<compile_context>
chip_gen: v7x
topology: tpu7x:2x2x1
jax: 0.10.0
libtpu: 0.0.40
codegen_flags: <defaults>
</compile_context>

<pallas_src>
import functools

import jax
import jax.numpy as jnp
from jax import lax
from jax.experimental import pallas as pl
from jax.experimental.pallas import tpu as pltpu


# ----------------------------------------------------------------------------
# Pallas kernels
# ----------------------------------------------------------------------------
def _mm_kernel(*refs, relu, has_res, multi_k):
    """Fused matmul: out = act((A @ B) * scale + bias [+ residual])."""
    if multi_k:
        refs, acc_ref = refs[:-1], refs[-1]
    o_ref = refs[-1]
    in_refs = refs[:-1]
    if has_res:
        a_ref, b_ref, s_ref, c_ref, r_ref = in_refs
    else:
        a_ref, b_ref, s_ref, c_ref = in_refs
        r_ref = None

    def epilogue(y):
        y = y * s_ref[...] + c_ref[...]
        if has_res:
            y = y + r_ref[...].astype(jnp.float32)
        if relu:
            y = jnp.maximum(y, 0.0)
        return y.astype(o_ref.dtype)

    if multi_k:
        @pl.when(pl.program_id(2) == 0)
        def _():
            acc_ref[...] = jnp.zeros_like(acc_ref)

        acc_ref[...] += jnp.dot(a_ref[...], b_ref[...],
                                preferred_element_type=jnp.float32)

        @pl.when(pl.program_id(2) == pl.num_programs(2) - 1)
        def _():
            o_ref[...] = epilogue(acc_ref[...])
    else:
        y = jnp.dot(a_ref[...], b_ref[...],
                    preferred_element_type=jnp.float32)
        o_ref[...] = epilogue(y)


def _window_max_kernel(x_ref, o_ref, *, num):
    r = x_ref[0]
    for i in range(1, num):
        r = jnp.maximum(r, x_ref[i])
    o_ref[...] = r


def _gap_kernel(x_ref, o_ref, *, inv):
    s = jnp.sum(x_ref[0].astype(jnp.float32), axis=0, keepdims=True)
    o_ref[0] = s * inv


# ----------------------------------------------------------------------------
# Tiling helpers
# ----------------------------------------------------------------------------
def _round_up(x, m):
    return ((x + m - 1) // m) * m


def _pick_m(m):
    mp = _round_up(m, 16)
    if mp <= 256:
        return mp, mp
    for t in (256, 128):
        if mp % t == 0:
            return t, mp
    return 128, _round_up(mp, 128)


def _pick_n(n):
    if n < 128:            # e.g. Cout=64 stem / num_classes: full-dim lane block
        return n, n
    for t in (256, 128):
        if n % t == 0:
            return t, n
    return 128, _round_up(n, 128)


def _pick_k(k):
    if k < 128:            # e.g. 1x1 conv with Cin=64: single full-dim K block
        return k, k
    for t in (512, 384, 256, 128):
        if k % t == 0:
            return t, k
    kp = _round_up(k, 128)
    for t in (256, 128):
        if kp % t == 0:
            return t, kp
    return 128, kp


# ----------------------------------------------------------------------------
# Fused matmul wrapper (conv / fc hot path)
# ----------------------------------------------------------------------------
def fused_matmul(a, b, scale, bias, *, relu, residual=None,
                 out_dtype=jnp.bfloat16):
    """out = act((a @ b) * scale + bias [+ residual]), bf16 MXU, f32 accum."""
    M, K = a.shape
    K2, N = b.shape
    assert K == K2
    tm, Mp = _pick_m(M)
    tn, Np = _pick_n(N)
    tk, Kp = _pick_k(K)

    a = a.astype(jnp.bfloat16)
    b = b.astype(jnp.bfloat16)
    if (Mp, Kp) != (M, K):
        a = jnp.pad(a, ((0, Mp - M), (0, Kp - K)))
    if (Kp, Np) != (K, N):
        b = jnp.pad(b, ((0, Kp - K), (0, Np - N)))
    s = scale.astype(jnp.float32).reshape(1, N)
    c = bias.astype(jnp.float32).reshape(1, N)
    if Np != N:
        s = jnp.pad(s, ((0, 0), (0, Np - N)))
        c = jnp.pad(c, ((0, 0), (0, Np - N)))

    inputs = [a, b, s, c]
    in_specs = [
        pl.BlockSpec((tm, tk), lambda i, j, k: (i, k)),
        pl.BlockSpec((tk, tn), lambda i, j, k: (k, j)),
        pl.BlockSpec((1, tn), lambda i, j, k: (0, j)),
        pl.BlockSpec((1, tn), lambda i, j, k: (0, j)),
    ]
    has_res = residual is not None
    if has_res:
        r = residual.astype(jnp.bfloat16)
        if (Mp, Np) != (M, N):
            r = jnp.pad(r, ((0, Mp - M), (0, Np - N)))
        inputs.append(r)
        in_specs.append(pl.BlockSpec((tm, tn), lambda i, j, k: (i, j)))

    kgrid = Kp // tk
    multi_k = kgrid > 1
    kernel = functools.partial(_mm_kernel, relu=relu, has_res=has_res,
                               multi_k=multi_k)
    scratch = [pltpu.VMEM((tm, tn), jnp.float32)] if multi_k else []

    out = pl.pallas_call(
        kernel,
        out_shape=jax.ShapeDtypeStruct((Mp, Np), out_dtype),
        grid_spec=pltpu.PrefetchScalarGridSpec(
            num_scalar_prefetch=0,
            grid=(Mp // tm, Np // tn, kgrid),
            in_specs=in_specs,
            out_specs=pl.BlockSpec((tm, tn), lambda i, j, k: (i, j)),
            scratch_shapes=scratch,
        ),
        compiler_params=pltpu.CompilerParams(
            dimension_semantics=("parallel", "parallel", "arbitrary")),
    )(*inputs)
    if (Mp, Np) != (M, N):
        out = out[:M, :N]
    return out


# ----------------------------------------------------------------------------
# Network ops
# ----------------------------------------------------------------------------
def _bn_fold(bn, eps=1e-5):
    scale = bn["gamma"] * lax.rsqrt(bn["var"] + eps)
    return scale, bn["beta"] - bn["mean"] * scale


def conv2d_bn_act(x, w, scale, bias, *, stride=1, padding=0, relu=True,
                  residual=None, out_dtype=jnp.bfloat16):
    """NHWC conv (no conv bias, matches resnet) fused with BN/ReLU/residual."""
    N, H, W, Cin = x.shape
    KH, KW, _, Cout = w.shape
    Ho = (H + 2 * padding - KH) // stride + 1
    Wo = (W + 2 * padding - KW) // stride + 1

    if KH == 1 and KW == 1 and padding == 0:
        if stride > 1:
            x = x[:, ::stride, ::stride, :]
        patches = x.reshape(N * Ho * Wo, Cin)
    else:
        # TODO(synk): im2col patch extraction done in plain JAX; folding the
        # KHxKW taps into the matmul K-grid via index_map would avoid this copy.
        xp = jnp.pad(x, ((0, 0), (padding, padding), (padding, padding),
                         (0, 0)))
        ps = []
        for kh in range(KH):
            for kw in range(KW):
                ps.append(xp[:, kh:kh + stride * Ho:stride,
                             kw:kw + stride * Wo:stride, :])
        patches = jnp.concatenate(ps, axis=-1).reshape(
            N * Ho * Wo, KH * KW * Cin)

    res2 = None if residual is None else residual.reshape(N * Ho * Wo, Cout)
    out = fused_matmul(patches, w.reshape(KH * KW * Cin, Cout), scale, bias,
                       relu=relu, residual=res2, out_dtype=out_dtype)
    return out.reshape(N, Ho, Wo, Cout)


def maxpool2d(x, kernel=3, stride=2, padding=1):
    N, H, W, C = x.shape
    xp = jnp.pad(x, ((0, 0), (padding, padding), (padding, padding), (0, 0)),
                 constant_values=-jnp.inf)
    Ho = (H + 2 * padding - kernel) // stride + 1
    Wo = (W + 2 * padding - kernel) // stride + 1
    wins = []
    for kh in range(kernel):
        for kw in range(kernel):
            wins.append(xp[:, kh:kh + stride * Ho:stride,
                           kw:kw + stride * Wo:stride, :])
    KK = kernel * kernel
    R = N * Ho * Wo
    stacked = jnp.stack(wins, axis=0).reshape(KK, R, C)
    tr = min(1024, _round_up(R, 16))
    Rp = _round_up(R, tr)
    if Rp != R:
        stacked = jnp.pad(stacked, ((0, 0), (0, Rp - R), (0, 0)))
    out = pl.pallas_call(
        functools.partial(_window_max_kernel, num=KK),
        out_shape=jax.ShapeDtypeStruct((Rp, C), x.dtype),
        grid_spec=pltpu.PrefetchScalarGridSpec(
            num_scalar_prefetch=0,
            grid=(Rp // tr,),
            in_specs=[pl.BlockSpec((KK, tr, C), lambda i: (0, i, 0))],
            out_specs=pl.BlockSpec((tr, C), lambda i: (i, 0)),
        ),
        compiler_params=pltpu.CompilerParams(
            dimension_semantics=("parallel",)),
    )(stacked)
    return out[:R].reshape(N, Ho, Wo, C)


def global_avgpool(x):
    N, H, W, C = x.shape
    hw = H * W
    x3 = x.reshape(N, hw, C)
    out = pl.pallas_call(
        functools.partial(_gap_kernel, inv=1.0 / hw),
        out_shape=jax.ShapeDtypeStruct((N, 1, C), jnp.float32),
        grid_spec=pltpu.PrefetchScalarGridSpec(
            num_scalar_prefetch=0,
            grid=(N,),
            in_specs=[pl.BlockSpec((1, hw, C), lambda n: (n, 0, 0))],
            out_specs=pl.BlockSpec((1, 1, C), lambda n: (n, 0, 0)),
        ),
        compiler_params=pltpu.CompilerParams(
            dimension_semantics=("parallel",)),
    )(x3)
    return out.reshape(N, C)


# ----------------------------------------------------------------------------
# ResNet-50 architecture
# ----------------------------------------------------------------------------
LAYER_CFG = ((64, 3, 1), (128, 4, 2), (256, 6, 2), (512, 3, 2))


def bottleneck(x, p, stride):
    s1, b1 = _bn_fold(p["bn1"])
    s2, b2 = _bn_fold(p["bn2"])
    s3, b3 = _bn_fold(p["bn3"])
    if "down_conv" in p:
        sd, bd = _bn_fold(p["down_bn"])
        identity = conv2d_bn_act(x, p["down_conv"], sd, bd, stride=stride,
                                 padding=0, relu=False)
    else:
        identity = x
    out = conv2d_bn_act(x, p["conv1"], s1, b1, stride=1, padding=0, relu=True)
    out = conv2d_bn_act(out, p["conv2"], s2, b2, stride=stride, padding=1,
                        relu=True)
    # conv3 + bn3 + residual add + ReLU fused into one matmul epilogue.
    out = conv2d_bn_act(out, p["conv3"], s3, b3, stride=1, padding=0,
                        relu=True, residual=identity)
    return out


def resnet50_forward(params, x_nchw):
    # NCHW (PyTorch convention) -> NHWC (kernel layout)
    x = jnp.transpose(x_nchw.astype(jnp.float32), (0, 2, 3, 1))
    s1, b1 = _bn_fold(params["bn1"])
    x = conv2d_bn_act(x, params["conv1"], s1, b1, stride=2, padding=3,
                      relu=True)
    x = maxpool2d(x, kernel=3, stride=2, padding=1)
    for li, (width, blocks, stride) in enumerate(LAYER_CFG):
        for bi in range(blocks):
            st = stride if bi == 0 else 1
            x = bottleneck(x, params["layers"][li][bi], st)
    feat = global_avgpool(x)                           # [N, 2048] f32
    nc = params["fc_w"].shape[1]
    # fc bias fused into the matmul epilogue (scale = 1).
    logits = fused_matmul(feat, params["fc_w"],
                          jnp.ones((nc,), jnp.float32), params["fc_b"],
                          relu=False, residual=None, out_dtype=jnp.float32)
    return logits


# ----------------------------------------------------------------------------
# Deterministic parameter init (synthetic; no checkpoint load)
# ----------------------------------------------------------------------------
def _he_conv(key, kh, kw, cin, cout):
    fan_in = kh * kw * cin
    return jax.random.normal(key, (kh, kw, cin, cout),
                             jnp.float32) * jnp.sqrt(2.0 / fan_in)


def _bn_init(key, c):
    k1, k2, k3, k4 = jax.random.split(key, 4)
    return {
        "gamma": 1.0 + 0.05 * jax.random.normal(k1, (c,), jnp.float32),
        "beta": 0.05 * jax.random.normal(k2, (c,), jnp.float32),
        "mean": 0.05 * jax.random.normal(k3, (c,), jnp.float32),
        "var": 1.0 + 0.05 * jax.random.uniform(k4, (c,), jnp.float32),
    }


def init_params(key, num_classes):
    keys = iter(jax.random.split(key, 512))
    nk = lambda: next(keys)
    params = {
        "conv1": _he_conv(nk(), 7, 7, 3, 64),
        "bn1": _bn_init(nk(), 64),
        "layers": [],
    }
    cin = 64
    for width, blocks, stride in LAYER_CFG:
        layer = []
        for bi in range(blocks):
            s = stride if bi == 0 else 1
            p = {
                "conv1": _he_conv(nk(), 1, 1, cin, width),
                "bn1": _bn_init(nk(), width),
                "conv2": _he_conv(nk(), 3, 3, width, width),
                "bn2": _bn_init(nk(), width),
                "conv3": _he_conv(nk(), 1, 1, width, width * 4),
                "bn3": _bn_init(nk(), width * 4),
            }
            if s != 1 or cin != width * 4:
                p["down_conv"] = _he_conv(nk(), 1, 1, cin, width * 4)
                p["down_bn"] = _bn_init(nk(), width * 4)
            layer.append(p)
            cin = width * 4
        params["layers"].append(layer)
    params["fc_w"] = jax.random.normal(
        nk(), (2048, num_classes), jnp.float32) / jnp.sqrt(2048.0)
    params["fc_b"] = jnp.zeros((num_classes,), jnp.float32)
    return params


# ----------------------------------------------------------------------------
if __name__ == "__main__":
    num_classes = 10
    key = jax.random.PRNGKey(0)
    pkey, xkey = jax.random.split(key)
    params = init_params(pkey, num_classes)
    # Small input consistent with the module: NCHW, 3 channels (resnet50 stem).
    x = jax.random.normal(xkey, (2, 3, 16, 16), jnp.float32)

    fwd = jax.jit(resnet50_forward)
    logits = jax.block_until_ready(fwd(params, x))

    assert logits.shape == (2, num_classes), logits.shape
    assert bool(jnp.all(jnp.isfinite(logits)))
    print("KERNEL_OK")
</pallas_src>

<mosaic_0001>
module attributes {stable_mosaic.version = 11 : i64} {
  func.func @_mm_kernel(%arg0: i32, %arg1: i32, %arg2: i32, %arg3: memref<128x256xbf16, #tpu.memory_space<vmem>>, %arg4: memref<256x64xbf16, #tpu.memory_space<vmem>>, %arg5: memref<1x64xf32, #tpu.memory_space<vmem>>, %arg6: memref<1x64xf32, #tpu.memory_space<vmem>>, %arg7: memref<128x64xbf16, #tpu.memory_space<vmem>>) attributes {dimension_semantics = [#tpu.dimension_semantics<parallel>, #tpu.dimension_semantics<parallel>, #tpu.dimension_semantics<arbitrary>], iteration_bounds = array<i64: 1, 1, 1>, scalar_prefetch = 0 : i64, scratch_operands = 0 : i64, tpu.core_type = #tpu.core_type<tc>, window_params = [{transform_indices = @transform_0, window_bounds = array<i64: 128, 256>}, {transform_indices = @transform_1, window_bounds = array<i64: 256, 64>}, {transform_indices = @transform_2, window_bounds = array<i64: 1, 64>}, {transform_indices = @transform_3, window_bounds = array<i64: 1, 64>}, {transform_indices = @transform_4, window_bounds = array<i64: 128, 64>}]} {
    %c0 = arith.constant 0 : index
    %c0_0 = arith.constant 0 : index
    %0 = vector.load %arg3[%c0, %c0_0] : memref<128x256xbf16, #tpu.memory_space<vmem>>, vector<128x256xbf16>
    %c0_1 = arith.constant 0 : index
    %c0_2 = arith.constant 0 : index
    %1 = vector.load %arg4[%c0_1, %c0_2] : memref<256x64xbf16, #tpu.memory_space<vmem>>, vector<256x64xbf16>
    %cst = arith.constant dense<0.000000e+00> : vector<128x64xf32>
    %2 = tpu.matmul %0, %1, %cst {dimension_numbers = #tpu.dot_dimension_numbers<[1], [0], [0], [1], [0, 0, 1, 1], [], []>} : vector<128x256xbf16>, vector<256x64xbf16>, vector<128x64xf32> -> vector<128x64xf32>
    %c0_3 = arith.constant 0 : index
    %c0_4 = arith.constant 0 : index
    %3 = vector.load %arg5[%c0_3, %c0_4] : memref<1x64xf32, #tpu.memory_space<vmem>>, vector<1x64xf32>
    %4 = vector.broadcast %3 : vector<1x64xf32> to vector<128x64xf32>
    %5 = arith.mulf %2, %4 : vector<128x64xf32>
    %c0_5 = arith.constant 0 : index
    %c0_6 = arith.constant 0 : index
    %6 = vector.load %arg6[%c0_5, %c0_6] : memref<1x64xf32, #tpu.memory_space<vmem>>, vector<1x64xf32>
    %7 = vector.broadcast %6 : vector<1x64xf32> to vector<128x64xf32>
    %8 = arith.addf %5, %7 : vector<128x64xf32>
    %cst_7 = arith.constant 0.000000e+00 : f32
    %9 = vector.broadcast %cst_7 : f32 to vector<128x64xf32>
    %10 = arith.maximumf %8, %9 : vector<128x64xf32>
    %11 = arith.truncf %10 : vector<128x64xf32> to vector<128x64xbf16>
    %c0_8 = arith.constant 0 : index
    %c0_9 = arith.constant 0 : index
    %12 = vector.load %arg7[%c0_8, %c0_9] : memref<128x64xbf16, #tpu.memory_space<vmem>>, vector<128x64xbf16>
    tpu.vector_store %arg7[%c0_8, %c0_9], %11 {strides = array<i32>} : memref<128x64xbf16, #tpu.memory_space<vmem>>, vector<128x64xbf16>,
    return
  }
  func.func @transform_0(%arg0: i32, %arg1: i32, %arg2: i32) -> (i32, i32) {
    %c0_i32 = arith.constant 0 : i32
    return %arg0, %arg2 : i32, i32
  }
  func.func @transform_1(%arg0: i32, %arg1: i32, %arg2: i32) -> (i32, i32) {
    %c0_i32 = arith.constant 0 : i32
    return %arg2, %arg1 : i32, i32
  }
  func.func @transform_2(%arg0: i32, %arg1: i32, %arg2: i32) -> (i32, i32) {
    %c0_i32 = arith.constant 0 : i32
    %c0_i32_0 = arith.constant 0 : i32
    return %c0_i32, %arg1 : i32, i32
  }
  func.func @transform_3(%arg0: i32, %arg1: i32, %arg2: i32) -> (i32, i32) {
    %c0_i32 = arith.constant 0 : i32
    %c0_i32_0 = arith.constant 0 : i32
    return %c0_i32, %arg1 : i32, i32
  }
  func.func @transform_4(%arg0: i32, %arg1: i32, %arg2: i32) -> (i32, i32) {
    %c0_i32 = arith.constant 0 : i32
    return %arg0, %arg1 : i32, i32
  }
}

module attributes {stable_mosaic.version = 11 : i64} {
  func.func @_window_max_kernel(%arg0: i32, %arg1: memref<9x32x64xbf16, #tpu.memory_space<vmem>>, %arg2: memref<32x64xbf16, #tpu.memory_space<vmem>>) attributes {dimension_semantics = [#tpu.dimension_semantics<parallel>], iteration_bounds = array<i64: 1>, scalar_prefetch = 0 : i64, scratch_operands = 0 : i64, tpu.core_type = #tpu.core_type<tc>, window_params = [{transform_indices = @transform_0, window_bounds = array<i64: 9, 32, 64>}, {transform_indices = @transform_1, window_bounds = array<i64: 32, 64>}]} {
    %c0 = arith.constant 0 : index
    %c0_0 = arith.constant 0 : index
    %c0_1 = arith.constant 0 : index
    %0 = vector.load %arg1[%c0, %c0_0, %c0_1] : memref<9x32x64xbf16, #tpu.memory_space<vmem>>, vector<1x32x64xbf16>
    %1 = vector.shape_cast %0 : vector<1x32x64xbf16> to vector<32x64xbf16>
    %c1 = arith.constant 1 : index
    %c0_2 = arith.constant 0 : index
    %c0_3 = arith.constant 0 : index
    %2 = vector.load %arg1[%c1, %c0_2, %c0_3] : memref<9x32x64xbf16, #tpu.memory_space<vmem>>, vector<1x32x64xbf16>
    %3 = vector.shape_cast %2 : vector<1x32x64xbf16> to vector<32x64xbf16>
    %4 = arith.maximumf %1, %3 : vector<32x64xbf16>
    %c2 = arith.constant 2 : index
    %c0_4 = arith.constant 0 : index
    %c0_5 = arith.constant 0 : index
    %5 = vector.load %arg1[%c2, %c0_4, %c0_5] : memref<9x32x64xbf16, #tpu.memory_space<vmem>>, vector<1x32x64xbf16>
    %6 = vector.shape_cast %5 : vector<1x32x64xbf16> to vector<32x64xbf16>
    %7 = arith.maximumf %4, %6 : vector<32x64xbf16>
    %c3 = arith.constant 3 : index
    %c0_6 = arith.constant 0 : index
    %c0_7 = arith.constant 0 : index
    %8 = vector.load %arg1[%c3, %c0_6, %c0_7] : memref<9x32x64xbf16, #tpu.memory_space<vmem>>, vector<1x32x64xbf16>
    %9 = vector.shape_cast %8 : vector<1x32x64xbf16> to vector<32x64xbf16>
    %10 = arith.maximumf %7, %9 : vector<32x64xbf16>
    %c4 = arith.constant 4 : index
    %c0_8 = arith.constant 0 : index
    %c0_9 = arith.constant 0 : index
    %11 = vector.load %arg1[%c4, %c0_8, %c0_9] : memref<9x32x64xbf16, #tpu.memory_space<vmem>>, vector<1x32x64xbf16>
    %12 = vector.shape_cast %11 : vector<1x32x64xbf16> to vector<32x64xbf16>
    %13 = arith.maximumf %10, %12 : vector<32x64xbf16>
    %c5 = arith.constant 5 : index
    %c0_10 = arith.constant 0 : index
    %c0_11 = arith.constant 0 : index
    %14 = vector.load %arg1[%c5, %c0_10, %c0_11] : memref<9x32x64xbf16, #tpu.memory_space<vmem>>, vector<1x32x64xbf16>
    %15 = vector.shape_cast %14 : vector<1x32x64xbf16> to vector<32x64xbf16>
    %16 = arith.maximumf %13, %15 : vector<32x64xbf16>
    %c6 = arith.constant 6 : index
    %c0_12 = arith.constant 0 : index
    %c0_13 = arith.constant 0 : index
    %17 = vector.load %arg1[%c6, %c0_12, %c0_13] : memref<9x32x64xbf16, #tpu.memory_space<vmem>>, vector<1x32x64xbf16>
    %18 = vector.shape_cast %17 : vector<1x32x64xbf16> to vector<32x64xbf16>
    %19 = arith.maximumf %16, %18 : vector<32x64xbf16>
    %c7 = arith.constant 7 : index
    %c0_14 = arith.constant 0 : index
    %c0_15 = arith.constant 0 : index
    %20 = vector.load %arg1[%c7, %c0_14, %c0_15] : memref<9x32x64xbf16, #tpu.memory_space<vmem>>, vector<1x32x64xbf16>
    %21 = vector.shape_cast %20 : vector<1x32x64xbf16> to vector<32x64xbf16>
    %22 = arith.maximumf %19, %21 : vector<32x64xbf16>
    %c8 = arith.constant 8 : index
    %c0_16 = arith.constant 0 : index
    %c0_17 = arith.constant 0 : index
    %23 = vector.load %arg1[%c8, %c0_16, %c0_17] : memref<9x32x64xbf16, #tpu.memory_space<vmem>>, vector<1x32x64xbf16>
    %24 = vector.shape_cast %23 : vector<1x32x64xbf16> to vector<32x64xbf16>
    %25 = arith.maximumf %22, %24 : vector<32x64xbf16>
    %c0_18 = arith.constant 0 : index
    %c0_19 = arith.constant 0 : index
    %26 = vector.load %arg2[%c0_18, %c0_19] : memref<32x64xbf16, #tpu.memory_space<vmem>>, vector<32x64xbf16>
    tpu.vector_store %arg2[%c0_18, %c0_19], %25 {strides = array<i32>} : memref<32x64xbf16, #tpu.memory_space<vmem>>, vector<32x64xbf16>,
    return
  }
  func.func @transform_0(%arg0: i32) -> (i32, i32, i32) {
    %c0_i32 = arith.constant 0 : i32
    %c0_i32_0 = arith.constant 0 : i32
    %c0_i32_1 = arith.constant 0 : i32
    return %c0_i32, %arg0, %c0_i32_0 : i32, i32, i32
  }
  func.func @transform_1(%arg0: i32) -> (i32, i32) {
    %c0_i32 = arith.constant 0 : i32
    %c0_i32_0 = arith.constant 0 : i32
    return %arg0, %c0_i32 : i32, i32
  }
}

module attributes {stable_mosaic.version = 11 : i64} {
  func.func @_mm_kernel(%arg0: i32, %arg1: i32, %arg2: i32, %arg3: memref<32x64xbf16, #tpu.memory_space<vmem>>, %arg4: memref<64x64xbf16, #tpu.memory_space<vmem>>, %arg5: memref<1x64xf32, #tpu.memory_space<vmem>>, %arg6: memref<1x64xf32, #tpu.memory_space<vmem>>, %arg7: memref<32x64xbf16, #tpu.memory_space<vmem>>) attributes {dimension_semantics = [#tpu.dimension_semantics<parallel>, #tpu.dimension_semantics<parallel>, #tpu.dimension_semantics<arbitrary>], iteration_bounds = array<i64: 1, 1, 1>, scalar_prefetch = 0 : i64, scratch_operands = 0 : i64, tpu.core_type = #tpu.core_type<tc>, window_params = [{transform_indices = @transform_0, window_bounds = array<i64: 32, 64>}, {transform_indices = @transform_1, window_bounds = array<i64: 64, 64>}, {transform_indices = @transform_2, window_bounds = array<i64: 1, 64>}, {transform_indices = @transform_3, window_bounds = array<i64: 1, 64>}, {transform_indices = @transform_4, window_bounds = array<i64: 32, 64>}]} {
    %c0 = arith.constant 0 : index
    %c0_0 = arith.constant 0 : index
    %0 = vector.load %arg3[%c0, %c0_0] : memref<32x64xbf16, #tpu.memory_space<vmem>>, vector<32x64xbf16>
    %c0_1 = arith.constant 0 : index
    %c0_2 = arith.constant 0 : index
    %1 = vector.load %arg4[%c0_1, %c0_2] : memref<64x64xbf16, #tpu.memory_space<vmem>>, vector<64x64xbf16>
    %cst = arith.constant dense<0.000000e+00> : vector<32x64xf32>
    %2 = tpu.matmul %0, %1, %cst {dimension_numbers = #tpu.dot_dimension_numbers<[1], [0], [0], [1], [0, 0, 1, 1], [], []>} : vector<32x64xbf16>, vector<64x64xbf16>, vector<32x64xf32> -> vector<32x64xf32>
    %c0_3 = arith.constant 0 : index
    %c0_4 = arith.constant 0 : index
    %3 = vector.load %arg5[%c0_3, %c0_4] : memref<1x64xf32, #tpu.memory_space<vmem>>, vector<1x64xf32>
    %4 = vector.broadcast %3 : vector<1x64xf32> to vector<32x64xf32>
    %5 = arith.mulf %2, %4 : vector<32x64xf32>
    %c0_5 = arith.constant 0 : index
    %c0_6 = arith.constant 0 : index
    %6 = vector.load %arg6[%c0_5, %c0_6] : memref<1x64xf32, #tpu.memory_space<vmem>>, vector<1x64xf32>
    %7 = vector.broadcast %6 : vector<1x64xf32> to vector<32x64xf32>
    %8 = arith.addf %5, %7 : vector<32x64xf32>
    %cst_7 = arith.constant 0.000000e+00 : f32
    %9 = vector.broadcast %cst_7 : f32 to vector<32x64xf32>
    %10 = arith.maximumf %8, %9 : vector<32x64xf32>
    %11 = arith.truncf %10 : vector<32x64xf32> to vector<32x64xbf16>
    %c0_8 = arith.constant 0 : index
    %c0_9 = arith.constant 0 : index
    %12 = vector.load %arg7[%c0_8, %c0_9] : memref<32x64xbf16, #tpu.memory_space<vmem>>, vector<32x64xbf16>
    tpu.vector_store %arg7[%c0_8, %c0_9], %11 {strides = array<i32>} : memref<32x64xbf16, #tpu.memory_space<vmem>>, vector<32x64xbf16>,
    return
  }
  func.func @transform_0(%arg0: i32, %arg1: i32, %arg2: i32) -> (i32, i32) {
    %c0_i32 = arith.constant 0 : i32
    return %arg0, %arg2 : i32, i32
  }
  func.func @transform_1(%arg0: i32, %arg1: i32, %arg2: i32) -> (i32, i32) {
    %c0_i32 = arith.constant 0 : i32
    return %arg2, %arg1 : i32, i32
  }
  func.func @transform_2(%arg0: i32, %arg1: i32, %arg2: i32) -> (i32, i32) {
    %c0_i32 = arith.constant 0 : i32
    %c0_i32_0 = arith.constant 0 : i32
    return %c0_i32, %arg1 : i32, i32
  }
  func.func @transform_3(%arg0: i32, %arg1: i32, %arg2: i32) -> (i32, i32) {
    %c0_i32 = arith.constant 0 : i32
    %c0_i32_0 = arith.constant 0 : i32
    return %c0_i32, %arg1 : i32, i32
  }
  func.func @transform_4(%arg0: i32, %arg1: i32, %arg2: i32) -> (i32, i32) {
    %c0_i32 = arith.constant 0 : i32
    return %arg0, %arg1 : i32, i32
  }
}

module attributes {stable_mosaic.version = 11 : i64} {
  func.func @_mm_kernel(%arg0: i32, %arg1: i32, %arg2: i32, %arg3: memref<32x64xbf16, #tpu.memory_space<vmem>>, %arg4: memref<64x256xbf16, #tpu.memory_space<vmem>>, %arg5: memref<1x256xf32, #tpu.memory_space<vmem>>, %arg6: memref<1x256xf32, #tpu.memory_space<vmem>>, %arg7: memref<32x256xbf16, #tpu.memory_space<vmem>>) attributes {dimension_semantics = [#tpu.dimension_semantics<parallel>, #tpu.dimension_semantics<parallel>, #tpu.dimension_semantics<arbitrary>], iteration_bounds = array<i64: 1, 1, 1>, scalar_prefetch = 0 : i64, scratch_operands = 0 : i64, tpu.core_type = #tpu.core_type<tc>, window_params = [{transform_indices = @transform_0, window_bounds = array<i64: 32, 64>}, {transform_indices = @transform_1, window_bounds = array<i64: 64, 256>}, {transform_indices = @transform_2, window_bounds = array<i64: 1, 256>}, {transform_indices = @transform_3, window_bounds = array<i64: 1, 256>}, {transform_indices = @transform_4, window_bounds = array<i64: 32, 256>}]} {
    %c0 = arith.constant 0 : index
    %c0_0 = arith.constant 0 : index
    %0 = vector.load %arg3[%c0, %c0_0] : memref<32x64xbf16, #tpu.memory_space<vmem>>, vector<32x64xbf16>
    %c0_1 = arith.constant 0 : index
    %c0_2 = arith.constant 0 : index
    %1 = vector.load %arg4[%c0_1, %c0_2] : memref<64x256xbf16, #tpu.memory_space<vmem>>, vector<64x256xbf16>
    %cst = arith.constant dense<0.000000e+00> : vector<32x256xf32>
    %2 = tpu.matmul %0, %1, %cst {dimension_numbers = #tpu.dot_dimension_numbers<[1], [0], [0], [1], [0, 0, 1, 1], [], []>} : vector<32x64xbf16>, vector<64x256xbf16>, vector<32x256xf32> -> vector<32x256xf32>
    %c0_3 = arith.constant 0 : index
    %c0_4 = arith.constant 0 : index
    %3 = vector.load %arg5[%c0_3, %c0_4] : memref<1x256xf32, #tpu.memory_space<vmem>>, vector<1x256xf32>
    %4 = vector.broadcast %3 : vector<1x256xf32> to vector<32x256xf32>
    %5 = arith.mulf %2, %4 : vector<32x256xf32>
    %c0_5 = arith.constant 0 : index
    %c0_6 = arith.constant 0 : index
    %6 = vector.load %arg6[%c0_5, %c0_6] : memref<1x256xf32, #tpu.memory_space<vmem>>, vector<1x256xf32>
    %7 = vector.broadcast %6 : vector<1x256xf32> to vector<32x256xf32>
    %8 = arith.addf %5, %7 : vector<32x256xf32>
    %9 = arith.truncf %8 : vector<32x256xf32> to vector<32x256xbf16>
    %c0_7 = arith.constant 0 : index
    %c0_8 = arith.constant 0 : index
    %10 = vector.load %arg7[%c0_7, %c0_8] : memref<32x256xbf16, #tpu.memory_space<vmem>>, vector<32x256xbf16>
    tpu.vector_store %arg7[%c0_7, %c0_8], %9 {strides = array<i32>} : memref<32x256xbf16, #tpu.memory_space<vmem>>, vector<32x256xbf16>,
    return
  }
  func.func @transform_0(%arg0: i32, %arg1: i32, %arg2: i32) -> (i32, i32) {
    %c0_i32 = arith.constant 0 : i32
    return %arg0, %arg2 : i32, i32
  }
  func.func @transform_1(%arg0: i32, %arg1: i32, %arg2: i32) -> (i32, i32) {
    %c0_i32 = arith.constant 0 : i32
    return %arg2, %arg1 : i32, i32
  }
  func.func @transform_2(%arg0: i32, %arg1: i32, %arg2: i32) -> (i32, i32) {
    %c0_i32 = arith.constant 0 : i32
    %c0_i32_0 = arith.constant 0 : i32
    return %c0_i32, %arg1 : i32, i32
  }
  func.func @transform_3(%arg0: i32, %arg1: i32, %arg2: i32) -> (i32, i32) {
    %c0_i32 = arith.constant 0 : i32
    %c0_i32_0 = arith.constant 0 : i32
    return %c0_i32, %arg1 : i32, i32
  }
  func.func @transform_4(%arg0: i32, %arg1: i32, %arg2: i32) -> (i32, i32) {
    %c0_i32 = arith.constant 0 : i32
    return %arg0, %arg1 : i32, i32
  }
}

module attributes {stable_mosaic.version = 11 : i64} {
  func.func @_mm_kernel(%arg0: i32, %arg1: i32, %arg2: i32, %arg3: memref<32x128xbf16, #tpu.memory_space<vmem>>, %arg4: memref<128x64xbf16, #tpu.memory_space<vmem>>, %arg5: memref<1x64xf32, #tpu.memory_space<vmem>>, %arg6: memref<1x64xf32, #tpu.memory_space<vmem>>, %arg7: memref<32x64xbf16, #tpu.memory_space<vmem>>, %arg8: memref<32x64xf32, #tpu.memory_space<vmem>>) attributes {dimension_semantics = [#tpu.dimension_semantics<parallel>, #tpu.dimension_semantics<parallel>, #tpu.dimension_semantics<arbitrary>], iteration_bounds = array<i64: 1, 1, 5>, scalar_prefetch = 0 : i64, scratch_operands = 1 : i64, tpu.core_type = #tpu.core_type<tc>, window_params = [{transform_indices = @transform_0, window_bounds = array<i64: 32, 128>}, {transform_indices = @transform_1, window_bounds = array<i64: 128, 64>}, {transform_indices = @transform_2, window_bounds = array<i64: 1, 64>}, {transform_indices = @transform_3, window_bounds = array<i64: 1, 64>}, {transform_indices = @transform_4, window_bounds = array<i64: 32, 64>}]} {
    %c0_i32 = arith.constant 0 : i32
    %0 = arith.cmpi eq, %arg2, %c0_i32 : i32
    %1 = arith.extui %0 : i1 to i32
    %c0_i32_0 = arith.constant 0 : i32
    %2 = arith.cmpi ne, %1, %c0_i32_0 : i32
    scf.if %2 {
      %cst_9 = arith.constant 0.000000e+00 : f32
      %12 = vector.broadcast %cst_9 : f32 to vector<32x64xf32>
      %c0_10 = arith.constant 0 : index
      %c0_11 = arith.constant 0 : index
      %13 = vector.load %arg8[%c0_10, %c0_11] : memref<32x64xf32, #tpu.memory_space<vmem>>, vector<32x64xf32>
      tpu.vector_store %arg8[%c0_10, %c0_11], %12 {strides = array<i32>} : memref<32x64xf32, #tpu.memory_space<vmem>>, vector<32x64xf32>,
    } else {
    }
    %c0 = arith.constant 0 : index
    %c0_1 = arith.constant 0 : index
    %3 = vector.load %arg8[%c0, %c0_1] : memref<32x64xf32, #tpu.memory_space<vmem>>, vector<32x64xf32>
    %c0_2 = arith.constant 0 : index
    %c0_3 = arith.constant 0 : index
    %4 = vector.load %arg3[%c0_2, %c0_3] : memref<32x128xbf16, #tpu.memory_space<vmem>>, vector<32x128xbf16>
    %c0_4 = arith.constant 0 : index
    %c0_5 = arith.constant 0 : index
    %5 = vector.load %arg4[%c0_4, %c0_5] : memref<128x64xbf16, #tpu.memory_space<vmem>>, vector<128x64xbf16>
    %cst = arith.constant dense<0.000000e+00> : vector<32x64xf32>
    %6 = tpu.matmul %4, %5, %cst {dimension_numbers = #tpu.dot_dimension_numbers<[1], [0], [0], [1], [0, 0, 1, 1], [], []>} : vector<32x128xbf16>, vector<128x64xbf16>, vector<32x64xf32> -> vector<32x64xf32>
    %7 = arith.addf %3, %6 : vector<32x64xf32>
    %c0_6 = arith.constant 0 : index
    %c0_7 = arith.constant 0 : index
    %8 = vector.load %arg8[%c0_6, %c0_7] : memref<32x64xf32, #tpu.memory_space<vmem>>, vector<32x64xf32>
    tpu.vector_store %arg8[%c0_6, %c0_7], %7 {strides = array<i32>} : memref<32x64xf32, #tpu.memory_space<vmem>>, vector<32x64xf32>,
    %c4_i32 = arith.constant 4 : i32
    %9 = arith.cmpi eq, %arg2, %c4_i32 : i32
    %10 = arith.extui %9 : i1 to i32
    %c0_i32_8 = arith.constant 0 : i32
    %11 = arith.cmpi ne, %10, %c0_i32_8 : i32
    scf.if %11 {
      %c0_9 = arith.constant 0 : index
      %c0_10 = arith.constant 0 : index
      %12 = vector.load %arg8[%c0_9, %c0_10] : memref<32x64xf32, #tpu.memory_space<vmem>>, vector<32x64xf32>
      %c0_11 = arith.constant 0 : index
      %c0_12 = arith.constant 0 : index
      %13 = vector.load %arg5[%c0_11, %c0_12] : memref<1x64xf32, #tpu.memory_space<vmem>>, vector<1x64xf32>
      %14 = vector.broadcast %13 : vector<1x64xf32> to vector<32x64xf32>
      %15 = arith.mulf %12, %14 : vector<32x64xf32>
      %c0_13 = arith.constant 0 : index
      %c0_14 = arith.constant 0 : index
      %16 = vector.load %arg6[%c0_13, %c0_14] : memref<1x64xf32, #tpu.memory_space<vmem>>, vector<1x64xf32>
      %17 = vector.broadcast %16 : vector<1x64xf32> to vector<32x64xf32>
      %18 = arith.addf %15, %17 : vector<32x64xf32>
      %cst_15 = arith.constant 0.000000e+00 : f32
      %19 = vector.broadcast %cst_15 : f32 to vector<32x64xf32>
      %20 = arith.maximumf %18, %19 : vector<32x64xf32>
      %21 = arith.truncf %20 : vector<32x64xf32> to vector<32x64xbf16>
      %c0_16 = arith.constant 0 : index
      %c0_17 = arith.constant 0 : index
      %22 = vector.load %arg7[%c0_16, %c0_17] : memref<32x64xbf16, #tpu.memory_space<vmem>>, vector<32x64xbf16>
      tpu.vector_store %arg7[%c0_16, %c0_17], %21 {strides = array<i32>} : memref<32x64xbf16, #tpu.memory_space<vmem>>, vector<32x64xbf16>,
    } else {
    }
    return
  }
  func.func @transform_0(%arg0: i32, %arg1: i32, %arg2: i32) -> (i32, i32) {
    %c0_i32 = arith.constant 0 : i32
    return %arg0, %arg2 : i32, i32
  }
  func.func @transform_1(%arg0: i32, %arg1: i32, %arg2: i32) -> (i32, i32) {
    %c0_i32 = arith.constant 0 : i32
    return %arg2, %arg1 : i32, i32
  }
  func.func @transform_2(%arg0: i32, %arg1: i32, %arg2: i32) -> (i32, i32) {
    %c0_i32 = arith.constant 0 : i32
    %c0_i32_0 = arith.constant 0 : i32
    return %c0_i32, %arg1 : i32, i32
  }
  func.func @transform_3(%arg0: i32, %arg1: i32, %arg2: i32) -> (i32, i32) {
    %c0_i32 = arith.constant 0 : i32
    %c0_i32_0 = arith.constant 0 : i32
    return %c0_i32, %arg1 : i32, i32
  }
  func.func @transform_4(%arg0: i32, %arg1: i32, %arg2: i32) -> (i32, i32) {
    %c0_i32 = arith.constant 0 : i32
    return %arg0, %arg1 : i32, i32
  }
}

module attributes {stable_mosaic.version = 11 : i64} {
  func.func @_mm_kernel(%arg0: i32, %arg1: i32, %arg2: i32, %arg3: memref<32x256xbf16, #tpu.memory_space<vmem>>, %arg4: memref<256x64xbf16, #tpu.memory_space<vmem>>, %arg5: memref<1x64xf32, #tpu.memory_space<vmem>>, %arg6: memref<1x64xf32, #tpu.memory_space<vmem>>, %arg7: memref<32x64xbf16, #tpu.memory_space<vmem>>) attributes {dimension_semantics = [#tpu.dimension_semantics<parallel>, #tpu.dimension_semantics<parallel>, #tpu.dimension_semantics<arbitrary>], iteration_bounds = array<i64: 1, 1, 1>, scalar_prefetch = 0 : i64, scratch_operands = 0 : i64, tpu.core_type = #tpu.core_type<tc>, window_params = [{transform_indices = @transform_0, window_bounds = array<i64: 32, 256>}, {transform_indices = @transform_1, window_bounds = array<i64: 256, 64>}, {transform_indices = @transform_2, window_bounds = array<i64: 1, 64>}, {transform_indices = @transform_3, window_bounds = array<i64: 1, 64>}, {transform_indices = @transform_4, window_bounds = array<i64: 32, 64>}]} {
    %c0 = arith.constant 0 : index
    %c0_0 = arith.constant 0 : index
    %0 = vector.load %arg3[%c0, %c0_0] : memref<32x256xbf16, #tpu.memory_space<vmem>>, vector<32x256xbf16>
    %c0_1 = arith.constant 0 : index
    %c0_2 = arith.constant 0 : index
    %1 = vector.load %arg4[%c0_1, %c0_2] : memref<256x64xbf16, #tpu.memory_space<vmem>>, vector<256x64xbf16>
    %cst = arith.constant dense<0.000000e+00> : vector<32x64xf32>
    %2 = tpu.matmul %0, %1, %cst {dimension_numbers = #tpu.dot_dimension_numbers<[1], [0], [0], [1], [0, 0, 1, 1], [], []>} : vector<32x256xbf16>, vector<256x64xbf16>, vector<32x64xf32> -> vector<32x64xf32>
    %c0_3 = arith.constant 0 : index
    %c0_4 = arith.constant 0 : index
    %3 = vector.load %arg5[%c0_3, %c0_4] : memref<1x64xf32, #tpu.memory_space<vmem>>, vector<1x64xf32>
    %4 = vector.broadcast %3 : vector<1x64xf32> to vector<32x64xf32>
    %5 = arith.mulf %2, %4 : vector<32x64xf32>
    %c0_5 = arith.constant 0 : index
    %c0_6 = arith.constant 0 : index
    %6 = vector.load %arg6[%c0_5, %c0_6] : memref<1x64xf32, #tpu.memory_space<vmem>>, vector<1x64xf32>
    %7 = vector.broadcast %6 : vector<1x64xf32> to vector<32x64xf32>
    %8 = arith.addf %5, %7 : vector<32x64xf32>
    %cst_7 = arith.constant 0.000000e+00 : f32
    %9 = vector.broadcast %cst_7 : f32 to vector<32x64xf32>
    %10 = arith.maximumf %8, %9 : vector<32x64xf32>
    %11 = arith.truncf %10 : vector<32x64xf32> to vector<32x64xbf16>
    %c0_8 = arith.constant 0 : index
    %c0_9 = arith.constant 0 : index
    %12 = vector.load %arg7[%c0_8, %c0_9] : memref<32x64xbf16, #tpu.memory_space<vmem>>, vector<32x64xbf16>
    tpu.vector_store %arg7[%c0_8, %c0_9], %11 {strides = array<i32>} : memref<32x64xbf16, #tpu.memory_space<vmem>>, vector<32x64xbf16>,
    return
  }
  func.func @transform_0(%arg0: i32, %arg1: i32, %arg2: i32) -> (i32, i32) {
    %c0_i32 = arith.constant 0 : i32
    return %arg0, %arg2 : i32, i32
  }
  func.func @transform_1(%arg0: i32, %arg1: i32, %arg2: i32) -> (i32, i32) {
    %c0_i32 = arith.constant 0 : i32
    return %arg2, %arg1 : i32, i32
  }
  func.func @transform_2(%arg0: i32, %arg1: i32, %arg2: i32) -> (i32, i32) {
    %c0_i32 = arith.constant 0 : i32
    %c0_i32_0 = arith.constant 0 : i32
    return %c0_i32, %arg1 : i32, i32
  }
  func.func @transform_3(%arg0: i32, %arg1: i32, %arg2: i32) -> (i32, i32) {
    %c0_i32 = arith.constant 0 : i32
    %c0_i32_0 = arith.constant 0 : i32
    return %c0_i32, %arg1 : i32, i32
  }
  func.func @transform_4(%arg0: i32, %arg1: i32, %arg2: i32) -> (i32, i32) {
    %c0_i32 = arith.constant 0 : i32
    return %arg0, %arg1 : i32, i32
  }
}

module attributes {stable_mosaic.version = 11 : i64} {
  func.func @_mm_kernel(%arg0: i32, %arg1: i32, %arg2: i32, %arg3: memref<32x64xbf16, #tpu.memory_space<vmem>>, %arg4: memref<64x256xbf16, #tpu.memory_space<vmem>>, %arg5: memref<1x256xf32, #tpu.memory_space<vmem>>, %arg6: memref<1x256xf32, #tpu.memory_space<vmem>>, %arg7: memref<32x256xbf16, #tpu.memory_space<vmem>>, %arg8: memref<32x256xbf16, #tpu.memory_space<vmem>>) attributes {dimension_semantics = [#tpu.dimension_semantics<parallel>, #tpu.dimension_semantics<parallel>, #tpu.dimension_semantics<arbitrary>], iteration_bounds = array<i64: 1, 1, 1>, scalar_prefetch = 0 : i64, scratch_operands = 0 : i64, tpu.core_type = #tpu.core_type<tc>, window_params = [{transform_indices = @transform_0, window_bounds = array<i64: 32, 64>}, {transform_indices = @transform_1, window_bounds = array<i64: 64, 256>}, {transform_indices = @transform_2, window_bounds = array<i64: 1, 256>}, {transform_indices = @transform_3, window_bounds = array<i64: 1, 256>}, {transform_indices = @transform_4, window_bounds = array<i64: 32, 256>}, {transform_indices = @transform_5, window_bounds = array<i64: 32, 256>}]} {
    %c0 = arith.constant 0 : index
    %c0_0 = arith.constant 0 : index
    %0 = vector.load %arg3[%c0, %c0_0] : memref<32x64xbf16, #tpu.memory_space<vmem>>, vector<32x64xbf16>
    %c0_1 = arith.constant 0 : index
    %c0_2 = arith.constant 0 : index
    %1 = vector.load %arg4[%c0_1, %c0_2] : memref<64x256xbf16, #tpu.memory_space<vmem>>, vector<64x256xbf16>
    %cst = arith.constant dense<0.000000e+00> : vector<32x256xf32>
    %2 = tpu.matmul %0, %1, %cst {dimension_numbers = #tpu.dot_dimension_numbers<[1], [0], [0], [1], [0, 0, 1, 1], [], []>} : vector<32x64xbf16>, vector<64x256xbf16>, vector<32x256xf32> -> vector<32x256xf32>
    %c0_3 = arith.constant 0 : index
    %c0_4 = arith.constant 0 : index
    %3 = vector.load %arg5[%c0_3, %c0_4] : memref<1x256xf32, #tpu.memory_space<vmem>>, vector<1x256xf32>
    %4 = vector.broadcast %3 : vector<1x256xf32> to vector<32x256xf32>
    %5 = arith.mulf %2, %4 : vector<32x256xf32>
    %c0_5 = arith.constant 0 : index
    %c0_6 = arith.constant 0 : index
    %6 = vector.load %arg6[%c0_5, %c0_6] : memref<1x256xf32, #tpu.memory_space<vmem>>, vector<1x256xf32>
    %7 = vector.broadcast %6 : vector<1x256xf32> to vector<32x256xf32>
    %8 = arith.addf %5, %7 : vector<32x256xf32>
    %c0_7 = arith.constant 0 : index
    %c0_8 = arith.constant 0 : index
    %9 = vector.load %arg7[%c0_7, %c0_8] : memref<32x256xbf16, #tpu.memory_space<vmem>>, vector<32x256xbf16>
    %10 = arith.extf %9 : vector<32x256xbf16> to vector<32x256xf32>
    %11 = arith.addf %8, %10 : vector<32x256xf32>
    %cst_9 = arith.constant 0.000000e+00 : f32
    %12 = vector.broadcast %cst_9 : f32 to vector<32x256xf32>
    %13 = arith.maximumf %11, %12 : vector<32x256xf32>
    %14 = arith.truncf %13 : vector<32x256xf32> to vector<32x256xbf16>
    %c0_10 = arith.constant 0 : index
    %c0_11 = arith.constant 0 : index
    %15 = vector.load %arg8[%c0_10, %c0_11] : memref<32x256xbf16, #tpu.memory_space<vmem>>, vector<32x256xbf16>
    tpu.vector_store %arg8[%c0_10, %c0_11], %14 {strides = array<i32>} : memref<32x256xbf16, #tpu.memory_space<vmem>>, vector<32x256xbf16>,
    return
  }
  func.func @transform_0(%arg0: i32, %arg1: i32, %arg2: i32) -> (i32, i32) {
    %c0_i32 = arith.constant 0 : i32
    return %arg0, %arg2 : i32, i32
  }
  func.func @transform_1(%arg0: i32, %arg1: i32, %arg2: i32) -> (i32, i32) {
    %c0_i32 = arith.constant 0 : i32
    return %arg2, %arg1 : i32, i32
  }
  func.func @transform_2(%arg0: i32, %arg1: i32, %arg2: i32) -> (i32, i32) {
    %c0_i32 = arith.constant 0 : i32
    %c0_i32_0 = arith.constant 0 : i32
    return %c0_i32, %arg1 : i32, i32
  }
  func.func @transform_3(%arg0: i32, %arg1: i32, %arg2: i32) -> (i32, i32) {
    %c0_i32 = arith.constant 0 : i32
    %c0_i32_0 = arith.constant 0 : i32
    return %c0_i32, %arg1 : i32, i32
  }
  func.func @transform_4(%arg0: i32, %arg1: i32, %arg2: i32) -> (i32, i32) {
    %c0_i32 = arith.constant 0 : i32
    return %arg0, %arg1 : i32, i32
  }
  func.func @transform_5(%arg0: i32, %arg1: i32, %arg2: i32) -> (i32, i32) {
    %c0_i32 = arith.constant 0 : i32
    return %arg0, %arg1 : i32, i32
  }
}

module attributes {stable_mosaic.version = 11 : i64} {
  func.func @_mm_kernel(%arg0: i32, %arg1: i32, %arg2: i32, %arg3: memref<32x256xbf16, #tpu.memory_space<vmem>>, %arg4: memref<256x128xbf16, #tpu.memory_space<vmem>>, %arg5: memref<1x128xf32, #tpu.memory_space<vmem>>, %arg6: memref<1x128xf32, #tpu.memory_space<vmem>>, %arg7: memref<32x128xbf16, #tpu.memory_space<vmem>>) attributes {dimension_semantics = [#tpu.dimension_semantics<parallel>, #tpu.dimension_semantics<parallel>, #tpu.dimension_semantics<arbitrary>], iteration_bounds = array<i64: 1, 1, 1>, scalar_prefetch = 0 : i64, scratch_operands = 0 : i64, tpu.core_type = #tpu.core_type<tc>, window_params = [{transform_indices = @transform_0, window_bounds = array<i64: 32, 256>}, {transform_indices = @transform_1, window_bounds = array<i64: 256, 128>}, {transform_indices = @transform_2, window_bounds = array<i64: 1, 128>}, {transform_indices = @transform_3, window_bounds = array<i64: 1, 128>}, {transform_indices = @transform_4, window_bounds = array<i64: 32, 128>}]} {
    %c0 = arith.constant 0 : index
    %c0_0 = arith.constant 0 : index
    %0 = vector.load %arg3[%c0, %c0_0] : memref<32x256xbf16, #tpu.memory_space<vmem>>, vector<32x256xbf16>
    %c0_1 = arith.constant 0 : index
    %c0_2 = arith.constant 0 : index
    %1 = vector.load %arg4[%c0_1, %c0_2] : memref<256x128xbf16, #tpu.memory_space<vmem>>, vector<256x128xbf16>
    %cst = arith.constant dense<0.000000e+00> : vector<32x128xf32>
    %2 = tpu.matmul %0, %1, %cst {dimension_numbers = #tpu.dot_dimension_numbers<[1], [0], [0], [1], [0, 0, 1, 1], [], []>} : vector<32x256xbf16>, vector<256x128xbf16>, vector<32x128xf32> -> vector<32x128xf32>
    %c0_3 = arith.constant 0 : index
    %c0_4 = arith.constant 0 : index
    %3 = vector.load %arg5[%c0_3, %c0_4] : memref<1x128xf32, #tpu.memory_space<vmem>>, vector<1x128xf32>
    %4 = vector.broadcast %3 : vector<1x128xf32> to vector<32x128xf32>
    %5 = arith.mulf %2, %4 : vector<32x128xf32>
    %c0_5 = arith.constant 0 : index
    %c0_6 = arith.constant 0 : index
    %6 = vector.load %arg6[%c0_5, %c0_6] : memref<1x128xf32, #tpu.memory_space<vmem>>, vector<1x128xf32>
    %7 = vector.broadcast %6 : vector<1x128xf32> to vector<32x128xf32>
    %8 = arith.addf %5, %7 : vector<32x128xf32>
    %cst_7 = arith.constant 0.000000e+00 : f32
    %9 = vector.broadcast %cst_7 : f32 to vector<32x128xf32>
    %10 = arith.maximumf %8, %9 : vector<32x128xf32>
    %11 = arith.truncf %10 : vector<32x128xf32> to vector<32x128xbf16>
    %c0_8 = arith.constant 0 : index
    %c0_9 = arith.constant 0 : index
    %12 = vector.load %arg7[%c0_8, %c0_9] : memref<32x128xbf16, #tpu.memory_space<vmem>>, vector<32x128xbf16>
    tpu.vector_store %arg7[%c0_8, %c0_9], %11 {strides = array<i32>} : memref<32x128xbf16, #tpu.memory_space<vmem>>, vector<32x128xbf16>,
    return
  }
  func.func @transform_0(%arg0: i32, %arg1: i32, %arg2: i32) -> (i32, i32) {
    %c0_i32 = arith.constant 0 : i32
    return %arg0, %arg2 : i32, i32
  }
  func.func @transform_1(%arg0: i32, %arg1: i32, %arg2: i32) -> (i32, i32) {
    %c0_i32 = arith.constant 0 : i32
    return %arg2, %arg1 : i32, i32
  }
  func.func @transform_2(%arg0: i32, %arg1: i32, %arg2: i32) -> (i32, i32) {
    %c0_i32 = arith.constant 0 : i32
    %c0_i32_0 = arith.constant 0 : i32
    return %c0_i32, %arg1 : i32, i32
  }
  func.func @transform_3(%arg0: i32, %arg1: i32, %arg2: i32) -> (i32, i32) {
    %c0_i32 = arith.constant 0 : i32
    %c0_i32_0 = arith.constant 0 : i32
    return %c0_i32, %arg1 : i32, i32
  }
  func.func @transform_4(%arg0: i32, %arg1: i32, %arg2: i32) -> (i32, i32) {
    %c0_i32 = arith.constant 0 : i32
    return %arg0, %arg1 : i32, i32
  }
}

module attributes {stable_mosaic.version = 11 : i64} {
  func.func @_mm_kernel(%arg0: i32, %arg1: i32, %arg2: i32, %arg3: memref<16x384xbf16, #tpu.memory_space<vmem>>, %arg4: memref<384x128xbf16, #tpu.memory_space<vmem>>, %arg5: memref<1x128xf32, #tpu.memory_space<vmem>>, %arg6: memref<1x128xf32, #tpu.memory_space<vmem>>, %arg7: memref<16x128xbf16, #tpu.memory_space<vmem>>, %arg8: memref<16x128xf32, #tpu.memory_space<vmem>>) attributes {dimension_semantics = [#tpu.dimension_semantics<parallel>, #tpu.dimension_semantics<parallel>, #tpu.dimension_semantics<arbitrary>], iteration_bounds = array<i64: 1, 1, 3>, scalar_prefetch = 0 : i64, scratch_operands = 1 : i64, tpu.core_type = #tpu.core_type<tc>, window_params = [{transform_indices = @transform_0, window_bounds = array<i64: 16, 384>}, {transform_indices = @transform_1, window_bounds = array<i64: 384, 128>}, {transform_indices = @transform_2, window_bounds = array<i64: 1, 128>}, {transform_indices = @transform_3, window_bounds = array<i64: 1, 128>}, {transform_indices = @transform_4, window_bounds = array<i64: 16, 128>}]} {
    %c0_i32 = arith.constant 0 : i32
    %0 = arith.cmpi eq, %arg2, %c0_i32 : i32
    %1 = arith.extui %0 : i1 to i32
    %c0_i32_0 = arith.constant 0 : i32
    %2 = arith.cmpi ne, %1, %c0_i32_0 : i32
    scf.if %2 {
      %cst_9 = arith.constant 0.000000e+00 : f32
      %12 = vector.broadcast %cst_9 : f32 to vector<16x128xf32>
      %c0_10 = arith.constant 0 : index
      %c0_11 = arith.constant 0 : index
      %13 = vector.load %arg8[%c0_10, %c0_11] : memref<16x128xf32, #tpu.memory_space<vmem>>, vector<16x128xf32>
      tpu.vector_store %arg8[%c0_10, %c0_11], %12 {strides = array<i32>} : memref<16x128xf32, #tpu.memory_space<vmem>>, vector<16x128xf32>,
    } else {
    }
    %c0 = arith.constant 0 : index
    %c0_1 = arith.constant 0 : index
    %3 = vector.load %arg8[%c0, %c0_1] : memref<16x128xf32, #tpu.memory_space<vmem>>, vector<16x128xf32>
    %c0_2 = arith.constant 0 : index
    %c0_3 = arith.constant 0 : index
    %4 = vector.load %arg3[%c0_2, %c0_3] : memref<16x384xbf16, #tpu.memory_space<vmem>>, vector<16x384xbf16>
    %c0_4 = arith.constant 0 : index
    %c0_5 = arith.constant 0 : index
    %5 = vector.load %arg4[%c0_4, %c0_5] : memref<384x128xbf16, #tpu.memory_space<vmem>>, vector<384x128xbf16>
    %cst = arith.constant dense<0.000000e+00> : vector<16x128xf32>
    %6 = tpu.matmul %4, %5, %cst {dimension_numbers = #tpu.dot_dimension_numbers<[1], [0], [0], [1], [0, 0, 1, 1], [], []>} : vector<16x384xbf16>, vector<384x128xbf16>, vector<16x128xf32> -> vector<16x128xf32>
    %7 = arith.addf %3, %6 : vector<16x128xf32>
    %c0_6 = arith.constant 0 : index
    %c0_7 = arith.constant 0 : index
    %8 = vector.load %arg8[%c0_6, %c0_7] : memref<16x128xf32, #tpu.memory_space<vmem>>, vector<16x128xf32>
    tpu.vector_store %arg8[%c0_6, %c0_7], %7 {strides = array<i32>} : memref<16x128xf32, #tpu.memory_space<vmem>>, vector<16x128xf32>,
    %c2_i32 = arith.constant 2 : i32
    %9 = arith.cmpi eq, %arg2, %c2_i32 : i32
    %10 = arith.extui %9 : i1 to i32
    %c0_i32_8 = arith.constant 0 : i32
    %11 = arith.cmpi ne, %10, %c0_i32_8 : i32
    scf.if %11 {
      %c0_9 = arith.constant 0 : index
      %c0_10 = arith.constant 0 : index
      %12 = vector.load %arg8[%c0_9, %c0_10] : memref<16x128xf32, #tpu.memory_space<vmem>>, vector<16x128xf32>
      %c0_11 = arith.constant 0 : index
      %c0_12 = arith.constant 0 : index
      %13 = vector.load %arg5[%c0_11, %c0_12] : memref<1x128xf32, #tpu.memory_space<vmem>>, vector<1x128xf32>
      %14 = vector.broadcast %13 : vector<1x128xf32> to vector<16x128xf32>
      %15 = arith.mulf %12, %14 : vector<16x128xf32>
      %c0_13 = arith.constant 0 : index
      %c0_14 = arith.constant 0 : index
      %16 = vector.load %arg6[%c0_13, %c0_14] : memref<1x128xf32, #tpu.memory_space<vmem>>, vector<1x128xf32>
      %17 = vector.broadcast %16 : vector<1x128xf32> to vector<16x128xf32>
      %18 = arith.addf %15, %17 : vector<16x128xf32>
      %cst_15 = arith.constant 0.000000e+00 : f32
      %19 = vector.broadcast %cst_15 : f32 to vector<16x128xf32>
      %20 = arith.maximumf %18, %19 : vector<16x128xf32>
      %21 = arith.truncf %20 : vector<16x128xf32> to vector<16x128xbf16>
      %c0_16 = arith.constant 0 : index
      %c0_17 = arith.constant 0 : index
      %22 = vector.load %arg7[%c0_16, %c0_17] : memref<16x128xbf16, #tpu.memory_space<vmem>>, vector<16x128xbf16>
      tpu.vector_store %arg7[%c0_16, %c0_17], %21 {strides = array<i32>} : memref<16x128xbf16, #tpu.memory_space<vmem>>, vector<16x128xbf16>,
    } else {
    }
    return
  }
  func.func @transform_0(%arg0: i32, %arg1: i32, %arg2: i32) -> (i32, i32) {
    %c0_i32 = arith.constant 0 : i32
    return %arg0, %arg2 : i32, i32
  }
  func.func @transform_1(%arg0: i32, %arg1: i32, %arg2: i32) -> (i32, i32) {
    %c0_i32 = arith.constant 0 : i32
    return %arg2, %arg1 : i32, i32
  }
  func.func @transform_2(%arg0: i32, %arg1: i32, %arg2: i32) -> (i32, i32) {
    %c0_i32 = arith.constant 0 : i32
    %c0_i32_0 = arith.constant 0 : i32
    return %c0_i32, %arg1 : i32, i32
  }
  func.func @transform_3(%arg0: i32, %arg1: i32, %arg2: i32) -> (i32, i32) {
    %c0_i32 = arith.constant 0 : i32
    %c0_i32_0 = arith.constant 0 : i32
    return %c0_i32, %arg1 : i32, i32
  }
  func.func @transform_4(%arg0: i32, %arg1: i32, %arg2: i32) -> (i32, i32) {
    %c0_i32 = arith.constant 0 : i32
    return %arg0, %arg1 : i32, i32
  }
}

module attributes {stable_mosaic.version = 11 : i64} {
  func.func @_mm_kernel(%arg0: i32, %arg1: i32, %arg2: i32, %arg3: memref<16x256xbf16, #tpu.memory_space<vmem>>, %arg4: memref<256x256xbf16, #tpu.memory_space<vmem>>, %arg5: memref<1x256xf32, #tpu.memory_space<vmem>>, %arg6: memref<1x256xf32, #tpu.memory_space<vmem>>, %arg7: memref<16x256xbf16, #tpu.memory_space<vmem>>) attributes {dimension_semantics = [#tpu.dimension_semantics<parallel>, #tpu.dimension_semantics<parallel>, #tpu.dimension_semantics<arbitrary>], iteration_bounds = array<i64: 1, 2, 1>, scalar_prefetch = 0 : i64, scratch_operands = 0 : i64, tpu.core_type = #tpu.core_type<tc>, window_params = [{transform_indices = @transform_0, window_bounds = array<i64: 16, 256>}, {transform_indices = @transform_1, window_bounds = array<i64: 256, 256>}, {transform_indices = @transform_2, window_bounds = array<i64: 1, 256>}, {transform_indices = @transform_3, window_bounds = array<i64: 1, 256>}, {transform_indices = @transform_4, window_bounds = array<i64: 16, 256>}]} {
    %c0 = arith.constant 0 : index
    %c0_0 = arith.constant 0 : index
    %0 = vector.load %arg3[%c0, %c0_0] : memref<16x256xbf16, #tpu.memory_space<vmem>>, vector<16x256xbf16>
    %c0_1 = arith.constant 0 : index
    %c0_2 = arith.constant 0 : index
    %1 = vector.load %arg4[%c0_1, %c0_2] : memref<256x256xbf16, #tpu.memory_space<vmem>>, vector<256x256xbf16>
    %cst = arith.constant dense<0.000000e+00> : vector<16x256xf32>
    %2 = tpu.matmul %0, %1, %cst {dimension_numbers = #tpu.dot_dimension_numbers<[1], [0], [0], [1], [0, 0, 1, 1], [], []>} : vector<16x256xbf16>, vector<256x256xbf16>, vector<16x256xf32> -> vector<16x256xf32>
    %c0_3 = arith.constant 0 : index
    %c0_4 = arith.constant 0 : index
    %3 = vector.load %arg5[%c0_3, %c0_4] : memref<1x256xf32, #tpu.memory_space<vmem>>, vector<1x256xf32>
    %4 = vector.broadcast %3 : vector<1x256xf32> to vector<16x256xf32>
    %5 = arith.mulf %2, %4 : vector<16x256xf32>
    %c0_5 = arith.constant 0 : index
    %c0_6 = arith.constant 0 : index
    %6 = vector.load %arg6[%c0_5, %c0_6] : memref<1x256xf32, #tpu.memory_space<vmem>>, vector<1x256xf32>
    %7 = vector.broadcast %6 : vector<1x256xf32> to vector<16x256xf32>
    %8 = arith.addf %5, %7 : vector<16x256xf32>
    %9 = arith.truncf %8 : vector<16x256xf32> to vector<16x256xbf16>
    %c0_7 = arith.constant 0 : index
    %c0_8 = arith.constant 0 : index
    %10 = vector.load %arg7[%c0_7, %c0_8] : memref<16x256xbf16, #tpu.memory_space<vmem>>, vector<16x256xbf16>
    tpu.vector_store %arg7[%c0_7, %c0_8], %9 {strides = array<i32>} : memref<16x256xbf16, #tpu.memory_space<vmem>>, vector<16x256xbf16>,
    return
  }
  func.func @transform_0(%arg0: i32, %arg1: i32, %arg2: i32) -> (i32, i32) {
    %c0_i32 = arith.constant 0 : i32
    return %arg0, %arg2 : i32, i32
  }
  func.func @transform_1(%arg0: i32, %arg1: i32, %arg2: i32) -> (i32, i32) {
    %c0_i32 = arith.constant 0 : i32
    return %arg2, %arg1 : i32, i32
  }
  func.func @transform_2(%arg0: i32, %arg1: i32, %arg2: i32) -> (i32, i32) {
    %c0_i32 = arith.constant 0 : i32
    %c0_i32_0 = arith.constant 0 : i32
    return %c0_i32, %arg1 : i32, i32
  }
  func.func @transform_3(%arg0: i32, %arg1: i32, %arg2: i32) -> (i32, i32) {
    %c0_i32 = arith.constant 0 : i32
    %c0_i32_0 = arith.constant 0 : i32
    return %c0_i32, %arg1 : i32, i32
  }
  func.func @transform_4(%arg0: i32, %arg1: i32, %arg2: i32) -> (i32, i32) {
    %c0_i32 = arith.constant 0 : i32
    return %arg0, %arg1 : i32, i32
  }
}

module attributes {stable_mosaic.version = 11 : i64} {
  func.func @_mm_kernel(%arg0: i32, %arg1: i32, %arg2: i32, %arg3: memref<16x128xbf16, #tpu.memory_space<vmem>>, %arg4: memref<128x256xbf16, #tpu.memory_space<vmem>>, %arg5: memref<1x256xf32, #tpu.memory_space<vmem>>, %arg6: memref<1x256xf32, #tpu.memory_space<vmem>>, %arg7: memref<16x256xbf16, #tpu.memory_space<vmem>>, %arg8: memref<16x256xbf16, #tpu.memory_space<vmem>>) attributes {dimension_semantics = [#tpu.dimension_semantics<parallel>, #tpu.dimension_semantics<parallel>, #tpu.dimension_semantics<arbitrary>], iteration_bounds = array<i64: 1, 2, 1>, scalar_prefetch = 0 : i64, scratch_operands = 0 : i64, tpu.core_type = #tpu.core_type<tc>, window_params = [{transform_indices = @transform_0, window_bounds = array<i64: 16, 128>}, {transform_indices = @transform_1, window_bounds = array<i64: 128, 256>}, {transform_indices = @transform_2, window_bounds = array<i64: 1, 256>}, {transform_indices = @transform_3, window_bounds = array<i64: 1, 256>}, {transform_indices = @transform_4, window_bounds = array<i64: 16, 256>}, {transform_indices = @transform_5, window_bounds = array<i64: 16, 256>}]} {
    %c0 = arith.constant 0 : index
    %c0_0 = arith.constant 0 : index
    %0 = vector.load %arg3[%c0, %c0_0] : memref<16x128xbf16, #tpu.memory_space<vmem>>, vector<16x128xbf16>
    %c0_1 = arith.constant 0 : index
    %c0_2 = arith.constant 0 : index
    %1 = vector.load %arg4[%c0_1, %c0_2] : memref<128x256xbf16, #tpu.memory_space<vmem>>, vector<128x256xbf16>
    %cst = arith.constant dense<0.000000e+00> : vector<16x256xf32>
    %2 = tpu.matmul %0, %1, %cst {dimension_numbers = #tpu.dot_dimension_numbers<[1], [0], [0], [1], [0, 0, 1, 1], [], []>} : vector<16x128xbf16>, vector<128x256xbf16>, vector<16x256xf32> -> vector<16x256xf32>
    %c0_3 = arith.constant 0 : index
    %c0_4 = arith.constant 0 : index
    %3 = vector.load %arg5[%c0_3, %c0_4] : memref<1x256xf32, #tpu.memory_space<vmem>>, vector<1x256xf32>
    %4 = vector.broadcast %3 : vector<1x256xf32> to vector<16x256xf32>
    %5 = arith.mulf %2, %4 : vector<16x256xf32>
    %c0_5 = arith.constant 0 : index
    %c0_6 = arith.constant 0 : index
    %6 = vector.load %arg6[%c0_5, %c0_6] : memref<1x256xf32, #tpu.memory_space<vmem>>, vector<1x256xf32>
    %7 = vector.broadcast %6 : vector<1x256xf32> to vector<16x256xf32>
    %8 = arith.addf %5, %7 : vector<16x256xf32>
    %c0_7 = arith.constant 0 : index
    %c0_8 = arith.constant 0 : index
    %9 = vector.load %arg7[%c0_7, %c0_8] : memref<16x256xbf16, #tpu.memory_space<vmem>>, vector<16x256xbf16>
    %10 = arith.extf %9 : vector<16x256xbf16> to vector<16x256xf32>
    %11 = arith.addf %8, %10 : vector<16x256xf32>
    %cst_9 = arith.constant 0.000000e+00 : f32
    %12 = vector.broadcast %cst_9 : f32 to vector<16x256xf32>
    %13 = arith.maximumf %11, %12 : vector<16x256xf32>
    %14 = arith.truncf %13 : vector<16x256xf32> to vector<16x256xbf16>
    %c0_10 = arith.constant 0 : index
    %c0_11 = arith.constant 0 : index
    %15 = vector.load %arg8[%c0_10, %c0_11] : memref<16x256xbf16, #tpu.memory_space<vmem>>, vector<16x256xbf16>
    tpu.vector_store %arg8[%c0_10, %c0_11], %14 {strides = array<i32>} : memref<16x256xbf16, #tpu.memory_space<vmem>>, vector<16x256xbf16>,
    return
  }
  func.func @transform_0(%arg0: i32, %arg1: i32, %arg2: i32) -> (i32, i32) {
    %c0_i32 = arith.constant 0 : i32
    return %arg0, %arg2 : i32, i32
  }
  func.func @transform_1(%arg0: i32, %arg1: i32, %arg2: i32) -> (i32, i32) {
    %c0_i32 = arith.constant 0 : i32
    return %arg2, %arg1 : i32, i32
  }
  func.func @transform_2(%arg0: i32, %arg1: i32, %arg2: i32) -> (i32, i32) {
    %c0_i32 = arith.constant 0 : i32
    %c0_i32_0 = arith.constant 0 : i32
    return %c0_i32, %arg1 : i32, i32
  }
  func.func @transform_3(%arg0: i32, %arg1: i32, %arg2: i32) -> (i32, i32) {
    %c0_i32 = arith.constant 0 : i32
    %c0_i32_0 = arith.constant 0 : i32
    return %c0_i32, %arg1 : i32, i32
  }
  func.func @transform_4(%arg0: i32, %arg1: i32, %arg2: i32) -> (i32, i32) {
    %c0_i32 = arith.constant 0 : i32
    return %arg0, %arg1 : i32, i32
  }
  func.func @transform_5(%arg0: i32, %arg1: i32, %arg2: i32) -> (i32, i32) {
    %c0_i32 = arith.constant 0 : i32
    return %arg0, %arg1 : i32, i32
  }
}

module attributes {stable_mosaic.version = 11 : i64} {
  func.func @_mm_kernel(%arg0: i32, %arg1: i32, %arg2: i32, %arg3: memref<16x512xbf16, #tpu.memory_space<vmem>>, %arg4: memref<512x128xbf16, #tpu.memory_space<vmem>>, %arg5: memref<1x128xf32, #tpu.memory_space<vmem>>, %arg6: memref<1x128xf32, #tpu.memory_space<vmem>>, %arg7: memref<16x128xbf16, #tpu.memory_space<vmem>>) attributes {dimension_semantics = [#tpu.dimension_semantics<parallel>, #tpu.dimension_semantics<parallel>, #tpu.dimension_semantics<arbitrary>], iteration_bounds = array<i64: 1, 1, 1>, scalar_prefetch = 0 : i64, scratch_operands = 0 : i64, tpu.core_type = #tpu.core_type<tc>, window_params = [{transform_indices = @transform_0, window_bounds = array<i64: 16, 512>}, {transform_indices = @transform_1, window_bounds = array<i64: 512, 128>}, {transform_indices = @transform_2, window_bounds = array<i64: 1, 128>}, {transform_indices = @transform_3, window_bounds = array<i64: 1, 128>}, {transform_indices = @transform_4, window_bounds = array<i64: 16, 128>}]} {
    %c0 = arith.constant 0 : index
    %c0_0 = arith.constant 0 : index
    %0 = vector.load %arg3[%c0, %c0_0] : memref<16x512xbf16, #tpu.memory_space<vmem>>, vector<16x512xbf16>
    %c0_1 = arith.constant 0 : index
    %c0_2 = arith.constant 0 : index
    %1 = vector.load %arg4[%c0_1, %c0_2] : memref<512x128xbf16, #tpu.memory_space<vmem>>, vector<512x128xbf16>
    %cst = arith.constant dense<0.000000e+00> : vector<16x128xf32>
    %2 = tpu.matmul %0, %1, %cst {dimension_numbers = #tpu.dot_dimension_numbers<[1], [0], [0], [1], [0, 0, 1, 1], [], []>} : vector<16x512xbf16>, vector<512x128xbf16>, vector<16x128xf32> -> vector<16x128xf32>
    %c0_3 = arith.constant 0 : index
    %c0_4 = arith.constant 0 : index
    %3 = vector.load %arg5[%c0_3, %c0_4] : memref<1x128xf32, #tpu.memory_space<vmem>>, vector<1x128xf32>
    %4 = vector.broadcast %3 : vector<1x128xf32> to vector<16x128xf32>
    %5 = arith.mulf %2, %4 : vector<16x128xf32>
    %c0_5 = arith.constant 0 : index
    %c0_6 = arith.constant 0 : index
    %6 = vector.load %arg6[%c0_5, %c0_6] : memref<1x128xf32, #tpu.memory_space<vmem>>, vector<1x128xf32>
    %7 = vector.broadcast %6 : vector<1x128xf32> to vector<16x128xf32>
    %8 = arith.addf %5, %7 : vector<16x128xf32>
    %cst_7 = arith.constant 0.000000e+00 : f32
    %9 = vector.broadcast %cst_7 : f32 to vector<16x128xf32>
    %10 = arith.maximumf %8, %9 : vector<16x128xf32>
    %11 = arith.truncf %10 : vector<16x128xf32> to vector<16x128xbf16>
    %c0_8 = arith.constant 0 : index
    %c0_9 = arith.constant 0 : index
    %12 = vector.load %arg7[%c0_8, %c0_9] : memref<16x128xbf16, #tpu.memory_space<vmem>>, vector<16x128xbf16>
    tpu.vector_store %arg7[%c0_8, %c0_9], %11 {strides = array<i32>} : memref<16x128xbf16, #tpu.memory_space<vmem>>, vector<16x128xbf16>,
    return
  }
  func.func @transform_0(%arg0: i32, %arg1: i32, %arg2: i32) -> (i32, i32) {
    %c0_i32 = arith.constant 0 : i32
    return %arg0, %arg2 : i32, i32
  }
  func.func @transform_1(%arg0: i32, %arg1: i32, %arg2: i32) -> (i32, i32) {
    %c0_i32 = arith.constant 0 : i32
    return %arg2, %arg1 : i32, i32
  }
  func.func @transform_2(%arg0: i32, %arg1: i32, %arg2: i32) -> (i32, i32) {
    %c0_i32 = arith.constant 0 : i32
    %c0_i32_0 = arith.constant 0 : i32
    return %c0_i32, %arg1 : i32, i32
  }
  func.func @transform_3(%arg0: i32, %arg1: i32, %arg2: i32) -> (i32, i32) {
    %c0_i32 = arith.constant 0 : i32
    %c0_i32_0 = arith.constant 0 : i32
    return %c0_i32, %arg1 : i32, i32
  }
  func.func @transform_4(%arg0: i32, %arg1: i32, %arg2: i32) -> (i32, i32) {
    %c0_i32 = arith.constant 0 : i32
    return %arg0, %arg1 : i32, i32
  }
}

module attributes {stable_mosaic.version = 11 : i64} {
  func.func @_mm_kernel(%arg0: i32, %arg1: i32, %arg2: i32, %arg3: memref<16x512xbf16, #tpu.memory_space<vmem>>, %arg4: memref<512x256xbf16, #tpu.memory_space<vmem>>, %arg5: memref<1x256xf32, #tpu.memory_space<vmem>>, %arg6: memref<1x256xf32, #tpu.memory_space<vmem>>, %arg7: memref<16x256xbf16, #tpu.memory_space<vmem>>) attributes {dimension_semantics = [#tpu.dimension_semantics<parallel>, #tpu.dimension_semantics<parallel>, #tpu.dimension_semantics<arbitrary>], iteration_bounds = array<i64: 1, 1, 1>, scalar_prefetch = 0 : i64, scratch_operands = 0 : i64, tpu.core_type = #tpu.core_type<tc>, window_params = [{transform_indices = @transform_0, window_bounds = array<i64: 16, 512>}, {transform_indices = @transform_1, window_bounds = array<i64: 512, 256>}, {transform_indices = @transform_2, window_bounds = array<i64: 1, 256>}, {transform_indices = @transform_3, window_bounds = array<i64: 1, 256>}, {transform_indices = @transform_4, window_bounds = array<i64: 16, 256>}]} {
    %c0 = arith.constant 0 : index
    %c0_0 = arith.constant 0 : index
    %0 = vector.load %arg3[%c0, %c0_0] : memref<16x512xbf16, #tpu.memory_space<vmem>>, vector<16x512xbf16>
    %c0_1 = arith.constant 0 : index
    %c0_2 = arith.constant 0 : index
    %1 = vector.load %arg4[%c0_1, %c0_2] : memref<512x256xbf16, #tpu.memory_space<vmem>>, vector<512x256xbf16>
    %cst = arith.constant dense<0.000000e+00> : vector<16x256xf32>
    %2 = tpu.matmul %0, %1, %cst {dimension_numbers = #tpu.dot_dimension_numbers<[1], [0], [0], [1], [0, 0, 1, 1], [], []>} : vector<16x512xbf16>, vector<512x256xbf16>, vector<16x256xf32> -> vector<16x256xf32>
    %c0_3 = arith.constant 0 : index
    %c0_4 = arith.constant 0 : index
    %3 = vector.load %arg5[%c0_3, %c0_4] : memref<1x256xf32, #tpu.memory_space<vmem>>, vector<1x256xf32>
    %4 = vector.broadcast %3 : vector<1x256xf32> to vector<16x256xf32>
    %5 = arith.mulf %2, %4 : vector<16x256xf32>
    %c0_5 = arith.constant 0 : index
    %c0_6 = arith.constant 0 : index
    %6 = vector.load %arg6[%c0_5, %c0_6] : memref<1x256xf32, #tpu.memory_space<vmem>>, vector<1x256xf32>
    %7 = vector.broadcast %6 : vector<1x256xf32> to vector<16x256xf32>
    %8 = arith.addf %5, %7 : vector<16x256xf32>
    %cst_7 = arith.constant 0.000000e+00 : f32
    %9 = vector.broadcast %cst_7 : f32 to vector<16x256xf32>
    %10 = arith.maximumf %8, %9 : vector<16x256xf32>
    %11 = arith.truncf %10 : vector<16x256xf32> to vector<16x256xbf16>
    %c0_8 = arith.constant 0 : index
    %c0_9 = arith.constant 0 : index
    %12 = vector.load %arg7[%c0_8, %c0_9] : memref<16x256xbf16, #tpu.memory_space<vmem>>, vector<16x256xbf16>
    tpu.vector_store %arg7[%c0_8, %c0_9], %11 {strides = array<i32>} : memref<16x256xbf16, #tpu.memory_space<vmem>>, vector<16x256xbf16>,
    return
  }
  func.func @transform_0(%arg0: i32, %arg1: i32, %arg2: i32) -> (i32, i32) {
    %c0_i32 = arith.constant 0 : i32
    return %arg0, %arg2 : i32, i32
  }
  func.func @transform_1(%arg0: i32, %arg1: i32, %arg2: i32) -> (i32, i32) {
    %c0_i32 = arith.constant 0 : i32
    return %arg2, %arg1 : i32, i32
  }
  func.func @transform_2(%arg0: i32, %arg1: i32, %arg2: i32) -> (i32, i32) {
    %c0_i32 = arith.constant 0 : i32
    %c0_i32_0 = arith.constant 0 : i32
    return %c0_i32, %arg1 : i32, i32
  }
  func.func @transform_3(%arg0: i32, %arg1: i32, %arg2: i32) -> (i32, i32) {
    %c0_i32 = arith.constant 0 : i32
    %c0_i32_0 = arith.constant 0 : i32
    return %c0_i32, %arg1 : i32, i32
  }
  func.func @transform_4(%arg0: i32, %arg1: i32, %arg2: i32) -> (i32, i32) {
    %c0_i32 = arith.constant 0 : i32
    return %arg0, %arg1 : i32, i32
  }
}

module attributes {stable_mosaic.version = 11 : i64} {
  func.func @_mm_kernel(%arg0: i32, %arg1: i32, %arg2: i32, %arg3: memref<16x384xbf16, #tpu.memory_space<vmem>>, %arg4: memref<384x256xbf16, #tpu.memory_space<vmem>>, %arg5: memref<1x256xf32, #tpu.memory_space<vmem>>, %arg6: memref<1x256xf32, #tpu.memory_space<vmem>>, %arg7: memref<16x256xbf16, #tpu.memory_space<vmem>>, %arg8: memref<16x256xf32, #tpu.memory_space<vmem>>) attributes {dimension_semantics = [#tpu.dimension_semantics<parallel>, #tpu.dimension_semantics<parallel>, #tpu.dimension_semantics<arbitrary>], iteration_bounds = array<i64: 1, 1, 6>, scalar_prefetch = 0 : i64, scratch_operands = 1 : i64, tpu.core_type = #tpu.core_type<tc>, window_params = [{transform_indices = @transform_0, window_bounds = array<i64: 16, 384>}, {transform_indices = @transform_1, window_bounds = array<i64: 384, 256>}, {transform_indices = @transform_2, window_bounds = array<i64: 1, 256>}, {transform_indices = @transform_3, window_bounds = array<i64: 1, 256>}, {transform_indices = @transform_4, window_bounds = array<i64: 16, 256>}]} {
    %c0_i32 = arith.constant 0 : i32
    %0 = arith.cmpi eq, %arg2, %c0_i32 : i32
    %1 = arith.extui %0 : i1 to i32
    %c0_i32_0 = arith.constant 0 : i32
    %2 = arith.cmpi ne, %1, %c0_i32_0 : i32
    scf.if %2 {
      %cst_9 = arith.constant 0.000000e+00 : f32
      %12 = vector.broadcast %cst_9 : f32 to vector<16x256xf32>
      %c0_10 = arith.constant 0 : index
      %c0_11 = arith.constant 0 : index
      %13 = vector.load %arg8[%c0_10, %c0_11] : memref<16x256xf32, #tpu.memory_space<vmem>>, vector<16x256xf32>
      tpu.vector_store %arg8[%c0_10, %c0_11], %12 {strides = array<i32>} : memref<16x256xf32, #tpu.memory_space<vmem>>, vector<16x256xf32>,
    } else {
    }
    %c0 = arith.constant 0 : index
    %c0_1 = arith.constant 0 : index
    %3 = vector.load %arg8[%c0, %c0_1] : memref<16x256xf32, #tpu.memory_space<vmem>>, vector<16x256xf32>
    %c0_2 = arith.constant 0 : index
    %c0_3 = arith.constant 0 : index
    %4 = vector.load %arg3[%c0_2, %c0_3] : memref<16x384xbf16, #tpu.memory_space<vmem>>, vector<16x384xbf16>
    %c0_4 = arith.constant 0 : index
    %c0_5 = arith.constant 0 : index
    %5 = vector.load %arg4[%c0_4, %c0_5] : memref<384x256xbf16, #tpu.memory_space<vmem>>, vector<384x256xbf16>
    %cst = arith.constant dense<0.000000e+00> : vector<16x256xf32>
    %6 = tpu.matmul %4, %5, %cst {dimension_numbers = #tpu.dot_dimension_numbers<[1], [0], [0], [1], [0, 0, 1, 1], [], []>} : vector<16x384xbf16>, vector<384x256xbf16>, vector<16x256xf32> -> vector<16x256xf32>
    %7 = arith.addf %3, %6 : vector<16x256xf32>
    %c0_6 = arith.constant 0 : index
    %c0_7 = arith.constant 0 : index
    %8 = vector.load %arg8[%c0_6, %c0_7] : memref<16x256xf32, #tpu.memory_space<vmem>>, vector<16x256xf32>
    tpu.vector_store %arg8[%c0_6, %c0_7], %7 {strides = array<i32>} : memref<16x256xf32, #tpu.memory_space<vmem>>, vector<16x256xf32>,
    %c5_i32 = arith.constant 5 : i32
    %9 = arith.cmpi eq, %arg2, %c5_i32 : i32
    %10 = arith.extui %9 : i1 to i32
    %c0_i32_8 = arith.constant 0 : i32
    %11 = arith.cmpi ne, %10, %c0_i32_8 : i32
    scf.if %11 {
      %c0_9 = arith.constant 0 : index
      %c0_10 = arith.constant 0 : index
      %12 = vector.load %arg8[%c0_9, %c0_10] : memref<16x256xf32, #tpu.memory_space<vmem>>, vector<16x256xf32>
      %c0_11 = arith.constant 0 : index
      %c0_12 = arith.constant 0 : index
      %13 = vector.load %arg5[%c0_11, %c0_12] : memref<1x256xf32, #tpu.memory_space<vmem>>, vector<1x256xf32>
      %14 = vector.broadcast %13 : vector<1x256xf32> to vector<16x256xf32>
      %15 = arith.mulf %12, %14 : vector<16x256xf32>
      %c0_13 = arith.constant 0 : index
      %c0_14 = arith.constant 0 : index
      %16 = vector.load %arg6[%c0_13, %c0_14] : memref<1x256xf32, #tpu.memory_space<vmem>>, vector<1x256xf32>
      %17 = vector.broadcast %16 : vector<1x256xf32> to vector<16x256xf32>
      %18 = arith.addf %15, %17 : vector<16x256xf32>
      %cst_15 = arith.constant 0.000000e+00 : f32
      %19 = vector.broadcast %cst_15 : f32 to vector<16x256xf32>
      %20 = arith.maximumf %18, %19 : vector<16x256xf32>
      %21 = arith.truncf %20 : vector<16x256xf32> to vector<16x256xbf16>
      %c0_16 = arith.constant 0 : index
      %c0_17 = arith.constant 0 : index
      %22 = vector.load %arg7[%c0_16, %c0_17] : memref<16x256xbf16, #tpu.memory_space<vmem>>, vector<16x256xbf16>
      tpu.vector_store %arg7[%c0_16, %c0_17], %21 {strides = array<i32>} : memref<16x256xbf16, #tpu.memory_space<vmem>>, vector<16x256xbf16>,
    } else {
    }
    return
  }
  func.func @transform_0(%arg0: i32, %arg1: i32, %arg2: i32) -> (i32, i32) {
    %c0_i32 = arith.constant 0 : i32
    return %arg0, %arg2 : i32, i32
  }
  func.func @transform_1(%arg0: i32, %arg1: i32, %arg2: i32) -> (i32, i32) {
    %c0_i32 = arith.constant 0 : i32
    return %arg2, %arg1 : i32, i32
  }
  func.func @transform_2(%arg0: i32, %arg1: i32, %arg2: i32) -> (i32, i32) {
    %c0_i32 = arith.constant 0 : i32
    %c0_i32_0 = arith.constant 0 : i32
    return %c0_i32, %arg1 : i32, i32
  }
  func.func @transform_3(%arg0: i32, %arg1: i32, %arg2: i32) -> (i32, i32) {
    %c0_i32 = arith.constant 0 : i32
    %c0_i32_0 = arith.constant 0 : i32
    return %c0_i32, %arg1 : i32, i32
  }
  func.func @transform_4(%arg0: i32, %arg1: i32, %arg2: i32) -> (i32, i32) {
    %c0_i32 = arith.constant 0 : i32
    return %arg0, %arg1 : i32, i32
  }
}

module attributes {stable_mosaic.version = 11 : i64} {
  func.func @_mm_kernel(%arg0: i32, %arg1: i32, %arg2: i32, %arg3: memref<16x512xbf16, #tpu.memory_space<vmem>>, %arg4: memref<512x256xbf16, #tpu.memory_space<vmem>>, %arg5: memref<1x256xf32, #tpu.memory_space<vmem>>, %arg6: memref<1x256xf32, #tpu.memory_space<vmem>>, %arg7: memref<16x256xbf16, #tpu.memory_space<vmem>>) attributes {dimension_semantics = [#tpu.dimension_semantics<parallel>, #tpu.dimension_semantics<parallel>, #tpu.dimension_semantics<arbitrary>], iteration_bounds = array<i64: 1, 4, 1>, scalar_prefetch = 0 : i64, scratch_operands = 0 : i64, tpu.core_type = #tpu.core_type<tc>, window_params = [{transform_indices = @transform_0, window_bounds = array<i64: 16, 512>}, {transform_indices = @transform_1, window_bounds = array<i64: 512, 256>}, {transform_indices = @transform_2, window_bounds = array<i64: 1, 256>}, {transform_indices = @transform_3, window_bounds = array<i64: 1, 256>}, {transform_indices = @transform_4, window_bounds = array<i64: 16, 256>}]} {
    %c0 = arith.constant 0 : index
    %c0_0 = arith.constant 0 : index
    %0 = vector.load %arg3[%c0, %c0_0] : memref<16x512xbf16, #tpu.memory_space<vmem>>, vector<16x512xbf16>
    %c0_1 = arith.constant 0 : index
    %c0_2 = arith.constant 0 : index
    %1 = vector.load %arg4[%c0_1, %c0_2] : memref<512x256xbf16, #tpu.memory_space<vmem>>, vector<512x256xbf16>
    %cst = arith.constant dense<0.000000e+00> : vector<16x256xf32>
    %2 = tpu.matmul %0, %1, %cst {dimension_numbers = #tpu.dot_dimension_numbers<[1], [0], [0], [1], [0, 0, 1, 1], [], []>} : vector<16x512xbf16>, vector<512x256xbf16>, vector<16x256xf32> -> vector<16x256xf32>
    %c0_3 = arith.constant 0 : index
    %c0_4 = arith.constant 0 : index
    %3 = vector.load %arg5[%c0_3, %c0_4] : memref<1x256xf32, #tpu.memory_space<vmem>>, vector<1x256xf32>
    %4 = vector.broadcast %3 : vector<1x256xf32> to vector<16x256xf32>
    %5 = arith.mulf %2, %4 : vector<16x256xf32>
    %c0_5 = arith.constant 0 : index
    %c0_6 = arith.constant 0 : index
    %6 = vector.load %arg6[%c0_5, %c0_6] : memref<1x256xf32, #tpu.memory_space<vmem>>, vector<1x256xf32>
    %7 = vector.broadcast %6 : vector<1x256xf32> to vector<16x256xf32>
    %8 = arith.addf %5, %7 : vector<16x256xf32>
    %9 = arith.truncf %8 : vector<16x256xf32> to vector<16x256xbf16>
    %c0_7 = arith.constant 0 : index
    %c0_8 = arith.constant 0 : index
    %10 = vector.load %arg7[%c0_7, %c0_8] : memref<16x256xbf16, #tpu.memory_space<vmem>>, vector<16x256xbf16>
    tpu.vector_store %arg7[%c0_7, %c0_8], %9 {strides = array<i32>} : memref<16x256xbf16, #tpu.memory_space<vmem>>, vector<16x256xbf16>,
    return
  }
  func.func @transform_0(%arg0: i32, %arg1: i32, %arg2: i32) -> (i32, i32) {
    %c0_i32 = arith.constant 0 : i32
    return %arg0, %arg2 : i32, i32
  }
  func.func @transform_1(%arg0: i32, %arg1: i32, %arg2: i32) -> (i32, i32) {
    %c0_i32 = arith.constant 0 : i32
    return %arg2, %arg1 : i32, i32
  }
  func.func @transform_2(%arg0: i32, %arg1: i32, %arg2: i32) -> (i32, i32) {
    %c0_i32 = arith.constant 0 : i32
    %c0_i32_0 = arith.constant 0 : i32
    return %c0_i32, %arg1 : i32, i32
  }
  func.func @transform_3(%arg0: i32, %arg1: i32, %arg2: i32) -> (i32, i32) {
    %c0_i32 = arith.constant 0 : i32
    %c0_i32_0 = arith.constant 0 : i32
    return %c0_i32, %arg1 : i32, i32
  }
  func.func @transform_4(%arg0: i32, %arg1: i32, %arg2: i32) -> (i32, i32) {
    %c0_i32 = arith.constant 0 : i32
    return %arg0, %arg1 : i32, i32
  }
}

module attributes {stable_mosaic.version = 11 : i64} {
  func.func @_mm_kernel(%arg0: i32, %arg1: i32, %arg2: i32, %arg3: memref<16x256xbf16, #tpu.memory_space<vmem>>, %arg4: memref<256x256xbf16, #tpu.memory_space<vmem>>, %arg5: memref<1x256xf32, #tpu.memory_space<vmem>>, %arg6: memref<1x256xf32, #tpu.memory_space<vmem>>, %arg7: memref<16x256xbf16, #tpu.memory_space<vmem>>, %arg8: memref<16x256xbf16, #tpu.memory_space<vmem>>) attributes {dimension_semantics = [#tpu.dimension_semantics<parallel>, #tpu.dimension_semantics<parallel>, #tpu.dimension_semantics<arbitrary>], iteration_bounds = array<i64: 1, 4, 1>, scalar_prefetch = 0 : i64, scratch_operands = 0 : i64, tpu.core_type = #tpu.core_type<tc>, window_params = [{transform_indices = @transform_0, window_bounds = array<i64: 16, 256>}, {transform_indices = @transform_1, window_bounds = array<i64: 256, 256>}, {transform_indices = @transform_2, window_bounds = array<i64: 1, 256>}, {transform_indices = @transform_3, window_bounds = array<i64: 1, 256>}, {transform_indices = @transform_4, window_bounds = array<i64: 16, 256>}, {transform_indices = @transform_5, window_bounds = array<i64: 16, 256>}]} {
    %c0 = arith.constant 0 : index
    %c0_0 = arith.constant 0 : index
    %0 = vector.load %arg3[%c0, %c0_0] : memref<16x256xbf16, #tpu.memory_space<vmem>>, vector<16x256xbf16>
    %c0_1 = arith.constant 0 : index
    %c0_2 = arith.constant 0 : index
    %1 = vector.load %arg4[%c0_1, %c0_2] : memref<256x256xbf16, #tpu.memory_space<vmem>>, vector<256x256xbf16>
    %cst = arith.constant dense<0.000000e+00> : vector<16x256xf32>
    %2 = tpu.matmul %0, %1, %cst {dimension_numbers = #tpu.dot_dimension_numbers<[1], [0], [0], [1], [0, 0, 1, 1], [], []>} : vector<16x256xbf16>, vector<256x256xbf16>, vector<16x256xf32> -> vector<16x256xf32>
    %c0_3 = arith.constant 0 : index
    %c0_4 = arith.constant 0 : index
    %3 = vector.load %arg5[%c0_3, %c0_4] : memref<1x256xf32, #tpu.memory_space<vmem>>, vector<1x256xf32>
    %4 = vector.broadcast %3 : vector<1x256xf32> to vector<16x256xf32>
    %5 = arith.mulf %2, %4 : vector<16x256xf32>
    %c0_5 = arith.constant 0 : index
    %c0_6 = arith.constant 0 : index
    %6 = vector.load %arg6[%c0_5, %c0_6] : memref<1x256xf32, #tpu.memory_space<vmem>>, vector<1x256xf32>
    %7 = vector.broadcast %6 : vector<1x256xf32> to vector<16x256xf32>
    %8 = arith.addf %5, %7 : vector<16x256xf32>
    %c0_7 = arith.constant 0 : index
    %c0_8 = arith.constant 0 : index
    %9 = vector.load %arg7[%c0_7, %c0_8] : memref<16x256xbf16, #tpu.memory_space<vmem>>, vector<16x256xbf16>
    %10 = arith.extf %9 : vector<16x256xbf16> to vector<16x256xf32>
    %11 = arith.addf %8, %10 : vector<16x256xf32>
    %cst_9 = arith.constant 0.000000e+00 : f32
    %12 = vector.broadcast %cst_9 : f32 to vector<16x256xf32>
    %13 = arith.maximumf %11, %12 : vector<16x256xf32>
    %14 = arith.truncf %13 : vector<16x256xf32> to vector<16x256xbf16>
    %c0_10 = arith.constant 0 : index
    %c0_11 = arith.constant 0 : index
    %15 = vector.load %arg8[%c0_10, %c0_11] : memref<16x256xbf16, #tpu.memory_space<vmem>>, vector<16x256xbf16>
    tpu.vector_store %arg8[%c0_10, %c0_11], %14 {strides = array<i32>} : memref<16x256xbf16, #tpu.memory_space<vmem>>, vector<16x256xbf16>,
    return
  }
  func.func @transform_0(%arg0: i32, %arg1: i32, %arg2: i32) -> (i32, i32) {
    %c0_i32 = arith.constant 0 : i32
    return %arg0, %arg2 : i32, i32
  }
  func.func @transform_1(%arg0: i32, %arg1: i32, %arg2: i32) -> (i32, i32) {
    %c0_i32 = arith.constant 0 : i32
    return %arg2, %arg1 : i32, i32
  }
  func.func @transform_2(%arg0: i32, %arg1: i32, %arg2: i32) -> (i32, i32) {
    %c0_i32 = arith.constant 0 : i32
    %c0_i32_0 = arith.constant 0 : i32
    return %c0_i32, %arg1 : i32, i32
  }
  func.func @transform_3(%arg0: i32, %arg1: i32, %arg2: i32) -> (i32, i32) {
    %c0_i32 = arith.constant 0 : i32
    %c0_i32_0 = arith.constant 0 : i32
    return %c0_i32, %arg1 : i32, i32
  }
  func.func @transform_4(%arg0: i32, %arg1: i32, %arg2: i32) -> (i32, i32) {
    %c0_i32 = arith.constant 0 : i32
    return %arg0, %arg1 : i32, i32
  }
  func.func @transform_5(%arg0: i32, %arg1: i32, %arg2: i32) -> (i32, i32) {
    %c0_i32 = arith.constant 0 : i32
    return %arg0, %arg1 : i32, i32
  }
}

module attributes {stable_mosaic.version = 11 : i64} {
  func.func @_mm_kernel(%arg0: i32, %arg1: i32, %arg2: i32, %arg3: memref<16x512xbf16, #tpu.memory_space<vmem>>, %arg4: memref<512x256xbf16, #tpu.memory_space<vmem>>, %arg5: memref<1x256xf32, #tpu.memory_space<vmem>>, %arg6: memref<1x256xf32, #tpu.memory_space<vmem>>, %arg7: memref<16x256xbf16, #tpu.memory_space<vmem>>, %arg8: memref<16x256xf32, #tpu.memory_space<vmem>>) attributes {dimension_semantics = [#tpu.dimension_semantics<parallel>, #tpu.dimension_semantics<parallel>, #tpu.dimension_semantics<arbitrary>], iteration_bounds = array<i64: 1, 1, 2>, scalar_prefetch = 0 : i64, scratch_operands = 1 : i64, tpu.core_type = #tpu.core_type<tc>, window_params = [{transform_indices = @transform_0, window_bounds = array<i64: 16, 512>}, {transform_indices = @transform_1, window_bounds = array<i64: 512, 256>}, {transform_indices = @transform_2, window_bounds = array<i64: 1, 256>}, {transform_indices = @transform_3, window_bounds = array<i64: 1, 256>}, {transform_indices = @transform_4, window_bounds = array<i64: 16, 256>}]} {
    %c0_i32 = arith.constant 0 : i32
    %0 = arith.cmpi eq, %arg2, %c0_i32 : i32
    %1 = arith.extui %0 : i1 to i32
    %c0_i32_0 = arith.constant 0 : i32
    %2 = arith.cmpi ne, %1, %c0_i32_0 : i32
    scf.if %2 {
      %cst_9 = arith.constant 0.000000e+00 : f32
      %12 = vector.broadcast %cst_9 : f32 to vector<16x256xf32>
      %c0_10 = arith.constant 0 : index
      %c0_11 = arith.constant 0 : index
      %13 = vector.load %arg8[%c0_10, %c0_11] : memref<16x256xf32, #tpu.memory_space<vmem>>, vector<16x256xf32>
      tpu.vector_store %arg8[%c0_10, %c0_11], %12 {strides = array<i32>} : memref<16x256xf32, #tpu.memory_space<vmem>>, vector<16x256xf32>,
    } else {
    }
    %c0 = arith.constant 0 : index
    %c0_1 = arith.constant 0 : index
    %3 = vector.load %arg8[%c0, %c0_1] : memref<16x256xf32, #tpu.memory_space<vmem>>, vector<16x256xf32>
    %c0_2 = arith.constant 0 : index
    %c0_3 = arith.constant 0 : index
    %4 = vector.load %arg3[%c0_2, %c0_3] : memref<16x512xbf16, #tpu.memory_space<vmem>>, vector<16x512xbf16>
    %c0_4 = arith.constant 0 : index
    %c0_5 = arith.constant 0 : index
    %5 = vector.load %arg4[%c0_4, %c0_5] : memref<512x256xbf16, #tpu.memory_space<vmem>>, vector<512x256xbf16>
    %cst = arith.constant dense<0.000000e+00> : vector<16x256xf32>
    %6 = tpu.matmul %4, %5, %cst {dimension_numbers = #tpu.dot_dimension_numbers<[1], [0], [0], [1], [0, 0, 1, 1], [], []>} : vector<16x512xbf16>, vector<512x256xbf16>, vector<16x256xf32> -> vector<16x256xf32>
    %7 = arith.addf %3, %6 : vector<16x256xf32>
    %c0_6 = arith.constant 0 : index
    %c0_7 = arith.constant 0 : index
    %8 = vector.load %arg8[%c0_6, %c0_7] : memref<16x256xf32, #tpu.memory_space<vmem>>, vector<16x256xf32>
    tpu.vector_store %arg8[%c0_6, %c0_7], %7 {strides = array<i32>} : memref<16x256xf32, #tpu.memory_space<vmem>>, vector<16x256xf32>,
    %c1_i32 = arith.constant 1 : i32
    %9 = arith.cmpi eq, %arg2, %c1_i32 : i32
    %10 = arith.extui %9 : i1 to i32
    %c0_i32_8 = arith.constant 0 : i32
    %11 = arith.cmpi ne, %10, %c0_i32_8 : i32
    scf.if %11 {
      %c0_9 = arith.constant 0 : index
      %c0_10 = arith.constant 0 : index
      %12 = vector.load %arg8[%c0_9, %c0_10] : memref<16x256xf32, #tpu.memory_space<vmem>>, vector<16x256xf32>
      %c0_11 = arith.constant 0 : index
      %c0_12 = arith.constant 0 : index
      %13 = vector.load %arg5[%c0_11, %c0_12] : memref<1x256xf32, #tpu.memory_space<vmem>>, vector<1x256xf32>
      %14 = vector.broadcast %13 : vector<1x256xf32> to vector<16x256xf32>
      %15 = arith.mulf %12, %14 : vector<16x256xf32>
      %c0_13 = arith.constant 0 : index
      %c0_14 = arith.constant 0 : index
      %16 = vector.load %arg6[%c0_13, %c0_14] : memref<1x256xf32, #tpu.memory_space<vmem>>, vector<1x256xf32>
      %17 = vector.broadcast %16 : vector<1x256xf32> to vector<16x256xf32>
      %18 = arith.addf %15, %17 : vector<16x256xf32>
      %cst_15 = arith.constant 0.000000e+00 : f32
      %19 = vector.broadcast %cst_15 : f32 to vector<16x256xf32>
      %20 = arith.maximumf %18, %19 : vector<16x256xf32>
      %21 = arith.truncf %20 : vector<16x256xf32> to vector<16x256xbf16>
      %c0_16 = arith.constant 0 : index
      %c0_17 = arith.constant 0 : index
      %22 = vector.load %arg7[%c0_16, %c0_17] : memref<16x256xbf16, #tpu.memory_space<vmem>>, vector<16x256xbf16>
      tpu.vector_store %arg7[%c0_16, %c0_17], %21 {strides = array<i32>} : memref<16x256xbf16, #tpu.memory_space<vmem>>, vector<16x256xbf16>,
    } else {
    }
    return
  }
  func.func @transform_0(%arg0: i32, %arg1: i32, %arg2: i32) -> (i32, i32) {
    %c0_i32 = arith.constant 0 : i32
    return %arg0, %arg2 : i32, i32
  }
  func.func @transform_1(%arg0: i32, %arg1: i32, %arg2: i32) -> (i32, i32) {
    %c0_i32 = arith.constant 0 : i32
    return %arg2, %arg1 : i32, i32
  }
  func.func @transform_2(%arg0: i32, %arg1: i32, %arg2: i32) -> (i32, i32) {
    %c0_i32 = arith.constant 0 : i32
    %c0_i32_0 = arith.constant 0 : i32
    return %c0_i32, %arg1 : i32, i32
  }
  func.func @transform_3(%arg0: i32, %arg1: i32, %arg2: i32) -> (i32, i32) {
    %c0_i32 = arith.constant 0 : i32
    %c0_i32_0 = arith.constant 0 : i32
    return %c0_i32, %arg1 : i32, i32
  }
  func.func @transform_4(%arg0: i32, %arg1: i32, %arg2: i32) -> (i32, i32) {
    %c0_i32 = arith.constant 0 : i32
    return %arg0, %arg1 : i32, i32
  }
}

module attributes {stable_mosaic.version = 11 : i64} {
  func.func @_mm_kernel(%arg0: i32, %arg1: i32, %arg2: i32, %arg3: memref<16x512xbf16, #tpu.memory_space<vmem>>, %arg4: memref<512x256xbf16, #tpu.memory_space<vmem>>, %arg5: memref<1x256xf32, #tpu.memory_space<vmem>>, %arg6: memref<1x256xf32, #tpu.memory_space<vmem>>, %arg7: memref<16x256xbf16, #tpu.memory_space<vmem>>, %arg8: memref<16x256xf32, #tpu.memory_space<vmem>>) attributes {dimension_semantics = [#tpu.dimension_semantics<parallel>, #tpu.dimension_semantics<parallel>, #tpu.dimension_semantics<arbitrary>], iteration_bounds = array<i64: 1, 2, 2>, scalar_prefetch = 0 : i64, scratch_operands = 1 : i64, tpu.core_type = #tpu.core_type<tc>, window_params = [{transform_indices = @transform_0, window_bounds = array<i64: 16, 512>}, {transform_indices = @transform_1, window_bounds = array<i64: 512, 256>}, {transform_indices = @transform_2, window_bounds = array<i64: 1, 256>}, {transform_indices = @transform_3, window_bounds = array<i64: 1, 256>}, {transform_indices = @transform_4, window_bounds = array<i64: 16, 256>}]} {
    %c0_i32 = arith.constant 0 : i32
    %0 = arith.cmpi eq, %arg2, %c0_i32 : i32
    %1 = arith.extui %0 : i1 to i32
    %c0_i32_0 = arith.constant 0 : i32
    %2 = arith.cmpi ne, %1, %c0_i32_0 : i32
    scf.if %2 {
      %cst_9 = arith.constant 0.000000e+00 : f32
      %12 = vector.broadcast %cst_9 : f32 to vector<16x256xf32>
      %c0_10 = arith.constant 0 : index
      %c0_11 = arith.constant 0 : index
      %13 = vector.load %arg8[%c0_10, %c0_11] : memref<16x256xf32, #tpu.memory_space<vmem>>, vector<16x256xf32>
      tpu.vector_store %arg8[%c0_10, %c0_11], %12 {strides = array<i32>} : memref<16x256xf32, #tpu.memory_space<vmem>>, vector<16x256xf32>,
    } else {
    }
    %c0 = arith.constant 0 : index
    %c0_1 = arith.constant 0 : index
    %3 = vector.load %arg8[%c0, %c0_1] : memref<16x256xf32, #tpu.memory_space<vmem>>, vector<16x256xf32>
    %c0_2 = arith.constant 0 : index
    %c0_3 = arith.constant 0 : index
    %4 = vector.load %arg3[%c0_2, %c0_3] : memref<16x512xbf16, #tpu.memory_space<vmem>>, vector<16x512xbf16>
    %c0_4 = arith.constant 0 : index
    %c0_5 = arith.constant 0 : index
    %5 = vector.load %arg4[%c0_4, %c0_5] : memref<512x256xbf16, #tpu.memory_space<vmem>>, vector<512x256xbf16>
    %cst = arith.constant dense<0.000000e+00> : vector<16x256xf32>
    %6 = tpu.matmul %4, %5, %cst {dimension_numbers = #tpu.dot_dimension_numbers<[1], [0], [0], [1], [0, 0, 1, 1], [], []>} : vector<16x512xbf16>, vector<512x256xbf16>, vector<16x256xf32> -> vector<16x256xf32>
    %7 = arith.addf %3, %6 : vector<16x256xf32>
    %c0_6 = arith.constant 0 : index
    %c0_7 = arith.constant 0 : index
    %8 = vector.load %arg8[%c0_6, %c0_7] : memref<16x256xf32, #tpu.memory_space<vmem>>, vector<16x256xf32>
    tpu.vector_store %arg8[%c0_6, %c0_7], %7 {strides = array<i32>} : memref<16x256xf32, #tpu.memory_space<vmem>>, vector<16x256xf32>,
    %c1_i32 = arith.constant 1 : i32
    %9 = arith.cmpi eq, %arg2, %c1_i32 : i32
    %10 = arith.extui %9 : i1 to i32
    %c0_i32_8 = arith.constant 0 : i32
    %11 = arith.cmpi ne, %10, %c0_i32_8 : i32
    scf.if %11 {
      %c0_9 = arith.constant 0 : index
      %c0_10 = arith.constant 0 : index
      %12 = vector.load %arg8[%c0_9, %c0_10] : memref<16x256xf32, #tpu.memory_space<vmem>>, vector<16x256xf32>
      %c0_11 = arith.constant 0 : index
      %c0_12 = arith.constant 0 : index
      %13 = vector.load %arg5[%c0_11, %c0_12] : memref<1x256xf32, #tpu.memory_space<vmem>>, vector<1x256xf32>
      %14 = vector.broadcast %13 : vector<1x256xf32> to vector<16x256xf32>
      %15 = arith.mulf %12, %14 : vector<16x256xf32>
      %c0_13 = arith.constant 0 : index
      %c0_14 = arith.constant 0 : index
      %16 = vector.load %arg6[%c0_13, %c0_14] : memref<1x256xf32, #tpu.memory_space<vmem>>, vector<1x256xf32>
      %17 = vector.broadcast %16 : vector<1x256xf32> to vector<16x256xf32>
      %18 = arith.addf %15, %17 : vector<16x256xf32>
      %cst_15 = arith.constant 0.000000e+00 : f32
      %19 = vector.broadcast %cst_15 : f32 to vector<16x256xf32>
      %20 = arith.maximumf %18, %19 : vector<16x256xf32>
      %21 = arith.truncf %20 : vector<16x256xf32> to vector<16x256xbf16>
      %c0_16 = arith.constant 0 : index
      %c0_17 = arith.constant 0 : index
      %22 = vector.load %arg7[%c0_16, %c0_17] : memref<16x256xbf16, #tpu.memory_space<vmem>>, vector<16x256xbf16>
      tpu.vector_store %arg7[%c0_16, %c0_17], %21 {strides = array<i32>} : memref<16x256xbf16, #tpu.memory_space<vmem>>, vector<16x256xbf16>,
    } else {
    }
    return
  }
  func.func @transform_0(%arg0: i32, %arg1: i32, %arg2: i32) -> (i32, i32) {
    %c0_i32 = arith.constant 0 : i32
    return %arg0, %arg2 : i32, i32
  }
  func.func @transform_1(%arg0: i32, %arg1: i32, %arg2: i32) -> (i32, i32) {
    %c0_i32 = arith.constant 0 : i32
    return %arg2, %arg1 : i32, i32
  }
  func.func @transform_2(%arg0: i32, %arg1: i32, %arg2: i32) -> (i32, i32) {
    %c0_i32 = arith.constant 0 : i32
    %c0_i32_0 = arith.constant 0 : i32
    return %c0_i32, %arg1 : i32, i32
  }
  func.func @transform_3(%arg0: i32, %arg1: i32, %arg2: i32) -> (i32, i32) {
    %c0_i32 = arith.constant 0 : i32
    %c0_i32_0 = arith.constant 0 : i32
    return %c0_i32, %arg1 : i32, i32
  }
  func.func @transform_4(%arg0: i32, %arg1: i32, %arg2: i32) -> (i32, i32) {
    %c0_i32 = arith.constant 0 : i32
    return %arg0, %arg1 : i32, i32
  }
}

module attributes {stable_mosaic.version = 11 : i64} {
  func.func @_mm_kernel(%arg0: i32, %arg1: i32, %arg2: i32, %arg3: memref<16x512xbf16, #tpu.memory_space<vmem>>, %arg4: memref<512x256xbf16, #tpu.memory_space<vmem>>, %arg5: memref<1x256xf32, #tpu.memory_space<vmem>>, %arg6: memref<1x256xf32, #tpu.memory_space<vmem>>, %arg7: memref<16x256xbf16, #tpu.memory_space<vmem>>, %arg8: memref<16x256xf32, #tpu.memory_space<vmem>>) attributes {dimension_semantics = [#tpu.dimension_semantics<parallel>, #tpu.dimension_semantics<parallel>, #tpu.dimension_semantics<arbitrary>], iteration_bounds = array<i64: 1, 2, 9>, scalar_prefetch = 0 : i64, scratch_operands = 1 : i64, tpu.core_type = #tpu.core_type<tc>, window_params = [{transform_indices = @transform_0, window_bounds = array<i64: 16, 512>}, {transform_indices = @transform_1, window_bounds = array<i64: 512, 256>}, {transform_indices = @transform_2, window_bounds = array<i64: 1, 256>}, {transform_indices = @transform_3, window_bounds = array<i64: 1, 256>}, {transform_indices = @transform_4, window_bounds = array<i64: 16, 256>}]} {
    %c0_i32 = arith.constant 0 : i32
    %0 = arith.cmpi eq, %arg2, %c0_i32 : i32
    %1 = arith.extui %0 : i1 to i32
    %c0_i32_0 = arith.constant 0 : i32
    %2 = arith.cmpi ne, %1, %c0_i32_0 : i32
    scf.if %2 {
      %cst_9 = arith.constant 0.000000e+00 : f32
      %12 = vector.broadcast %cst_9 : f32 to vector<16x256xf32>
      %c0_10 = arith.constant 0 : index
      %c0_11 = arith.constant 0 : index
      %13 = vector.load %arg8[%c0_10, %c0_11] : memref<16x256xf32, #tpu.memory_space<vmem>>, vector<16x256xf32>
      tpu.vector_store %arg8[%c0_10, %c0_11], %12 {strides = array<i32>} : memref<16x256xf32, #tpu.memory_space<vmem>>, vector<16x256xf32>,
    } else {
    }
    %c0 = arith.constant 0 : index
    %c0_1 = arith.constant 0 : index
    %3 = vector.load %arg8[%c0, %c0_1] : memref<16x256xf32, #tpu.memory_space<vmem>>, vector<16x256xf32>
    %c0_2 = arith.constant 0 : index
    %c0_3 = arith.constant 0 : index
    %4 = vector.load %arg3[%c0_2, %c0_3] : memref<16x512xbf16, #tpu.memory_space<vmem>>, vector<16x512xbf16>
    %c0_4 = arith.constant 0 : index
    %c0_5 = arith.constant 0 : index
    %5 = vector.load %arg4[%c0_4, %c0_5] : memref<512x256xbf16, #tpu.memory_space<vmem>>, vector<512x256xbf16>
    %cst = arith.constant dense<0.000000e+00> : vector<16x256xf32>
    %6 = tpu.matmul %4, %5, %cst {dimension_numbers = #tpu.dot_dimension_numbers<[1], [0], [0], [1], [0, 0, 1, 1], [], []>} : vector<16x512xbf16>, vector<512x256xbf16>, vector<16x256xf32> -> vector<16x256xf32>
    %7 = arith.addf %3, %6 : vector<16x256xf32>
    %c0_6 = arith.constant 0 : index
    %c0_7 = arith.constant 0 : index
    %8 = vector.load %arg8[%c0_6, %c0_7] : memref<16x256xf32, #tpu.memory_space<vmem>>, vector<16x256xf32>
    tpu.vector_store %arg8[%c0_6, %c0_7], %7 {strides = array<i32>} : memref<16x256xf32, #tpu.memory_space<vmem>>, vector<16x256xf32>,
    %c8_i32 = arith.constant 8 : i32
    %9 = arith.cmpi eq, %arg2, %c8_i32 : i32
    %10 = arith.extui %9 : i1 to i32
    %c0_i32_8 = arith.constant 0 : i32
    %11 = arith.cmpi ne, %10, %c0_i32_8 : i32
    scf.if %11 {
      %c0_9 = arith.constant 0 : index
      %c0_10 = arith.constant 0 : index
      %12 = vector.load %arg8[%c0_9, %c0_10] : memref<16x256xf32, #tpu.memory_space<vmem>>, vector<16x256xf32>
      %c0_11 = arith.constant 0 : index
      %c0_12 = arith.constant 0 : index
      %13 = vector.load %arg5[%c0_11, %c0_12] : memref<1x256xf32, #tpu.memory_space<vmem>>, vector<1x256xf32>
      %14 = vector.broadcast %13 : vector<1x256xf32> to vector<16x256xf32>
      %15 = arith.mulf %12, %14 : vector<16x256xf32>
      %c0_13 = arith.constant 0 : index
      %c0_14 = arith.constant 0 : index
      %16 = vector.load %arg6[%c0_13, %c0_14] : memref<1x256xf32, #tpu.memory_space<vmem>>, vector<1x256xf32>
      %17 = vector.broadcast %16 : vector<1x256xf32> to vector<16x256xf32>
      %18 = arith.addf %15, %17 : vector<16x256xf32>
      %cst_15 = arith.constant 0.000000e+00 : f32
      %19 = vector.broadcast %cst_15 : f32 to vector<16x256xf32>
      %20 = arith.maximumf %18, %19 : vector<16x256xf32>
      %21 = arith.truncf %20 : vector<16x256xf32> to vector<16x256xbf16>
      %c0_16 = arith.constant 0 : index
      %c0_17 = arith.constant 0 : index
      %22 = vector.load %arg7[%c0_16, %c0_17] : memref<16x256xbf16, #tpu.memory_space<vmem>>, vector<16x256xbf16>
      tpu.vector_store %arg7[%c0_16, %c0_17], %21 {strides = array<i32>} : memref<16x256xbf16, #tpu.memory_space<vmem>>, vector<16x256xbf16>,
    } else {
    }
    return
  }
  func.func @transform_0(%arg0: i32, %arg1: i32, %arg2: i32) -> (i32, i32) {
    %c0_i32 = arith.constant 0 : i32
    return %arg0, %arg2 : i32, i32
  }
  func.func @transform_1(%arg0: i32, %arg1: i32, %arg2: i32) -> (i32, i32) {
    %c0_i32 = arith.constant 0 : i32
    return %arg2, %arg1 : i32, i32
  }
  func.func @transform_2(%arg0: i32, %arg1: i32, %arg2: i32) -> (i32, i32) {
    %c0_i32 = arith.constant 0 : i32
    %c0_i32_0 = arith.constant 0 : i32
    return %c0_i32, %arg1 : i32, i32
  }
  func.func @transform_3(%arg0: i32, %arg1: i32, %arg2: i32) -> (i32, i32) {
    %c0_i32 = arith.constant 0 : i32
    %c0_i32_0 = arith.constant 0 : i32
    return %c0_i32, %arg1 : i32, i32
  }
  func.func @transform_4(%arg0: i32, %arg1: i32, %arg2: i32) -> (i32, i32) {
    %c0_i32 = arith.constant 0 : i32
    return %arg0, %arg1 : i32, i32
  }
}

module attributes {stable_mosaic.version = 11 : i64} {
  func.func @_mm_kernel(%arg0: i32, %arg1: i32, %arg2: i32, %arg3: memref<16x512xbf16, #tpu.memory_space<vmem>>, %arg4: memref<512x256xbf16, #tpu.memory_space<vmem>>, %arg5: memref<1x256xf32, #tpu.memory_space<vmem>>, %arg6: memref<1x256xf32, #tpu.memory_space<vmem>>, %arg7: memref<16x256xbf16, #tpu.memory_space<vmem>>, %arg8: memref<16x256xf32, #tpu.memory_space<vmem>>) attributes {dimension_semantics = [#tpu.dimension_semantics<parallel>, #tpu.dimension_semantics<parallel>, #tpu.dimension_semantics<arbitrary>], iteration_bounds = array<i64: 1, 8, 2>, scalar_prefetch = 0 : i64, scratch_operands = 1 : i64, tpu.core_type = #tpu.core_type<tc>, window_params = [{transform_indices = @transform_0, window_bounds = array<i64: 16, 512>}, {transform_indices = @transform_1, window_bounds = array<i64: 512, 256>}, {transform_indices = @transform_2, window_bounds = array<i64: 1, 256>}, {transform_indices = @transform_3, window_bounds = array<i64: 1, 256>}, {transform_indices = @transform_4, window_bounds = array<i64: 16, 256>}]} {
    %c0_i32 = arith.constant 0 : i32
    %0 = arith.cmpi eq, %arg2, %c0_i32 : i32
    %1 = arith.extui %0 : i1 to i32
    %c0_i32_0 = arith.constant 0 : i32
    %2 = arith.cmpi ne, %1, %c0_i32_0 : i32
    scf.if %2 {
      %cst_9 = arith.constant 0.000000e+00 : f32
      %12 = vector.broadcast %cst_9 : f32 to vector<16x256xf32>
      %c0_10 = arith.constant 0 : index
      %c0_11 = arith.constant 0 : index
      %13 = vector.load %arg8[%c0_10, %c0_11] : memref<16x256xf32, #tpu.memory_space<vmem>>, vector<16x256xf32>
      tpu.vector_store %arg8[%c0_10, %c0_11], %12 {strides = array<i32>} : memref<16x256xf32, #tpu.memory_space<vmem>>, vector<16x256xf32>,
    } else {
    }
    %c0 = arith.constant 0 : index
    %c0_1 = arith.constant 0 : index
    %3 = vector.load %arg8[%c0, %c0_1] : memref<16x256xf32, #tpu.memory_space<vmem>>, vector<16x256xf32>
    %c0_2 = arith.constant 0 : index
    %c0_3 = arith.constant 0 : index
    %4 = vector.load %arg3[%c0_2, %c0_3] : memref<16x512xbf16, #tpu.memory_space<vmem>>, vector<16x512xbf16>
    %c0_4 = arith.constant 0 : index
    %c0_5 = arith.constant 0 : index
    %5 = vector.load %arg4[%c0_4, %c0_5] : memref<512x256xbf16, #tpu.memory_space<vmem>>, vector<512x256xbf16>
    %cst = arith.constant dense<0.000000e+00> : vector<16x256xf32>
    %6 = tpu.matmul %4, %5, %cst {dimension_numbers = #tpu.dot_dimension_numbers<[1], [0], [0], [1], [0, 0, 1, 1], [], []>} : vector<16x512xbf16>, vector<512x256xbf16>, vector<16x256xf32> -> vector<16x256xf32>
    %7 = arith.addf %3, %6 : vector<16x256xf32>
    %c0_6 = arith.constant 0 : index
    %c0_7 = arith.constant 0 : index
    %8 = vector.load %arg8[%c0_6, %c0_7] : memref<16x256xf32, #tpu.memory_space<vmem>>, vector<16x256xf32>
    tpu.vector_store %arg8[%c0_6, %c0_7], %7 {strides = array<i32>} : memref<16x256xf32, #tpu.memory_space<vmem>>, vector<16x256xf32>,
    %c1_i32 = arith.constant 1 : i32
    %9 = arith.cmpi eq, %arg2, %c1_i32 : i32
    %10 = arith.extui %9 : i1 to i32
    %c0_i32_8 = arith.constant 0 : i32
    %11 = arith.cmpi ne, %10, %c0_i32_8 : i32
    scf.if %11 {
      %c0_9 = arith.constant 0 : index
      %c0_10 = arith.constant 0 : index
      %12 = vector.load %arg8[%c0_9, %c0_10] : memref<16x256xf32, #tpu.memory_space<vmem>>, vector<16x256xf32>
      %c0_11 = arith.constant 0 : index
      %c0_12 = arith.constant 0 : index
      %13 = vector.load %arg5[%c0_11, %c0_12] : memref<1x256xf32, #tpu.memory_space<vmem>>, vector<1x256xf32>
      %14 = vector.broadcast %13 : vector<1x256xf32> to vector<16x256xf32>
      %15 = arith.mulf %12, %14 : vector<16x256xf32>
      %c0_13 = arith.constant 0 : index
      %c0_14 = arith.constant 0 : index
      %16 = vector.load %arg6[%c0_13, %c0_14] : memref<1x256xf32, #tpu.memory_space<vmem>>, vector<1x256xf32>
      %17 = vector.broadcast %16 : vector<1x256xf32> to vector<16x256xf32>
      %18 = arith.addf %15, %17 : vector<16x256xf32>
      %19 = arith.truncf %18 : vector<16x256xf32> to vector<16x256xbf16>
      %c0_15 = arith.constant 0 : index
      %c0_16 = arith.constant 0 : index
      %20 = vector.load %arg7[%c0_15, %c0_16] : memref<16x256xbf16, #tpu.memory_space<vmem>>, vector<16x256xbf16>
      tpu.vector_store %arg7[%c0_15, %c0_16], %19 {strides = array<i32>} : memref<16x256xbf16, #tpu.memory_space<vmem>>, vector<16x256xbf16>,
    } else {
    }
    return
  }
  func.func @transform_0(%arg0: i32, %arg1: i32, %arg2: i32) -> (i32, i32) {
    %c0_i32 = arith.constant 0 : i32
    return %arg0, %arg2 : i32, i32
  }
  func.func @transform_1(%arg0: i32, %arg1: i32, %arg2: i32) -> (i32, i32) {
    %c0_i32 = arith.constant 0 : i32
    return %arg2, %arg1 : i32, i32
  }
  func.func @transform_2(%arg0: i32, %arg1: i32, %arg2: i32) -> (i32, i32) {
    %c0_i32 = arith.constant 0 : i32
    %c0_i32_0 = arith.constant 0 : i32
    return %c0_i32, %arg1 : i32, i32
  }
  func.func @transform_3(%arg0: i32, %arg1: i32, %arg2: i32) -> (i32, i32) {
    %c0_i32 = arith.constant 0 : i32
    %c0_i32_0 = arith.constant 0 : i32
    return %c0_i32, %arg1 : i32, i32
  }
  func.func @transform_4(%arg0: i32, %arg1: i32, %arg2: i32) -> (i32, i32) {
    %c0_i32 = arith.constant 0 : i32
    return %arg0, %arg1 : i32, i32
  }
}

module attributes {stable_mosaic.version = 11 : i64} {
  func.func @_mm_kernel(%arg0: i32, %arg1: i32, %arg2: i32, %arg3: memref<16x512xbf16, #tpu.memory_space<vmem>>, %arg4: memref<512x256xbf16, #tpu.memory_space<vmem>>, %arg5: memref<1x256xf32, #tpu.memory_space<vmem>>, %arg6: memref<1x256xf32, #tpu.memory_space<vmem>>, %arg7: memref<16x256xbf16, #tpu.memory_space<vmem>>, %arg8: memref<16x256xbf16, #tpu.memory_space<vmem>>) attributes {dimension_semantics = [#tpu.dimension_semantics<parallel>, #tpu.dimension_semantics<parallel>, #tpu.dimension_semantics<arbitrary>], iteration_bounds = array<i64: 1, 8, 1>, scalar_prefetch = 0 : i64, scratch_operands = 0 : i64, tpu.core_type = #tpu.core_type<tc>, window_params = [{transform_indices = @transform_0, window_bounds = array<i64: 16, 512>}, {transform_indices = @transform_1, window_bounds = array<i64: 512, 256>}, {transform_indices = @transform_2, window_bounds = array<i64: 1, 256>}, {transform_indices = @transform_3, window_bounds = array<i64: 1, 256>}, {transform_indices = @transform_4, window_bounds = array<i64: 16, 256>}, {transform_indices = @transform_5, window_bounds = array<i64: 16, 256>}]} {
    %c0 = arith.constant 0 : index
    %c0_0 = arith.constant 0 : index
    %0 = vector.load %arg3[%c0, %c0_0] : memref<16x512xbf16, #tpu.memory_space<vmem>>, vector<16x512xbf16>
    %c0_1 = arith.constant 0 : index
    %c0_2 = arith.constant 0 : index
    %1 = vector.load %arg4[%c0_1, %c0_2] : memref<512x256xbf16, #tpu.memory_space<vmem>>, vector<512x256xbf16>
    %cst = arith.constant dense<0.000000e+00> : vector<16x256xf32>
    %2 = tpu.matmul %0, %1, %cst {dimension_numbers = #tpu.dot_dimension_numbers<[1], [0], [0], [1], [0, 0, 1, 1], [], []>} : vector<16x512xbf16>, vector<512x256xbf16>, vector<16x256xf32> -> vector<16x256xf32>
    %c0_3 = arith.constant 0 : index
    %c0_4 = arith.constant 0 : index
    %3 = vector.load %arg5[%c0_3, %c0_4] : memref<1x256xf32, #tpu.memory_space<vmem>>, vector<1x256xf32>
    %4 = vector.broadcast %3 : vector<1x256xf32> to vector<16x256xf32>
    %5 = arith.mulf %2, %4 : vector<16x256xf32>
    %c0_5 = arith.constant 0 : index
    %c0_6 = arith.constant 0 : index
    %6 = vector.load %arg6[%c0_5, %c0_6] : memref<1x256xf32, #tpu.memory_space<vmem>>, vector<1x256xf32>
    %7 = vector.broadcast %6 : vector<1x256xf32> to vector<16x256xf32>
    %8 = arith.addf %5, %7 : vector<16x256xf32>
    %c0_7 = arith.constant 0 : index
    %c0_8 = arith.constant 0 : index
    %9 = vector.load %arg7[%c0_7, %c0_8] : memref<16x256xbf16, #tpu.memory_space<vmem>>, vector<16x256xbf16>
    %10 = arith.extf %9 : vector<16x256xbf16> to vector<16x256xf32>
    %11 = arith.addf %8, %10 : vector<16x256xf32>
    %cst_9 = arith.constant 0.000000e+00 : f32
    %12 = vector.broadcast %cst_9 : f32 to vector<16x256xf32>
    %13 = arith.maximumf %11, %12 : vector<16x256xf32>
    %14 = arith.truncf %13 : vector<16x256xf32> to vector<16x256xbf16>
    %c0_10 = arith.constant 0 : index
    %c0_11 = arith.constant 0 : index
    %15 = vector.load %arg8[%c0_10, %c0_11] : memref<16x256xbf16, #tpu.memory_space<vmem>>, vector<16x256xbf16>
    tpu.vector_store %arg8[%c0_10, %c0_11], %14 {strides = array<i32>} : memref<16x256xbf16, #tpu.memory_space<vmem>>, vector<16x256xbf16>,
    return
  }
  func.func @transform_0(%arg0: i32, %arg1: i32, %arg2: i32) -> (i32, i32) {
    %c0_i32 = arith.constant 0 : i32
    return %arg0, %arg2 : i32, i32
  }
  func.func @transform_1(%arg0: i32, %arg1: i32, %arg2: i32) -> (i32, i32) {
    %c0_i32 = arith.constant 0 : i32
    return %arg2, %arg1 : i32, i32
  }
  func.func @transform_2(%arg0: i32, %arg1: i32, %arg2: i32) -> (i32, i32) {
    %c0_i32 = arith.constant 0 : i32
    %c0_i32_0 = arith.constant 0 : i32
    return %c0_i32, %arg1 : i32, i32
  }
  func.func @transform_3(%arg0: i32, %arg1: i32, %arg2: i32) -> (i32, i32) {
    %c0_i32 = arith.constant 0 : i32
    %c0_i32_0 = arith.constant 0 : i32
    return %c0_i32, %arg1 : i32, i32
  }
  func.func @transform_4(%arg0: i32, %arg1: i32, %arg2: i32) -> (i32, i32) {
    %c0_i32 = arith.constant 0 : i32
    return %arg0, %arg1 : i32, i32
  }
  func.func @transform_5(%arg0: i32, %arg1: i32, %arg2: i32) -> (i32, i32) {
    %c0_i32 = arith.constant 0 : i32
    return %arg0, %arg1 : i32, i32
  }
}

module attributes {stable_mosaic.version = 11 : i64} {
  func.func @_mm_kernel(%arg0: i32, %arg1: i32, %arg2: i32, %arg3: memref<16x512xbf16, #tpu.memory_space<vmem>>, %arg4: memref<512x256xbf16, #tpu.memory_space<vmem>>, %arg5: memref<1x256xf32, #tpu.memory_space<vmem>>, %arg6: memref<1x256xf32, #tpu.memory_space<vmem>>, %arg7: memref<16x256xbf16, #tpu.memory_space<vmem>>, %arg8: memref<16x256xf32, #tpu.memory_space<vmem>>) attributes {dimension_semantics = [#tpu.dimension_semantics<parallel>, #tpu.dimension_semantics<parallel>, #tpu.dimension_semantics<arbitrary>], iteration_bounds = array<i64: 1, 2, 4>, scalar_prefetch = 0 : i64, scratch_operands = 1 : i64, tpu.core_type = #tpu.core_type<tc>, window_params = [{transform_indices = @transform_0, window_bounds = array<i64: 16, 512>}, {transform_indices = @transform_1, window_bounds = array<i64: 512, 256>}, {transform_indices = @transform_2, window_bounds = array<i64: 1, 256>}, {transform_indices = @transform_3, window_bounds = array<i64: 1, 256>}, {transform_indices = @transform_4, window_bounds = array<i64: 16, 256>}]} {
    %c0_i32 = arith.constant 0 : i32
    %0 = arith.cmpi eq, %arg2, %c0_i32 : i32
    %1 = arith.extui %0 : i1 to i32
    %c0_i32_0 = arith.constant 0 : i32
    %2 = arith.cmpi ne, %1, %c0_i32_0 : i32
    scf.if %2 {
      %cst_9 = arith.constant 0.000000e+00 : f32
      %12 = vector.broadcast %cst_9 : f32 to vector<16x256xf32>
      %c0_10 = arith.constant 0 : index
      %c0_11 = arith.constant 0 : index
      %13 = vector.load %arg8[%c0_10, %c0_11] : memref<16x256xf32, #tpu.memory_space<vmem>>, vector<16x256xf32>
      tpu.vector_store %arg8[%c0_10, %c0_11], %12 {strides = array<i32>} : memref<16x256xf32, #tpu.memory_space<vmem>>, vector<16x256xf32>,
    } else {
    }
    %c0 = arith.constant 0 : index
    %c0_1 = arith.constant 0 : index
    %3 = vector.load %arg8[%c0, %c0_1] : memref<16x256xf32, #tpu.memory_space<vmem>>, vector<16x256xf32>
    %c0_2 = arith.constant 0 : index
    %c0_3 = arith.constant 0 : index
    %4 = vector.load %arg3[%c0_2, %c0_3] : memref<16x512xbf16, #tpu.memory_space<vmem>>, vector<16x512xbf16>
    %c0_4 = arith.constant 0 : index
    %c0_5 = arith.constant 0 : index
    %5 = vector.load %arg4[%c0_4, %c0_5] : memref<512x256xbf16, #tpu.memory_space<vmem>>, vector<512x256xbf16>
    %cst = arith.constant dense<0.000000e+00> : vector<16x256xf32>
    %6 = tpu.matmul %4, %5, %cst {dimension_numbers = #tpu.dot_dimension_numbers<[1], [0], [0], [1], [0, 0, 1, 1], [], []>} : vector<16x512xbf16>, vector<512x256xbf16>, vector<16x256xf32> -> vector<16x256xf32>
    %7 = arith.addf %3, %6 : vector<16x256xf32>
    %c0_6 = arith.constant 0 : index
    %c0_7 = arith.constant 0 : index
    %8 = vector.load %arg8[%c0_6, %c0_7] : memref<16x256xf32, #tpu.memory_space<vmem>>, vector<16x256xf32>
    tpu.vector_store %arg8[%c0_6, %c0_7], %7 {strides = array<i32>} : memref<16x256xf32, #tpu.memory_space<vmem>>, vector<16x256xf32>,
    %c3_i32 = arith.constant 3 : i32
    %9 = arith.cmpi eq, %arg2, %c3_i32 : i32
    %10 = arith.extui %9 : i1 to i32
    %c0_i32_8 = arith.constant 0 : i32
    %11 = arith.cmpi ne, %10, %c0_i32_8 : i32
    scf.if %11 {
      %c0_9 = arith.constant 0 : index
      %c0_10 = arith.constant 0 : index
      %12 = vector.load %arg8[%c0_9, %c0_10] : memref<16x256xf32, #tpu.memory_space<vmem>>, vector<16x256xf32>
      %c0_11 = arith.constant 0 : index
      %c0_12 = arith.constant 0 : index
      %13 = vector.load %arg5[%c0_11, %c0_12] : memref<1x256xf32, #tpu.memory_space<vmem>>, vector<1x256xf32>
      %14 = vector.broadcast %13 : vector<1x256xf32> to vector<16x256xf32>
      %15 = arith.mulf %12, %14 : vector<16x256xf32>
      %c0_13 = arith.constant 0 : index
      %c0_14 = arith.constant 0 : index
      %16 = vector.load %arg6[%c0_13, %c0_14] : memref<1x256xf32, #tpu.memory_space<vmem>>, vector<1x256xf32>
      %17 = vector.broadcast %16 : vector<1x256xf32> to vector<16x256xf32>
      %18 = arith.addf %15, %17 : vector<16x256xf32>
      %cst_15 = arith.constant 0.000000e+00 : f32
      %19 = vector.broadcast %cst_15 : f32 to vector<16x256xf32>
      %20 = arith.maximumf %18, %19 : vector<16x256xf32>
      %21 = arith.truncf %20 : vector<16x256xf32> to vector<16x256xbf16>
      %c0_16 = arith.constant 0 : index
      %c0_17 = arith.constant 0 : index
      %22 = vector.load %arg7[%c0_16, %c0_17] : memref<16x256xbf16, #tpu.memory_space<vmem>>, vector<16x256xbf16>
      tpu.vector_store %arg7[%c0_16, %c0_17], %21 {strides = array<i32>} : memref<16x256xbf16, #tpu.memory_space<vmem>>, vector<16x256xbf16>,
    } else {
    }
    return
  }
  func.func @transform_0(%arg0: i32, %arg1: i32, %arg2: i32) -> (i32, i32) {
    %c0_i32 = arith.constant 0 : i32
    return %arg0, %arg2 : i32, i32
  }
  func.func @transform_1(%arg0: i32, %arg1: i32, %arg2: i32) -> (i32, i32) {
    %c0_i32 = arith.constant 0 : i32
    return %arg2, %arg1 : i32, i32
  }
  func.func @transform_2(%arg0: i32, %arg1: i32, %arg2: i32) -> (i32, i32) {
    %c0_i32 = arith.constant 0 : i32
    %c0_i32_0 = arith.constant 0 : i32
    return %c0_i32, %arg1 : i32, i32
  }
  func.func @transform_3(%arg0: i32, %arg1: i32, %arg2: i32) -> (i32, i32) {
    %c0_i32 = arith.constant 0 : i32
    %c0_i32_0 = arith.constant 0 : i32
    return %c0_i32, %arg1 : i32, i32
  }
  func.func @transform_4(%arg0: i32, %arg1: i32, %arg2: i32) -> (i32, i32) {
    %c0_i32 = arith.constant 0 : i32
    return %arg0, %arg1 : i32, i32
  }
}

module attributes {stable_mosaic.version = 11 : i64} {
  func.func @_gap_kernel(%arg0: i32, %arg1: memref<1x1x2048xbf16, #tpu.memory_space<vmem>>, %arg2: memref<1x1x2048xf32, #tpu.memory_space<vmem>>) attributes {dimension_semantics = [#tpu.dimension_semantics<parallel>], iteration_bounds = array<i64: 2>, scalar_prefetch = 0 : i64, scratch_operands = 0 : i64, tpu.core_type = #tpu.core_type<tc>, window_params = [{transform_indices = @transform_0, window_bounds = array<i64: 1, 1, 2048>}, {transform_indices = @transform_1, window_bounds = array<i64: 1, 1, 2048>}]} {
    %c0 = arith.constant 0 : index
    %c0_0 = arith.constant 0 : index
    %c0_1 = arith.constant 0 : index
    %0 = vector.load %arg1[%c0, %c0_0, %c0_1] : memref<1x1x2048xbf16, #tpu.memory_space<vmem>>, vector<1x1x2048xbf16>
    %1 = vector.shape_cast %0 : vector<1x1x2048xbf16> to vector<1x2048xbf16>
    %2 = arith.extf %1 : vector<1x2048xbf16> to vector<1x2048xf32>
    %cst = arith.constant dense<0.000000e+00> : vector<2048xf32>
    %3 = vector.multi_reduction <add>, %2, %cst [0] : vector<1x2048xf32> to vector<2048xf32>
    %4 = vector.shape_cast %3 : vector<2048xf32> to vector<1x2048xf32>
    %cst_2 = arith.constant 1.000000e+00 : f32
    %5 = vector.broadcast %cst_2 : f32 to vector<1x2048xf32>
    %6 = arith.mulf %4, %5 : vector<1x2048xf32>
    %c0_3 = arith.constant 0 : index
    %c0_4 = arith.constant 0 : index
    %c0_5 = arith.constant 0 : index
    %7 = vector.load %arg2[%c0_3, %c0_4, %c0_5] : memref<1x1x2048xf32, #tpu.memory_space<vmem>>, vector<1x1x2048xf32>
    %8 = vector.shape_cast %7 : vector<1x1x2048xf32> to vector<1x2048xf32>
    %9 = vector.shape_cast %6 : vector<1x2048xf32> to vector<1x1x2048xf32>
    tpu.vector_store %arg2[%c0_3, %c0_4, %c0_5], %9 {strides = array<i32>} : memref<1x1x2048xf32, #tpu.memory_space<vmem>>, vector<1x1x2048xf32>,
    return
  }
  func.func @transform_0(%arg0: i32) -> (i32, i32, i32) {
    %c0_i32 = arith.constant 0 : i32
    %c0_i32_0 = arith.constant 0 : i32
    %c0_i32_1 = arith.constant 0 : i32
    return %arg0, %c0_i32, %c0_i32_0 : i32, i32, i32
  }
  func.func @transform_1(%arg0: i32) -> (i32, i32, i32) {
    %c0_i32 = arith.constant 0 : i32
    %c0_i32_0 = arith.constant 0 : i32
    %c0_i32_1 = arith.constant 0 : i32
    return %arg0, %c0_i32, %c0_i32_0 : i32, i32, i32
  }
}

module attributes {stable_mosaic.version = 11 : i64} {
  func.func @_mm_kernel(%arg0: i32, %arg1: i32, %arg2: i32, %arg3: memref<16x512xbf16, #tpu.memory_space<vmem>>, %arg4: memref<512x10xbf16, #tpu.memory_space<vmem>>, %arg5: memref<1x10xf32, #tpu.memory_space<vmem>>, %arg6: memref<1x10xf32, #tpu.memory_space<vmem>>, %arg7: memref<16x10xf32, #tpu.memory_space<vmem>>, %arg8: memref<16x10xf32, #tpu.memory_space<vmem>>) attributes {dimension_semantics = [#tpu.dimension_semantics<parallel>, #tpu.dimension_semantics<parallel>, #tpu.dimension_semantics<arbitrary>], iteration_bounds = array<i64: 1, 1, 4>, scalar_prefetch = 0 : i64, scratch_operands = 1 : i64, tpu.core_type = #tpu.core_type<tc>, window_params = [{transform_indices = @transform_0, window_bounds = array<i64: 16, 512>}, {transform_indices = @transform_1, window_bounds = array<i64: 512, 10>}, {transform_indices = @transform_2, window_bounds = array<i64: 1, 10>}, {transform_indices = @transform_3, window_bounds = array<i64: 1, 10>}, {transform_indices = @transform_4, window_bounds = array<i64: 16, 10>}]} {
    %c0_i32 = arith.constant 0 : i32
    %0 = arith.cmpi eq, %arg2, %c0_i32 : i32
    %1 = arith.extui %0 : i1 to i32
    %c0_i32_0 = arith.constant 0 : i32
    %2 = arith.cmpi ne, %1, %c0_i32_0 : i32
    scf.if %2 {
      %cst_9 = arith.constant 0.000000e+00 : f32
      %12 = vector.broadcast %cst_9 : f32 to vector<16x10xf32>
      %c0_10 = arith.constant 0 : index
      %c0_11 = arith.constant 0 : index
      %13 = vector.load %arg8[%c0_10, %c0_11] : memref<16x10xf32, #tpu.memory_space<vmem>>, vector<16x10xf32>
      tpu.vector_store %arg8[%c0_10, %c0_11], %12 {strides = array<i32>} : memref<16x10xf32, #tpu.memory_space<vmem>>, vector<16x10xf32>,
    } else {
    }
    %c0 = arith.constant 0 : index
    %c0_1 = arith.constant 0 : index
    %3 = vector.load %arg8[%c0, %c0_1] : memref<16x10xf32, #tpu.memory_space<vmem>>, vector<16x10xf32>
    %c0_2 = arith.constant 0 : index
    %c0_3 = arith.constant 0 : index
    %4 = vector.load %arg3[%c0_2, %c0_3] : memref<16x512xbf16, #tpu.memory_space<vmem>>, vector<16x512xbf16>
    %c0_4 = arith.constant 0 : index
    %c0_5 = arith.constant 0 : index
    %5 = vector.load %arg4[%c0_4, %c0_5] : memref<512x10xbf16, #tpu.memory_space<vmem>>, vector<512x10xbf16>
    %cst = arith.constant dense<0.000000e+00> : vector<16x10xf32>
    %6 = tpu.matmul %4, %5, %cst {dimension_numbers = #tpu.dot_dimension_numbers<[1], [0], [0], [1], [0, 0, 1, 1], [], []>} : vector<16x512xbf16>, vector<512x10xbf16>, vector<16x10xf32> -> vector<16x10xf32>
    %7 = arith.addf %3, %6 : vector<16x10xf32>
    %c0_6 = arith.constant 0 : index
    %c0_7 = arith.constant 0 : index
    %8 = vector.load %arg8[%c0_6, %c0_7] : memref<16x10xf32, #tpu.memory_space<vmem>>, vector<16x10xf32>
    tpu.vector_store %arg8[%c0_6, %c0_7], %7 {strides = array<i32>} : memref<16x10xf32, #tpu.memory_space<vmem>>, vector<16x10xf32>,
    %c3_i32 = arith.constant 3 : i32
    %9 = arith.cmpi eq, %arg2, %c3_i32 : i32
    %10 = arith.extui %9 : i1 to i32
    %c0_i32_8 = arith.constant 0 : i32
    %11 = arith.cmpi ne, %10, %c0_i32_8 : i32
    scf.if %11 {
      %c0_9 = arith.constant 0 : index
      %c0_10 = arith.constant 0 : index
      %12 = vector.load %arg8[%c0_9, %c0_10] : memref<16x10xf32, #tpu.memory_space<vmem>>, vector<16x10xf32>
      %c0_11 = arith.constant 0 : index
      %c0_12 = arith.constant 0 : index
      %13 = vector.load %arg5[%c0_11, %c0_12] : memref<1x10xf32, #tpu.memory_space<vmem>>, vector<1x10xf32>
      %14 = vector.broadcast %13 : vector<1x10xf32> to vector<16x10xf32>
      %15 = arith.mulf %12, %14 : vector<16x10xf32>
      %c0_13 = arith.constant 0 : index
      %c0_14 = arith.constant 0 : index
      %16 = vector.load %arg6[%c0_13, %c0_14] : memref<1x10xf32, #tpu.memory_space<vmem>>, vector<1x10xf32>
      %17 = vector.broadcast %16 : vector<1x10xf32> to vector<16x10xf32>
      %18 = arith.addf %15, %17 : vector<16x10xf32>
      %c0_15 = arith.constant 0 : index
      %c0_16 = arith.constant 0 : index
      %19 = vector.load %arg7[%c0_15, %c0_16] : memref<16x10xf32, #tpu.memory_space<vmem>>, vector<16x10xf32>
      tpu.vector_store %arg7[%c0_15, %c0_16], %18 {strides = array<i32>} : memref<16x10xf32, #tpu.memory_space<vmem>>, vector<16x10xf32>,
    } else {
    }
    return
  }
  func.func @transform_0(%arg0: i32, %arg1: i32, %arg2: i32) -> (i32, i32) {
    %c0_i32 = arith.constant 0 : i32
    return %arg0, %arg2 : i32, i32
  }
  func.func @transform_1(%arg0: i32, %arg1: i32, %arg2: i32) -> (i32, i32) {
    %c0_i32 = arith.constant 0 : i32
    return %arg2, %arg1 : i32, i32
  }
  func.func @transform_2(%arg0: i32, %arg1: i32, %arg2: i32) -> (i32, i32) {
    %c0_i32 = arith.constant 0 : i32
    %c0_i32_0 = arith.constant 0 : i32
    return %c0_i32, %arg1 : i32, i32
  }
  func.func @transform_3(%arg0: i32, %arg1: i32, %arg2: i32) -> (i32, i32) {
    %c0_i32 = arith.constant 0 : i32
    %c0_i32_0 = arith.constant 0 : i32
    return %c0_i32, %arg1 : i32, i32
  }
  func.func @transform_4(%arg0: i32, %arg1: i32, %arg2: i32) -> (i32, i32) {
    %c0_i32 = arith.constant 0 : i32
    return %arg0, %arg1 : i32, i32
  }
}

</mosaic_0001>

<bundles_post_ra>
// kernel: resnet50_forward.56
= control target key start
LH: loop header
LB: loop body
LE: loop exit
PB: predicated region body
PF: predicated region fallthrough
CT: control target
= control target key end

     0   :  { %vm465_vm0 = vcmask 519168   ;;  %s899_s1 = inlined_call_operand.vmem [shape: bf16[256,64], index: 1, kind: input, shape index: {}]   ;;  %s900_s0 = inlined_call_operand.vmem [shape: bf16[128,256], index: 0, kind: input, shape index: {}]   ;;  %s901_s2 = inlined_call_operand.vmem [shape: f32[1,64], index: 2, kind: input, shape index: {}]   ;;  %s902_s3 = inlined_call_operand.vmem [shape: f32[1,64], index: 3, kind: input, shape index: {}]   ;;  %s903_s4 = inlined_call_operand.vmem [shape: bf16[128,64], index: 4, kind: output, shape index: {}]  }
   0x1   :  { %v632_v0 = vld [vmem:[%s899_s1 + $0x40] sm:$0xff]   ;;  %v634_v2 = vld [vmem:[%s899_s1 + $0x48] sm:$0xff]   ;;  %v636_v4 = vld [vmem:[%s899_s1 + $0x50] sm:$0xff]  }
   0x2   :  { %v633_v1 = vld [vmem:[%s899_s1] sm:$0xff]   ;;  %552 = vmatprep.subr.bf16.mxu0 %v632_v0  ;;  %616 = vmatprep.subr.bf16.mxu1 %v632_v0  ;;  %v635_v3 = vld [vmem:[%s899_s1 + $0x8] sm:$0xff]   ;;  %v637_v5 = vld [vmem:[%s899_s1 + $0x10] sm:$0xff]  }
   0x3   :  { %553 = vmatpush3.bf16.msra.mxu0 %v633_v1  ;;  %624 = vmatpush3.bf16.msra.mxu1 %v633_v1  ;;  %v638_v6 = vld [vmem:[%s899_s1 + $0x58] sm:$0xff]   ;;  %v640_v8 = vld [vmem:[%s899_s1 + $0x60] sm:$0xff]   ;;  %v642_v10 = vld [vmem:[%s899_s1 + $0x68] sm:$0xff]  }
   0x4   :  { %554 = vmatprep.subr.bf16.mxu0 %v634_v2  ;;  %617 = vmatprep.subr.bf16.mxu1 %v634_v2  ;;  %v639_v7 = vld [vmem:[%s899_s1 + $0x18] sm:$0xff]   ;;  %v641_v9 = vld [vmem:[%s899_s1 + $0x20] sm:$0xff]   ;;  %v643_v13 = vld [vmem:[%s899_s1 + $0x28] sm:$0xff]  }
   0x5   :  { %v650_v11 = vld [vmem:[%s900_s0 + $0x4] ss:$8 sps:$4 sm:$0xff]   ;;  %v644_v14 = vld [vmem:[%s899_s1 + $0x70] sm:$0xff]   ;;  %v646_v16 = vld [vmem:[%s899_s1 + $0x78] sm:$0xff]  }
   0x6   :  { %v653_v12 = vld [vmem:[%s900_s0 + $0x44] ss:$8 sps:$4 sm:$0xff]   ;;  %274 = vmatprep.mubr.bf16.mxu0 %v650_v11  ;;  %v645_v15 = vld [vmem:[%s899_s1 + $0x30] sm:$0xff]   ;;  %v647_v17 = vld [vmem:[%s899_s1 + $0x38] sm:$0xff]  }
   0x7   :  { %555 = vmatpush3.bf16.msra.mxu0 %v635_v3  ;;  %625 = vmatpush3.bf16.msra.mxu1 %v635_v3  ;;  %v648_v18 = vld [vmem:[%s900_s0] ss:$8 sps:$4 sm:$0xff]   ;;  %v654_v20 = vld [vmem:[%s900_s0 + $0x14] ss:$8 sps:$4 sm:$0xff]   ;;  %v658_v22 = vld [vmem:[%s900_s0 + $0x10] ss:$8 sps:$4 sm:$0xff]  }
   0x8   :  { %556 = vmatprep.subr.bf16.mxu0 %v636_v4  ;;  %618 = vmatprep.subr.bf16.mxu1 %v636_v4  ;;  %v651_v19 = vld [vmem:[%s900_s0 + $0x40] ss:$8 sps:$4 sm:$0xff]   ;;  %v656_v21 = vld [vmem:[%s900_s0 + $0x54] ss:$8 sps:$4 sm:$0xff]   ;;  %v659_v23 = vld [vmem:[%s900_s0 + $0x50] ss:$8 sps:$4 sm:$0xff]  }
   0x9   :  { %306 = vmatprep.mubr.bf16.mxu1 %v653_v12  ;;  %v660_v24 = vld [vmem:[%s900_s0 + $0x24] ss:$8 sps:$4 sm:$0xff]   ;;  %v664_v26 = vld [vmem:[%s900_s0 + $0x20] ss:$8 sps:$4 sm:$0xff]   ;;  %v666_v28 = vld [vmem:[%s900_s0 + $0x34] ss:$8 sps:$4 sm:$0xff]  }
   0xa   :  { %v662_v25 = vld [vmem:[%s900_s0 + $0x64] ss:$8 sps:$4 sm:$0xff]   ;;  %v665_v27 = vld [vmem:[%s900_s0 + $0x60] ss:$8 sps:$4 sm:$0xff]   ;;  %v668_v29 = vld [vmem:[%s900_s0 + $0x74] ss:$8 sps:$4 sm:$0xff]  }
   0xb   :  { %557 = vmatpush3.bf16.msra.mxu0 %v637_v5  ;;  %626 = vmatpush3.bf16.msra.mxu1 %v637_v5  ;;  %v670_v30 = vld [vmem:[%s900_s0 + $0x30] ss:$8 sps:$4 sm:$0xff]   ;;  %v796_v35 = vld [vmem:[%s901_s2] ss:$0 sm:$0xff] }
   0xc   :  { %558 = vmatprep.subr.bf16.mxu0 %v638_v6  ;;  %619 = vmatprep.subr.bf16.mxu1 %v638_v6  ;;  %v671_v31 = vld [vmem:[%s900_s0 + $0x70] ss:$8 sps:$4 sm:$0xff]   ;;  %v801_v41 = vld [vmem:[%s902_s3] ss:$0 sm:$0xff] }
   0xf   :  { %559 = vmatpush3.bf16.msra.mxu0 %v639_v7  ;;  %627 = vmatpush3.bf16.msra.mxu1 %v639_v7 }
  0x10   :  { %560 = vmatprep.subr.bf16.mxu0 %v640_v8  ;;  %620 = vmatprep.subr.bf16.mxu1 %v640_v8 }
  0x13   :  { %561 = vmatpush3.bf16.msra.mxu0 %v641_v9  ;;  %628 = vmatpush3.bf16.msra.mxu1 %v641_v9 }
  0x14   :  { %562 = vmatprep.subr.bf16.mxu0 %v642_v10  ;;  %621 = vmatprep.subr.bf16.mxu1 %v642_v10 }
  0x17   :  { %563 = vmatpush3.bf16.msra.mxu0 %v643_v13  ;;  %629 = vmatpush3.bf16.msra.mxu1 %v643_v13 }
  0x18   :  { %564 = vmatprep.subr.bf16.mxu0 %v644_v14  ;;  %622 = vmatprep.subr.bf16.mxu1 %v644_v14 }
  0x1b   :  { %565 = vmatpush3.bf16.msra.mxu0 %v645_v15  ;;  %630 = vmatpush3.bf16.msra.mxu1 %v645_v15 }
  0x1c   :  { %566 = vmatprep.subr.bf16.mxu0 %v646_v16  ;;  %623 = vmatprep.subr.bf16.mxu1 %v646_v16 }
  0x1f   :  { %567 = vmatpush3.bf16.msra.mxu0 %v647_v17  ;;  %631 = vmatpush3.bf16.msra.mxu1 %v647_v17 }
  0x22   :  { %275 = vmatmul.mubr.bf16.vlgmr.msra.gmra.mrb[0].mxu0 %v648_v18  ;;  %307 = vmatmul.mubr.bf16.vlgmr.msra.gmra.mrb[0].mxu1 %v651_v19 }
  0x23   :  { %282 = vmatprep.mubr.bf16.mxu0 %v654_v20  ;;  %314 = vmatprep.mubr.bf16.mxu1 %v656_v21 }
  0x2a   :  { %283 = vmatmul.mubr.bf16.gmra.mrb[4].mxu0 %v658_v22  ;;  %315 = vmatmul.mubr.bf16.gmra.mrb[4].mxu1 %v659_v23 }
  0x2b   :  { %290 = vmatprep.mubr.bf16.mxu0 %v660_v24  ;;  %322 = vmatprep.mubr.bf16.mxu1 %v662_v25 }
  0x32   :  { %291 = vmatmul.mubr.bf16.gmra.mrb[8].mxu0 %v664_v26  ;;  %323 = vmatmul.mubr.bf16.gmra.mrb[8].mxu1 %v665_v27 }
  0x33   :  { %298 = vmatprep.mubr.bf16.mxu0 %v666_v28  ;;  %330 = vmatprep.mubr.bf16.mxu1 %v668_v29 }
  0x3a   :  { %299 = vmatmul.mubr.bf16.gmra.mrb[12].mxu0 %v670_v30  ;;  %331 = vmatmul.mubr.bf16.gmra.mrb[12].mxu1 %v671_v31 }
  0xf5   :  { %v568_v32 = vpop.f32.mrb[0].mxu0  ;;  %v592_v33 = vpop.f32.mrb[0].mxu1 }
  0xf6   :  { %v569_v34 = vpop.f32.mrb[1].mxu0  ;;  %v593_v36 = vpop.f32.mrb[1].mxu1 }
  0xf7   :  { %v570_v37 = vadd.f32 %v569_v34, %v568_v32  ;;  %v594_v38 = vadd.f32 %v593_v36, %v592_v33  ;;  %v571_v39 = vpop.f32.mrb[2].mxu0  ;;  %v595_v40 = vpop.f32.mrb[2].mxu1 }
  0xf8   :  { %v572_v42 = vpop.f32.mrb[3].mxu0  ;;  %v596_v43 = vpop.f32.mrb[3].mxu1 }
  0xf9   :  { %v346_v44 = vmul.f32 %v570_v37, %v796_v35  ;;  %v354_v45 = vmul.f32 %v594_v38, %v796_v35  ;;  %v573_v46 = vadd.f32 %v572_v42, %v571_v39  ;;  %v597_v47 = vadd.f32 %v596_v43, %v595_v40 }
  0xfb   :  { %v369_v48 = vadd.f32 %v801_v41, %v346_v44  ;;  %v377_v49 = vadd.f32 %v801_v41, %v354_v45  ;;  %v347_v50 = vmul.f32 %v573_v46, %v796_v35  ;;  %v355_v51 = vmul.f32 %v597_v47, %v796_v35 }
  0xfd   :  { %v385_v52 = vmax.f32 %v369_v48, 0.0  ;;  %v393_v53 = vmax.f32 %v377_v49, 0.0  ;;  %v370_v54 = vadd.f32 %v801_v41, %v347_v50  ;;  %v378_v55 = vadd.f32 %v801_v41, %v355_v51  ;;  %v574_v56 = vpop.f32.mrb[4].mxu0  ;;  %v598_v57 = vpop.f32.mrb[4].mxu1 }
  0xfe   :  { %v575_v58 = vpop.f32.mrb[5].mxu0  ;;  %v599_v59 = vpop.f32.mrb[5].mxu1 }
  0xff   :  { %v536_v60 = vpack.c.bf16 %v385_v52, %v385_v52  ;;  %v544_v61 = vpack.c.bf16 %v393_v53, %v393_v53  ;;  %v386_v62 = vmax.f32 %v370_v54, 0.0  ;;  %v394_v63 = vmax.f32 %v378_v55, 0.0  ;;  %v577_v0 = vpop.f32.mrb[6].mxu0  ;;  %v601_v1 = vpop.f32.mrb[6].mxu1 }
 0x100   :  { %v576_v2 = vadd.f32 %v575_v58, %v574_v56  ;;  %v600_v3 = vadd.f32 %v599_v59, %v598_v57  ;;  %v578_v4 = vpop.f32.mrb[7].mxu0  ;;  %v602_v5 = vpop.f32.mrb[7].mxu1 }
 0x101   :  { %466 = vst.msk [vmem:[%s903_s4] sm:$0xf] %vm465_vm0, %v536_v60  ;;  %474 = vst.msk [vmem:[%s903_s4 + $0x20] sm:$0xf] %vm465_vm0, %v544_v61  ;;  %v537_v6 = vpack.c.bf16 %v386_v62, %v386_v62  ;;  %v545_v7 = vpack.c.bf16 %v394_v63, %v394_v63  ;;  %v579_v8 = vadd.f32 %v578_v4, %v577_v0 }
 0x102   :  { %v603_v9 = vadd.f32 %v602_v5, %v601_v1  ;;  %v348_v10 = vmul.f32 %v576_v2, %v796_v35  ;;  %v356_v11 = vmul.f32 %v600_v3, %v796_v35 }
 0x103   :  { %467 = vst.msk [vmem:[%s903_s4 + $0x4] sm:$0xf] %vm465_vm0, %v537_v6  ;;  %475 = vst.msk [vmem:[%s903_s4 + $0x24] sm:$0xf] %vm465_vm0, %v545_v7  ;;  %v349_v12 = vmul.f32 %v579_v8, %v796_v35 }
 0x104   :  { %v357_v13 = vmul.f32 %v603_v9, %v796_v35  ;;  %v371_v14 = vadd.f32 %v801_v41, %v348_v10  ;;  %v379_v15 = vadd.f32 %v801_v41, %v356_v11 }
 0x105   :  { %v372_v16 = vadd.f32 %v801_v41, %v349_v12  ;;  %v580_v18 = vpop.f32.mrb[8].mxu0  ;;  %v604_v19 = vpop.f32.mrb[8].mxu1 }
 0x106   :  { %v380_v17 = vadd.f32 %v801_v41, %v357_v13  ;;  %v387_v20 = vmax.f32 %v371_v14, 0.0  ;;  %v395_v21 = vmax.f32 %v379_v15, 0.0  ;;  %v581_v22 = vpop.f32.mrb[9].mxu0  ;;  %v605_v23 = vpop.f32.mrb[9].mxu1 }
 0x107   :  { %v388_v24 = vmax.f32 %v372_v16, 0.0  ;;  %v582_v26 = vadd.f32 %v581_v22, %v580_v18  ;;  %v606_v27 = vadd.f32 %v605_v23, %v604_v19  ;;  %v583_v28 = vpop.f32.mrb[10].mxu0  ;;  %v607_v29 = vpop.f32.mrb[10].mxu1 }
 0x108   :  { %v396_v25 = vmax.f32 %v380_v17, 0.0  ;;  %v538_v30 = vpack.c.bf16 %v387_v20, %v387_v20  ;;  %v546_v31 = vpack.c.bf16 %v395_v21, %v395_v21  ;;  %v584_v32 = vpop.f32.mrb[11].mxu0  ;;  %v608_v33 = vpop.f32.mrb[11].mxu1 }
 0x109   :  { %v539_v34 = vpack.c.bf16 %v388_v24, %v388_v24  ;;  %v350_v37 = vmul.f32 %v582_v26, %v796_v35  ;;  %v358_v38 = vmul.f32 %v606_v27, %v796_v35  ;;  %v585_v39 = vadd.f32 %v584_v32, %v583_v28 }
 0x10a   :  { %v547_v36 = vpack.c.bf16 %v396_v25, %v396_v25  ;;  %468 = vst.msk [vmem:[%s903_s4 + $0x8] sm:$0xf] %vm465_vm0, %v538_v30  ;;  %476 = vst.msk [vmem:[%s903_s4 + $0x28] sm:$0xf] %vm465_vm0, %v546_v31  ;;  %v609_v40 = vadd.f32 %v608_v33, %v607_v29 }
 0x10b   :  { %469 = vst.msk [vmem:[%s903_s4 + $0xc] sm:$0xf] %vm465_vm0, %v539_v34  ;;  %v373_v42 = vadd.f32 %v801_v41, %v350_v37  ;;  %v381_v43 = vadd.f32 %v801_v41, %v358_v38  ;;  %v351_v44 = vmul.f32 %v585_v39, %v796_v35 }
 0x10c   :  { %477 = vst.msk [vmem:[%s903_s4 + $0x2c] sm:$0xf] %vm465_vm0, %v547_v36  ;;  %v359_v45 = vmul.f32 %v609_v40, %v796_v35 }
 0x10d   :  { %v389_v46 = vmax.f32 %v373_v42, 0.0  ;;  %v397_v47 = vmax.f32 %v381_v43, 0.0  ;;  %v586_v48 = vpop.f32.mrb[12].mxu0  ;;  %v610_v49 = vpop.f32.mrb[12].mxu1  ;;  %v374_v50 = vadd.f32 %v801_v41, %v351_v44 }
 0x10e   :  { %v382_v51 = vadd.f32 %v801_v41, %v359_v45  ;;  %v587_v52 = vpop.f32.mrb[13].mxu0  ;;  %v611_v53 = vpop.f32.mrb[13].mxu1 }
 0x10f   :  { %v540_v54 = vpack.c.bf16 %v389_v46, %v389_v46  ;;  %v548_v55 = vpack.c.bf16 %v397_v47, %v397_v47  ;;  %v588_v56 = vadd.f32 %v587_v52, %v586_v48  ;;  %v612_v57 = vadd.f32 %v611_v53, %v610_v49  ;;  %v589_v58 = vpop.f32.mrb[14].mxu0  ;;  %v613_v59 = vpop.f32.mrb[14].mxu1 }
 0x110   :  { %v390_v60 = vmax.f32 %v374_v50, 0.0  ;;  %v398_v61 = vmax.f32 %v382_v51, 0.0  ;;  %v590_v62 = vpop.f32.mrb[15].mxu0  ;;  %v614_v63 = vpop.f32.mrb[15].mxu1 }
 0x111   :  { %470 = vst.msk [vmem:[%s903_s4 + $0x10] sm:$0xf] %vm465_vm0, %v540_v54  ;;  %478 = vst.msk [vmem:[%s903_s4 + $0x30] sm:$0xf] %vm465_vm0, %v548_v55  ;;  %v352_v0 = vmul.f32 %v588_v56, %v796_v35  ;;  %v360_v1 = vmul.f32 %v612_v57, %v796_v35  ;;  %v591_v2 = vadd.f32 %v590_v62, %v589_v58 }
 0x112   :  { %v615_v3 = vadd.f32 %v614_v63, %v613_v59  ;;  %v541_v4 = vpack.c.bf16 %v390_v60, %v390_v60  ;;  %v549_v5 = vpack.c.bf16 %v398_v61, %v398_v61 }
 0x113   :  { %v375_v6 = vadd.f32 %v801_v41, %v352_v0  ;;  %v383_v7 = vadd.f32 %v801_v41, %v360_v1  ;;  %v353_v8 = vmul.f32 %v591_v2, %v796_v35 }
 0x114   :  { %v361_v9 = vmul.f32 %v615_v3, %v796_v35  ;;  %471 = vst.msk [vmem:[%s903_s4 + $0x14] sm:$0xf] %vm465_vm0, %v541_v4  ;;  %479 = vst.msk [vmem:[%s903_s4 + $0x34] sm:$0xf] %vm465_vm0, %v549_v5 }
 0x115   :  { %v391_v10 = vmax.f32 %v375_v6, 0.0  ;;  %v399_v11 = vmax.f32 %v383_v7, 0.0  ;;  %v376_v12 = vadd.f32 %v801_v41, %v353_v8 }
 0x116   :  { %v384_v13 = vadd.f32 %v801_v41, %v361_v9 }
 0x117   :  { %v542_v14 = vpack.c.bf16 %v391_v10, %v391_v10  ;;  %v550_v15 = vpack.c.bf16 %v399_v11, %v399_v11  ;;  %v392_v16 = vmax.f32 %v376_v12, 0.0 }
 0x118   :  { %v400_v35 = vmax.f32 %v384_v13, 0.0 }
 0x119   :  { %472 = vst.msk [vmem:[%s903_s4 + $0x18] sm:$0xf] %vm465_vm0, %v542_v14  ;;  %480 = vst.msk [vmem:[%s903_s4 + $0x38] sm:$0xf] %vm465_vm0, %v550_v15  ;;  %v543_v17 = vpack.c.bf16 %v392_v16, %v392_v16 }
 0x11a   :  { %v551_v18 = vpack.c.bf16 %v400_v35, %v400_v35 }
 0x11b   :  { %473 = vst.msk [vmem:[%s903_s4 + $0x1c] sm:$0xf] %vm465_vm0, %v543_v17 }
 0x11c   :  { %481 = vst.msk [vmem:[%s903_s4 + $0x3c] sm:$0xf] %vm465_vm0, %v551_v18 }

// kernel: resnet50_forward.57
= control target key start
LH: loop header
LB: loop body
LE: loop exit
PB: predicated region body
PF: predicated region fallthrough
CT: control target
= control target key end

     0   :  { %vm84_vm0 = vcmask 519168   ;;  %s259_s0 = inlined_call_operand.vmem [shape: bf16[9,32,64], index: 0, kind: input, shape index: {}]   ;;  %s260_s1 = inlined_call_operand.vmem [shape: bf16[32,64], index: 1, kind: output, shape index: {}]  }
   0x1   :  { %v8_v0 = vld [vmem:[%s259_s0] sm:$0xf]  ;;  %v93_v1 = vld [vmem:[%s259_s0 + $0x10] sm:$0xf]  ;;  %v9_v6 = vld [vmem:[%s259_s0 + $0x4] sm:$0xf] }
   0x2   :  { %v97_v2 = vld [vmem:[%s259_s0 + $0x20] sm:$0xf]  ;;  %v17_v3 = vmax.bf16 %v93_v1, %v8_v0  ;;  %v101_v4 = vld [vmem:[%s259_s0 + $0x30] sm:$0xf]  ;;  %v94_v7 = vld [vmem:[%s259_s0 + $0x14] sm:$0xf] }
   0x3   :  { %v98_v8 = vld [vmem:[%s259_s0 + $0x24] sm:$0xf]  ;;  %v105_v9 = vld [vmem:[%s259_s0 + $0x40] sm:$0xf]  ;;  %v18_v10 = vmax.bf16 %v94_v7, %v9_v6  ;;  %v109_v12 = vld [vmem:[%s259_s0 + $0x50] sm:$0xf] }
   0x4   :  { %v26_v5 = vmax.bf16 %v97_v2, %v17_v3  ;;  %v102_v13 = vld [vmem:[%s259_s0 + $0x34] sm:$0xf]  ;;  %v10_v15 = vld [vmem:[%s259_s0 + $0x8] sm:$0xf]  ;;  %v95_v16 = vld [vmem:[%s259_s0 + $0x18] sm:$0xf] }
   0x5   :  { %v27_v14 = vmax.bf16 %v98_v8, %v18_v10  ;;  %v99_v17 = vld [vmem:[%s259_s0 + $0x28] sm:$0xf]  ;;  %v106_v19 = vld [vmem:[%s259_s0 + $0x44] sm:$0xf]  ;;  %v19_v20 = vmax.bf16 %v95_v16, %v10_v15  ;;  %v113_v21 = vld [vmem:[%s259_s0 + $0x60] sm:$0xf] }
   0x6   :  { %v35_v11 = vmax.bf16 %v101_v4, %v26_v5  ;;  %v110_v23 = vld [vmem:[%s259_s0 + $0x54] sm:$0xf]  ;;  %v103_v24 = vld [vmem:[%s259_s0 + $0x38] sm:$0xf]  ;;  %v11_v27 = vld [vmem:[%s259_s0 + $0xc] sm:$0xf] }
   0x7   :  { %v36_v22 = vmax.bf16 %v102_v13, %v27_v14  ;;  %v28_v26 = vmax.bf16 %v99_v17, %v19_v20  ;;  %v96_v28 = vld [vmem:[%s259_s0 + $0x1c] sm:$0xf]  ;;  %v100_v29 = vld [vmem:[%s259_s0 + $0x2c] sm:$0xf]  ;;  %v117_v30 = vld [vmem:[%s259_s0 + $0x70] sm:$0xf] }
   0x8   :  { %v44_v18 = vmax.bf16 %v105_v9, %v35_v11  ;;  %v107_v32 = vld [vmem:[%s259_s0 + $0x48] sm:$0xf]  ;;  %v20_v33 = vmax.bf16 %v96_v28, %v11_v27  ;;  %v114_v35 = vld [vmem:[%s259_s0 + $0x64] sm:$0xf]  ;;  %v104_v37 = vld [vmem:[%s259_s0 + $0x3c] sm:$0xf] }
   0x9   :  { %v45_v31 = vmax.bf16 %v106_v19, %v36_v22  ;;  %v37_v36 = vmax.bf16 %v103_v24, %v28_v26  ;;  %v121_v38 = vld [vmem:[%s259_s0 + $0x80] sm:$0xf]  ;;  %v111_v40 = vld [vmem:[%s259_s0 + $0x58] sm:$0xf]  ;;  %v118_v43 = vld [vmem:[%s259_s0 + $0x74] sm:$0xf] }
   0xa   :  { %v53_v25 = vmax.bf16 %v109_v12, %v44_v18  ;;  %v29_v41 = vmax.bf16 %v100_v29, %v20_v33  ;;  %v108_v45 = vld [vmem:[%s259_s0 + $0x4c] sm:$0xf]  ;;  %v115_v47 = vld [vmem:[%s259_s0 + $0x68] sm:$0xf]  ;;  %v122_v50 = vld [vmem:[%s259_s0 + $0x84] sm:$0xf] }
   0xb   :  { %v54_v39 = vmax.bf16 %v110_v23, %v45_v31  ;;  %v46_v44 = vmax.bf16 %v107_v32, %v37_v36  ;;  %v112_v52 = vld [vmem:[%s259_s0 + $0x5c] sm:$0xf]  ;;  %v119_v54 = vld [vmem:[%s259_s0 + $0x78] sm:$0xf]  ;;  %v116_v57 = vld [vmem:[%s259_s0 + $0x6c] sm:$0xf] }
   0xc   :  { %v62_v34 = vmax.bf16 %v113_v21, %v53_v25  ;;  %v38_v48 = vmax.bf16 %v104_v37, %v29_v41  ;;  %v123_v59 = vld [vmem:[%s259_s0 + $0x88] sm:$0xf]  ;;  %v120_v62 = vld [vmem:[%s259_s0 + $0x7c] sm:$0xf]  ;;  %v124_v1 = vld [vmem:[%s259_s0 + $0x8c] sm:$0xf] }
   0xd   :  { %v63_v46 = vmax.bf16 %v114_v35, %v54_v39  ;;  %v55_v51 = vmax.bf16 %v111_v40, %v46_v44 }
   0xe   :  { %v71_v42 = vmax.bf16 %v117_v30, %v62_v34  ;;  %v47_v55 = vmax.bf16 %v108_v45, %v38_v48 }
   0xf   :  { %v72_v53 = vmax.bf16 %v118_v43, %v63_v46  ;;  %v64_v56 = vmax.bf16 %v115_v47, %v55_v51 }
  0x10   :  { %v80_v49 = vmax.bf16 %v121_v38, %v71_v42  ;;  %v56_v60 = vmax.bf16 %v112_v52, %v47_v55 }
  0x11   :  { %v81_v58 = vmax.bf16 %v122_v50, %v72_v53  ;;  %v73_v61 = vmax.bf16 %v119_v54, %v64_v56 }
  0x12   :  { %85 = vst.msk [vmem:[%s260_s1] sm:$0xf] %vm84_vm0, %v80_v49  ;;  %v65_v63 = vmax.bf16 %v116_v57, %v56_v60 }
  0x13   :  { %86 = vst.msk [vmem:[%s260_s1 + $0x4] sm:$0xf] %vm84_vm0, %v81_v58  ;;  %v82_v0 = vmax.bf16 %v123_v59, %v73_v61 }
  0x14   :  { %v74_v2 = vmax.bf16 %v120_v62, %v65_v63 }
  0x15   :  { %87 = vst.msk [vmem:[%s260_s1 + $0x8] sm:$0xf] %vm84_vm0, %v82_v0 }
  0x16   :  { %v83_v3 = vmax.bf16 %v124_v1, %v74_v2 }
  0x18   :  { %88 = vst.msk [vmem:[%s260_s1 + $0xc] sm:$0xf] %vm84_vm0, %v83_v3 }

// kernel: resnet50_forward.59
= control target key start
LH: loop header
LB: loop body
LE: loop exit
PB: predicated region body
PF: predicated region fallthrough
CT: control target
= control target key end

     0   :  { %vm64_vm0 = vcmask 523264   ;;  %vm162_vm1 = vcmask 519168   ;;  %s274_s1 = inlined_call_operand.vmem [shape: bf16[64,64], index: 1, kind: input, shape index: {}]   ;;  %s275_s0 = inlined_call_operand.vmem [shape: bf16[32,64], index: 0, kind: input, shape index: {}]   ;;  %s276_s2 = inlined_call_operand.vmem [shape: f32[1,64], index: 2, kind: input, shape index: {}]   ;;  %s277_s3 = inlined_call_operand.vmem [shape: f32[1,64], index: 3, kind: input, shape index: {}]   ;;  %s278_s4 = inlined_call_operand.vmem [shape: bf16[32,64], index: 4, kind: output, shape index: {}]  }
   0x1   :  { %v207_v0 = vld [vmem:[%s274_s1] sm:$0xff]   ;;  %v208_v1 = vld [vmem:[%s274_s1 + $0x8] sm:$0xff]   ;;  %v209_v2 = vld [vmem:[%s274_s1 + $0x10] sm:$0xff]  }
   0x2   :  { %195 = vmatprep.subr.bf16.mxu0 %v207_v0  ;;  %v211_v3 = vld [vmem:[%s275_s0] sm:$0xff]   ;;  %v210_v4 = vld [vmem:[%s274_s1 + $0x18] sm:$0xff]   ;;  %v212_v5 = vld [vmem:[%s275_s0 + $0x8] sm:$0xff]  }
   0x3   :  { %196 = vmatpush3.bf16.msra.mxu0 %v207_v0  ;;  %203 = vmatprep.mubr.msk.bf16.mxu0 %vm64_vm0, %v211_v3  ;;  %v179_v6 = vld [vmem:[%s276_s2] ss:$0 sm:$0xff] }
   0x4   :  { %197 = vmatprep.subr.bf16.mxu0 %v208_v1  ;;  %v180_v8 = vld [vmem:[%s277_s3] ss:$0 sm:$0xff] }
   0x7   :  { %198 = vmatpush3.bf16.msra.mxu0 %v208_v1 }
   0x8   :  { %199 = vmatprep.subr.bf16.mxu0 %v209_v2 }
   0xb   :  { %200 = vmatpush3.bf16.msra.mxu0 %v209_v2 }
   0xc   :  { %201 = vmatprep.subr.bf16.mxu0 %v210_v4 }
   0xf   :  { %202 = vmatpush3.bf16.msra.mxu0 %v210_v4 }
  0x12   :  { %204 = vmatmul.mubr.msk.bf16.vlgmr.msra.gmra.mrb[0].mxu0 %vm64_vm0, %v212_v5 }
  0xe5   :  { %v205_v7 = vpop.f32.mrb[0].mxu0 }
  0xe6   :  { %v129_v9 = vmul.f32 %v205_v7, %v179_v6  ;;  %v105_v10 = vpop.f32.mrb[1].mxu0 }
  0xe7   :  { %v127_v11 = vmul.f32 %v179_v6, %v105_v10  ;;  %v206_v12 = vpop.f32.mrb[2].mxu0 }
  0xe8   :  { %v140_v13 = vadd.f32 %v180_v8, %v129_v9  ;;  %v130_v14 = vmul.f32 %v206_v12, %v179_v6  ;;  %v108_v15 = vpop.f32.mrb[3].mxu0 }
  0xe9   :  { %v138_v16 = vadd.f32 %v180_v8, %v127_v11  ;;  %v128_v17 = vmul.f32 %v179_v6, %v108_v15 }
  0xea   :  { %v144_v18 = vmax.f32 %v140_v13, 0.0  ;;  %v141_v19 = vadd.f32 %v180_v8, %v130_v14 }
  0xeb   :  { %v142_v20 = vmax.f32 %v138_v16, 0.0  ;;  %v139_v21 = vadd.f32 %v180_v8, %v128_v17 }
  0xec   :  { %v187_v22 = vpack.c.bf16 %v144_v18, %v144_v18  ;;  %v145_v23 = vmax.f32 %v141_v19, 0.0 }
  0xed   :  { %v185_v24 = vpack.c.bf16 %v142_v20, %v142_v20  ;;  %v143_v25 = vmax.f32 %v139_v21, 0.0 }
  0xee   :  { %165 = vst.msk [vmem:[%s278_s4 + $0x8] sm:$0xf] %vm162_vm1, %v187_v22  ;;  %v188_v26 = vpack.c.bf16 %v145_v23, %v145_v23 }
  0xef   :  { %163 = vst.msk [vmem:[%s278_s4] sm:$0xf] %vm162_vm1, %v185_v24  ;;  %v186_v27 = vpack.c.bf16 %v143_v25, %v143_v25 }
  0xf0   :  { %166 = vst.msk [vmem:[%s278_s4 + $0xc] sm:$0xf] %vm162_vm1, %v188_v26 }
  0xf1   :  { %164 = vst.msk [vmem:[%s278_s4 + $0x4] sm:$0xf] %vm162_vm1, %v186_v27 }

// kernel: resnet50_forward.58
= control target key start
LH: loop header
LB: loop body
LE: loop exit
PB: predicated region body
PF: predicated region fallthrough
CT: control target
= control target key end

     0   :  { %v255_v1 = vmov 0   ;;  %vm80_vm0 = vcmask 523264   ;;  %v142_v11 = vlaneseq  ;;  %s329_s1 = inlined_call_operand.vmem [shape: bf16[64,256], index: 1, kind: input, shape index: {}]   ;;  %s330_s0 = inlined_call_operand.vmem [shape: bf16[32,64], index: 0, kind: input, shape index: {}]   ;;  %s331_s2 = inlined_call_operand.vmem [shape: f32[1,256], index: 2, kind: input, shape index: {}]   ;;  %s332_s3 = inlined_call_operand.vmem [shape: f32[1,256], index: 3, kind: input, shape index: {}]   ;;  %s333_s4 = inlined_call_operand.vmem [shape: bf16[32,256], index: 4, kind: output, shape index: {}]  }
   0x1   :  { %v241_v0 = vld [vmem:[%s329_s1 + $0x4] ss:$8 sps:$4 sm:$0xff]   ;;  %119 = vmatprep.mubr.bf16.mxu0 %v255_v1  ;;  %129 = vmatprep.mubr.bf16.mxu1 %v255_v1  ;;  %v243_v2 = vld [vmem:[%s329_s1] ss:$8 sps:$4 sm:$0xff]   ;;  %v244_v3 = vld [vmem:[%s329_s1 + $0x14] ss:$8 sps:$4 sm:$0xff]  }
   0x2   :  { %87 = vmatprep.subr.bf16.mxu0 %v241_v0  ;;  %232 = vmatprep.subr.bf16.mxu1 %v241_v0  ;;  %v246_v4 = vld [vmem:[%s329_s1 + $0x10] ss:$8 sps:$4 sm:$0xff]   ;;  %v247_v5 = vld [vmem:[%s329_s1 + $0x24] ss:$8 sps:$4 sm:$0xff]   ;;  %v249_v6 = vld [vmem:[%s329_s1 + $0x20] ss:$8 sps:$4 sm:$0xff]  }
   0x3   :  { %88 = vmatpush1.bf16.msra.mxu0 %v243_v2  ;;  %236 = vmatpush1.bf16.msra.mxu1 %v243_v2  ;;  %v250_v7 = vld [vmem:[%s329_s1 + $0x34] ss:$8 sps:$4 sm:$0xff]   ;;  %v252_v8 = vld [vmem:[%s329_s1 + $0x30] ss:$8 sps:$4 sm:$0xff]   ;;  %v253_v9 = vld [vmem:[%s330_s0] sm:$0xff]   ;;  %v143_v12 = vshrl.u32 %v142_v11, 7 }
   0x4   :  { %89 = vmatprep.subr.bf16.mxu0 %v244_v3  ;;  %233 = vmatprep.subr.bf16.mxu1 %v244_v3  ;;  %v254_v10 = vld [vmem:[%s330_s0 + $0x8] sm:$0xff]   ;;  %v140_v14 = vld [vmem:[%s331_s2] sm:$0x3] }
   0x5   :  { %v144_v13 = vsub.s32 0, %v143_v12  ;;  %v148_v15 = vsub.s32 1, %v143_v12  ;;  %v160_v16 = vld [vmem:[%s332_s3] sm:$0x3] }
   0x7   :  { %90 = vmatpush1.bf16.msra.mxu0 %v246_v4  ;;  %237 = vmatpush1.bf16.msra.mxu1 %v246_v4  ;;  %v145_v17 = vrot.slane %v140_v14, %v144_v13  ;;  %v149_v18 = vrot.slane %v140_v14, %v148_v15  ;;  %v165_v19 = vrot.slane %v160_v16, %v144_v13 }
   0x8   :  { %91 = vmatprep.subr.bf16.mxu0 %v247_v5  ;;  %234 = vmatprep.subr.bf16.mxu1 %v247_v5  ;;  %v169_v22 = vrot.slane %v160_v16, %v148_v15 }
   0xb   :  { %92 = vmatpush1.bf16.msra.mxu0 %v249_v6  ;;  %238 = vmatpush1.bf16.msra.mxu1 %v249_v6 }
   0xc   :  { %93 = vmatprep.subr.bf16.mxu0 %v250_v7  ;;  %235 = vmatprep.subr.bf16.mxu1 %v250_v7 }
   0xf   :  { %94 = vmatpush1.bf16.msra.mxu0 %v252_v8  ;;  %239 = vmatpush1.bf16.msra.mxu1 %v252_v8 }
  0x12   :  { %222 = vmatmul.mubr.msk.bf16.vlgmr.msra.gmra.mrb[0].mxu0 %vm80_vm0, %v253_v9  ;;  %223 = vmatmul.mubr.msk.bf16.vlgmr.msra.gmra.mrb[0].mxu1 %vm80_vm0, %v254_v10 }
  0xe5   :  { %v121_v20 = vpop.f32.mrb[0].mxu0  ;;  %v131_v21 = vpop.f32.mrb[0].mxu1 }
  0xe6   :  { %v152_v23 = vmul.f32 %v145_v17, %v121_v20  ;;  %v156_v24 = vmul.f32 %v145_v17, %v131_v21  ;;  %v123_v25 = vpop.f32.mrb[1].mxu0  ;;  %v133_v26 = vpop.f32.mrb[1].mxu1 }
  0xe7   :  { %v153_v27 = vmul.f32 %v149_v18, %v123_v25  ;;  %v157_v28 = vmul.f32 %v149_v18, %v133_v26  ;;  %v125_v29 = vpop.f32.mrb[2].mxu0  ;;  %v135_v30 = vpop.f32.mrb[2].mxu1 }
  0xe8   :  { %v172_v31 = vadd.f32 %v165_v19, %v152_v23  ;;  %v176_v32 = vadd.f32 %v165_v19, %v156_v24  ;;  %v154_v33 = vmul.f32 %v145_v17, %v125_v29  ;;  %v158_v34 = vmul.f32 %v145_v17, %v135_v30  ;;  %v127_v35 = vpop.f32.mrb[3].mxu0  ;;  %v137_v36 = vpop.f32.mrb[3].mxu1 }
  0xe9   :  { %v173_v37 = vadd.f32 %v169_v22, %v153_v27  ;;  %v177_v38 = vadd.f32 %v169_v22, %v157_v28  ;;  %v155_v39 = vmul.f32 %v149_v18, %v127_v35  ;;  %v159_v40 = vmul.f32 %v149_v18, %v137_v36 }
  0xea   :  { %v174_v41 = vadd.f32 %v165_v19, %v154_v33  ;;  %v178_v42 = vadd.f32 %v165_v19, %v158_v34 }
  0xeb   :  { %v228_v43 = vpack.c.bf16 %v173_v37, %v172_v31  ;;  %v230_v44 = vpack.c.bf16 %v177_v38, %v176_v32  ;;  %v175_v45 = vadd.f32 %v169_v22, %v155_v39  ;;  %v179_v46 = vadd.f32 %v169_v22, %v159_v40 }
  0xed   :  { %204 = vst [vmem:[%s333_s4] sm:$0xff] %v228_v43  ;;  %206 = vst [vmem:[%s333_s4 + $0x10] sm:$0xff] %v230_v44  ;;  %v229_v47 = vpack.c.bf16 %v175_v45, %v174_v41  ;;  %v231_v48 = vpack.c.bf16 %v179_v46, %v178_v42 }
  0xef   :  { %205 = vst [vmem:[%s333_s4 + $0x8] sm:$0xff] %v229_v47  ;;  %207 = vst [vmem:[%s333_s4 + $0x18] sm:$0xff] %v231_v48 }

// kernel: resnet50_forward.60
= control target key start
LH: loop header
LB: loop body
LE: loop exit
PB: predicated region body
PF: predicated region fallthrough
CT: control target
= control target key end

     0   :  { %s859_s15 = smov 0   ;;  %s861_s16 = smov 0   ;;  %s961_s0 = inlined_call_operand.vmem [shape: bf16[32,640], index: 0, kind: input, shape index: {}]   ;;  %s962_s1 = inlined_call_operand.vmem [shape: bf16[640,64], index: 1, kind: input, shape index: {}]   ;;  %s963_s2 = inlined_call_operand.vmem [shape: f32[1,64], index: 2, kind: input, shape index: {}]   ;;  %s964_s3 = inlined_call_operand.vmem [shape: f32[1,64], index: 3, kind: input, shape index: {}]   ;;  %s965_s4 = inlined_call_operand.vmem [shape: bf16[32,64], index: 4, kind: output, shape index: {}]  }
   0x1   :  { %s863_s17 = smov 0   ;;  %s865_s18 = smov 0  }
   0x2   :  { %s867_s19 = smov 0  }
   0x3 LB: > { %s26_s20 = sadd.s32 1, %s827_s18  ;;  %p49_p1 = scmp.ne.s32.totalorder %s819_s16, %s815_s15  ;;  %s831_s19 = sphi %s867_s19, %s14_s19   ;;  %s827_s18 = sphi %s865_s18, %s969_s18   ;;  %s823_s17 = sphi %s863_s17, %s968_s17   ;;  %s819_s16 = sphi %s861_s16, %s967_s16   ;;  %s815_s15 = sphi %s859_s15, %s966_s15  }
   0x4   : > { %p27_p0 = scmp.ge.s32.totalorder %s26_s20, 5  ;;  %p50_p2 = scmp.eq.s32.totalorder %s831_s19, 0 }
   0x5   : > { %s42_s22 = sadd.s32 1, %s819_s16  ;;  %p679_p5 = scmp.ge.s32.totalorder %s831_s19, 5 }
   0x6   : > { %s971_s20 = smov (%p27_p0, %s26_s20), 0  ;;  %p51_p3 = por %p50_p2, %p49_p1 }
   0x7   : > { %s38_s21 = ssub.s32 %s827_s18, %s971_s20  ;;  %195 = sbr.rel (%p679_p5) target bundleno = 21 (0x15), region = 24 }
   0x8   : > { %p40_p4 = scmp.eq.s32.totalorder %s38_s21, 0 }
   0xa   : > { %s894_s23 = scalar_select %p40_p4, %s819_s16, %s42_s22  }
   0xe   : > { %198 = sbr.rel (!%p51_p3) target bundleno = 21 (0x15), region = 28  ;;  %s200_s24 = sand.u32 (%p51_p3), 1, %s819_s16  }
   0xf   : > { %s681_s25 = sshll.u32 (%p51_p3), %s827_s18, 2  ;;  %s680_s26 = sshll.u32 (%p51_p3), %s200_s24, 4 }
  0x10   : > { %s207_s29 = scalar_lea.vmem (%p51_p3), %s961_s0, %s681_s25  ;;  %s202_s30 = scalar_lea.vmem (%p51_p3), [#allocation3], %s680_s26 }
  0x11   : > { %v223_v0 = vld [vmem:[%s207_s29] sm:$0xf] (%p51_p3)  ;;  %v225_v1 = vld [vmem:[%s207_s29 + $0x14] sm:$0xf] (%p51_p3)  ;;  %v227_v2 = vld [vmem:[%s207_s29 + $0x28] sm:$0xf] (%p51_p3) }
  0x12   : > { %224 = vst [vmem:[%s202_s30] sm:$0xf] (%p51_p3), %v223_v0  ;;  %226 = vst [vmem:[%s202_s30 + $0x4] sm:$0xf] (%p51_p3), %v225_v1  ;;  %v229_v3 = vld [vmem:[%s207_s29 + $0x3c] sm:$0xf] (%p51_p3) }
  0x13   : > { %228 = vst [vmem:[%s202_s30 + $0x8] sm:$0xf] (%p51_p3), %v227_v2  ;;  %230 = vst [vmem:[%s202_s30 + $0xc] sm:$0xf] (%p51_p3), %v229_v3 }
  0x15 PF: > { %p682_p6 = scmp.ge.s32.totalorder %s831_s19, 1  ;;  %p272_p7 = scmp.lt.s32.totalorder %s831_s19, 6 }
  0x17   : > { %p273_p8 = pnand %p682_p6, %p272_p7 }
  0x18   : > { %s279_s5 = sand.u32 (!%p273_p8), 1, %s815_s15   ;;  %s684_s6 = sshll.u32 (!%p273_p8), %s823_s17, 4 }
  0x19   : > { %276 = sbr.rel (%p273_p8) target bundleno = 306 (0x132), region = 73  ;;  %s906_s7 = sshll.u32 (!%p273_p8), %s279_s5, 4 }
  0x1a   : > { %p323_p9 = scmp.lt.s32.totalorder (!%p273_p8), %s684_s6, 79  ;;  %s281_s12 = scalar_lea.vmem (!%p273_p8), [#allocation3], %s906_s7 }
  0x1b   : > { %p686_p10 = scmp.ne.s32.totalorder (!%p273_p8), %s823_s17, 0 }
  0x20   : > { %s973_s6 = smov (!%p323_p9, %s684_s6), 79  ;;  %350 = sbr.rel (%p686_p10) target bundleno = 39 (0x27), region = 81 }
  0x21   : > { %s685_s8 = sshll.u32 %s973_s6, 2  ;;  %vm351_vm0 = vcmask (!%p686_p10), 523264   ;;  %v833_v4 = vmov (!%p686_p10), 0.0  }
  0x22   : > { %s911_s11 = scalar_lea.vmem %s962_s1, %s685_s8  ;;  %352 = vst.msk [vmem:[#allocation2] sm:$0xff] (!%p686_p10), %vm351_vm0, %v833_v4  ;;  %353 = vst.msk [vmem:[#allocation2 + $0x8] sm:$0xff] (!%p686_p10), %vm351_vm0, %v833_v4 }
  0x23   : > { %354 = vst.msk [vmem:[#allocation2 + $0x10] sm:$0xff] (!%p686_p10), %vm351_vm0, %v833_v4  ;;  %355 = vst.msk [vmem:[#allocation2 + $0x18] sm:$0xff] (!%p686_p10), %vm351_vm0, %v833_v4 }
  0x27 PF: > { %v783_v5 = vld [vmem:[%s911_s11] sm:$0xff]   ;;  %v784_v6 = vld [vmem:[%s911_s11 + $0x8] sm:$0xff]   ;;  %v785_v7 = vld [vmem:[%s911_s11 + $0x10] sm:$0xff]   ;;  %vm493_vm1 = vcmask 523264   ;;  %p697_p11 = scmp.ne.s32.totalorder %s823_s17, 4 }
  0x28   : > { %722 = vmatprep.subr.bf16.mxu0 %v783_v5  ;;  %v786_v8 = vld [vmem:[%s911_s11 + $0x18] sm:$0xff]   ;;  %v791_v9 = vld [vmem:[%s281_s12] sm:$0xff]   ;;  %v788_v11 = vld [vmem:[%s911_s11 + $0x28] sm:$0xff]   ;;  %vm548_vm2 = vcmask (!%p697_p11), 519168  }
  0x29   : > { %723 = vmatpush3.bf16.msra.mxu0 %v783_v5  ;;  %738 = vmatprep.mubr.bf16.mxu0 %v791_v9  ;;  %v787_v10 = vld [vmem:[%s911_s11 + $0x20] sm:$0xff]   ;;  %v789_v12 = vld [vmem:[%s911_s11 + $0x30] sm:$0xff]   ;;  %v790_v13 = vld [vmem:[%s911_s11 + $0x38] sm:$0xff]  }
  0x2a   : > { %724 = vmatprep.subr.bf16.mxu0 %v784_v6  ;;  %v792_v14 = vld [vmem:[%s281_s12 + $0x8] sm:$0xff]   ;;  %v358_v15 = vld [vmem:[#allocation2 + $0x10] sm:$0xff]  ;;  %v356_v16 = vld [vmem:[#allocation2] sm:$0xff] }
  0x2b   : > { %v359_v18 = vld [vmem:[#allocation2 + $0x18] sm:$0xff]  ;;  %v357_v21 = vld [vmem:[#allocation2 + $0x8] sm:$0xff]  ;;  %v698_v28 = vld [vmem:[%s963_s2] ss:$0 sm:$0xff] (!%p697_p11) }
  0x2c   : > { %v699_v29 = vld [vmem:[%s964_s3] ss:$0 sm:$0xff] (!%p697_p11) }
  0x2d   : > { %725 = vmatpush3.bf16.msra.mxu0 %v784_v6 }
  0x2e   : > { %726 = vmatprep.subr.bf16.mxu0 %v785_v7 }
  0x31   : > { %727 = vmatpush3.bf16.msra.mxu0 %v785_v7 }
  0x32   : > { %728 = vmatprep.subr.bf16.mxu0 %v786_v8 }
  0x35   : > { %729 = vmatpush3.bf16.msra.mxu0 %v786_v8 }
  0x36   : > { %730 = vmatprep.subr.bf16.mxu0 %v787_v10 }
  0x39   : > { %731 = vmatpush3.bf16.msra.mxu0 %v787_v10 }
  0x3a   : > { %732 = vmatprep.subr.bf16.mxu0 %v788_v11 }
  0x3d   : > { %733 = vmatpush3.bf16.msra.mxu0 %v788_v11 }
  0x3e   : > { %734 = vmatprep.subr.bf16.mxu0 %v789_v12 }
  0x41   : > { %735 = vmatpush3.bf16.msra.mxu0 %v789_v12 }
  0x42   : > { %736 = vmatprep.subr.bf16.mxu0 %v790_v13 }
  0x45   : > { %737 = vmatpush3.bf16.msra.mxu0 %v790_v13 }
  0x48   : > { %739 = vmatmul.mubr.bf16.vlgmr.msra.gmra.mrb[0].mxu0 %v792_v14 }
 0x11b   : > { %v740_v17 = vpop.f32.mrb[0].mxu0  ;;  %501 = sbr.rel (%p697_p11) target bundleno = 306 (0x132), region = 85 }
 0x11c   : > { %v491_v19 = vadd.f32 %v740_v17, %v358_v15  ;;  %v474_v20 = vpop.f32.mrb[1].mxu0 }
 0x11d   : > { %v489_v22 = vadd.f32 %v474_v20, %v356_v16  ;;  %v741_v23 = vpop.f32.mrb[2].mxu0 }
 0x11e   : > { %496 = vst.msk [vmem:[#allocation2 + $0x10] sm:$0xff] %vm493_vm1, %v491_v19  ;;  %v492_v24 = vadd.f32 %v741_v23, %v359_v18  ;;  %v477_v25 = vpop.f32.mrb[3].mxu0 }
 0x11f   : > { %494 = vst.msk [vmem:[#allocation2] sm:$0xff] %vm493_vm1, %v489_v22  ;;  %v490_v26 = vadd.f32 %v477_v25, %v357_v21 }
 0x120   : > { %497 = vst.msk [vmem:[#allocation2 + $0x18] sm:$0xff] %vm493_vm1, %v492_v24 }
 0x121   : > { %495 = vst.msk [vmem:[#allocation2 + $0x8] sm:$0xff] %vm493_vm1, %v490_v26 }
 0x125   : > { %v504_v32 = vld [vmem:[#allocation2 + $0x10] sm:$0xff] }
 0x126   : > { %v502_v27 = vld [vmem:[#allocation2] sm:$0xff]  ;;  %v515_v35 = vmul.f32 %v698_v28, %v504_v32 }
 0x127   : > { %v513_v30 = vmul.f32 %v698_v28, %v502_v27  ;;  %v505_v33 = vld [vmem:[#allocation2 + $0x18] sm:$0xff] }
 0x128   : > { %v503_v31 = vld [vmem:[#allocation2 + $0x8] sm:$0xff]  ;;  %v516_v36 = vmul.f32 %v698_v28, %v505_v33  ;;  %v526_v39 = vadd.f32 %v699_v29, %v515_v35 }
 0x129   : > { %v514_v34 = vmul.f32 %v698_v28, %v503_v31  ;;  %v524_v37 = vadd.f32 %v699_v29, %v513_v30 }
 0x12a   : > { %v527_v40 = vadd.f32 %v699_v29, %v516_v36  ;;  %v530_v43 = vmax.f32 %v526_v39, 0.0 }
 0x12b   : > { %v525_v38 = vadd.f32 %v699_v29, %v514_v34  ;;  %v528_v41 = vmax.f32 %v524_v37, 0.0 }
 0x12c   : > { %v531_v44 = vmax.f32 %v527_v40, 0.0  ;;  %v710_v47 = vpack.c.bf16 %v530_v43, %v530_v43 }
 0x12d   : > { %v529_v42 = vmax.f32 %v525_v38, 0.0  ;;  %v708_v45 = vpack.c.bf16 %v528_v41, %v528_v41 }
 0x12e   : > { %v711_v48 = vpack.c.bf16 %v531_v44, %v531_v44  ;;  %551 = vst.msk [vmem:[%s965_s4 + $0x8] sm:$0xf] %vm548_vm2, %v710_v47 }
 0x12f   : > { %v709_v46 = vpack.c.bf16 %v529_v42, %v529_v42  ;;  %549 = vst.msk [vmem:[%s965_s4] sm:$0xf] %vm548_vm2, %v708_v45 }
 0x130   : > { %552 = vst.msk [vmem:[%s965_s4 + $0xc] sm:$0xf] %vm548_vm2, %v711_v48 }
 0x131   : > { %550 = vst.msk [vmem:[%s965_s4 + $0x4] sm:$0xf] %vm548_vm2, %v709_v46 }
 0x132 PF: > { %s14_s19 = sadd.s32 1, %s831_s19   ;;  %s966_s15 = smov %s819_s16 }
 0x133   : > { %p11_p12 = scmp.ge.s32.totalorder %s14_s19, 7   ;;  %s967_s16 = smov %s894_s23 }
 0x134   : > { %s968_s17 = smov %s827_s18  ;;  %s969_s18 = smov %s971_s20 }
 0x135   :  { %13 = sbr.rel (!%p11_p12) target bundleno = 3 (0x3), region = 129 }

// kernel: resnet50_forward.62
= control target key start
LH: loop header
LB: loop body
LE: loop exit
PB: predicated region body
PF: predicated region fallthrough
CT: control target
= control target key end

     0   :  { %vm261_vm0 = vcmask 519168   ;;  %s469_s1 = inlined_call_operand.vmem [shape: bf16[256,64], index: 1, kind: input, shape index: {}]   ;;  %s470_s0 = inlined_call_operand.vmem [shape: bf16[32,256], index: 0, kind: input, shape index: {}]   ;;  %s471_s2 = inlined_call_operand.vmem [shape: f32[1,64], index: 2, kind: input, shape index: {}]   ;;  %s472_s3 = inlined_call_operand.vmem [shape: f32[1,64], index: 3, kind: input, shape index: {}]   ;;  %s473_s4 = inlined_call_operand.vmem [shape: bf16[32,64], index: 4, kind: output, shape index: {}]  }
   0x1   :  { %v344_v0 = vld [vmem:[%s469_s1 + $0x40] sm:$0xff]   ;;  %v346_v2 = vld [vmem:[%s469_s1 + $0x48] sm:$0xff]   ;;  %v348_v4 = vld [vmem:[%s469_s1 + $0x50] sm:$0xff]  }
   0x2   :  { %v345_v1 = vld [vmem:[%s469_s1] sm:$0xff]   ;;  %300 = vmatprep.subr.bf16.mxu0 %v344_v0  ;;  %328 = vmatprep.subr.bf16.mxu1 %v344_v0  ;;  %v347_v3 = vld [vmem:[%s469_s1 + $0x8] sm:$0xff]   ;;  %v349_v5 = vld [vmem:[%s469_s1 + $0x10] sm:$0xff]  }
   0x3   :  { %301 = vmatpush3.bf16.msra.mxu0 %v345_v1  ;;  %336 = vmatpush3.bf16.msra.mxu1 %v345_v1  ;;  %v350_v6 = vld [vmem:[%s469_s1 + $0x58] sm:$0xff]   ;;  %v352_v8 = vld [vmem:[%s469_s1 + $0x60] sm:$0xff]   ;;  %v354_v10 = vld [vmem:[%s469_s1 + $0x68] sm:$0xff]  }
   0x4   :  { %302 = vmatprep.subr.bf16.mxu0 %v346_v2  ;;  %329 = vmatprep.subr.bf16.mxu1 %v346_v2  ;;  %v351_v7 = vld [vmem:[%s469_s1 + $0x18] sm:$0xff]   ;;  %v353_v9 = vld [vmem:[%s469_s1 + $0x20] sm:$0xff]   ;;  %v355_v13 = vld [vmem:[%s469_s1 + $0x28] sm:$0xff]  }
   0x5   :  { %v362_v11 = vld [vmem:[%s470_s0 + $0x4] ss:$8 sps:$4 sm:$0xff]   ;;  %v365_v12 = vld [vmem:[%s470_s0 + $0x14] ss:$8 sps:$4 sm:$0xff]   ;;  %v360_v18 = vld [vmem:[%s470_s0] ss:$8 sps:$4 sm:$0xff]  }
   0x6   :  { %v356_v14 = vld [vmem:[%s469_s1 + $0x70] sm:$0xff]   ;;  %202 = vmatprep.mubr.bf16.mxu0 %v362_v11  ;;  %210 = vmatprep.mubr.bf16.mxu1 %v365_v12  ;;  %v358_v16 = vld [vmem:[%s469_s1 + $0x78] sm:$0xff]   ;;  %v290_v23 = vld [vmem:[%s471_s2] ss:$0 sm:$0xff] }
   0x7   :  { %303 = vmatpush3.bf16.msra.mxu0 %v347_v3  ;;  %337 = vmatpush3.bf16.msra.mxu1 %v347_v3  ;;  %v357_v15 = vld [vmem:[%s469_s1 + $0x30] sm:$0xff]   ;;  %v359_v17 = vld [vmem:[%s469_s1 + $0x38] sm:$0xff]   ;;  %v291_v29 = vld [vmem:[%s472_s3] ss:$0 sm:$0xff] }
   0x8   :  { %304 = vmatprep.subr.bf16.mxu0 %v348_v4  ;;  %330 = vmatprep.subr.bf16.mxu1 %v348_v4  ;;  %v363_v19 = vld [vmem:[%s470_s0 + $0x10] ss:$8 sps:$4 sm:$0xff]  }
   0xb   :  { %305 = vmatpush3.bf16.msra.mxu0 %v349_v5  ;;  %338 = vmatpush3.bf16.msra.mxu1 %v349_v5 }
   0xc   :  { %306 = vmatprep.subr.bf16.mxu0 %v350_v6  ;;  %331 = vmatprep.subr.bf16.mxu1 %v350_v6 }
   0xf   :  { %307 = vmatpush3.bf16.msra.mxu0 %v351_v7  ;;  %339 = vmatpush3.bf16.msra.mxu1 %v351_v7 }
  0x10   :  { %308 = vmatprep.subr.bf16.mxu0 %v352_v8  ;;  %332 = vmatprep.subr.bf16.mxu1 %v352_v8 }
  0x13   :  { %309 = vmatpush3.bf16.msra.mxu0 %v353_v9  ;;  %340 = vmatpush3.bf16.msra.mxu1 %v353_v9 }
  0x14   :  { %310 = vmatprep.subr.bf16.mxu0 %v354_v10  ;;  %333 = vmatprep.subr.bf16.mxu1 %v354_v10 }
  0x17   :  { %311 = vmatpush3.bf16.msra.mxu0 %v355_v13  ;;  %341 = vmatpush3.bf16.msra.mxu1 %v355_v13 }
  0x18   :  { %312 = vmatprep.subr.bf16.mxu0 %v356_v14  ;;  %334 = vmatprep.subr.bf16.mxu1 %v356_v14 }
  0x1b   :  { %313 = vmatpush3.bf16.msra.mxu0 %v357_v15  ;;  %342 = vmatpush3.bf16.msra.mxu1 %v357_v15 }
  0x1c   :  { %314 = vmatprep.subr.bf16.mxu0 %v358_v16  ;;  %335 = vmatprep.subr.bf16.mxu1 %v358_v16 }
  0x1f   :  { %315 = vmatpush3.bf16.msra.mxu0 %v359_v17  ;;  %343 = vmatpush3.bf16.msra.mxu1 %v359_v17 }
  0x22   :  { %203 = vmatmul.mubr.bf16.vlgmr.msra.gmra.mrb[0].mxu0 %v360_v18  ;;  %211 = vmatmul.mubr.bf16.vlgmr.msra.gmra.mrb[0].mxu1 %v363_v19 }
  0xf5   :  { %v316_v20 = vpop.f32.mrb[0].mxu0  ;;  %v322_v21 = vpop.f32.mrb[0].mxu1 }
  0xf6   :  { %v317_v22 = vpop.f32.mrb[1].mxu0  ;;  %v323_v24 = vpop.f32.mrb[1].mxu1 }
  0xf7   :  { %v318_v25 = vadd.f32 %v317_v22, %v316_v20  ;;  %v324_v26 = vadd.f32 %v323_v24, %v322_v21  ;;  %v319_v27 = vpop.f32.mrb[2].mxu0  ;;  %v325_v28 = vpop.f32.mrb[2].mxu1 }
  0xf8   :  { %v320_v30 = vpop.f32.mrb[3].mxu0  ;;  %v326_v31 = vpop.f32.mrb[3].mxu1 }
  0xf9   :  { %v226_v32 = vmul.f32 %v318_v25, %v290_v23  ;;  %v228_v33 = vmul.f32 %v324_v26, %v290_v23  ;;  %v321_v34 = vadd.f32 %v320_v30, %v319_v27  ;;  %v327_v35 = vadd.f32 %v326_v31, %v325_v28 }
  0xfb   :  { %v237_v36 = vadd.f32 %v291_v29, %v226_v32  ;;  %v239_v37 = vadd.f32 %v291_v29, %v228_v33  ;;  %v227_v38 = vmul.f32 %v321_v34, %v290_v23  ;;  %v229_v39 = vmul.f32 %v327_v35, %v290_v23 }
  0xfd   :  { %v241_v40 = vmax.f32 %v237_v36, 0.0  ;;  %v243_v41 = vmax.f32 %v239_v37, 0.0  ;;  %v238_v42 = vadd.f32 %v291_v29, %v227_v38  ;;  %v240_v43 = vadd.f32 %v291_v29, %v229_v39 }
  0xff   :  { %v296_v44 = vpack.c.bf16 %v241_v40, %v241_v40  ;;  %v298_v45 = vpack.c.bf16 %v243_v41, %v243_v41  ;;  %v242_v46 = vmax.f32 %v238_v42, 0.0  ;;  %v244_v47 = vmax.f32 %v240_v43, 0.0 }
 0x101   :  { %262 = vst.msk [vmem:[%s473_s4] sm:$0xf] %vm261_vm0, %v296_v44  ;;  %264 = vst.msk [vmem:[%s473_s4 + $0x8] sm:$0xf] %vm261_vm0, %v298_v45  ;;  %v297_v48 = vpack.c.bf16 %v242_v46, %v242_v46  ;;  %v299_v49 = vpack.c.bf16 %v244_v47, %v244_v47 }
 0x103   :  { %263 = vst.msk [vmem:[%s473_s4 + $0x4] sm:$0xf] %vm261_vm0, %v297_v48  ;;  %265 = vst.msk [vmem:[%s473_s4 + $0xc] sm:$0xf] %vm261_vm0, %v299_v49 }

// kernel: resnet50_forward.61
= control target key start
LH: loop header
LB: loop body
LE: loop exit
PB: predicated region body
PF: predicated region fallthrough
CT: control target
= control target key end

     0   :  { %v286_v1 = vmov 0   ;;  %vm83_vm0 = vcmask 523264   ;;  %v145_v11 = vlaneseq  ;;  %s377_s1 = inlined_call_operand.vmem [shape: bf16[64,256], index: 1, kind: input, shape index: {}]   ;;  %s378_s0 = inlined_call_operand.vmem [shape: bf16[32,64], index: 0, kind: input, shape index: {}]   ;;  %s379_s2 = inlined_call_operand.vmem [shape: f32[1,256], index: 2, kind: input, shape index: {}]   ;;  %s380_s3 = inlined_call_operand.vmem [shape: f32[1,256], index: 3, kind: input, shape index: {}]   ;;  %s381_s4 = inlined_call_operand.vmem [shape: bf16[32,256], index: 4, kind: input, shape index: {}]   ;;  %s382_s5 = inlined_call_operand.vmem [shape: bf16[32,256], index: 5, kind: output, shape index: {}]  }
   0x1   :  { %v272_v0 = vld [vmem:[%s377_s1 + $0x4] ss:$8 sps:$4 sm:$0xff]   ;;  %122 = vmatprep.mubr.bf16.mxu0 %v286_v1  ;;  %132 = vmatprep.mubr.bf16.mxu1 %v286_v1  ;;  %v274_v2 = vld [vmem:[%s377_s1] ss:$8 sps:$4 sm:$0xff]   ;;  %v275_v3 = vld [vmem:[%s377_s1 + $0x14] ss:$8 sps:$4 sm:$0xff]  }
   0x2   :  { %90 = vmatprep.subr.bf16.mxu0 %v272_v0  ;;  %263 = vmatprep.subr.bf16.mxu1 %v272_v0  ;;  %v277_v4 = vld [vmem:[%s377_s1 + $0x10] ss:$8 sps:$4 sm:$0xff]   ;;  %v278_v5 = vld [vmem:[%s377_s1 + $0x24] ss:$8 sps:$4 sm:$0xff]   ;;  %v280_v6 = vld [vmem:[%s377_s1 + $0x20] ss:$8 sps:$4 sm:$0xff]  }
   0x3   :  { %91 = vmatpush1.bf16.msra.mxu0 %v274_v2  ;;  %267 = vmatpush1.bf16.msra.mxu1 %v274_v2  ;;  %v281_v7 = vld [vmem:[%s377_s1 + $0x34] ss:$8 sps:$4 sm:$0xff]   ;;  %v283_v8 = vld [vmem:[%s377_s1 + $0x30] ss:$8 sps:$4 sm:$0xff]   ;;  %v284_v9 = vld [vmem:[%s378_s0] sm:$0xff]   ;;  %v146_v12 = vshrl.u32 %v145_v11, 7 }
   0x4   :  { %92 = vmatprep.subr.bf16.mxu0 %v275_v3  ;;  %264 = vmatprep.subr.bf16.mxu1 %v275_v3  ;;  %v285_v10 = vld [vmem:[%s378_s0 + $0x8] sm:$0xff]   ;;  %v143_v14 = vld [vmem:[%s379_s2] sm:$0x3]  ;;  %v185_v19 = vld [vmem:[%s381_s4 + $0x10] sm:$0xff] }
   0x5   :  { %v147_v13 = vsub.s32 0, %v146_v12  ;;  %v151_v15 = vsub.s32 1, %v146_v12  ;;  %v163_v16 = vld [vmem:[%s380_s3] sm:$0x3]  ;;  %v184_v21 = vld [vmem:[%s381_s4 + $0x8] sm:$0xff]  ;;  %v186_v22 = vld [vmem:[%s381_s4 + $0x18] sm:$0xff]  ;;  %v191_v28 = vunpack.c.l.bf16 %v185_v19  ;;  %v192_v30 = vunpack.c.h.bf16 %v185_v19 }
   0x6   :  { %v183_v18 = vld [vmem:[%s381_s4] sm:$0xff]  ;;  %v189_v35 = vunpack.c.l.bf16 %v184_v21  ;;  %v193_v36 = vunpack.c.l.bf16 %v186_v22  ;;  %v190_v41 = vunpack.c.h.bf16 %v184_v21  ;;  %v194_v42 = vunpack.c.h.bf16 %v186_v22 }
   0x7   :  { %93 = vmatpush1.bf16.msra.mxu0 %v277_v4  ;;  %268 = vmatpush1.bf16.msra.mxu1 %v277_v4  ;;  %v148_v17 = vrot.slane %v143_v14, %v147_v13  ;;  %v152_v20 = vrot.slane %v143_v14, %v151_v15  ;;  %v168_v23 = vrot.slane %v163_v16, %v147_v13  ;;  %v187_v26 = vunpack.c.l.bf16 %v183_v18 }
   0x8   :  { %94 = vmatprep.subr.bf16.mxu0 %v278_v5  ;;  %265 = vmatprep.subr.bf16.mxu1 %v278_v5  ;;  %v172_v24 = vrot.slane %v163_v16, %v151_v15  ;;  %v188_v29 = vunpack.c.h.bf16 %v183_v18 }
   0xb   :  { %95 = vmatpush1.bf16.msra.mxu0 %v280_v6  ;;  %269 = vmatpush1.bf16.msra.mxu1 %v280_v6 }
   0xc   :  { %96 = vmatprep.subr.bf16.mxu0 %v281_v7  ;;  %266 = vmatprep.subr.bf16.mxu1 %v281_v7 }
   0xf   :  { %97 = vmatpush1.bf16.msra.mxu0 %v283_v8  ;;  %270 = vmatpush1.bf16.msra.mxu1 %v283_v8 }
  0x12   :  { %253 = vmatmul.mubr.msk.bf16.vlgmr.msra.gmra.mrb[0].mxu0 %vm83_vm0, %v284_v9  ;;  %254 = vmatmul.mubr.msk.bf16.vlgmr.msra.gmra.mrb[0].mxu1 %vm83_vm0, %v285_v10 }
  0xe5   :  { %v124_v25 = vpop.f32.mrb[0].mxu0  ;;  %v134_v27 = vpop.f32.mrb[0].mxu1 }
  0xe6   :  { %v155_v31 = vmul.f32 %v148_v17, %v124_v25  ;;  %v159_v32 = vmul.f32 %v148_v17, %v134_v27  ;;  %v126_v33 = vpop.f32.mrb[1].mxu0  ;;  %v136_v34 = vpop.f32.mrb[1].mxu1 }
  0xe7   :  { %v156_v37 = vmul.f32 %v152_v20, %v126_v33  ;;  %v160_v38 = vmul.f32 %v152_v20, %v136_v34  ;;  %v128_v39 = vpop.f32.mrb[2].mxu0  ;;  %v138_v40 = vpop.f32.mrb[2].mxu1 }
  0xe8   :  { %v175_v43 = vadd.f32 %v168_v23, %v155_v31  ;;  %v179_v44 = vadd.f32 %v168_v23, %v159_v32  ;;  %v157_v45 = vmul.f32 %v148_v17, %v128_v39  ;;  %v161_v46 = vmul.f32 %v148_v17, %v138_v40  ;;  %v130_v47 = vpop.f32.mrb[3].mxu0  ;;  %v140_v48 = vpop.f32.mrb[3].mxu1 }
  0xe9   :  { %v176_v49 = vadd.f32 %v172_v24, %v156_v37  ;;  %v180_v50 = vadd.f32 %v172_v24, %v160_v38  ;;  %v158_v51 = vmul.f32 %v152_v20, %v130_v47  ;;  %v162_v52 = vmul.f32 %v152_v20, %v140_v48 }
  0xea   :  { %v195_v53 = vadd.f32 %v187_v26, %v175_v43  ;;  %v199_v54 = vadd.f32 %v191_v28, %v179_v44  ;;  %v177_v55 = vadd.f32 %v168_v23, %v157_v45  ;;  %v181_v56 = vadd.f32 %v168_v23, %v161_v46 }
  0xeb   :  { %v196_v57 = vadd.f32 %v188_v29, %v176_v49  ;;  %v200_v58 = vadd.f32 %v192_v30, %v180_v50  ;;  %v178_v59 = vadd.f32 %v172_v24, %v158_v51  ;;  %v182_v60 = vadd.f32 %v172_v24, %v162_v52 }
  0xec   :  { %v203_v61 = vmax.f32 %v195_v53, 0.0  ;;  %v207_v62 = vmax.f32 %v199_v54, 0.0  ;;  %v197_v63 = vadd.f32 %v189_v35, %v177_v55  ;;  %v201_v0 = vadd.f32 %v193_v36, %v181_v56 }
  0xed   :  { %v204_v1 = vmax.f32 %v196_v57, 0.0  ;;  %v208_v2 = vmax.f32 %v200_v58, 0.0  ;;  %v198_v3 = vadd.f32 %v190_v41, %v178_v59  ;;  %v202_v4 = vadd.f32 %v194_v42, %v182_v60 }
  0xee   :  { %v205_v5 = vmax.f32 %v197_v63, 0.0  ;;  %v209_v6 = vmax.f32 %v201_v0, 0.0 }
  0xef   :  { %v259_v7 = vpack.c.bf16 %v204_v1, %v203_v61  ;;  %v261_v8 = vpack.c.bf16 %v208_v2, %v207_v62  ;;  %v206_v9 = vmax.f32 %v198_v3, 0.0  ;;  %v210_v10 = vmax.f32 %v202_v4, 0.0 }
  0xf1   :  { %235 = vst [vmem:[%s382_s5] sm:$0xff] %v259_v7  ;;  %237 = vst [vmem:[%s382_s5 + $0x10] sm:$0xff] %v261_v8  ;;  %v260_v11 = vpack.c.bf16 %v206_v9, %v205_v5  ;;  %v262_v12 = vpack.c.bf16 %v210_v10, %v209_v6 }
  0xf3   :  { %236 = vst [vmem:[%s382_s5 + $0x8] sm:$0xff] %v260_v11  ;;  %238 = vst [vmem:[%s382_s5 + $0x18] sm:$0xff] %v262_v12 }

// kernel: resnet50_forward.69
= control target key start
LH: loop header
LB: loop body
LE: loop exit
PB: predicated region body
PF: predicated region fallthrough
CT: control target
= control target key end

     0   :  { %s473_s1 = inlined_call_operand.vmem [shape: bf16[256,128], index: 1, kind: input, shape index: {}]   ;;  %s474_s0 = inlined_call_operand.vmem [shape: bf16[32,256], index: 0, kind: input, shape index: {}]   ;;  %s475_s2 = inlined_call_operand.vmem [shape: f32[1,128], index: 2, kind: input, shape index: {}]   ;;  %s476_s3 = inlined_call_operand.vmem [shape: f32[1,128], index: 3, kind: input, shape index: {}]   ;;  %s477_s4 = inlined_call_operand.vmem [shape: bf16[32,128], index: 4, kind: output, shape index: {}]  }
   0x1   :  { %v354_v0 = vld [vmem:[%s473_s1 + $0x40] sm:$0xff]   ;;  %v356_v2 = vld [vmem:[%s473_s1 + $0x48] sm:$0xff]   ;;  %v358_v4 = vld [vmem:[%s473_s1 + $0x50] sm:$0xff]  }
   0x2   :  { %v355_v1 = vld [vmem:[%s473_s1] sm:$0xff]   ;;  %310 = vmatprep.subr.bf16.mxu0 %v354_v0  ;;  %338 = vmatprep.subr.bf16.mxu1 %v354_v0  ;;  %v357_v3 = vld [vmem:[%s473_s1 + $0x8] sm:$0xff]   ;;  %v359_v5 = vld [vmem:[%s473_s1 + $0x10] sm:$0xff]  }
   0x3   :  { %311 = vmatpush3.bf16.msra.mxu0 %v355_v1  ;;  %346 = vmatpush3.bf16.msra.mxu1 %v355_v1  ;;  %v360_v6 = vld [vmem:[%s473_s1 + $0x58] sm:$0xff]   ;;  %v362_v8 = vld [vmem:[%s473_s1 + $0x60] sm:$0xff]   ;;  %v364_v10 = vld [vmem:[%s473_s1 + $0x68] sm:$0xff]  }
   0x4   :  { %312 = vmatprep.subr.bf16.mxu0 %v356_v2  ;;  %339 = vmatprep.subr.bf16.mxu1 %v356_v2  ;;  %v361_v7 = vld [vmem:[%s473_s1 + $0x18] sm:$0xff]   ;;  %v363_v9 = vld [vmem:[%s473_s1 + $0x20] sm:$0xff]   ;;  %v365_v13 = vld [vmem:[%s473_s1 + $0x28] sm:$0xff]  }
   0x5   :  { %v372_v11 = vld [vmem:[%s474_s0 + $0x4] ss:$8 sps:$4 sm:$0xff]   ;;  %v375_v12 = vld [vmem:[%s474_s0 + $0x14] ss:$8 sps:$4 sm:$0xff]   ;;  %v370_v18 = vld [vmem:[%s474_s0] ss:$8 sps:$4 sm:$0xff]  }
   0x6   :  { %v366_v14 = vld [vmem:[%s473_s1 + $0x70] sm:$0xff]   ;;  %202 = vmatprep.mubr.bf16.mxu0 %v372_v11  ;;  %210 = vmatprep.mubr.bf16.mxu1 %v375_v12  ;;  %v368_v16 = vld [vmem:[%s473_s1 + $0x78] sm:$0xff]   ;;  %v289_v23 = vld [vmem:[%s475_s2] ss:$0 sm:$0xff] }
   0x7   :  { %313 = vmatpush3.bf16.msra.mxu0 %v357_v3  ;;  %347 = vmatpush3.bf16.msra.mxu1 %v357_v3  ;;  %v367_v15 = vld [vmem:[%s473_s1 + $0x30] sm:$0xff]   ;;  %v369_v17 = vld [vmem:[%s473_s1 + $0x38] sm:$0xff]   ;;  %v290_v29 = vld [vmem:[%s476_s3] ss:$0 sm:$0xff] }
   0x8   :  { %314 = vmatprep.subr.bf16.mxu0 %v358_v4  ;;  %340 = vmatprep.subr.bf16.mxu1 %v358_v4  ;;  %v373_v19 = vld [vmem:[%s474_s0 + $0x10] ss:$8 sps:$4 sm:$0xff]  }
   0xb   :  { %315 = vmatpush3.bf16.msra.mxu0 %v359_v5  ;;  %348 = vmatpush3.bf16.msra.mxu1 %v359_v5 }
   0xc   :  { %316 = vmatprep.subr.bf16.mxu0 %v360_v6  ;;  %341 = vmatprep.subr.bf16.mxu1 %v360_v6 }
   0xf   :  { %317 = vmatpush3.bf16.msra.mxu0 %v361_v7  ;;  %349 = vmatpush3.bf16.msra.mxu1 %v361_v7 }
  0x10   :  { %318 = vmatprep.subr.bf16.mxu0 %v362_v8  ;;  %342 = vmatprep.subr.bf16.mxu1 %v362_v8 }
  0x13   :  { %319 = vmatpush3.bf16.msra.mxu0 %v363_v9  ;;  %350 = vmatpush3.bf16.msra.mxu1 %v363_v9 }
  0x14   :  { %320 = vmatprep.subr.bf16.mxu0 %v364_v10  ;;  %343 = vmatprep.subr.bf16.mxu1 %v364_v10 }
  0x17   :  { %321 = vmatpush3.bf16.msra.mxu0 %v365_v13  ;;  %351 = vmatpush3.bf16.msra.mxu1 %v365_v13 }
  0x18   :  { %322 = vmatprep.subr.bf16.mxu0 %v366_v14  ;;  %344 = vmatprep.subr.bf16.mxu1 %v366_v14 }
  0x1b   :  { %323 = vmatpush3.bf16.msra.mxu0 %v367_v15  ;;  %352 = vmatpush3.bf16.msra.mxu1 %v367_v15 }
  0x1c   :  { %324 = vmatprep.subr.bf16.mxu0 %v368_v16  ;;  %345 = vmatprep.subr.bf16.mxu1 %v368_v16 }
  0x1f   :  { %325 = vmatpush3.bf16.msra.mxu0 %v369_v17  ;;  %353 = vmatpush3.bf16.msra.mxu1 %v369_v17 }
  0x22   :  { %203 = vmatmul.mubr.bf16.vlgmr.msra.gmra.mrb[0].mxu0 %v370_v18  ;;  %211 = vmatmul.mubr.bf16.vlgmr.msra.gmra.mrb[0].mxu1 %v373_v19 }
  0xf5   :  { %v326_v20 = vpop.f32.mrb[0].mxu0  ;;  %v332_v21 = vpop.f32.mrb[0].mxu1 }
  0xf6   :  { %v327_v22 = vpop.f32.mrb[1].mxu0  ;;  %v333_v24 = vpop.f32.mrb[1].mxu1 }
  0xf7   :  { %v328_v25 = vadd.f32 %v327_v22, %v326_v20  ;;  %v334_v26 = vadd.f32 %v333_v24, %v332_v21  ;;  %v329_v27 = vpop.f32.mrb[2].mxu0  ;;  %v335_v28 = vpop.f32.mrb[2].mxu1 }
  0xf8   :  { %v330_v30 = vpop.f32.mrb[3].mxu0  ;;  %v336_v31 = vpop.f32.mrb[3].mxu1 }
  0xf9   :  { %v226_v32 = vmul.f32 %v328_v25, %v289_v23  ;;  %v228_v33 = vmul.f32 %v334_v26, %v289_v23  ;;  %v331_v34 = vadd.f32 %v330_v30, %v329_v27  ;;  %v337_v35 = vadd.f32 %v336_v31, %v335_v28 }
  0xfb   :  { %v237_v36 = vadd.f32 %v290_v29, %v226_v32  ;;  %v239_v37 = vadd.f32 %v290_v29, %v228_v33  ;;  %v227_v38 = vmul.f32 %v331_v34, %v289_v23  ;;  %v229_v39 = vmul.f32 %v337_v35, %v289_v23 }
  0xfd   :  { %v238_v40 = vadd.f32 %v290_v29, %v227_v38  ;;  %v240_v41 = vadd.f32 %v290_v29, %v229_v39  ;;  %v241_v42 = vmax.f32 %v237_v36, 0.0  ;;  %v243_v43 = vmax.f32 %v239_v37, 0.0 }
  0xff   :  { %v242_v44 = vmax.f32 %v238_v40, 0.0  ;;  %v244_v45 = vmax.f32 %v240_v41, 0.0 }
 0x101   :  { %v302_v46 = vpack.c.bf16 %v242_v44, %v241_v42  ;;  %v307_v47 = vpack.c.bf16 %v244_v45, %v243_v43 }
 0x103   :  { %303 = vst [vmem:[%s477_s4] sm:$0xff] %v302_v46   ;;  %309 = vst [vmem:[%s477_s4 + $0x8] sm:$0xff] %v307_v47  }

// kernel: resnet50_forward.70
= control target key start
LH: loop header
LB: loop body
LE: loop exit
PB: predicated region body
PF: predicated region fallthrough
CT: control target
= control target key end

     0   :  { %s1048_s15 = smov 0   ;;  %s1050_s16 = smov 0   ;;  %s1155_s0 = inlined_call_operand.vmem [shape: bf16[16,1152], index: 0, kind: input, shape index: {}]   ;;  %s1156_s1 = inlined_call_operand.vmem [shape: bf16[1152,128], index: 1, kind: input, shape index: {}]   ;;  %s1157_s2 = inlined_call_operand.vmem [shape: f32[1,128], index: 2, kind: input, shape index: {}]   ;;  %s1158_s3 = inlined_call_operand.vmem [shape: f32[1,128], index: 3, kind: input, shape index: {}]   ;;  %s1159_s4 = inlined_call_operand.vmem [shape: bf16[16,128], index: 4, kind: output, shape index: {}]  }
   0x1   :  { %s1052_s17 = smov 0   ;;  %s1054_s18 = smov 0  }
   0x2   :  { %s1056_s19 = smov 0  }
   0x3 LB: > { %s26_s20 = sadd.s32 1, %s1014_s18  ;;  %p49_p1 = scmp.ne.s32.totalorder %s1006_s16, %s1002_s15  ;;  %s1018_s19 = sphi %s1056_s19, %s14_s19   ;;  %s1014_s18 = sphi %s1054_s18, %s1163_s18   ;;  %s1010_s17 = sphi %s1052_s17, %s1162_s17   ;;  %s1006_s16 = sphi %s1050_s16, %s1161_s16   ;;  %s1002_s15 = sphi %s1048_s15, %s1160_s15  }
   0x4   : > { %p27_p0 = scmp.ge.s32.totalorder %s26_s20, 3  ;;  %p50_p2 = scmp.eq.s32.totalorder %s1018_s19, 0 }
   0x5   : > { %s42_s22 = sadd.s32 1, %s1006_s16  ;;  %p803_p5 = scmp.ge.s32.totalorder %s1018_s19, 3 }
   0x6   : > { %s1165_s20 = smov (%p27_p0, %s26_s20), 0  ;;  %p51_p3 = por %p50_p2, %p49_p1 }
   0x7   : > { %s38_s21 = ssub.s32 %s1014_s18, %s1165_s20  ;;  %195 = sbr.rel (%p803_p5) target bundleno = 21 (0x15), region = 24 }
   0x8   : > { %p40_p4 = scmp.eq.s32.totalorder %s38_s21, 0 }
   0xa   : > { %s1083_s23 = scalar_select %p40_p4, %s1006_s16, %s42_s22  }
   0xe   : > { %198 = sbr.rel (!%p51_p3) target bundleno = 21 (0x15), region = 28  ;;  %s200_s24 = sand.u32 (%p51_p3), 1, %s1006_s16  }
   0xf   : > { %s848_s25 = smul.u32 (%p51_p3), 12, %s1014_s18 }
  0x10   : > { %s907_s26 = smul.u32 (%p51_p3), 24, %s200_s24 }
  0x11   : > { %s208_s29 = scalar_lea.vmem (%p51_p3), %s1155_s0, %s848_s25 }
  0x12   : > { %v223_v0 = vld [vmem:[%s208_s29] sm:$0xff] (%p51_p3)  ;;  %v805_v2 = vld [vmem:[%s208_s29 + $0x8] sm:$0xf] (%p51_p3)  ;;  %s202_s30 = scalar_lea.vmem (%p51_p3), [#allocation3], %s907_s26  ;;  %v807_v3 = vld [vmem:[%s208_s29 + $0x2c] sm:$0xf] (%p51_p3) }
  0x13   : > { %v225_v1 = vld [vmem:[%s208_s29 + $0x24] sm:$0xff] (%p51_p3)  ;;  %224 = vst [vmem:[%s202_s30] sm:$0xff] (%p51_p3), %v223_v0  ;;  %806 = vst [vmem:[%s202_s30 + $0x8] sm:$0xf] (%p51_p3), %v805_v2 }
  0x14   : > { %226 = vst [vmem:[%s202_s30 + $0xc] sm:$0xff] (%p51_p3), %v225_v1  ;;  %808 = vst [vmem:[%s202_s30 + $0x14] sm:$0xf] (%p51_p3), %v807_v3 }
  0x15 PF: > { %p809_p6 = scmp.ge.s32.totalorder %s1018_s19, 1  ;;  %p254_p7 = scmp.lt.s32.totalorder %s1018_s19, 4 }
  0x17   : > { %p255_p8 = pnand %p809_p6, %p254_p7 }
  0x18   : > { %s261_s5 = sand.u32 (!%p255_p8), 1, %s1002_s15   ;;  %s305_s6 = smul.u32 (!%p255_p8), 48, %s1010_s17 }
  0x19   : > { %258 = sbr.rel (%p255_p8) target bundleno = 310 (0x136), region = 58  ;;  %p811_p10 = scmp.ne.s32.totalorder (!%p255_p8), %s1010_s17, 0 }
  0x1a   : > { %s908_s7 = smul.u32 (!%p255_p8), 24, %s261_s5  ;;  %p306_p9 = scmp.lt.s32.totalorder (!%p255_p8), %s305_s6, 143 }
  0x1c   : > { %s1100_s12 = scalar_lea.vmem (!%p255_p8), [#allocation3], %s908_s7 }
  0x20   : > { %s1167_s6 = smov (!%p306_p9, %s305_s6), 143  ;;  %333 = sbr.rel (%p811_p10) target bundleno = 39 (0x27), region = 66 }
  0x21   : > { %s810_s8 = sshll.u32 %s1167_s6, 2  ;;  %v1020_v4 = vmov (!%p811_p10), 0.0  }
  0x22   : > { %s1098_s11 = scalar_lea.vmem %s1156_s1, %s810_s8  ;;  %334 = vst [vmem:[#allocation2] sm:$0xff] (!%p811_p10), %v1020_v4  ;;  %335 = vst [vmem:[#allocation2 + $0x8] sm:$0xff] (!%p811_p10), %v1020_v4 }
  0x27 PF: > { %v952_v5 = vld [vmem:[%s1098_s11 + $0x40] sm:$0xff]   ;;  %v1021_v6 = vmov 0.0   ;;  %vm1022_vm0 = vmmov 0   ;;  %v955_v9 = vld [vmem:[%s1098_s11 + $0x48] sm:$0xff]   ;;  %v958_v12 = vld [vmem:[%s1098_s11 + $0x50] sm:$0xff]   ;;  %p839_p11 = scmp.ne.s32.totalorder %s1010_s17, 2 }
  0x28   : > { %887 = vmatprep.subr.bf16.mxu1 %v1021_v6  ;;  %v953_v7 = vld [vmem:[%s1098_s11] sm:$0xff]   ;;  %856 = vmatprep.subr.bf16.mxu0 %v952_v5  ;;  %v956_v10 = vld [vmem:[%s1098_s11 + $0x8] sm:$0xff]   ;;  %v959_v13 = vld [vmem:[%s1098_s11 + $0x10] sm:$0xff]  }
  0x29   : > { %v954_v8 = vld [vmem:[%s1098_s11 + $0x80] sm:$0xff]   ;;  %903 = vmatprep.mubr.msk.bf16.mxu1 %vm1022_vm0, %v1021_v6  ;;  %857 = vmatpush3.bf16.msra.mxu0 %v953_v7  ;;  %v957_v11 = vld [vmem:[%s1098_s11 + $0x88] sm:$0xff]   ;;  %v960_v14 = vld [vmem:[%s1098_s11 + $0x90] sm:$0xff]  }
  0x2a   : > { %888 = vmatpush3.bf16.msra.mxu1 %v954_v8  ;;  %858 = vmatprep.subr.bf16.mxu0 %v955_v9  ;;  %v961_v15 = vld [vmem:[%s1098_s11 + $0x58] sm:$0xff]   ;;  %v964_v18 = vld [vmem:[%s1098_s11 + $0x60] sm:$0xff]   ;;  %v967_v21 = vld [vmem:[%s1098_s11 + $0x68] sm:$0xff]  }
  0x2b   : > { %889 = vmatprep.subr.bf16.mxu1 %v1021_v6  ;;  %v962_v16 = vld [vmem:[%s1098_s11 + $0x18] sm:$0xff]   ;;  %v965_v19 = vld [vmem:[%s1098_s11 + $0x20] sm:$0xff]   ;;  %v968_v22 = vld [vmem:[%s1098_s11 + $0x28] sm:$0xff]  }
  0x2c   : > { %v963_v17 = vld [vmem:[%s1098_s11 + $0x98] sm:$0xff]   ;;  %v966_v20 = vld [vmem:[%s1098_s11 + $0xa0] sm:$0xff]   ;;  %v969_v23 = vld [vmem:[%s1098_s11 + $0xa8] sm:$0xff]  }
  0x2d   : > { %859 = vmatpush3.bf16.msra.mxu0 %v956_v10  ;;  %v970_v24 = vld [vmem:[%s1098_s11 + $0x70] sm:$0xff]   ;;  %v973_v27 = vld [vmem:[%s1098_s11 + $0x78] sm:$0xff]   ;;  %v336_v39 = vld [vmem:[#allocation2] sm:$0xff] }
  0x2e   : > { %890 = vmatpush3.bf16.msra.mxu1 %v957_v11  ;;  %860 = vmatprep.subr.bf16.mxu0 %v958_v12  ;;  %v971_v25 = vld [vmem:[%s1098_s11 + $0x30] sm:$0xff]   ;;  %v974_v29 = vld [vmem:[%s1098_s11 + $0x38] sm:$0xff]   ;;  %v337_v45 = vld [vmem:[#allocation2 + $0x8] sm:$0xff] }
  0x2f   : > { %891 = vmatprep.subr.bf16.mxu1 %v1021_v6  ;;  %v972_v26 = vld [vmem:[%s1098_s11 + $0xb0] sm:$0xff]   ;;  %v975_v30 = vld [vmem:[%s1098_s11 + $0xb8] sm:$0xff]   ;;  %v840_v51 = vld [vmem:[%s1157_s2] ss:$0 sm:$0xff] (!%p839_p11) }
  0x30   : > { %v978_v28 = vld [vmem:[%s1100_s12 + $0x4] ss:$12 sps:$4 sm:$0xff]   ;;  %v976_v31 = vld [vmem:[%s1100_s12] ss:$12 sps:$4 sm:$0xff]   ;;  %v979_v32 = vld [vmem:[%s1100_s12 + $0x8] ss:$12 sps:$4 sm:$0xff]  }
  0x31   : > { %861 = vmatpush3.bf16.msra.mxu0 %v959_v13  ;;  %582 = vmatprep.mubr.bf16.mxu0 %v978_v28  ;;  %v841_v54 = vld [vmem:[%s1158_s3] ss:$0 sm:$0xff] (!%p839_p11) }
  0x32   : > { %892 = vmatpush3.bf16.msra.mxu1 %v960_v14  ;;  %862 = vmatprep.subr.bf16.mxu0 %v961_v15 }
  0x33   : > { %893 = vmatprep.subr.bf16.mxu1 %v1021_v6 }
  0x35   : > { %863 = vmatpush3.bf16.msra.mxu0 %v962_v16 }
  0x36   : > { %894 = vmatpush3.bf16.msra.mxu1 %v963_v17  ;;  %864 = vmatprep.subr.bf16.mxu0 %v964_v18 }
  0x37   : > { %895 = vmatprep.subr.bf16.mxu1 %v1021_v6 }
  0x39   : > { %865 = vmatpush3.bf16.msra.mxu0 %v965_v19 }
  0x3a   : > { %896 = vmatpush3.bf16.msra.mxu1 %v966_v20  ;;  %866 = vmatprep.subr.bf16.mxu0 %v967_v21 }
  0x3b   : > { %897 = vmatprep.subr.bf16.mxu1 %v1021_v6 }
  0x3d   : > { %867 = vmatpush3.bf16.msra.mxu0 %v968_v22 }
  0x3e   : > { %898 = vmatpush3.bf16.msra.mxu1 %v969_v23  ;;  %868 = vmatprep.subr.bf16.mxu0 %v970_v24 }
  0x3f   : > { %899 = vmatprep.subr.bf16.mxu1 %v1021_v6 }
  0x41   : > { %869 = vmatpush3.bf16.msra.mxu0 %v971_v25 }
  0x42   : > { %900 = vmatpush3.bf16.msra.mxu1 %v972_v26  ;;  %870 = vmatprep.subr.bf16.mxu0 %v973_v27 }
  0x43   : > { %901 = vmatprep.subr.bf16.mxu1 %v1021_v6 }
  0x45   : > { %871 = vmatpush3.bf16.msra.mxu0 %v974_v29 }
  0x46   : > { %902 = vmatpush3.bf16.msra.mxu1 %v975_v30 }
  0x48   : > { %583 = vmatmul.mubr.bf16.vlgmr.msra.gmra.mrb[0].mxu0 %v976_v31 }
  0x49   : > { %904 = vmatmul.mubr.bf16.vlgmr.msra.gmra.mrb[0].mxu1 %v979_v32 }
 0x11b   : > { %v872_v33 = vpop.f32.mrb[0].mxu0 }
 0x11c   : > { %v625_v34 = vpop.f32.mrb[0].mxu1  ;;  %v873_v35 = vpop.f32.mrb[1].mxu0 }
 0x11d   : > { %v874_v36 = vadd.f32 %v873_v35, %v872_v33  ;;  %v905_v37 = vpop.f32.mrb[1].mxu1  ;;  %v875_v38 = vpop.f32.mrb[2].mxu0 }
 0x11e   : > { %v628_v40 = vpop.f32.mrb[2].mxu1  ;;  %v876_v41 = vpop.f32.mrb[3].mxu0 }
 0x11f   : > { %v626_v42 = vadd.f32 %v874_v36, %v625_v34  ;;  %v877_v43 = vadd.f32 %v876_v41, %v875_v38  ;;  %v906_v44 = vpop.f32.mrb[3].mxu1  ;;  %639 = sbr.rel (%p839_p11) target bundleno = 310 (0x136), region = 70 }
 0x121   : > { %v632_v46 = vadd.f32 %v626_v42, %v336_v39  ;;  %v629_v47 = vadd.f32 %v877_v43, %v628_v40 }
 0x123   : > { %634 = vst [vmem:[#allocation2] sm:$0xff] %v632_v46  ;;  %v633_v48 = vadd.f32 %v629_v47, %v337_v45 }
 0x125   : > { %635 = vst [vmem:[#allocation2 + $0x8] sm:$0xff] %v633_v48 }
 0x12a   : > { %v640_v49 = vld [vmem:[#allocation2] sm:$0xff] }
 0x12b   : > { %v649_v52 = vmul.f32 %v840_v51, %v640_v49 }
 0x12c   : > { %v641_v50 = vld [vmem:[#allocation2 + $0x8] sm:$0xff] }
 0x12d   : > { %v650_v53 = vmul.f32 %v840_v51, %v641_v50  ;;  %v658_v55 = vadd.f32 %v841_v54, %v649_v52 }
 0x12f   : > { %v659_v56 = vadd.f32 %v841_v54, %v650_v53  ;;  %v660_v57 = vmax.f32 %v658_v55, 0.0 }
 0x131   : > { %v661_v58 = vmax.f32 %v659_v56, 0.0 }
 0x133   : > { %v854_v59 = vpack.c.bf16 %v661_v58, %v660_v57 }
 0x135   : > { %855 = vst [vmem:[%s1159_s4] sm:$0xff] %v854_v59  }
 0x136 PF: > { %s14_s19 = sadd.s32 1, %s1018_s19   ;;  %s1160_s15 = smov %s1006_s16 }
 0x137   : > { %p11_p12 = scmp.ge.s32.totalorder %s14_s19, 5   ;;  %s1161_s16 = smov %s1083_s23 }
 0x138   : > { %s1162_s17 = smov %s1014_s18  ;;  %s1163_s18 = smov %s1165_s20 }
 0x139   :  { %13 = sbr.rel (!%p11_p12) target bundleno = 3 (0x3), region = 120 }

// kernel: resnet50_forward.68
= control target key start
LH: loop header
LB: loop body
LE: loop exit
PB: predicated region body
PF: predicated region fallthrough
CT: control target
= control target key end

     0   :  { %s1129_s15 = smov 0   ;;  %s1131_s16 = smov 0   ;;  %s1320_s0 = inlined_call_operand.vmem [shape: bf16[16,256], index: 0, kind: input, shape index: {}]   ;;  %s1321_s1 = inlined_call_operand.vmem [shape: bf16[256,512], index: 1, kind: input, shape index: {}]   ;;  %s1322_s2 = inlined_call_operand.vmem [shape: f32[1,512], index: 2, kind: input, shape index: {}]   ;;  %s1323_s3 = inlined_call_operand.vmem [shape: f32[1,512], index: 3, kind: input, shape index: {}]   ;;  %s1324_s4 = inlined_call_operand.vmem [shape: bf16[16,512], index: 4, kind: output, shape index: {}]  }
   0x1   :  { %s1133_s17 = smov 0   ;;  %s1135_s18 = smov 0  }
   0x2   :  { %s1137_s19 = smov 0  }
   0x3 LB: > { %s29_s20 = sadd.s32 1, %s1098_s18  ;;  %s915_s21 = sadd.s32 4294967295, %s1102_s19   ;;  %s1102_s19 = sphi %s1137_s19, %s14_s19   ;;  %s1098_s18 = sphi %s1135_s18, %s1329_s18   ;;  %s1094_s17 = sphi %s1133_s17, %s1328_s17   ;;  %s1090_s16 = sphi %s1131_s16, %s1327_s16   ;;  %s1086_s15 = sphi %s1129_s15, %s1326_s15  }
   0x4   : > { %p31_p0 = scmp.ge.s32.totalorder %s29_s20, 2  ;;  %p77_p1 = scmp.ne.s32.totalorder %s1090_s16, %s1086_s15 }
   0x5   : > { %p78_p2 = scmp.eq.s32.totalorder %s1102_s19, 0  ;;  %p161_p4 = scmp.eq.s32.totalorder %s915_s21, 1 }
   0x6   : > { %s1331_s20 = smov (%p31_p0, %s29_s20), 0  ;;  %s70_s23 = sadd.s32 1, %s1090_s16 }
   0x7   : > { %p79_p3 = por %p78_p2, %p77_p1  ;;  %s66_s22 = ssub.s32 %s1098_s18, %s1331_s20 }
   0x8   : > { %p68_p5 = scmp.eq.s32.totalorder %s66_s22, 0  ;;  %p1164_p6 = por %p161_p4, %p77_p1 }
   0x9   : > { %p919_p7 = scmp.ge.s32.totalorder %s1102_s19, 2 }
   0xa   : > { %s1169_s25 = scalar_select %p68_p5, %s1090_s16, %s70_s23  }
   0xb   : > { %198 = sbr.rel (%p919_p7) target bundleno = 38 (0x26), region = 20 }
  0x12   : > { %201 = sbr.rel (!%p79_p3) target bundleno = 38 (0x26), region = 24  ;;  %s203_s26 = sand.u32 (%p79_p3), 1, %s1090_s16  }
  0x13   : > { %s969_s27 = sshll.u32 (%p79_p3), %s1098_s18, 3  ;;  %s920_s28 = sshll.u32 (%p79_p3), %s203_s26, 8 }
  0x14   : > { %s1177_s5 = scalar_lea.vmem (%p79_p3), %s1321_s1, %s969_s27  ;;  %s1182_s6 = scalar_lea.vmem (%p79_p3), [#allocation2], %s920_s28 }
  0x15   : > { %v301_v0 = vld [vmem:[%s1177_s5] sm:$0xff] (%p79_p3)  ;;  %v303_v1 = vld [vmem:[%s1177_s5 + $0x10] sm:$0xff] (%p79_p3) }
  0x16   : > { %v305_v2 = vld [vmem:[%s1177_s5 + $0x20] sm:$0xff] (%p79_p3)  ;;  %302 = vst [vmem:[%s1182_s6] sm:$0xff] (%p79_p3), %v301_v0  ;;  %304 = vst [vmem:[%s1182_s6 + $0x8] sm:$0xff] (%p79_p3), %v303_v1  ;;  %v307_v3 = vld [vmem:[%s1177_s5 + $0x30] sm:$0xff] (%p79_p3) }
  0x17   : > { %306 = vst [vmem:[%s1182_s6 + $0x10] sm:$0xff] (%p79_p3), %v305_v2  ;;  %v309_v4 = vld [vmem:[%s1177_s5 + $0x40] sm:$0xff] (%p79_p3)  ;;  %v311_v5 = vld [vmem:[%s1177_s5 + $0x50] sm:$0xff] (%p79_p3)  ;;  %308 = vst [vmem:[%s1182_s6 + $0x18] sm:$0xff] (%p79_p3), %v307_v3 }
  0x18   : > { %310 = vst [vmem:[%s1182_s6 + $0x20] sm:$0xff] (%p79_p3), %v309_v4  ;;  %312 = vst [vmem:[%s1182_s6 + $0x28] sm:$0xff] (%p79_p3), %v311_v5  ;;  %v313_v6 = vld [vmem:[%s1177_s5 + $0x60] sm:$0xff] (%p79_p3)  ;;  %v315_v7 = vld [vmem:[%s1177_s5 + $0x70] sm:$0xff] (%p79_p3) }
  0x19   : > { %v317_v8 = vld [vmem:[%s1177_s5 + $0x80] sm:$0xff]  ;;  %314 = vst [vmem:[%s1182_s6 + $0x30] sm:$0xff] %v313_v6  ;;  %316 = vst [vmem:[%s1182_s6 + $0x38] sm:$0xff] %v315_v7  ;;  %v319_v9 = vld [vmem:[%s1177_s5 + $0x90] sm:$0xff] }
  0x1a   : > { %318 = vst [vmem:[%s1182_s6 + $0x40] sm:$0xff] %v317_v8  ;;  %v321_v10 = vld [vmem:[%s1177_s5 + $0xa0] sm:$0xff]  ;;  %v323_v11 = vld [vmem:[%s1177_s5 + $0xb0] sm:$0xff]  ;;  %320 = vst [vmem:[%s1182_s6 + $0x48] sm:$0xff] %v319_v9 }
  0x1b   : > { %322 = vst [vmem:[%s1182_s6 + $0x50] sm:$0xff] %v321_v10  ;;  %324 = vst [vmem:[%s1182_s6 + $0x58] sm:$0xff] %v323_v11  ;;  %v325_v12 = vld [vmem:[%s1177_s5 + $0xc0] sm:$0xff]  ;;  %v327_v13 = vld [vmem:[%s1177_s5 + $0xd0] sm:$0xff] }
  0x1c   : > { %v329_v14 = vld [vmem:[%s1177_s5 + $0xe0] sm:$0xff]  ;;  %326 = vst [vmem:[%s1182_s6 + $0x60] sm:$0xff] %v325_v12  ;;  %328 = vst [vmem:[%s1182_s6 + $0x68] sm:$0xff] %v327_v13  ;;  %v331_v15 = vld [vmem:[%s1177_s5 + $0xf0] sm:$0xff] }
  0x1d   : > { %330 = vst [vmem:[%s1182_s6 + $0x70] sm:$0xff] %v329_v14  ;;  %v333_v16 = vld [vmem:[%s1177_s5 + $0x100] sm:$0xff]  ;;  %v335_v17 = vld [vmem:[%s1177_s5 + $0x110] sm:$0xff]  ;;  %332 = vst [vmem:[%s1182_s6 + $0x78] sm:$0xff] %v331_v15 }
  0x1e   : > { %334 = vst [vmem:[%s1182_s6 + $0x80] sm:$0xff] %v333_v16  ;;  %336 = vst [vmem:[%s1182_s6 + $0x88] sm:$0xff] %v335_v17  ;;  %v337_v18 = vld [vmem:[%s1177_s5 + $0x120] sm:$0xff]  ;;  %v339_v19 = vld [vmem:[%s1177_s5 + $0x130] sm:$0xff] }
  0x1f   : > { %v341_v20 = vld [vmem:[%s1177_s5 + $0x140] sm:$0xff]  ;;  %338 = vst [vmem:[%s1182_s6 + $0x90] sm:$0xff] %v337_v18  ;;  %340 = vst [vmem:[%s1182_s6 + $0x98] sm:$0xff] %v339_v19  ;;  %v343_v21 = vld [vmem:[%s1177_s5 + $0x150] sm:$0xff] }
  0x20   : > { %342 = vst [vmem:[%s1182_s6 + $0xa0] sm:$0xff] %v341_v20  ;;  %v345_v22 = vld [vmem:[%s1177_s5 + $0x160] sm:$0xff]  ;;  %v347_v23 = vld [vmem:[%s1177_s5 + $0x170] sm:$0xff]  ;;  %344 = vst [vmem:[%s1182_s6 + $0xa8] sm:$0xff] %v343_v21 }
  0x21   : > { %346 = vst [vmem:[%s1182_s6 + $0xb0] sm:$0xff] %v345_v22  ;;  %348 = vst [vmem:[%s1182_s6 + $0xb8] sm:$0xff] %v347_v23  ;;  %v349_v24 = vld [vmem:[%s1177_s5 + $0x180] sm:$0xff]  ;;  %v351_v25 = vld [vmem:[%s1177_s5 + $0x190] sm:$0xff] }
  0x22   : > { %v353_v26 = vld [vmem:[%s1177_s5 + $0x1a0] sm:$0xff]  ;;  %350 = vst [vmem:[%s1182_s6 + $0xc0] sm:$0xff] %v349_v24  ;;  %352 = vst [vmem:[%s1182_s6 + $0xc8] sm:$0xff] %v351_v25  ;;  %v355_v27 = vld [vmem:[%s1177_s5 + $0x1b0] sm:$0xff] }
  0x23   : > { %354 = vst [vmem:[%s1182_s6 + $0xd0] sm:$0xff] %v353_v26  ;;  %v357_v28 = vld [vmem:[%s1177_s5 + $0x1c0] sm:$0xff]  ;;  %v359_v29 = vld [vmem:[%s1177_s5 + $0x1d0] sm:$0xff]  ;;  %356 = vst [vmem:[%s1182_s6 + $0xd8] sm:$0xff] %v355_v27 }
  0x24   : > { %358 = vst [vmem:[%s1182_s6 + $0xe0] sm:$0xff] %v357_v28  ;;  %360 = vst [vmem:[%s1182_s6 + $0xe8] sm:$0xff] %v359_v29  ;;  %v361_v30 = vld [vmem:[%s1177_s5 + $0x1e0] sm:$0xff]  ;;  %v363_v31 = vld [vmem:[%s1177_s5 + $0x1f0] sm:$0xff] }
  0x25   : > { %362 = vst [vmem:[%s1182_s6 + $0xf0] sm:$0xff] %v361_v30  ;;  %364 = vst [vmem:[%s1182_s6 + $0xf8] sm:$0xff] %v363_v31 }
  0x26 PF: > { %p923_p8 = scmp.ge.s32.totalorder %s1102_s19, 1  ;;  %p385_p9 = scmp.lt.s32.totalorder %s1102_s19, 3 }
  0x28   : > { %p386_p10 = pnand %p923_p8, %p385_p9 }
  0x29   : > { %s392_s7 = sand.u32 (!%p386_p10), 1, %s1086_s15   ;;  %v1063_v32 = vld [vmem:[%s1320_s0 + $0x4] ss:$8 sps:$4 sm:$0xff] (!%p386_p10)   ;;  %v1061_v1 = vld [vmem:[%s1320_s0] ss:$8 sps:$4 sm:$0xff] (!%p386_p10)   ;;  %s926_s14 = sshll.u32 (!%p386_p10), %s1094_s17, 1  ;;  %v709_v2 = vlaneseq (!%p386_p10) }
  0x2a   : > { %389 = sbr.rel (%p386_p10) target bundleno = 339 (0x153), region = 70  ;;  %s924_s8 = sshll.u32 (!%p386_p10), %s392_s7, 8  ;;  %696 = vmatprep.mubr.bf16.mxu0 (!%p386_p10), %v1063_v32 }
  0x2b   : > { %s1253_s11 = scalar_lea.vmem (!%p386_p10), [#allocation2], %s924_s8  ;;  %p449_p11 = scmp.lt.s32.totalorder (!%p386_p10), %s926_s14, 3  ;;  %v710_v3 = vshrl.u32 (!%p386_p10), %v709_v2, 7 }
  0x2c   : > { %v1013_v33 = vld [vmem:[%s1253_s11 + $0x4] ss:$8 sps:$4 sm:$0xff] (!%p386_p10)   ;;  %v1015_v34 = vld [vmem:[%s1253_s11] ss:$8 sps:$4 sm:$0xff] (!%p386_p10)   ;;  %v1016_v35 = vld [vmem:[%s1253_s11 + $0x14] ss:$8 sps:$4 sm:$0xff] (!%p386_p10)  }
  0x2d   : > { %664 = vmatprep.subr.bf16.mxu0 (!%p386_p10), %v1013_v33  ;;  %v1018_v36 = vld [vmem:[%s1253_s11 + $0x10] ss:$8 sps:$4 sm:$0xff] (!%p386_p10)   ;;  %v1019_v37 = vld [vmem:[%s1253_s11 + $0x24] ss:$8 sps:$4 sm:$0xff] (!%p386_p10)   ;;  %v1021_v38 = vld [vmem:[%s1253_s11 + $0x20] ss:$8 sps:$4 sm:$0xff] (!%p386_p10)  }
  0x2e   : > { %665 = vmatpush1.bf16.msra.mxu0 (!%p386_p10), %v1015_v34  ;;  %v1022_v39 = vld [vmem:[%s1253_s11 + $0x34] ss:$8 sps:$4 sm:$0xff] (!%p386_p10)   ;;  %v1024_v40 = vld [vmem:[%s1253_s11 + $0x30] ss:$8 sps:$4 sm:$0xff] (!%p386_p10)   ;;  %v1025_v41 = vld [vmem:[%s1253_s11 + $0x44] ss:$8 sps:$4 sm:$0xff] (!%p386_p10)  }
  0x2f   : > { %666 = vmatprep.subr.bf16.mxu0 (!%p386_p10), %v1016_v35  ;;  %v1027_v42 = vld [vmem:[%s1253_s11 + $0x40] ss:$8 sps:$4 sm:$0xff] (!%p386_p10)   ;;  %v1028_v43 = vld [vmem:[%s1253_s11 + $0x54] ss:$8 sps:$4 sm:$0xff] (!%p386_p10)   ;;  %v1030_v44 = vld [vmem:[%s1253_s11 + $0x50] ss:$8 sps:$4 sm:$0xff] (!%p386_p10)  }
  0x30   : > { %v1031_v45 = vld [vmem:[%s1253_s11 + $0x64] ss:$8 sps:$4 sm:$0xff] (!%p386_p10)   ;;  %v1033_v46 = vld [vmem:[%s1253_s11 + $0x60] ss:$8 sps:$4 sm:$0xff] (!%p386_p10)   ;;  %v1034_v47 = vld [vmem:[%s1253_s11 + $0x74] ss:$8 sps:$4 sm:$0xff] (!%p386_p10)  }
  0x31   : > { %v1036_v48 = vld [vmem:[%s1253_s11 + $0x70] ss:$8 sps:$4 sm:$0xff]   ;;  %v1037_v49 = vld [vmem:[%s1253_s11 + $0x84] ss:$8 sps:$4 sm:$0xff]   ;;  %v1039_v50 = vld [vmem:[%s1253_s11 + $0x80] ss:$8 sps:$4 sm:$0xff]  }
  0x32   : > { %667 = vmatpush1.bf16.msra.mxu0 %v1018_v36  ;;  %v1040_v51 = vld [vmem:[%s1253_s11 + $0x94] ss:$8 sps:$4 sm:$0xff]   ;;  %v1042_v52 = vld [vmem:[%s1253_s11 + $0x90] ss:$8 sps:$4 sm:$0xff]   ;;  %v1043_v53 = vld [vmem:[%s1253_s11 + $0xa4] ss:$8 sps:$4 sm:$0xff]  }
  0x33   : > { %668 = vmatprep.subr.bf16.mxu0 %v1019_v37  ;;  %v1045_v54 = vld [vmem:[%s1253_s11 + $0xa0] ss:$8 sps:$4 sm:$0xff]   ;;  %v1046_v55 = vld [vmem:[%s1253_s11 + $0xb4] ss:$8 sps:$4 sm:$0xff]   ;;  %v1048_v56 = vld [vmem:[%s1253_s11 + $0xb0] ss:$8 sps:$4 sm:$0xff]  }
  0x34   : > { %v1049_v57 = vld [vmem:[%s1253_s11 + $0xc4] ss:$8 sps:$4 sm:$0xff]   ;;  %v1051_v58 = vld [vmem:[%s1253_s11 + $0xc0] ss:$8 sps:$4 sm:$0xff]   ;;  %v1052_v59 = vld [vmem:[%s1253_s11 + $0xd4] ss:$8 sps:$4 sm:$0xff]  }
  0x35   : > { %v1054_v60 = vld [vmem:[%s1253_s11 + $0xd0] ss:$8 sps:$4 sm:$0xff]   ;;  %v1055_v61 = vld [vmem:[%s1253_s11 + $0xe4] ss:$8 sps:$4 sm:$0xff]   ;;  %v1057_v62 = vld [vmem:[%s1253_s11 + $0xe0] ss:$8 sps:$4 sm:$0xff]  }
  0x36   : > { %669 = vmatpush1.bf16.msra.mxu0 %v1021_v38  ;;  %v1058_v63 = vld [vmem:[%s1253_s11 + $0xf4] ss:$8 sps:$4 sm:$0xff]   ;;  %v1060_v0 = vld [vmem:[%s1253_s11 + $0xf0] ss:$8 sps:$4 sm:$0xff]   ;;  %s1333_s14 = smov (!%p449_p11, %s926_s14), 3  ;;  %v711_v4 = vsub.s32 0, %v710_v3 }
  0x37   : > { %670 = vmatprep.subr.bf16.mxu0 %v1022_v39  ;;  %s451_s23 = scalar_lea.vmem %s1322_s2, %s1333_s14  ;;  %s456_s28 = scalar_lea.vmem %s1323_s3, %s1333_s14  ;;  %v715_v6 = vsub.s32 1, %v710_v3 }
  0x38   : > { %v707_v5 = vld [vmem:[%s451_s23] sm:$0x3]  ;;  %s925_s29 = sshll.u32 %s392_s7, 4  ;;  %s972_s15 = sshll.u32 (%p1164_p6), %s1094_s17, 3 }
  0x39   : > { %v723_v7 = vld [vmem:[%s456_s28] sm:$0x3]  ;;  %v712_v8 = vrot.slane %v707_v5, %v711_v4  ;;  %v716_v9 = vrot.slane %v707_v5, %v715_v6  ;;  %s433_s30 = scalar_lea.vmem [#allocation3], %s925_s29  ;;  %s765_s7 = scalar_lea.vmem (%p1164_p6), %s1324_s4, %s972_s15 }
  0x3a   : > { %671 = vmatpush1.bf16.msra.mxu0 %v1024_v40  ;;  %v728_v10 = vrot.slane %v723_v7, %v711_v4  ;;  %v732_v12 = vrot.slane %v723_v7, %v715_v6 }
  0x3b   : > { %672 = vmatprep.subr.bf16.mxu0 %v1025_v41 }
  0x3e   : > { %673 = vmatpush1.bf16.msra.mxu0 %v1027_v42 }
  0x3f   : > { %674 = vmatprep.subr.bf16.mxu0 %v1028_v43 }
  0x42   : > { %675 = vmatpush1.bf16.msra.mxu0 %v1030_v44 }
  0x43   : > { %676 = vmatprep.subr.bf16.mxu0 %v1031_v45 }
  0x46   : > { %677 = vmatpush1.bf16.msra.mxu0 %v1033_v46 }
  0x47   : > { %678 = vmatprep.subr.bf16.mxu0 %v1034_v47 }
  0x4a   : > { %679 = vmatpush1.bf16.msra.mxu0 %v1036_v48 }
  0x4b   : > { %680 = vmatprep.subr.bf16.mxu0 %v1037_v49 }
  0x4e   : > { %681 = vmatpush1.bf16.msra.mxu0 %v1039_v50 }
  0x4f   : > { %682 = vmatprep.subr.bf16.mxu0 %v1040_v51 }
  0x52   : > { %683 = vmatpush1.bf16.msra.mxu0 %v1042_v52 }
  0x53   : > { %684 = vmatprep.subr.bf16.mxu0 %v1043_v53 }
  0x56   : > { %685 = vmatpush1.bf16.msra.mxu0 %v1045_v54 }
  0x57   : > { %686 = vmatprep.subr.bf16.mxu0 %v1046_v55 }
  0x5a   : > { %687 = vmatpush1.bf16.msra.mxu0 %v1048_v56 }
  0x5b   : > { %688 = vmatprep.subr.bf16.mxu0 %v1049_v57 }
  0x5e   : > { %689 = vmatpush1.bf16.msra.mxu0 %v1051_v58 }
  0x5f   : > { %690 = vmatprep.subr.bf16.mxu0 %v1052_v59 }
  0x62   : > { %691 = vmatpush1.bf16.msra.mxu0 %v1054_v60 }
  0x63   : > { %692 = vmatprep.subr.bf16.mxu0 %v1055_v61 }
  0x66   : > { %693 = vmatpush1.bf16.msra.mxu0 %v1057_v62 }
  0x67   : > { %694 = vmatprep.subr.bf16.mxu0 %v1058_v63 }
  0x6a   : > { %695 = vmatpush1.bf16.msra.mxu0 %v1060_v0 }
  0x6d   : > { %697 = vmatmul.mubr.bf16.vlgmr.msra.gmra.mrb[0].mxu0 %v1061_v1 }
 0x140   : > { %v698_v11 = vpop.f32.mrb[0].mxu0 }
 0x141   : > { %v719_v13 = vmul.f32 %v712_v8, %v698_v11  ;;  %v700_v14 = vpop.f32.mrb[1].mxu0 }
 0x142   : > { %v720_v15 = vmul.f32 %v716_v9, %v700_v14  ;;  %v702_v16 = vpop.f32.mrb[2].mxu0 }
 0x143   : > { %v735_v17 = vadd.f32 %v728_v10, %v719_v13  ;;  %v721_v18 = vmul.f32 %v712_v8, %v702_v16  ;;  %v704_v19 = vpop.f32.mrb[3].mxu0 }
 0x144   : > { %v736_v20 = vadd.f32 %v732_v12, %v720_v15  ;;  %v722_v21 = vmul.f32 %v716_v9, %v704_v19  ;;  %759 = sbr.rel (!%p1164_p6) target bundleno = 339 (0x153), region = 78 }
 0x145   : > { %v737_v22 = vadd.f32 %v728_v10, %v721_v18 }
 0x146   : > { %v970_v23 = vpack.c.bf16 %v736_v20, %v735_v17  ;;  %v738_v24 = vadd.f32 %v732_v12, %v722_v21 }
 0x148   : > { %751 = vst [vmem:[%s433_s30] sm:$0xff] %v970_v23  ;;  %v971_v25 = vpack.c.bf16 %v738_v24, %v737_v22 }
 0x14a   : > { %752 = vst [vmem:[%s433_s30 + $0x8] sm:$0xff] %v971_v25 }
 0x14f   : > { %v795_v26 = vld [vmem:[%s433_s30] sm:$0xff] }
 0x150   : > { %796 = vst [vmem:[%s765_s7] sm:$0xff] %v795_v26 }
 0x151   : > { %v797_v27 = vld [vmem:[%s433_s30 + $0x8] sm:$0xff] }
 0x152   : > { %798 = vst [vmem:[%s765_s7 + $0x10] sm:$0xff] %v797_v27 }
 0x153 PF: > { %s14_s19 = sadd.s32 1, %s1102_s19   ;;  %s1326_s15 = smov %s1090_s16 }
 0x154   : > { %p11_p12 = scmp.ge.s32.totalorder %s14_s19, 4   ;;  %s1327_s16 = smov %s1169_s25 }
 0x155   : > { %s1328_s17 = smov %s1098_s18  ;;  %s1329_s18 = smov %s1331_s20 }
 0x156   :  { %13 = sbr.rel (!%p11_p12) target bundleno = 3 (0x3), region = 156 }

// kernel: resnet50_forward.71
= control target key start
LH: loop header
LB: loop body
LE: loop exit
PB: predicated region body
PF: predicated region fallthrough
CT: control target
= control target key end

     0   :  { %s1052_s18 = smov 0   ;;  %s1054_s19 = smov 0   ;;  %s1173_s0 = inlined_call_operand.vmem [shape: bf16[16,128], index: 0, kind: input, shape index: {}]   ;;  %s1174_s1 = inlined_call_operand.vmem [shape: bf16[128,512], index: 1, kind: input, shape index: {}]   ;;  %s1175_s2 = inlined_call_operand.vmem [shape: f32[1,512], index: 2, kind: input, shape index: {}]   ;;  %s1176_s3 = inlined_call_operand.vmem [shape: f32[1,512], index: 3, kind: input, shape index: {}]   ;;  %s1177_s4 = inlined_call_operand.vmem [shape: bf16[16,512], index: 4, kind: input, shape index: {}]   ;;  %s1178_s5 = inlined_call_operand.vmem [shape: bf16[16,512], index: 5, kind: output, shape index: {}]  }
   0x1   :  { %s1056_s20 = smov 0   ;;  %s1058_s21 = smov 0  }
   0x2   :  { %s1060_s22 = smov 0  }
   0x3 LB: > { %s30_s23 = sadd.s32 1, %s1015_s21  ;;  %s869_s24 = sadd.s32 4294967295, %s1019_s22   ;;  %s1019_s22 = sphi %s1060_s22, %s15_s22   ;;  %s1015_s21 = sphi %s1058_s21, %s1184_s21   ;;  %s1011_s20 = sphi %s1056_s20, %s1183_s20   ;;  %s1007_s19 = sphi %s1054_s19, %s1182_s19   ;;  %s1003_s18 = sphi %s1052_s18, %s1181_s18  }
   0x4   : > { %p32_p0 = scmp.ge.s32.totalorder %s30_s23, 2  ;;  %p78_p1 = scmp.ne.s32.totalorder %s1007_s19, %s1003_s18 }
   0x5   : > { %p79_p2 = scmp.eq.s32.totalorder %s1019_s22, 0  ;;  %p190_p4 = scmp.eq.s32.totalorder %s869_s24, 1 }
   0x6   : > { %s1186_s23 = smov (%p32_p0, %s30_s23), 0  ;;  %s71_s27 = sadd.s32 1, %s1007_s19 }
   0x7   : > { %p1084_p3 = por %p79_p2, %p78_p1  ;;  %s67_s26 = ssub.s32 %s1015_s21, %s1186_s23 }
   0x8   : > { %p69_p5 = scmp.eq.s32.totalorder %s67_s26, 0  ;;  %p1091_p6 = por %p190_p4, %p78_p1 }
   0x9   : > { %p873_p7 = scmp.ge.s32.totalorder %s1019_s22, 2 }
   0xa   : > { %s1096_s29 = scalar_select %p69_p5, %s1007_s19, %s71_s27  }
   0xb   : > { %224 = sbr.rel (%p873_p7) target bundleno = 37 (0x25), region = 20 }
  0x12   : > { %227 = sbr.rel (!%p1084_p3) target bundleno = 30 (0x1e), region = 24  ;;  %s229_s30 = sand.u32 (%p1084_p3), 1, %s1007_s19  }
  0x13   : > { %s910_s6 = sshll.u32 (%p1084_p3), %s1015_s21, 3  ;;  %s874_s7 = sshll.u32 (%p1084_p3), %s229_s30, 7 }
  0x14   : > { %s1106_s10 = scalar_lea.vmem (%p1084_p3), %s1174_s1, %s910_s6  ;;  %s231_s11 = scalar_lea.vmem (%p1084_p3), [#allocation2], %s874_s7 }
  0x15   : > { %v295_v0 = vld [vmem:[%s1106_s10] sm:$0xff] (%p1084_p3)  ;;  %v297_v1 = vld [vmem:[%s1106_s10 + $0x10] sm:$0xff] (%p1084_p3) }
  0x16   : > { %v299_v2 = vld [vmem:[%s1106_s10 + $0x20] sm:$0xff] (%p1084_p3)  ;;  %296 = vst [vmem:[%s231_s11] sm:$0xff] (%p1084_p3), %v295_v0  ;;  %298 = vst [vmem:[%s231_s11 + $0x8] sm:$0xff] (%p1084_p3), %v297_v1  ;;  %v301_v3 = vld [vmem:[%s1106_s10 + $0x30] sm:$0xff] (%p1084_p3) }
  0x17   : > { %300 = vst [vmem:[%s231_s11 + $0x10] sm:$0xff] (%p1084_p3), %v299_v2  ;;  %v303_v4 = vld [vmem:[%s1106_s10 + $0x40] sm:$0xff] (%p1084_p3)  ;;  %v305_v5 = vld [vmem:[%s1106_s10 + $0x50] sm:$0xff] (%p1084_p3)  ;;  %302 = vst [vmem:[%s231_s11 + $0x18] sm:$0xff] (%p1084_p3), %v301_v3 }
  0x18   : > { %304 = vst [vmem:[%s231_s11 + $0x20] sm:$0xff] (%p1084_p3), %v303_v4  ;;  %306 = vst [vmem:[%s231_s11 + $0x28] sm:$0xff] (%p1084_p3), %v305_v5  ;;  %v307_v6 = vld [vmem:[%s1106_s10 + $0x60] sm:$0xff] (%p1084_p3)  ;;  %v309_v7 = vld [vmem:[%s1106_s10 + $0x70] sm:$0xff] (%p1084_p3) }
  0x19   : > { %v311_v8 = vld [vmem:[%s1106_s10 + $0x80] sm:$0xff]  ;;  %308 = vst [vmem:[%s231_s11 + $0x30] sm:$0xff] %v307_v6  ;;  %310 = vst [vmem:[%s231_s11 + $0x38] sm:$0xff] %v309_v7  ;;  %v313_v9 = vld [vmem:[%s1106_s10 + $0x90] sm:$0xff] }
  0x1a   : > { %312 = vst [vmem:[%s231_s11 + $0x40] sm:$0xff] %v311_v8  ;;  %v315_v10 = vld [vmem:[%s1106_s10 + $0xa0] sm:$0xff]  ;;  %v317_v11 = vld [vmem:[%s1106_s10 + $0xb0] sm:$0xff]  ;;  %314 = vst [vmem:[%s231_s11 + $0x48] sm:$0xff] %v313_v9 }
  0x1b   : > { %316 = vst [vmem:[%s231_s11 + $0x50] sm:$0xff] %v315_v10  ;;  %318 = vst [vmem:[%s231_s11 + $0x58] sm:$0xff] %v317_v11  ;;  %v319_v12 = vld [vmem:[%s1106_s10 + $0xc0] sm:$0xff]  ;;  %v321_v13 = vld [vmem:[%s1106_s10 + $0xd0] sm:$0xff] }
  0x1c   : > { %v323_v14 = vld [vmem:[%s1106_s10 + $0xe0] sm:$0xff]  ;;  %320 = vst [vmem:[%s231_s11 + $0x60] sm:$0xff] %v319_v12  ;;  %322 = vst [vmem:[%s231_s11 + $0x68] sm:$0xff] %v321_v13  ;;  %v325_v15 = vld [vmem:[%s1106_s10 + $0xf0] sm:$0xff] }
  0x1d   : > { %324 = vst [vmem:[%s231_s11 + $0x70] sm:$0xff] %v323_v14  ;;  %326 = vst [vmem:[%s231_s11 + $0x78] sm:$0xff] %v325_v15 }
  0x1e PF: > { %348 = sbr.rel (!%p1084_p3) target bundleno = 37 (0x25), region = 70  ;;  %s350_s12 = sand.u32 (%p1084_p3), 1, %s1007_s19  }
  0x1f   : > { %s911_s13 = sshll.u32 (%p1084_p3), %s1015_s21, 3  ;;  %s877_s14 = sshll.u32 (%p1084_p3), %s350_s12, 4 }
  0x20   : > { %s358_s17 = scalar_lea.vmem (%p1084_p3), %s1177_s4, %s911_s13  ;;  %s352_s24 = scalar_lea.vmem (%p1084_p3), [#allocation3], %s877_s14 }
  0x21   : > { %v388_v16 = vld [vmem:[%s358_s17] sm:$0xff] (%p1084_p3)  ;;  %v390_v17 = vld [vmem:[%s358_s17 + $0x10] sm:$0xff] (%p1084_p3) }
  0x22   : > { %389 = vst [vmem:[%s352_s24] sm:$0xff] (%p1084_p3), %v388_v16  ;;  %391 = vst [vmem:[%s352_s24 + $0x8] sm:$0xff] (%p1084_p3), %v390_v17 }
  0x25 PF: > { %p880_p8 = scmp.ge.s32.totalorder %s1019_s22, 1  ;;  %p396_p9 = scmp.lt.s32.totalorder %s1019_s22, 3 }
  0x27   : > { %p397_p10 = pnand %p880_p8, %p396_p9 }
  0x28   : > { %s403_s25 = sand.u32 (!%p397_p10), 1, %s1003_s18   ;;  %v1021_v18 = vmov (!%p397_p10), 0   ;;  %v980_v35 = vld [vmem:[%s1173_s0] sm:$0xff] (!%p397_p10)   ;;  %s884_s7 = sshll.u32 (!%p397_p10), %s1011_s20, 1  ;;  %v631_v36 = vlaneseq (!%p397_p10) }
  0x29   : > { %400 = sbr.rel (%p397_p10) target bundleno = 310 (0x136), region = 108  ;;  %s881_s26 = sshll.u32 (!%p397_p10), %s403_s25, 7  ;;  %618 = vmatprep.mubr.bf16.mxu0 (!%p397_p10), %v1021_v18 }
  0x2a   : > { %s405_s27 = scalar_lea.vmem (!%p397_p10), [#allocation2], %s881_s26  ;;  %p468_p11 = scmp.lt.s32.totalorder (!%p397_p10), %s884_s7, 3  ;;  %v632_v37 = vshrl.u32 (!%p397_p10), %v631_v36, 7 }
  0x2b   : > { %v956_v19 = vld [vmem:[%s405_s27 + $0x4] ss:$8 sps:$4 sm:$0xff] (!%p397_p10)   ;;  %v958_v20 = vld [vmem:[%s405_s27] ss:$8 sps:$4 sm:$0xff] (!%p397_p10)   ;;  %v959_v21 = vld [vmem:[%s405_s27 + $0x14] ss:$8 sps:$4 sm:$0xff] (!%p397_p10)  }
  0x2c   : > { %586 = vmatprep.subr.bf16.mxu0 (!%p397_p10), %v956_v19  ;;  %v961_v22 = vld [vmem:[%s405_s27 + $0x10] ss:$8 sps:$4 sm:$0xff] (!%p397_p10)   ;;  %v962_v23 = vld [vmem:[%s405_s27 + $0x24] ss:$8 sps:$4 sm:$0xff] (!%p397_p10)   ;;  %v964_v24 = vld [vmem:[%s405_s27 + $0x20] ss:$8 sps:$4 sm:$0xff] (!%p397_p10)  }
  0x2d   : > { %587 = vmatpush1.bf16.msra.mxu0 (!%p397_p10), %v958_v20  ;;  %v965_v25 = vld [vmem:[%s405_s27 + $0x34] ss:$8 sps:$4 sm:$0xff] (!%p397_p10)   ;;  %v967_v26 = vld [vmem:[%s405_s27 + $0x30] ss:$8 sps:$4 sm:$0xff] (!%p397_p10)   ;;  %v968_v27 = vld [vmem:[%s405_s27 + $0x44] ss:$8 sps:$4 sm:$0xff] (!%p397_p10)  }
  0x2e   : > { %588 = vmatprep.subr.bf16.mxu0 (!%p397_p10), %v959_v21  ;;  %v970_v28 = vld [vmem:[%s405_s27 + $0x40] ss:$8 sps:$4 sm:$0xff] (!%p397_p10)   ;;  %v971_v29 = vld [vmem:[%s405_s27 + $0x54] ss:$8 sps:$4 sm:$0xff] (!%p397_p10)   ;;  %v973_v30 = vld [vmem:[%s405_s27 + $0x50] ss:$8 sps:$4 sm:$0xff] (!%p397_p10)  }
  0x2f   : > { %v974_v31 = vld [vmem:[%s405_s27 + $0x64] ss:$8 sps:$4 sm:$0xff] (!%p397_p10)   ;;  %v976_v32 = vld [vmem:[%s405_s27 + $0x60] ss:$8 sps:$4 sm:$0xff] (!%p397_p10)   ;;  %v977_v33 = vld [vmem:[%s405_s27 + $0x74] ss:$8 sps:$4 sm:$0xff] (!%p397_p10)  }
  0x30   : > { %v979_v34 = vld [vmem:[%s405_s27 + $0x70] ss:$8 sps:$4 sm:$0xff]   ;;  %s1188_s7 = smov (!%p468_p11, %s884_s7), 3  ;;  %s1145_s11 = sshll.u32 %s403_s25, 4  ;;  %v633_v38 = vsub.s32 0, %v632_v37  ;;  %v637_v40 = vsub.s32 1, %v632_v37 }
  0x31   : > { %589 = vmatpush1.bf16.msra.mxu0 %v961_v22  ;;  %s470_s10 = scalar_lea.vmem %s1175_s2, %s1188_s7  ;;  %s475_s14 = scalar_lea.vmem %s1176_s3, %s1188_s7 }
  0x32   : > { %590 = vmatprep.subr.bf16.mxu0 %v962_v23  ;;  %v629_v39 = vld [vmem:[%s470_s10] sm:$0x3]  ;;  %s412_s15 = scalar_lea.vmem [#allocation3], %s1145_s11  ;;  %s455_s18 = scalar_lea.vmem [#allocation4], %s1145_s11 }
  0x33   : > { %v645_v41 = vld [vmem:[%s475_s14] sm:$0x3]  ;;  %v634_v42 = vrot.slane %v629_v39, %v633_v38  ;;  %v638_v44 = vrot.slane %v629_v39, %v637_v40  ;;  %v662_v48 = vld [vmem:[%s412_s15 + $0x8] sm:$0xff]  ;;  %s914_s16 = sshll.u32 (%p1091_p6), %s1011_s20, 3 }
  0x34   : > { %v661_v43 = vld [vmem:[%s412_s15] sm:$0xff]  ;;  %v650_v45 = vrot.slane %v645_v41, %v633_v38  ;;  %v654_v47 = vrot.slane %v645_v41, %v637_v40  ;;  %v665_v57 = vunpack.c.l.bf16 %v662_v48  ;;  %v666_v61 = vunpack.c.h.bf16 %v662_v48  ;;  %s701_s25 = scalar_lea.vmem (%p1091_p6), %s1178_s5, %s914_s16 }
  0x35   : > { %591 = vmatpush1.bf16.msra.mxu0 %v964_v24  ;;  %v663_v50 = vunpack.c.l.bf16 %v661_v43  ;;  %v664_v53 = vunpack.c.h.bf16 %v661_v43 }
  0x36   : > { %592 = vmatprep.subr.bf16.mxu0 %v965_v25 }
  0x39   : > { %593 = vmatpush1.bf16.msra.mxu0 %v967_v26 }
  0x3a   : > { %594 = vmatprep.subr.bf16.mxu0 %v968_v27 }
  0x3d   : > { %595 = vmatpush1.bf16.msra.mxu0 %v970_v28 }
  0x3e   : > { %596 = vmatprep.subr.bf16.mxu0 %v971_v29 }
  0x41   : > { %597 = vmatpush1.bf16.msra.mxu0 %v973_v30 }
  0x42   : > { %598 = vmatprep.subr.bf16.mxu0 %v974_v31 }
  0x45   : > { %599 = vmatpush1.bf16.msra.mxu0 %v976_v32 }
  0x46   : > { %600 = vmatprep.subr.bf16.mxu0 %v977_v33 }
  0x49   : > { %601 = vmatpush1.bf16.msra.mxu0 %v979_v34 }
  0x4c   : > { %619 = vmatmul.mubr.bf16.vlgmr.msra.gmra.mrb[0].mxu0 %v980_v35 }
 0x11f   : > { %v620_v46 = vpop.f32.mrb[0].mxu0 }
 0x120   : > { %v641_v49 = vmul.f32 %v634_v42, %v620_v46  ;;  %v622_v51 = vpop.f32.mrb[1].mxu0 }
 0x121   : > { %v642_v52 = vmul.f32 %v638_v44, %v622_v51  ;;  %v624_v54 = vpop.f32.mrb[2].mxu0 }
 0x122   : > { %v657_v55 = vadd.f32 %v650_v45, %v641_v49  ;;  %v643_v56 = vmul.f32 %v634_v42, %v624_v54  ;;  %v626_v58 = vpop.f32.mrb[3].mxu0 }
 0x123   : > { %v658_v59 = vadd.f32 %v654_v47, %v642_v52  ;;  %v644_v60 = vmul.f32 %v638_v44, %v626_v58 }
 0x124   : > { %v667_v62 = vadd.f32 %v663_v50, %v657_v55  ;;  %v659_v63 = vadd.f32 %v650_v45, %v643_v56 }
 0x125   : > { %v668_v0 = vadd.f32 %v664_v53, %v658_v59  ;;  %v660_v1 = vadd.f32 %v654_v47, %v644_v60 }
 0x126   : > { %v671_v2 = vmax.f32 %v667_v62, 0.0  ;;  %v669_v3 = vadd.f32 %v665_v57, %v659_v63 }
 0x127   : > { %v672_v4 = vmax.f32 %v668_v0, 0.0  ;;  %v670_v5 = vadd.f32 %v666_v61, %v660_v1  ;;  %695 = sbr.rel (!%p1091_p6) target bundleno = 310 (0x136), region = 120 }
 0x128   : > { %v673_v6 = vmax.f32 %v669_v3, 0.0 }
 0x129   : > { %v912_v7 = vpack.c.bf16 %v672_v4, %v671_v2  ;;  %v674_v8 = vmax.f32 %v670_v5, 0.0 }
 0x12b   : > { %687 = vst [vmem:[%s455_s18] sm:$0xff] %v912_v7  ;;  %v913_v9 = vpack.c.bf16 %v674_v8, %v673_v6 }
 0x12d   : > { %688 = vst [vmem:[%s455_s18 + $0x8] sm:$0xff] %v913_v9 }
 0x132   : > { %v731_v10 = vld [vmem:[%s455_s18] sm:$0xff] }
 0x133   : > { %732 = vst [vmem:[%s701_s25] sm:$0xff] %v731_v10 }
 0x134   : > { %v733_v11 = vld [vmem:[%s455_s18 + $0x8] sm:$0xff] }
 0x135   : > { %734 = vst [vmem:[%s701_s25 + $0x10] sm:$0xff] %v733_v11 }
 0x136 PF: > { %s15_s22 = sadd.s32 1, %s1019_s22   ;;  %s1181_s18 = smov %s1007_s19 }
 0x137   : > { %p12_p12 = scmp.ge.s32.totalorder %s15_s22, 4   ;;  %s1182_s19 = smov %s1096_s29 }
 0x138   : > { %s1183_s20 = smov %s1015_s21  ;;  %s1184_s21 = smov %s1186_s23 }
 0x139   :  { %14 = sbr.rel (!%p12_p12) target bundleno = 3 (0x3), region = 206 }

// kernel: resnet50_forward.72
= control target key start
LH: loop header
LB: loop body
LE: loop exit
PB: predicated region body
PF: predicated region fallthrough
CT: control target
= control target key end

     0   :  { %s685_s1 = inlined_call_operand.vmem [shape: bf16[512,128], index: 1, kind: input, shape index: {}]   ;;  %s686_s0 = inlined_call_operand.vmem [shape: bf16[16,512], index: 0, kind: input, shape index: {}]   ;;  %s687_s2 = inlined_call_operand.vmem [shape: f32[1,128], index: 2, kind: input, shape index: {}]   ;;  %s688_s3 = inlined_call_operand.vmem [shape: f32[1,128], index: 3, kind: input, shape index: {}]   ;;  %s689_s4 = inlined_call_operand.vmem [shape: bf16[16,128], index: 4, kind: output, shape index: {}]  }
   0x1   :  { %v505_v0 = vld [vmem:[%s685_s1 + $0x40] sm:$0xff]   ;;  %v509_v4 = vld [vmem:[%s685_s1 + $0x48] sm:$0xff]   ;;  %v513_v8 = vld [vmem:[%s685_s1 + $0x50] sm:$0xff]  }
   0x2   :  { %v506_v1 = vld [vmem:[%s685_s1 + $0xc0] sm:$0xff]   ;;  %461 = vmatprep.subr.bf16.mxu0 %v505_v0  ;;  %v510_v5 = vld [vmem:[%s685_s1 + $0xc8] sm:$0xff]   ;;  %v514_v9 = vld [vmem:[%s685_s1 + $0xd0] sm:$0xff]  }
   0x3   :  { %v507_v2 = vld [vmem:[%s685_s1] sm:$0xff]   ;;  %483 = vmatprep.subr.bf16.mxu1 %v506_v1  ;;  %v511_v6 = vld [vmem:[%s685_s1 + $0x8] sm:$0xff]   ;;  %v515_v10 = vld [vmem:[%s685_s1 + $0x10] sm:$0xff]  }
   0x4   :  { %v508_v3 = vld [vmem:[%s685_s1 + $0x80] sm:$0xff]   ;;  %462 = vmatpush3.bf16.msra.mxu0 %v507_v2  ;;  %v512_v7 = vld [vmem:[%s685_s1 + $0x88] sm:$0xff]   ;;  %v516_v11 = vld [vmem:[%s685_s1 + $0x90] sm:$0xff]  }
   0x5   :  { %484 = vmatpush3.bf16.msra.mxu1 %v508_v3  ;;  %463 = vmatprep.subr.bf16.mxu0 %v509_v4  ;;  %v517_v12 = vld [vmem:[%s685_s1 + $0x58] sm:$0xff]   ;;  %v521_v16 = vld [vmem:[%s685_s1 + $0x60] sm:$0xff]   ;;  %v525_v20 = vld [vmem:[%s685_s1 + $0x68] sm:$0xff]  }
   0x6   :  { %485 = vmatprep.subr.bf16.mxu1 %v510_v5  ;;  %v518_v13 = vld [vmem:[%s685_s1 + $0xd8] sm:$0xff]   ;;  %v522_v17 = vld [vmem:[%s685_s1 + $0xe0] sm:$0xff]   ;;  %v526_v21 = vld [vmem:[%s685_s1 + $0xe8] sm:$0xff]  }
   0x7   :  { %v519_v14 = vld [vmem:[%s685_s1 + $0x18] sm:$0xff]   ;;  %v523_v18 = vld [vmem:[%s685_s1 + $0x20] sm:$0xff]   ;;  %v527_v22 = vld [vmem:[%s685_s1 + $0x28] sm:$0xff]  }
   0x8   :  { %464 = vmatpush3.bf16.msra.mxu0 %v511_v6  ;;  %v520_v15 = vld [vmem:[%s685_s1 + $0x98] sm:$0xff]   ;;  %v524_v19 = vld [vmem:[%s685_s1 + $0xa0] sm:$0xff]   ;;  %v528_v23 = vld [vmem:[%s685_s1 + $0xa8] sm:$0xff]  }
   0x9   :  { %486 = vmatpush3.bf16.msra.mxu1 %v512_v7  ;;  %465 = vmatprep.subr.bf16.mxu0 %v513_v8  ;;  %v529_v24 = vld [vmem:[%s685_s1 + $0x70] sm:$0xff]   ;;  %v533_v28 = vld [vmem:[%s685_s1 + $0x78] sm:$0xff]   ;;  %v450_v45 = vld [vmem:[%s687_s2] ss:$0 sm:$0xff] }
   0xa   :  { %487 = vmatprep.subr.bf16.mxu1 %v514_v9  ;;  %v530_v25 = vld [vmem:[%s685_s1 + $0xf0] sm:$0xff]   ;;  %v534_v29 = vld [vmem:[%s685_s1 + $0xf8] sm:$0xff]   ;;  %v451_v50 = vld [vmem:[%s688_s3] ss:$0 sm:$0xff] }
   0xb   :  { %v531_v26 = vld [vmem:[%s685_s1 + $0x30] sm:$0xff]   ;;  %v535_v30 = vld [vmem:[%s685_s1 + $0x38] sm:$0xff]  }
   0xc   :  { %466 = vmatpush3.bf16.msra.mxu0 %v515_v10  ;;  %v532_v27 = vld [vmem:[%s685_s1 + $0xb0] sm:$0xff]   ;;  %v536_v31 = vld [vmem:[%s685_s1 + $0xb8] sm:$0xff]  }
   0xd   :  { %488 = vmatpush3.bf16.msra.mxu1 %v516_v11  ;;  %467 = vmatprep.subr.bf16.mxu0 %v517_v12  ;;  %v537_v32 = vld [vmem:[%s686_s0] ss:$16 sps:$4 sm:$0xff]   ;;  %v539_v33 = vld [vmem:[%s686_s0 + $0x4] ss:$16 sps:$4 sm:$0xff]   ;;  %v540_v34 = vld [vmem:[%s686_s0 + $0x8] ss:$16 sps:$4 sm:$0xff]  }
   0xe   :  { %489 = vmatprep.subr.bf16.mxu1 %v518_v13  ;;  %v542_v35 = vld [vmem:[%s686_s0 + $0xc] ss:$16 sps:$4 sm:$0xff]   ;;  %330 = vmatprep.mubr.bf16.mxu0 %v539_v33 }
   0xf   :  { %371 = vmatprep.mubr.bf16.mxu1 %v542_v35 }
  0x10   :  { %468 = vmatpush3.bf16.msra.mxu0 %v519_v14 }
  0x11   :  { %490 = vmatpush3.bf16.msra.mxu1 %v520_v15  ;;  %469 = vmatprep.subr.bf16.mxu0 %v521_v16 }
  0x12   :  { %491 = vmatprep.subr.bf16.mxu1 %v522_v17 }
  0x14   :  { %470 = vmatpush3.bf16.msra.mxu0 %v523_v18 }
  0x15   :  { %492 = vmatpush3.bf16.msra.mxu1 %v524_v19  ;;  %471 = vmatprep.subr.bf16.mxu0 %v525_v20 }
  0x16   :  { %493 = vmatprep.subr.bf16.mxu1 %v526_v21 }
  0x18   :  { %472 = vmatpush3.bf16.msra.mxu0 %v527_v22 }
  0x19   :  { %494 = vmatpush3.bf16.msra.mxu1 %v528_v23  ;;  %473 = vmatprep.subr.bf16.mxu0 %v529_v24 }
  0x1a   :  { %495 = vmatprep.subr.bf16.mxu1 %v530_v25 }
  0x1c   :  { %474 = vmatpush3.bf16.msra.mxu0 %v531_v26 }
  0x1d   :  { %496 = vmatpush3.bf16.msra.mxu1 %v532_v27  ;;  %475 = vmatprep.subr.bf16.mxu0 %v533_v28 }
  0x1e   :  { %497 = vmatprep.subr.bf16.mxu1 %v534_v29 }
  0x20   :  { %476 = vmatpush3.bf16.msra.mxu0 %v535_v30 }
  0x21   :  { %498 = vmatpush3.bf16.msra.mxu1 %v536_v31 }
  0x23   :  { %331 = vmatmul.mubr.bf16.vlgmr.msra.gmra.mrb[0].mxu0 %v537_v32 }
  0x24   :  { %372 = vmatmul.mubr.bf16.vlgmr.msra.gmra.mrb[0].mxu1 %v540_v34 }
  0xf6   :  { %v477_v36 = vpop.f32.mrb[0].mxu0 }
  0xf7   :  { %v499_v37 = vpop.f32.mrb[0].mxu1  ;;  %v478_v38 = vpop.f32.mrb[1].mxu0 }
  0xf8   :  { %v479_v39 = vadd.f32 %v478_v38, %v477_v36  ;;  %v500_v40 = vpop.f32.mrb[1].mxu1  ;;  %v480_v41 = vpop.f32.mrb[2].mxu0 }
  0xf9   :  { %v501_v42 = vadd.f32 %v500_v40, %v499_v37  ;;  %v502_v43 = vpop.f32.mrb[2].mxu1  ;;  %v481_v44 = vpop.f32.mrb[3].mxu0 }
  0xfa   :  { %v482_v46 = vadd.f32 %v481_v44, %v480_v41  ;;  %v503_v47 = vpop.f32.mrb[3].mxu1 }
  0xfb   :  { %v374_v48 = vadd.f32 %v501_v42, %v479_v39  ;;  %v504_v49 = vadd.f32 %v503_v47, %v502_v43 }
  0xfd   :  { %v387_v51 = vmul.f32 %v450_v45, %v374_v48  ;;  %v377_v52 = vadd.f32 %v504_v49, %v482_v46 }
  0xff   :  { %v396_v53 = vadd.f32 %v451_v50, %v387_v51  ;;  %v388_v54 = vmul.f32 %v450_v45, %v377_v52 }
 0x101   :  { %v397_v55 = vadd.f32 %v451_v50, %v388_v54  ;;  %v398_v56 = vmax.f32 %v396_v53, 0.0 }
 0x103   :  { %v399_v57 = vmax.f32 %v397_v55, 0.0 }
 0x105   :  { %v459_v58 = vpack.c.bf16 %v399_v57, %v398_v56 }
 0x107   :  { %460 = vst [vmem:[%s689_s4] sm:$0xff] %v459_v58  }

// kernel: resnet50_forward.82
= control target key start
LH: loop header
LB: loop body
LE: loop exit
PB: predicated region body
PF: predicated region fallthrough
CT: control target
= control target key end

     0   :  { %s984_s1 = inlined_call_operand.vmem [shape: bf16[512,256], index: 1, kind: input, shape index: {}]   ;;  %s985_s0 = inlined_call_operand.vmem [shape: bf16[16,512], index: 0, kind: input, shape index: {}]   ;;  %s986_s2 = inlined_call_operand.vmem [shape: f32[1,256], index: 2, kind: input, shape index: {}]   ;;  %s987_s3 = inlined_call_operand.vmem [shape: f32[1,256], index: 3, kind: input, shape index: {}]   ;;  %s988_s4 = inlined_call_operand.vmem [shape: bf16[16,256], index: 4, kind: output, shape index: {}]  }
   0x1   :  { %v641_v0 = vld [vmem:[%s984_s1 + $0x4] ss:$8 sps:$4 sm:$0xff]   ;;  %v645_v2 = vld [vmem:[%s984_s1] ss:$8 sps:$4 sm:$0xff]   ;;  %v647_v4 = vld [vmem:[%s984_s1 + $0x14] ss:$8 sps:$4 sm:$0xff]  }
   0x2   :  { %v643_v1 = vld [vmem:[%s984_s1 + $0x104] ss:$8 sps:$4 sm:$0xff]   ;;  %425 = vmatprep.subr.bf16.mxu1 %v641_v0  ;;  %v646_v3 = vld [vmem:[%s984_s1 + $0x100] ss:$8 sps:$4 sm:$0xff]   ;;  %v649_v5 = vld [vmem:[%s984_s1 + $0x114] ss:$8 sps:$4 sm:$0xff]  }
   0x3   :  { %468 = vmatprep.subr.bf16.mxu0 %v643_v1  ;;  %426 = vmatpush1.bf16.msra.mxu1 %v645_v2  ;;  %v651_v6 = vld [vmem:[%s984_s1 + $0x10] ss:$8 sps:$4 sm:$0xff]   ;;  %v653_v8 = vld [vmem:[%s984_s1 + $0x24] ss:$8 sps:$4 sm:$0xff]   ;;  %v657_v10 = vld [vmem:[%s984_s1 + $0x20] ss:$8 sps:$4 sm:$0xff]  }
   0x4   :  { %469 = vmatpush1.bf16.msra.mxu0 %v646_v3  ;;  %427 = vmatprep.subr.bf16.mxu1 %v647_v4  ;;  %v652_v7 = vld [vmem:[%s984_s1 + $0x110] ss:$8 sps:$4 sm:$0xff]   ;;  %v655_v9 = vld [vmem:[%s984_s1 + $0x124] ss:$8 sps:$4 sm:$0xff]   ;;  %v658_v11 = vld [vmem:[%s984_s1 + $0x120] ss:$8 sps:$4 sm:$0xff]   ;;  %v513_v4 = vlaneseq }
   0x5   :  { %470 = vmatprep.subr.bf16.mxu0 %v649_v5  ;;  %v659_v12 = vld [vmem:[%s984_s1 + $0x34] ss:$8 sps:$4 sm:$0xff]   ;;  %v663_v14 = vld [vmem:[%s984_s1 + $0x30] ss:$8 sps:$4 sm:$0xff]   ;;  %v665_v16 = vld [vmem:[%s984_s1 + $0x44] ss:$8 sps:$4 sm:$0xff]  }
   0x6   :  { %v661_v13 = vld [vmem:[%s984_s1 + $0x134] ss:$8 sps:$4 sm:$0xff]   ;;  %v664_v15 = vld [vmem:[%s984_s1 + $0x130] ss:$8 sps:$4 sm:$0xff]   ;;  %v667_v17 = vld [vmem:[%s984_s1 + $0x144] ss:$8 sps:$4 sm:$0xff]  }
   0x7   :  { %428 = vmatpush1.bf16.msra.mxu1 %v651_v6  ;;  %v669_v18 = vld [vmem:[%s984_s1 + $0x40] ss:$8 sps:$4 sm:$0xff]   ;;  %v671_v20 = vld [vmem:[%s984_s1 + $0x54] ss:$8 sps:$4 sm:$0xff]   ;;  %v675_v22 = vld [vmem:[%s984_s1 + $0x50] ss:$8 sps:$4 sm:$0xff]  }
   0x8   :  { %471 = vmatpush1.bf16.msra.mxu0 %v652_v7  ;;  %429 = vmatprep.subr.bf16.mxu1 %v653_v8  ;;  %v670_v19 = vld [vmem:[%s984_s1 + $0x140] ss:$8 sps:$4 sm:$0xff]   ;;  %v673_v21 = vld [vmem:[%s984_s1 + $0x154] ss:$8 sps:$4 sm:$0xff]   ;;  %v676_v23 = vld [vmem:[%s984_s1 + $0x150] ss:$8 sps:$4 sm:$0xff]  }
   0x9   :  { %472 = vmatprep.subr.bf16.mxu0 %v655_v9  ;;  %v677_v24 = vld [vmem:[%s984_s1 + $0x64] ss:$8 sps:$4 sm:$0xff]   ;;  %v681_v26 = vld [vmem:[%s984_s1 + $0x60] ss:$8 sps:$4 sm:$0xff]   ;;  %v683_v28 = vld [vmem:[%s984_s1 + $0x74] ss:$8 sps:$4 sm:$0xff]  }
   0xa   :  { %v679_v25 = vld [vmem:[%s984_s1 + $0x164] ss:$8 sps:$4 sm:$0xff]   ;;  %v682_v27 = vld [vmem:[%s984_s1 + $0x160] ss:$8 sps:$4 sm:$0xff]   ;;  %v685_v29 = vld [vmem:[%s984_s1 + $0x174] ss:$8 sps:$4 sm:$0xff]  }
   0xb   :  { %430 = vmatpush1.bf16.msra.mxu1 %v657_v10  ;;  %v687_v30 = vld [vmem:[%s984_s1 + $0x70] ss:$8 sps:$4 sm:$0xff]   ;;  %v689_v32 = vld [vmem:[%s984_s1 + $0x84] ss:$8 sps:$4 sm:$0xff]   ;;  %v693_v34 = vld [vmem:[%s984_s1 + $0x80] ss:$8 sps:$4 sm:$0xff]  }
   0xc   :  { %473 = vmatpush1.bf16.msra.mxu0 %v658_v11  ;;  %431 = vmatprep.subr.bf16.mxu1 %v659_v12  ;;  %v688_v31 = vld [vmem:[%s984_s1 + $0x170] ss:$8 sps:$4 sm:$0xff]   ;;  %v691_v33 = vld [vmem:[%s984_s1 + $0x184] ss:$8 sps:$4 sm:$0xff]   ;;  %v694_v35 = vld [vmem:[%s984_s1 + $0x180] ss:$8 sps:$4 sm:$0xff]  }
   0xd   :  { %474 = vmatprep.subr.bf16.mxu0 %v661_v13  ;;  %v695_v36 = vld [vmem:[%s984_s1 + $0x94] ss:$8 sps:$4 sm:$0xff]   ;;  %v699_v38 = vld [vmem:[%s984_s1 + $0x90] ss:$8 sps:$4 sm:$0xff]   ;;  %v701_v40 = vld [vmem:[%s984_s1 + $0xa4] ss:$8 sps:$4 sm:$0xff]  }
   0xe   :  { %v697_v37 = vld [vmem:[%s984_s1 + $0x194] ss:$8 sps:$4 sm:$0xff]   ;;  %v700_v39 = vld [vmem:[%s984_s1 + $0x190] ss:$8 sps:$4 sm:$0xff]   ;;  %v703_v41 = vld [vmem:[%s984_s1 + $0x1a4] ss:$8 sps:$4 sm:$0xff]  }
   0xf   :  { %432 = vmatpush1.bf16.msra.mxu1 %v663_v14  ;;  %v705_v42 = vld [vmem:[%s984_s1 + $0xa0] ss:$8 sps:$4 sm:$0xff]   ;;  %v707_v44 = vld [vmem:[%s984_s1 + $0xb4] ss:$8 sps:$4 sm:$0xff]   ;;  %v711_v46 = vld [vmem:[%s984_s1 + $0xb0] ss:$8 sps:$4 sm:$0xff]  }
  0x10   :  { %475 = vmatpush1.bf16.msra.mxu0 %v664_v15  ;;  %433 = vmatprep.subr.bf16.mxu1 %v665_v16  ;;  %v706_v43 = vld [vmem:[%s984_s1 + $0x1a0] ss:$8 sps:$4 sm:$0xff]   ;;  %v709_v45 = vld [vmem:[%s984_s1 + $0x1b4] ss:$8 sps:$4 sm:$0xff]   ;;  %v712_v48 = vld [vmem:[%s984_s1 + $0x1b0] ss:$8 sps:$4 sm:$0xff]  }
  0x11   :  { %476 = vmatprep.subr.bf16.mxu0 %v667_v17  ;;  %v739_v47 = vld [vmem:[%s985_s0 + $0x4] ss:$16 sps:$4 sm:$0xff]   ;;  %v742_v51 = vld [vmem:[%s985_s0 + $0xc] ss:$16 sps:$4 sm:$0xff]   ;;  %v717_v52 = vld [vmem:[%s984_s1 + $0xc0] ss:$8 sps:$4 sm:$0xff]  }
  0x12   :  { %v713_v49 = vld [vmem:[%s984_s1 + $0xc4] ss:$8 sps:$4 sm:$0xff]   ;;  %457 = vmatprep.mubr.bf16.mxu1 %v739_v47  ;;  %500 = vmatprep.mubr.bf16.mxu0 %v742_v51  ;;  %v718_v53 = vld [vmem:[%s984_s1 + $0x1c0] ss:$8 sps:$4 sm:$0xff]   ;;  %v719_v54 = vld [vmem:[%s984_s1 + $0xd4] ss:$8 sps:$4 sm:$0xff]  }
  0x13   :  { %434 = vmatpush1.bf16.msra.mxu1 %v669_v18  ;;  %v715_v50 = vld [vmem:[%s984_s1 + $0x1c4] ss:$8 sps:$4 sm:$0xff]   ;;  %v721_v55 = vld [vmem:[%s984_s1 + $0x1d4] ss:$8 sps:$4 sm:$0xff]   ;;  %v723_v56 = vld [vmem:[%s984_s1 + $0xd0] ss:$8 sps:$4 sm:$0xff]  }
  0x14   :  { %477 = vmatpush1.bf16.msra.mxu0 %v670_v19  ;;  %435 = vmatprep.subr.bf16.mxu1 %v671_v20  ;;  %v724_v57 = vld [vmem:[%s984_s1 + $0x1d0] ss:$8 sps:$4 sm:$0xff]   ;;  %v725_v58 = vld [vmem:[%s984_s1 + $0xe4] ss:$8 sps:$4 sm:$0xff]   ;;  %v729_v60 = vld [vmem:[%s984_s1 + $0xe0] ss:$8 sps:$4 sm:$0xff]  }
  0x15   :  { %478 = vmatprep.subr.bf16.mxu0 %v673_v21  ;;  %v727_v59 = vld [vmem:[%s984_s1 + $0x1e4] ss:$8 sps:$4 sm:$0xff]   ;;  %v730_v61 = vld [vmem:[%s984_s1 + $0x1e0] ss:$8 sps:$4 sm:$0xff]   ;;  %v731_v62 = vld [vmem:[%s984_s1 + $0xf4] ss:$8 sps:$4 sm:$0xff]  }
  0x16   :  { %v733_v63 = vld [vmem:[%s984_s1 + $0x1f4] ss:$8 sps:$4 sm:$0xff]   ;;  %v735_v0 = vld [vmem:[%s984_s1 + $0xf0] ss:$8 sps:$4 sm:$0xff]   ;;  %v514_v5 = vshrl.u32 %v513_v4, 7 }
  0x17   :  { %436 = vmatpush1.bf16.msra.mxu1 %v675_v22  ;;  %v736_v1 = vld [vmem:[%s984_s1 + $0x1f0] ss:$8 sps:$4 sm:$0xff]   ;;  %v511_v7 = vld [vmem:[%s986_s2] sm:$0x3] }
  0x18   :  { %479 = vmatpush1.bf16.msra.mxu0 %v676_v23  ;;  %437 = vmatprep.subr.bf16.mxu1 %v677_v24  ;;  %v737_v2 = vld [vmem:[%s985_s0] ss:$16 sps:$4 sm:$0xff]   ;;  %v740_v3 = vld [vmem:[%s985_s0 + $0x8] ss:$16 sps:$4 sm:$0xff]   ;;  %v515_v6 = vsub.s32 0, %v514_v5  ;;  %v519_v8 = vsub.s32 1, %v514_v5 }
  0x19   :  { %480 = vmatprep.subr.bf16.mxu0 %v679_v25  ;;  %v527_v9 = vld [vmem:[%s987_s3] sm:$0x3] }
  0x1a   :  { %v516_v10 = vrot.slane %v511_v7, %v515_v6  ;;  %v520_v13 = vrot.slane %v511_v7, %v519_v8  ;;  %v532_v15 = vrot.slane %v527_v9, %v515_v6  ;;  %v536_v19 = vrot.slane %v527_v9, %v519_v8 }
  0x1b   :  { %438 = vmatpush1.bf16.msra.mxu1 %v681_v26 }
  0x1c   :  { %481 = vmatpush1.bf16.msra.mxu0 %v682_v27  ;;  %439 = vmatprep.subr.bf16.mxu1 %v683_v28 }
  0x1d   :  { %482 = vmatprep.subr.bf16.mxu0 %v685_v29 }
  0x1f   :  { %440 = vmatpush1.bf16.msra.mxu1 %v687_v30 }
  0x20   :  { %483 = vmatpush1.bf16.msra.mxu0 %v688_v31  ;;  %441 = vmatprep.subr.bf16.mxu1 %v689_v32 }
  0x21   :  { %484 = vmatprep.subr.bf16.mxu0 %v691_v33 }
  0x23   :  { %442 = vmatpush1.bf16.msra.mxu1 %v693_v34 }
  0x24   :  { %485 = vmatpush1.bf16.msra.mxu0 %v694_v35  ;;  %443 = vmatprep.subr.bf16.mxu1 %v695_v36 }
  0x25   :  { %486 = vmatprep.subr.bf16.mxu0 %v697_v37 }
  0x27   :  { %444 = vmatpush1.bf16.msra.mxu1 %v699_v38 }
  0x28   :  { %487 = vmatpush1.bf16.msra.mxu0 %v700_v39  ;;  %445 = vmatprep.subr.bf16.mxu1 %v701_v40 }
  0x29   :  { %488 = vmatprep.subr.bf16.mxu0 %v703_v41 }
  0x2b   :  { %446 = vmatpush1.bf16.msra.mxu1 %v705_v42 }
  0x2c   :  { %489 = vmatpush1.bf16.msra.mxu0 %v706_v43  ;;  %447 = vmatprep.subr.bf16.mxu1 %v707_v44 }
  0x2d   :  { %490 = vmatprep.subr.bf16.mxu0 %v709_v45 }
  0x2f   :  { %448 = vmatpush1.bf16.msra.mxu1 %v711_v46 }
  0x30   :  { %491 = vmatpush1.bf16.msra.mxu0 %v712_v48  ;;  %449 = vmatprep.subr.bf16.mxu1 %v713_v49 }
  0x31   :  { %492 = vmatprep.subr.bf16.mxu0 %v715_v50 }
  0x33   :  { %450 = vmatpush1.bf16.msra.mxu1 %v717_v52 }
  0x34   :  { %493 = vmatpush1.bf16.msra.mxu0 %v718_v53  ;;  %451 = vmatprep.subr.bf16.mxu1 %v719_v54 }
  0x35   :  { %494 = vmatprep.subr.bf16.mxu0 %v721_v55 }
  0x37   :  { %452 = vmatpush1.bf16.msra.mxu1 %v723_v56 }
  0x38   :  { %495 = vmatpush1.bf16.msra.mxu0 %v724_v57  ;;  %453 = vmatprep.subr.bf16.mxu1 %v725_v58 }
  0x39   :  { %496 = vmatprep.subr.bf16.mxu0 %v727_v59 }
  0x3b   :  { %454 = vmatpush1.bf16.msra.mxu1 %v729_v60 }
  0x3c   :  { %497 = vmatpush1.bf16.msra.mxu0 %v730_v61  ;;  %455 = vmatprep.subr.bf16.mxu1 %v731_v62 }
  0x3d   :  { %498 = vmatprep.subr.bf16.mxu0 %v733_v63 }
  0x3f   :  { %456 = vmatpush1.bf16.msra.mxu1 %v735_v0 }
  0x40   :  { %499 = vmatpush1.bf16.msra.mxu0 %v736_v1 }
  0x42   :  { %458 = vmatmul.mubr.bf16.vlgmr.msra.gmra.mrb[0].mxu1 %v737_v2 }
  0x43   :  { %501 = vmatmul.mubr.bf16.vlgmr.msra.gmra.mrb[0].mxu0 %v740_v3 }
 0x115   :  { %v459_v11 = vpop.f32.mrb[0].mxu1 }
 0x116   :  { %v502_v12 = vpop.f32.mrb[0].mxu0  ;;  %v461_v16 = vpop.f32.mrb[1].mxu1 }
 0x117   :  { %v503_v14 = vadd.f32 %v502_v12, %v459_v11  ;;  %v504_v17 = vpop.f32.mrb[1].mxu0  ;;  %v463_v20 = vpop.f32.mrb[2].mxu1 }
 0x118   :  { %v505_v18 = vadd.f32 %v504_v17, %v461_v16  ;;  %v506_v21 = vpop.f32.mrb[2].mxu0  ;;  %v465_v24 = vpop.f32.mrb[3].mxu1 }
 0x119   :  { %v523_v22 = vmul.f32 %v516_v10, %v503_v14  ;;  %v507_v23 = vadd.f32 %v506_v21, %v463_v20  ;;  %v508_v25 = vpop.f32.mrb[3].mxu0 }
 0x11a   :  { %v524_v26 = vmul.f32 %v520_v13, %v505_v18  ;;  %v509_v27 = vadd.f32 %v508_v25, %v465_v24 }
 0x11b   :  { %v539_v28 = vadd.f32 %v532_v15, %v523_v22  ;;  %v525_v29 = vmul.f32 %v516_v10, %v507_v23 }
 0x11c   :  { %v540_v30 = vadd.f32 %v536_v19, %v524_v26  ;;  %v526_v31 = vmul.f32 %v520_v13, %v509_v27 }
 0x11d   :  { %v543_v32 = vmax.f32 %v539_v28, 0.0  ;;  %v541_v33 = vadd.f32 %v532_v15, %v525_v29 }
 0x11e   :  { %v544_v34 = vmax.f32 %v540_v30, 0.0  ;;  %v542_v35 = vadd.f32 %v536_v19, %v526_v31 }
 0x11f   :  { %v545_v36 = vmax.f32 %v541_v33, 0.0 }
 0x120   :  { %v635_v37 = vpack.c.bf16 %v544_v34, %v543_v32  ;;  %v546_v38 = vmax.f32 %v542_v35, 0.0 }
 0x122   :  { %559 = vst [vmem:[%s988_s4] sm:$0xff] %v635_v37  ;;  %v636_v39 = vpack.c.bf16 %v546_v38, %v545_v36 }
 0x124   :  { %560 = vst [vmem:[%s988_s4 + $0x8] sm:$0xff] %v636_v39 }

// kernel: resnet50_forward.83
= control target key start
LH: loop header
LB: loop body
LE: loop exit
PB: predicated region body
PF: predicated region fallthrough
CT: control target
= control target key end

     0   :  { %s1231_s15 = smov 0   ;;  %s1233_s16 = smov 0   ;;  %s1365_s0 = inlined_call_operand.vmem [shape: bf16[16,2304], index: 0, kind: input, shape index: {}]   ;;  %s1366_s1 = inlined_call_operand.vmem [shape: bf16[2304,256], index: 1, kind: input, shape index: {}]   ;;  %s1367_s2 = inlined_call_operand.vmem [shape: f32[1,256], index: 2, kind: input, shape index: {}]   ;;  %s1368_s3 = inlined_call_operand.vmem [shape: f32[1,256], index: 3, kind: input, shape index: {}]   ;;  %s1369_s4 = inlined_call_operand.vmem [shape: bf16[16,256], index: 4, kind: output, shape index: {}]  }
   0x1   :  { %s1235_s17 = smov 0   ;;  %s1237_s18 = smov 0  }
   0x2   :  { %s1239_s19 = smov 0  }
   0x3 LB: > { %s26_s20 = sadd.s32 1, %s1198_s18  ;;  %p49_p1 = scmp.ne.s32.totalorder %s1190_s16, %s1186_s15  ;;  %s1202_s19 = sphi %s1239_s19, %s14_s19   ;;  %s1198_s18 = sphi %s1237_s18, %s1373_s18   ;;  %s1194_s17 = sphi %s1235_s17, %s1372_s17   ;;  %s1190_s16 = sphi %s1233_s16, %s1371_s16   ;;  %s1186_s15 = sphi %s1231_s15, %s1370_s15  }
   0x4   : > { %p27_p0 = scmp.ge.s32.totalorder %s26_s20, 6  ;;  %p50_p2 = scmp.eq.s32.totalorder %s1202_s19, 0 }
   0x5   : > { %s42_s22 = sadd.s32 1, %s1190_s16  ;;  %p968_p5 = scmp.ge.s32.totalorder %s1202_s19, 6 }
   0x6   : > { %s1375_s20 = smov (%p27_p0, %s26_s20), 0  ;;  %p51_p3 = por %p50_p2, %p49_p1 }
   0x7   : > { %s38_s21 = ssub.s32 %s1198_s18, %s1375_s20  ;;  %199 = sbr.rel (%p968_p5) target bundleno = 21 (0x15), region = 24 }
   0x8   : > { %p40_p4 = scmp.eq.s32.totalorder %s38_s21, 0 }
   0xa   : > { %s1266_s23 = scalar_select %p40_p4, %s1190_s16, %s42_s22  }
   0xe   : > { %202 = sbr.rel (!%p51_p3) target bundleno = 21 (0x15), region = 28  ;;  %s204_s24 = sand.u32 (%p51_p3), 1, %s1190_s16  }
   0xf   : > { %s1036_s25 = smul.u32 (%p51_p3), 12, %s1198_s18 }
  0x10   : > { %s1044_s26 = smul.u32 (%p51_p3), 24, %s204_s24 }
  0x11   : > { %s212_s29 = scalar_lea.vmem (%p51_p3), %s1365_s0, %s1036_s25 }
  0x12   : > { %v227_v0 = vld [vmem:[%s212_s29] sm:$0xff] (%p51_p3)  ;;  %v229_v1 = vld [vmem:[%s212_s29 + $0x48] sm:$0xff] (%p51_p3)  ;;  %s206_s30 = scalar_lea.vmem (%p51_p3), [#allocation3], %s1044_s26  ;;  %v972_v3 = vld [vmem:[%s212_s29 + $0x50] sm:$0xf] (%p51_p3) }
  0x13   : > { %v970_v2 = vld [vmem:[%s212_s29 + $0x8] sm:$0xf] (%p51_p3)  ;;  %228 = vst [vmem:[%s206_s30] sm:$0xff] (%p51_p3), %v227_v0  ;;  %230 = vst [vmem:[%s206_s30 + $0xc] sm:$0xff] (%p51_p3), %v229_v1 }
  0x14   : > { %971 = vst [vmem:[%s206_s30 + $0x8] sm:$0xf] (%p51_p3), %v970_v2  ;;  %973 = vst [vmem:[%s206_s30 + $0x14] sm:$0xf] (%p51_p3), %v972_v3 }
  0x15 PF: > { %p974_p6 = scmp.ge.s32.totalorder %s1202_s19, 1  ;;  %p261_p7 = scmp.lt.s32.totalorder %s1202_s19, 7 }
  0x17   : > { %p262_p8 = pnand %p974_p6, %p261_p7 }
  0x18   : > { %s268_s5 = sand.u32 (!%p262_p8), 1, %s1186_s15   ;;  %s318_s6 = smul.u32 (!%p262_p8), 48, %s1194_s17 }
  0x19   : > { %265 = sbr.rel (%p262_p8) target bundleno = 340 (0x154), region = 58  ;;  %p977_p10 = scmp.ne.s32.totalorder (!%p262_p8), %s1194_s17, 0 }
  0x1a   : > { %s1045_s7 = smul.u32 (!%p262_p8), 24, %s268_s5  ;;  %p320_p9 = scmp.lt.s32.totalorder (!%p262_p8), %s318_s6, 287 }
  0x1c   : > { %s1283_s12 = scalar_lea.vmem (!%p262_p8), [#allocation3], %s1045_s7 }
  0x20   : > { %s1377_s6 = smov (!%p320_p9, %s318_s6), 287  ;;  %356 = sbr.rel (%p977_p10) target bundleno = 39 (0x27), region = 66 }
  0x21   : > { %s1037_s8 = sshll.u32 %s1377_s6, 3  ;;  %v1204_v4 = vmov (!%p977_p10), 0.0  }
  0x22   : > { %s1281_s11 = scalar_lea.vmem %s1366_s1, %s1037_s8  ;;  %357 = vst [vmem:[#allocation2] sm:$0xff] (!%p977_p10), %v1204_v4  ;;  %358 = vst [vmem:[#allocation2 + $0x8] sm:$0xff] (!%p977_p10), %v1204_v4 }
  0x23   : > { %359 = vst [vmem:[#allocation2 + $0x10] sm:$0xff] (!%p977_p10), %v1204_v4  ;;  %360 = vst [vmem:[#allocation2 + $0x18] sm:$0xff] (!%p977_p10), %v1204_v4 }
  0x27 PF: > { %v1088_v5 = vld [vmem:[%s1281_s11 + $0x4] ss:$8 sps:$4 sm:$0xff]   ;;  %v1090_v6 = vld [vmem:[%s1281_s11] ss:$8 sps:$4 sm:$0xff]   ;;  %v1205_v7 = vmov 0   ;;  %p1029_p11 = scmp.ne.s32.totalorder %s1194_s17, 5 }
  0x28   : > { %748 = vmatprep.mubr.bf16.mxu0 %v1205_v7  ;;  %673 = vmatprep.subr.bf16.mxu1 %v1088_v5  ;;  %v1091_v8 = vld [vmem:[%s1281_s11 + $0x14] ss:$8 sps:$4 sm:$0xff]   ;;  %v1093_v9 = vld [vmem:[%s1281_s11 + $0x10] ss:$8 sps:$4 sm:$0xff]   ;;  %v1094_v10 = vld [vmem:[%s1281_s11 + $0x24] ss:$8 sps:$4 sm:$0xff]  }
  0x29   : > { %674 = vmatpush1.bf16.msra.mxu1 %v1090_v6  ;;  %v1096_v11 = vld [vmem:[%s1281_s11 + $0x20] ss:$8 sps:$4 sm:$0xff]   ;;  %v1097_v12 = vld [vmem:[%s1281_s11 + $0x34] ss:$8 sps:$4 sm:$0xff]   ;;  %v1099_v13 = vld [vmem:[%s1281_s11 + $0x30] ss:$8 sps:$4 sm:$0xff]  }
  0x2a   : > { %675 = vmatprep.subr.bf16.mxu1 %v1091_v8  ;;  %v1112_v14 = vld [vmem:[%s1281_s11 + $0x104] ss:$8 sps:$4 sm:$0xff]   ;;  %v1114_v15 = vld [vmem:[%s1281_s11 + $0x100] ss:$8 sps:$4 sm:$0xff]   ;;  %v1118_v17 = vld [vmem:[%s1281_s11 + $0x114] ss:$8 sps:$4 sm:$0xff]  }
  0x2b   : > { %v1100_v16 = vld [vmem:[%s1281_s11 + $0x44] ss:$8 sps:$4 sm:$0xff]   ;;  %716 = vmatprep.subr.bf16.mxu0 %v1112_v14  ;;  %v1120_v18 = vld [vmem:[%s1281_s11 + $0x110] ss:$8 sps:$4 sm:$0xff]   ;;  %v1102_v19 = vld [vmem:[%s1281_s11 + $0x40] ss:$8 sps:$4 sm:$0xff]  }
  0x2c   : > { %717 = vmatpush1.bf16.msra.mxu0 %v1114_v15  ;;  %v1103_v20 = vld [vmem:[%s1281_s11 + $0x54] ss:$8 sps:$4 sm:$0xff]   ;;  %v1124_v21 = vld [vmem:[%s1281_s11 + $0x124] ss:$8 sps:$4 sm:$0xff]   ;;  %v1126_v22 = vld [vmem:[%s1281_s11 + $0x120] ss:$8 sps:$4 sm:$0xff]  }
  0x2d   : > { %676 = vmatpush1.bf16.msra.mxu1 %v1093_v9  ;;  %718 = vmatprep.subr.bf16.mxu0 %v1118_v17  ;;  %v1105_v23 = vld [vmem:[%s1281_s11 + $0x50] ss:$8 sps:$4 sm:$0xff]   ;;  %v1130_v24 = vld [vmem:[%s1281_s11 + $0x134] ss:$8 sps:$4 sm:$0xff]   ;;  %v1106_v25 = vld [vmem:[%s1281_s11 + $0x64] ss:$8 sps:$4 sm:$0xff]  }
  0x2e   : > { %677 = vmatprep.subr.bf16.mxu1 %v1094_v10  ;;  %v1132_v26 = vld [vmem:[%s1281_s11 + $0x130] ss:$8 sps:$4 sm:$0xff]   ;;  %v1108_v27 = vld [vmem:[%s1281_s11 + $0x60] ss:$8 sps:$4 sm:$0xff]   ;;  %v1136_v28 = vld [vmem:[%s1281_s11 + $0x144] ss:$8 sps:$4 sm:$0xff]  }
  0x2f   : > { %v1109_v29 = vld [vmem:[%s1281_s11 + $0x74] ss:$8 sps:$4 sm:$0xff]   ;;  %v1138_v30 = vld [vmem:[%s1281_s11 + $0x140] ss:$8 sps:$4 sm:$0xff]   ;;  %v1111_v31 = vld [vmem:[%s1281_s11 + $0x70] ss:$8 sps:$4 sm:$0xff]  }
  0x30   : > { %719 = vmatpush1.bf16.msra.mxu0 %v1120_v18  ;;  %v1142_v32 = vld [vmem:[%s1281_s11 + $0x154] ss:$8 sps:$4 sm:$0xff]   ;;  %v1115_v33 = vld [vmem:[%s1281_s11 + $0x84] ss:$8 sps:$4 sm:$0xff]   ;;  %v1144_v34 = vld [vmem:[%s1281_s11 + $0x150] ss:$8 sps:$4 sm:$0xff]  }
  0x31   : > { %678 = vmatpush1.bf16.msra.mxu1 %v1096_v11  ;;  %720 = vmatprep.subr.bf16.mxu0 %v1124_v21  ;;  %v1117_v35 = vld [vmem:[%s1281_s11 + $0x80] ss:$8 sps:$4 sm:$0xff]   ;;  %v1148_v36 = vld [vmem:[%s1281_s11 + $0x164] ss:$8 sps:$4 sm:$0xff]   ;;  %v1121_v37 = vld [vmem:[%s1281_s11 + $0x94] ss:$8 sps:$4 sm:$0xff]  }
  0x32   : > { %679 = vmatprep.subr.bf16.mxu1 %v1097_v12  ;;  %v1150_v38 = vld [vmem:[%s1281_s11 + $0x160] ss:$8 sps:$4 sm:$0xff]   ;;  %v1123_v40 = vld [vmem:[%s1281_s11 + $0x90] ss:$8 sps:$4 sm:$0xff]   ;;  %v1154_v41 = vld [vmem:[%s1281_s11 + $0x174] ss:$8 sps:$4 sm:$0xff]  }
  0x33   : > { %v1163_v39 = vld [vmem:[%s1283_s12 + $0x4] ss:$12 sps:$4 sm:$0xff]   ;;  %v1160_v46 = vld [vmem:[%s1283_s12 + $0x8] ss:$12 sps:$4 sm:$0xff]   ;;  %v1161_v56 = vld [vmem:[%s1283_s12] ss:$12 sps:$4 sm:$0xff]  }
  0x34   : > { %721 = vmatpush1.bf16.msra.mxu0 %v1126_v22  ;;  %v1127_v42 = vld [vmem:[%s1281_s11 + $0xa4] ss:$8 sps:$4 sm:$0xff]   ;;  %705 = vmatprep.mubr.bf16.mxu1 %v1163_v39  ;;  %v1156_v43 = vld [vmem:[%s1281_s11 + $0x170] ss:$8 sps:$4 sm:$0xff]   ;;  %v1129_v44 = vld [vmem:[%s1281_s11 + $0xa0] ss:$8 sps:$4 sm:$0xff]  }
  0x35   : > { %680 = vmatpush1.bf16.msra.mxu1 %v1099_v13  ;;  %722 = vmatprep.subr.bf16.mxu0 %v1130_v24  ;;  %v1133_v45 = vld [vmem:[%s1281_s11 + $0xb4] ss:$8 sps:$4 sm:$0xff]   ;;  %v1135_v47 = vld [vmem:[%s1281_s11 + $0xb0] ss:$8 sps:$4 sm:$0xff]   ;;  %v1139_v48 = vld [vmem:[%s1281_s11 + $0xc4] ss:$8 sps:$4 sm:$0xff]   ;;  %v777_v13 = vlaneseq (!%p1029_p11) }
  0x36   : > { %681 = vmatprep.subr.bf16.mxu1 %v1100_v16  ;;  %v1141_v49 = vld [vmem:[%s1281_s11 + $0xc0] ss:$8 sps:$4 sm:$0xff]   ;;  %v1145_v50 = vld [vmem:[%s1281_s11 + $0xd4] ss:$8 sps:$4 sm:$0xff]   ;;  %v1147_v51 = vld [vmem:[%s1281_s11 + $0xd0] ss:$8 sps:$4 sm:$0xff]  }
  0x37   : > { %v1151_v52 = vld [vmem:[%s1281_s11 + $0xe4] ss:$8 sps:$4 sm:$0xff]   ;;  %v1153_v53 = vld [vmem:[%s1281_s11 + $0xe0] ss:$8 sps:$4 sm:$0xff]   ;;  %v1157_v54 = vld [vmem:[%s1281_s11 + $0xf4] ss:$8 sps:$4 sm:$0xff]  }
  0x38   : > { %723 = vmatpush1.bf16.msra.mxu0 %v1132_v26  ;;  %v1159_v55 = vld [vmem:[%s1281_s11 + $0xf0] ss:$8 sps:$4 sm:$0xff]   ;;  %v361_v61 = vld [vmem:[#allocation2] sm:$0xff]  ;;  %v362_v0 = vld [vmem:[#allocation2 + $0x8] sm:$0xff]  ;;  %v778_v14 = vshrl.u32 (!%p1029_p11), %v777_v13, 7 }
  0x39   : > { %682 = vmatpush1.bf16.msra.mxu1 %v1102_v19  ;;  %724 = vmatprep.subr.bf16.mxu0 %v1136_v28  ;;  %v363_v3 = vld [vmem:[#allocation2 + $0x10] sm:$0xff]  ;;  %v364_v7 = vld [vmem:[#allocation2 + $0x18] sm:$0xff]  ;;  %v775_v15 = vld [vmem:[%s1367_s2] sm:$0x3] (!%p1029_p11) }
  0x3a   : > { %683 = vmatprep.subr.bf16.mxu1 %v1103_v20  ;;  %v791_v16 = vld [vmem:[%s1368_s3] sm:$0x3] (!%p1029_p11)  ;;  %v779_v18 = vsub.s32 (!%p1029_p11), 0, %v778_v14  ;;  %v783_v19 = vsub.s32 (!%p1029_p11), 1, %v778_v14 }
  0x3c   : > { %725 = vmatpush1.bf16.msra.mxu0 %v1138_v30  ;;  %v784_v24 = vrot.slane (!%p1029_p11), %v775_v15, %v783_v19  ;;  %v800_v26 = vrot.slane (!%p1029_p11), %v791_v16, %v783_v19 }
  0x3d   : > { %684 = vmatpush1.bf16.msra.mxu1 %v1105_v23  ;;  %726 = vmatprep.subr.bf16.mxu0 %v1142_v32  ;;  %v780_v23 = vrot.slane (!%p1029_p11), %v775_v15, %v779_v18 }
  0x3e   : > { %685 = vmatprep.subr.bf16.mxu1 %v1106_v25  ;;  %v796_v25 = vrot.slane (!%p1029_p11), %v791_v16, %v779_v18 }
  0x40   : > { %727 = vmatpush1.bf16.msra.mxu0 %v1144_v34 }
  0x41   : > { %686 = vmatpush1.bf16.msra.mxu1 %v1108_v27  ;;  %728 = vmatprep.subr.bf16.mxu0 %v1148_v36 }
  0x42   : > { %687 = vmatprep.subr.bf16.mxu1 %v1109_v29 }
  0x44   : > { %729 = vmatpush1.bf16.msra.mxu0 %v1150_v38 }
  0x45   : > { %688 = vmatpush1.bf16.msra.mxu1 %v1111_v31  ;;  %730 = vmatprep.subr.bf16.mxu0 %v1154_v41 }
  0x46   : > { %689 = vmatprep.subr.bf16.mxu1 %v1115_v33 }
  0x48   : > { %731 = vmatpush1.bf16.msra.mxu0 %v1156_v43 }
  0x49   : > { %690 = vmatpush1.bf16.msra.mxu1 %v1117_v35 }
  0x4a   : > { %691 = vmatprep.subr.bf16.mxu1 %v1121_v37 }
  0x4b   : > { %749 = vmatmul.mubr.bf16.vlgmr.msra.gmra.mrb[0].mxu0 %v1160_v46 }
  0x4d   : > { %692 = vmatpush1.bf16.msra.mxu1 %v1123_v40 }
  0x4e   : > { %693 = vmatprep.subr.bf16.mxu1 %v1127_v42 }
  0x51   : > { %694 = vmatpush1.bf16.msra.mxu1 %v1129_v44 }
  0x52   : > { %695 = vmatprep.subr.bf16.mxu1 %v1133_v45 }
  0x55   : > { %696 = vmatpush1.bf16.msra.mxu1 %v1135_v47 }
  0x56   : > { %697 = vmatprep.subr.bf16.mxu1 %v1139_v48 }
  0x59   : > { %698 = vmatpush1.bf16.msra.mxu1 %v1141_v49 }
  0x5a   : > { %699 = vmatprep.subr.bf16.mxu1 %v1145_v50 }
  0x5d   : > { %700 = vmatpush1.bf16.msra.mxu1 %v1147_v51 }
  0x5e   : > { %701 = vmatprep.subr.bf16.mxu1 %v1151_v52 }
  0x61   : > { %702 = vmatpush1.bf16.msra.mxu1 %v1153_v53 }
  0x62   : > { %703 = vmatprep.subr.bf16.mxu1 %v1157_v54 }
  0x65   : > { %704 = vmatpush1.bf16.msra.mxu1 %v1159_v55 }
  0x68   : > { %706 = vmatmul.mubr.bf16.vlgmr.msra.gmra.mrb[0].mxu1 %v1161_v56 }
 0x11e   : > { %v750_v57 = vpop.f32.mrb[0].mxu0 }
 0x11f   : > { %v752_v58 = vpop.f32.mrb[1].mxu0 }
 0x120   : > { %v754_v59 = vpop.f32.mrb[2].mxu0 }
 0x121   : > { %v756_v60 = vpop.f32.mrb[3].mxu0 }
 0x13b   : > { %v707_v62 = vpop.f32.mrb[0].mxu1 }
 0x13c   : > { %v751_v63 = vadd.f32 %v750_v57, %v707_v62  ;;  %v709_v1 = vpop.f32.mrb[1].mxu1 }
 0x13d   : > { %v753_v2 = vadd.f32 %v752_v58, %v709_v1  ;;  %v711_v4 = vpop.f32.mrb[2].mxu1  ;;  %770 = sbr.rel (%p1029_p11) target bundleno = 340 (0x154), region = 70 }
 0x13e   : > { %v759_v5 = vadd.f32 %v751_v63, %v361_v61  ;;  %v755_v6 = vadd.f32 %v754_v59, %v711_v4  ;;  %v713_v8 = vpop.f32.mrb[3].mxu1 }
 0x13f   : > { %v760_v9 = vadd.f32 %v753_v2, %v362_v0  ;;  %v757_v10 = vadd.f32 %v756_v60, %v713_v8 }
 0x140   : > { %763 = vst [vmem:[#allocation2] sm:$0xff] %v759_v5  ;;  %v761_v11 = vadd.f32 %v755_v6, %v363_v3 }
 0x141   : > { %764 = vst [vmem:[#allocation2 + $0x8] sm:$0xff] %v760_v9  ;;  %v762_v12 = vadd.f32 %v757_v10, %v364_v7 }
 0x142   : > { %765 = vst [vmem:[#allocation2 + $0x10] sm:$0xff] %v761_v11 }
 0x143   : > { %766 = vst [vmem:[#allocation2 + $0x18] sm:$0xff] %v762_v12 }
 0x147   : > { %v771_v17 = vld [vmem:[#allocation2] sm:$0xff] }
 0x148   : > { %v772_v20 = vld [vmem:[#allocation2 + $0x8] sm:$0xff]  ;;  %v787_v27 = vmul.f32 %v780_v23, %v771_v17 }
 0x149   : > { %v773_v21 = vld [vmem:[#allocation2 + $0x10] sm:$0xff]  ;;  %v788_v28 = vmul.f32 %v784_v24, %v772_v20 }
 0x14a   : > { %v774_v22 = vld [vmem:[#allocation2 + $0x18] sm:$0xff]  ;;  %v789_v29 = vmul.f32 %v780_v23, %v773_v21  ;;  %v803_v31 = vadd.f32 %v796_v25, %v787_v27 }
 0x14b   : > { %v790_v30 = vmul.f32 %v784_v24, %v774_v22  ;;  %v804_v32 = vadd.f32 %v800_v26, %v788_v28 }
 0x14c   : > { %v805_v33 = vadd.f32 %v796_v25, %v789_v29  ;;  %v807_v35 = vmax.f32 %v803_v31, 0.0 }
 0x14d   : > { %v806_v34 = vadd.f32 %v800_v26, %v790_v30  ;;  %v808_v36 = vmax.f32 %v804_v32, 0.0 }
 0x14e   : > { %v809_v37 = vmax.f32 %v805_v33, 0.0 }
 0x14f   : > { %v810_v38 = vmax.f32 %v806_v34, 0.0  ;;  %v1038_v39 = vpack.c.bf16 %v808_v36, %v807_v35 }
 0x151   : > { %v1039_v40 = vpack.c.bf16 %v810_v38, %v809_v37  ;;  %823 = vst [vmem:[%s1369_s4] sm:$0xff] %v1038_v39 }
 0x153   : > { %824 = vst [vmem:[%s1369_s4 + $0x8] sm:$0xff] %v1039_v40 }
 0x154 PF: > { %s14_s19 = sadd.s32 1, %s1202_s19   ;;  %s1370_s15 = smov %s1190_s16 }
 0x155   : > { %p11_p12 = scmp.ge.s32.totalorder %s14_s19, 8   ;;  %s1371_s16 = smov %s1266_s23 }
 0x156   : > { %s1372_s17 = smov %s1198_s18  ;;  %s1373_s18 = smov %s1375_s20 }
 0x157   :  { %13 = sbr.rel (!%p11_p12) target bundleno = 3 (0x3), region = 120 }

// kernel: resnet50_forward.81
= control target key start
LH: loop header
LB: loop body
LE: loop exit
PB: predicated region body
PF: predicated region fallthrough
CT: control target
= control target key end

     0   :  { %s1593_s15 = smov 0   ;;  %s1595_s16 = smov 0   ;;  %s1886_s0 = inlined_call_operand.vmem [shape: bf16[16,512], index: 0, kind: input, shape index: {}]   ;;  %s1887_s1 = inlined_call_operand.vmem [shape: bf16[512,1024], index: 1, kind: input, shape index: {}]   ;;  %s1888_s2 = inlined_call_operand.vmem [shape: f32[1,1024], index: 2, kind: input, shape index: {}]   ;;  %s1889_s3 = inlined_call_operand.vmem [shape: f32[1,1024], index: 3, kind: input, shape index: {}]   ;;  %s1890_s4 = inlined_call_operand.vmem [shape: bf16[16,1024], index: 4, kind: output, shape index: {}]  }
   0x1   :  { %s1597_s17 = smov 0   ;;  %s1599_s18 = smov 0  }
   0x2   :  { %s1601_s19 = smov 0  }
   0x3 LB: > { %s29_s20 = sadd.s32 1, %s1562_s18  ;;  %s1290_s21 = sadd.s32 4294967295, %s1566_s19   ;;  %s1566_s19 = sphi %s1601_s19, %s14_s19   ;;  %s1562_s18 = sphi %s1599_s18, %s1895_s18   ;;  %s1558_s17 = sphi %s1597_s17, %s1894_s17   ;;  %s1554_s16 = sphi %s1595_s16, %s1893_s16   ;;  %s1550_s15 = sphi %s1593_s15, %s1892_s15  }
   0x4   : > { %p31_p0 = scmp.ge.s32.totalorder %s29_s20, 4  ;;  %p77_p1 = scmp.ne.s32.totalorder %s1554_s16, %s1550_s15 }
   0x5   : > { %p78_p2 = scmp.eq.s32.totalorder %s1566_s19, 0  ;;  %p161_p4 = scmp.eq.s32.totalorder %s1290_s21, 3 }
   0x6   : > { %s1897_s20 = smov (%p31_p0, %s29_s20), 0  ;;  %s70_s23 = sadd.s32 1, %s1554_s16 }
   0x7   : > { %p79_p3 = por %p78_p2, %p77_p1  ;;  %s66_s22 = ssub.s32 %s1562_s18, %s1897_s20 }
   0x8   : > { %p68_p5 = scmp.eq.s32.totalorder %s66_s22, 0  ;;  %p1628_p6 = por %p161_p4, %p77_p1 }
   0x9   : > { %p1294_p7 = scmp.ge.s32.totalorder %s1566_s19, 4 }
   0xa   : > { %s1633_s25 = scalar_select %p68_p5, %s1554_s16, %s70_s23  }
   0xb   : > { %198 = sbr.rel (%p1294_p7) target bundleno = 86 (0x56), region = 20 }
  0x12   : > { %201 = sbr.rel (!%p79_p3) target bundleno = 86 (0x56), region = 24  ;;  %s203_s26 = sand.u32 (%p79_p3), 1, %s1554_s16  }
  0x13   : > { %s1378_s27 = sshll.u32 (%p79_p3), %s1562_s18, 3  ;;  %s1295_s28 = sshll.u32 (%p79_p3), %s203_s26, 9 }
  0x14   : > { %s1641_s5 = scalar_lea.vmem (%p79_p3), %s1887_s1, %s1378_s27  ;;  %s1646_s6 = scalar_lea.vmem (%p79_p3), [#allocation2], %s1295_s28 }
  0x15   : > { %v365_v0 = vld [vmem:[%s1641_s5] sm:$0xff] (%p79_p3) }
  0x16   : > { %v367_v1 = vld [vmem:[%s1641_s5 + $0x20] sm:$0xff] (%p79_p3)  ;;  %366 = vst [vmem:[%s1646_s6] sm:$0xff] (%p79_p3), %v365_v0 }
  0x17   : > { %v369_v2 = vld [vmem:[%s1641_s5 + $0x40] sm:$0xff] (%p79_p3)  ;;  %368 = vst [vmem:[%s1646_s6 + $0x8] sm:$0xff] (%p79_p3), %v367_v1 }
  0x18   : > { %370 = vst [vmem:[%s1646_s6 + $0x10] sm:$0xff] (%p79_p3), %v369_v2  ;;  %v371_v3 = vld [vmem:[%s1641_s5 + $0x60] sm:$0xff] (%p79_p3) }
  0x19   : > { %v373_v4 = vld [vmem:[%s1641_s5 + $0x80] sm:$0xff]  ;;  %372 = vst [vmem:[%s1646_s6 + $0x18] sm:$0xff] %v371_v3 }
  0x1a   : > { %v375_v5 = vld [vmem:[%s1641_s5 + $0xa0] sm:$0xff]  ;;  %374 = vst [vmem:[%s1646_s6 + $0x20] sm:$0xff] %v373_v4 }
  0x1b   : > { %376 = vst [vmem:[%s1646_s6 + $0x28] sm:$0xff] %v375_v5  ;;  %v377_v6 = vld [vmem:[%s1641_s5 + $0xc0] sm:$0xff] }
  0x1c   : > { %v379_v7 = vld [vmem:[%s1641_s5 + $0xe0] sm:$0xff]  ;;  %378 = vst [vmem:[%s1646_s6 + $0x30] sm:$0xff] %v377_v6 }
  0x1d   : > { %v381_v8 = vld [vmem:[%s1641_s5 + $0x100] sm:$0xff]  ;;  %380 = vst [vmem:[%s1646_s6 + $0x38] sm:$0xff] %v379_v7 }
  0x1e   : > { %382 = vst [vmem:[%s1646_s6 + $0x40] sm:$0xff] %v381_v8  ;;  %v383_v9 = vld [vmem:[%s1641_s5 + $0x120] sm:$0xff] }
  0x1f   : > { %v385_v10 = vld [vmem:[%s1641_s5 + $0x140] sm:$0xff]  ;;  %384 = vst [vmem:[%s1646_s6 + $0x48] sm:$0xff] %v383_v9 }
  0x20   : > { %v387_v11 = vld [vmem:[%s1641_s5 + $0x160] sm:$0xff]  ;;  %386 = vst [vmem:[%s1646_s6 + $0x50] sm:$0xff] %v385_v10 }
  0x21   : > { %388 = vst [vmem:[%s1646_s6 + $0x58] sm:$0xff] %v387_v11  ;;  %v389_v12 = vld [vmem:[%s1641_s5 + $0x180] sm:$0xff] }
  0x22   : > { %v391_v13 = vld [vmem:[%s1641_s5 + $0x1a0] sm:$0xff]  ;;  %390 = vst [vmem:[%s1646_s6 + $0x60] sm:$0xff] %v389_v12 }
  0x23   : > { %v393_v14 = vld [vmem:[%s1641_s5 + $0x1c0] sm:$0xff]  ;;  %392 = vst [vmem:[%s1646_s6 + $0x68] sm:$0xff] %v391_v13 }
  0x24   : > { %394 = vst [vmem:[%s1646_s6 + $0x70] sm:$0xff] %v393_v14  ;;  %v395_v15 = vld [vmem:[%s1641_s5 + $0x1e0] sm:$0xff] }
  0x25   : > { %v397_v16 = vld [vmem:[%s1641_s5 + $0x200] sm:$0xff]  ;;  %396 = vst [vmem:[%s1646_s6 + $0x78] sm:$0xff] %v395_v15 }
  0x26   : > { %v399_v17 = vld [vmem:[%s1641_s5 + $0x220] sm:$0xff]  ;;  %398 = vst [vmem:[%s1646_s6 + $0x80] sm:$0xff] %v397_v16 }
  0x27   : > { %400 = vst [vmem:[%s1646_s6 + $0x88] sm:$0xff] %v399_v17  ;;  %v401_v18 = vld [vmem:[%s1641_s5 + $0x240] sm:$0xff] }
  0x28   : > { %v403_v19 = vld [vmem:[%s1641_s5 + $0x260] sm:$0xff]  ;;  %402 = vst [vmem:[%s1646_s6 + $0x90] sm:$0xff] %v401_v18 }
  0x29   : > { %v405_v20 = vld [vmem:[%s1641_s5 + $0x280] sm:$0xff]  ;;  %404 = vst [vmem:[%s1646_s6 + $0x98] sm:$0xff] %v403_v19 }
  0x2a   : > { %406 = vst [vmem:[%s1646_s6 + $0xa0] sm:$0xff] %v405_v20  ;;  %v407_v21 = vld [vmem:[%s1641_s5 + $0x2a0] sm:$0xff] }
  0x2b   : > { %v409_v22 = vld [vmem:[%s1641_s5 + $0x2c0] sm:$0xff]  ;;  %408 = vst [vmem:[%s1646_s6 + $0xa8] sm:$0xff] %v407_v21 }
  0x2c   : > { %v411_v23 = vld [vmem:[%s1641_s5 + $0x2e0] sm:$0xff]  ;;  %410 = vst [vmem:[%s1646_s6 + $0xb0] sm:$0xff] %v409_v22 }
  0x2d   : > { %412 = vst [vmem:[%s1646_s6 + $0xb8] sm:$0xff] %v411_v23  ;;  %v413_v24 = vld [vmem:[%s1641_s5 + $0x300] sm:$0xff] }
  0x2e   : > { %v415_v25 = vld [vmem:[%s1641_s5 + $0x320] sm:$0xff]  ;;  %414 = vst [vmem:[%s1646_s6 + $0xc0] sm:$0xff] %v413_v24 }
  0x2f   : > { %v417_v26 = vld [vmem:[%s1641_s5 + $0x340] sm:$0xff]  ;;  %416 = vst [vmem:[%s1646_s6 + $0xc8] sm:$0xff] %v415_v25 }
  0x30   : > { %418 = vst [vmem:[%s1646_s6 + $0xd0] sm:$0xff] %v417_v26  ;;  %v419_v27 = vld [vmem:[%s1641_s5 + $0x360] sm:$0xff] }
  0x31   : > { %v421_v28 = vld [vmem:[%s1641_s5 + $0x380] sm:$0xff]  ;;  %420 = vst [vmem:[%s1646_s6 + $0xd8] sm:$0xff] %v419_v27 }
  0x32   : > { %v423_v29 = vld [vmem:[%s1641_s5 + $0x3a0] sm:$0xff]  ;;  %422 = vst [vmem:[%s1646_s6 + $0xe0] sm:$0xff] %v421_v28 }
  0x33   : > { %424 = vst [vmem:[%s1646_s6 + $0xe8] sm:$0xff] %v423_v29  ;;  %v425_v30 = vld [vmem:[%s1641_s5 + $0x3c0] sm:$0xff] }
  0x34   : > { %v427_v31 = vld [vmem:[%s1641_s5 + $0x3e0] sm:$0xff]  ;;  %426 = vst [vmem:[%s1646_s6 + $0xf0] sm:$0xff] %v425_v30 }
  0x35   : > { %v429_v32 = vld [vmem:[%s1641_s5 + $0x400] sm:$0xff]  ;;  %428 = vst [vmem:[%s1646_s6 + $0xf8] sm:$0xff] %v427_v31 }
  0x36   : > { %430 = vst [vmem:[%s1646_s6 + $0x100] sm:$0xff] %v429_v32  ;;  %v431_v33 = vld [vmem:[%s1641_s5 + $0x420] sm:$0xff] }
  0x37   : > { %v433_v34 = vld [vmem:[%s1641_s5 + $0x440] sm:$0xff]  ;;  %432 = vst [vmem:[%s1646_s6 + $0x108] sm:$0xff] %v431_v33 }
  0x38   : > { %v435_v35 = vld [vmem:[%s1641_s5 + $0x460] sm:$0xff]  ;;  %434 = vst [vmem:[%s1646_s6 + $0x110] sm:$0xff] %v433_v34 }
  0x39   : > { %436 = vst [vmem:[%s1646_s6 + $0x118] sm:$0xff] %v435_v35  ;;  %v437_v36 = vld [vmem:[%s1641_s5 + $0x480] sm:$0xff] }
  0x3a   : > { %v439_v37 = vld [vmem:[%s1641_s5 + $0x4a0] sm:$0xff]  ;;  %438 = vst [vmem:[%s1646_s6 + $0x120] sm:$0xff] %v437_v36 }
  0x3b   : > { %v441_v38 = vld [vmem:[%s1641_s5 + $0x4c0] sm:$0xff]  ;;  %440 = vst [vmem:[%s1646_s6 + $0x128] sm:$0xff] %v439_v37 }
  0x3c   : > { %442 = vst [vmem:[%s1646_s6 + $0x130] sm:$0xff] %v441_v38  ;;  %v443_v39 = vld [vmem:[%s1641_s5 + $0x4e0] sm:$0xff] }
  0x3d   : > { %v445_v40 = vld [vmem:[%s1641_s5 + $0x500] sm:$0xff]  ;;  %444 = vst [vmem:[%s1646_s6 + $0x138] sm:$0xff] %v443_v39 }
  0x3e   : > { %v447_v41 = vld [vmem:[%s1641_s5 + $0x520] sm:$0xff]  ;;  %446 = vst [vmem:[%s1646_s6 + $0x140] sm:$0xff] %v445_v40 }
  0x3f   : > { %448 = vst [vmem:[%s1646_s6 + $0x148] sm:$0xff] %v447_v41  ;;  %v449_v42 = vld [vmem:[%s1641_s5 + $0x540] sm:$0xff] }
  0x40   : > { %v451_v43 = vld [vmem:[%s1641_s5 + $0x560] sm:$0xff]  ;;  %450 = vst [vmem:[%s1646_s6 + $0x150] sm:$0xff] %v449_v42 }
  0x41   : > { %v453_v44 = vld [vmem:[%s1641_s5 + $0x580] sm:$0xff]  ;;  %452 = vst [vmem:[%s1646_s6 + $0x158] sm:$0xff] %v451_v43 }
  0x42   : > { %454 = vst [vmem:[%s1646_s6 + $0x160] sm:$0xff] %v453_v44  ;;  %v455_v45 = vld [vmem:[%s1641_s5 + $0x5a0] sm:$0xff] }
  0x43   : > { %v457_v46 = vld [vmem:[%s1641_s5 + $0x5c0] sm:$0xff]  ;;  %456 = vst [vmem:[%s1646_s6 + $0x168] sm:$0xff] %v455_v45 }
  0x44   : > { %v459_v47 = vld [vmem:[%s1641_s5 + $0x5e0] sm:$0xff]  ;;  %458 = vst [vmem:[%s1646_s6 + $0x170] sm:$0xff] %v457_v46 }
  0x45   : > { %460 = vst [vmem:[%s1646_s6 + $0x178] sm:$0xff] %v459_v47  ;;  %v461_v48 = vld [vmem:[%s1641_s5 + $0x600] sm:$0xff] }
  0x46   : > { %v463_v49 = vld [vmem:[%s1641_s5 + $0x620] sm:$0xff]  ;;  %462 = vst [vmem:[%s1646_s6 + $0x180] sm:$0xff] %v461_v48 }
  0x47   : > { %v465_v50 = vld [vmem:[%s1641_s5 + $0x640] sm:$0xff]  ;;  %464 = vst [vmem:[%s1646_s6 + $0x188] sm:$0xff] %v463_v49 }
  0x48   : > { %466 = vst [vmem:[%s1646_s6 + $0x190] sm:$0xff] %v465_v50  ;;  %v467_v51 = vld [vmem:[%s1641_s5 + $0x660] sm:$0xff] }
  0x49   : > { %v469_v52 = vld [vmem:[%s1641_s5 + $0x680] sm:$0xff]  ;;  %468 = vst [vmem:[%s1646_s6 + $0x198] sm:$0xff] %v467_v51 }
  0x4a   : > { %v471_v53 = vld [vmem:[%s1641_s5 + $0x6a0] sm:$0xff]  ;;  %470 = vst [vmem:[%s1646_s6 + $0x1a0] sm:$0xff] %v469_v52 }
  0x4b   : > { %472 = vst [vmem:[%s1646_s6 + $0x1a8] sm:$0xff] %v471_v53  ;;  %v473_v54 = vld [vmem:[%s1641_s5 + $0x6c0] sm:$0xff] }
  0x4c   : > { %v475_v55 = vld [vmem:[%s1641_s5 + $0x6e0] sm:$0xff]  ;;  %474 = vst [vmem:[%s1646_s6 + $0x1b0] sm:$0xff] %v473_v54 }
  0x4d   : > { %v477_v56 = vld [vmem:[%s1641_s5 + $0x700] sm:$0xff]  ;;  %476 = vst [vmem:[%s1646_s6 + $0x1b8] sm:$0xff] %v475_v55 }
  0x4e   : > { %478 = vst [vmem:[%s1646_s6 + $0x1c0] sm:$0xff] %v477_v56  ;;  %v479_v57 = vld [vmem:[%s1641_s5 + $0x720] sm:$0xff] }
  0x4f   : > { %v481_v58 = vld [vmem:[%s1641_s5 + $0x740] sm:$0xff]  ;;  %480 = vst [vmem:[%s1646_s6 + $0x1c8] sm:$0xff] %v479_v57 }
  0x50   : > { %v483_v59 = vld [vmem:[%s1641_s5 + $0x760] sm:$0xff]  ;;  %482 = vst [vmem:[%s1646_s6 + $0x1d0] sm:$0xff] %v481_v58 }
  0x51   : > { %484 = vst [vmem:[%s1646_s6 + $0x1d8] sm:$0xff] %v483_v59  ;;  %v485_v60 = vld [vmem:[%s1641_s5 + $0x780] sm:$0xff] }
  0x52   : > { %v487_v61 = vld [vmem:[%s1641_s5 + $0x7a0] sm:$0xff]  ;;  %486 = vst [vmem:[%s1646_s6 + $0x1e0] sm:$0xff] %v485_v60 }
  0x53   : > { %v489_v62 = vld [vmem:[%s1641_s5 + $0x7c0] sm:$0xff]  ;;  %488 = vst [vmem:[%s1646_s6 + $0x1e8] sm:$0xff] %v487_v61 }
  0x54   : > { %490 = vst [vmem:[%s1646_s6 + $0x1f0] sm:$0xff] %v489_v62  ;;  %v491_v63 = vld [vmem:[%s1641_s5 + $0x7e0] sm:$0xff] }
  0x55   : > { %492 = vst [vmem:[%s1646_s6 + $0x1f8] sm:$0xff] %v491_v63 }
  0x56 PF: > { %p1298_p8 = scmp.ge.s32.totalorder %s1566_s19, 1  ;;  %p513_p9 = scmp.lt.s32.totalorder %s1566_s19, 5 }
  0x58   : > { %p514_p10 = pnand %p1298_p8, %p513_p9 }
  0x59   : > { %s520_s7 = sand.u32 (!%p514_p10), 1, %s1550_s15   ;;  %v1524_v0 = vld [vmem:[%s1886_s0 + $0x4] ss:$16 sps:$4 sm:$0xff] (!%p514_p10)   ;;  %v1527_v1 = vld [vmem:[%s1886_s0 + $0xc] ss:$16 sps:$4 sm:$0xff] (!%p514_p10)   ;;  %s1301_s26 = sshll.u32 (!%p514_p10), %s1558_s17, 1 }
  0x5a   : > { %517 = sbr.rel (%p514_p10) target bundleno = 390 (0x186), region = 70  ;;  %s1299_s8 = sshll.u32 (!%p514_p10), %s520_s7, 9  ;;  %1028 = vmatprep.mubr.bf16.mxu1 (!%p514_p10), %v1524_v0  ;;  %1071 = vmatprep.mubr.bf16.mxu0 (!%p514_p10), %v1527_v1 }
  0x5b   : > { %s1784_s13 = scalar_lea.vmem (!%p514_p10), [#allocation2], %s1299_s8  ;;  %p577_p11 = scmp.lt.s32.totalorder (!%p514_p10), %s1301_s26, 7 }
  0x5c   : > { %v1426_v2 = vld [vmem:[%s1784_s13 + $0x4] ss:$8 sps:$4 sm:$0xff] (!%p514_p10)   ;;  %v1430_v4 = vld [vmem:[%s1784_s13] ss:$8 sps:$4 sm:$0xff] (!%p514_p10)   ;;  %v1432_v6 = vld [vmem:[%s1784_s13 + $0x14] ss:$8 sps:$4 sm:$0xff] (!%p514_p10)  }
  0x5d   : > { %v1428_v3 = vld [vmem:[%s1784_s13 + $0x104] ss:$8 sps:$4 sm:$0xff] (!%p514_p10)   ;;  %996 = vmatprep.subr.bf16.mxu1 (!%p514_p10), %v1426_v2  ;;  %v1431_v5 = vld [vmem:[%s1784_s13 + $0x100] ss:$8 sps:$4 sm:$0xff] (!%p514_p10)   ;;  %v1434_v7 = vld [vmem:[%s1784_s13 + $0x114] ss:$8 sps:$4 sm:$0xff] (!%p514_p10)  }
  0x5e   : > { %1039 = vmatprep.subr.bf16.mxu0 (!%p514_p10), %v1428_v3  ;;  %997 = vmatpush1.bf16.msra.mxu1 (!%p514_p10), %v1430_v4  ;;  %v1436_v8 = vld [vmem:[%s1784_s13 + $0x10] ss:$8 sps:$4 sm:$0xff] (!%p514_p10)   ;;  %v1438_v10 = vld [vmem:[%s1784_s13 + $0x24] ss:$8 sps:$4 sm:$0xff] (!%p514_p10)   ;;  %v1442_v12 = vld [vmem:[%s1784_s13 + $0x20] ss:$8 sps:$4 sm:$0xff] (!%p514_p10)   ;;  %v1084_v4 = vlaneseq (!%p514_p10) }
  0x5f   : > { %1040 = vmatpush1.bf16.msra.mxu0 (!%p514_p10), %v1431_v5  ;;  %998 = vmatprep.subr.bf16.mxu1 (!%p514_p10), %v1432_v6  ;;  %v1437_v9 = vld [vmem:[%s1784_s13 + $0x110] ss:$8 sps:$4 sm:$0xff] (!%p514_p10)   ;;  %v1440_v11 = vld [vmem:[%s1784_s13 + $0x124] ss:$8 sps:$4 sm:$0xff] (!%p514_p10)   ;;  %v1443_v13 = vld [vmem:[%s1784_s13 + $0x120] ss:$8 sps:$4 sm:$0xff] (!%p514_p10)  }
  0x60   : > { %1041 = vmatprep.subr.bf16.mxu0 (!%p514_p10), %v1434_v7  ;;  %v1444_v14 = vld [vmem:[%s1784_s13 + $0x34] ss:$8 sps:$4 sm:$0xff] (!%p514_p10)   ;;  %v1448_v16 = vld [vmem:[%s1784_s13 + $0x30] ss:$8 sps:$4 sm:$0xff] (!%p514_p10)   ;;  %v1450_v18 = vld [vmem:[%s1784_s13 + $0x44] ss:$8 sps:$4 sm:$0xff] (!%p514_p10)  }
  0x61   : > { %v1446_v15 = vld [vmem:[%s1784_s13 + $0x134] ss:$8 sps:$4 sm:$0xff]   ;;  %v1449_v17 = vld [vmem:[%s1784_s13 + $0x130] ss:$8 sps:$4 sm:$0xff]   ;;  %v1452_v19 = vld [vmem:[%s1784_s13 + $0x144] ss:$8 sps:$4 sm:$0xff]  }
  0x62   : > { %999 = vmatpush1.bf16.msra.mxu1 %v1436_v8  ;;  %v1454_v20 = vld [vmem:[%s1784_s13 + $0x40] ss:$8 sps:$4 sm:$0xff]   ;;  %v1456_v22 = vld [vmem:[%s1784_s13 + $0x54] ss:$8 sps:$4 sm:$0xff]   ;;  %v1460_v24 = vld [vmem:[%s1784_s13 + $0x50] ss:$8 sps:$4 sm:$0xff]  }
  0x63   : > { %1042 = vmatpush1.bf16.msra.mxu0 %v1437_v9  ;;  %1000 = vmatprep.subr.bf16.mxu1 %v1438_v10  ;;  %v1455_v21 = vld [vmem:[%s1784_s13 + $0x140] ss:$8 sps:$4 sm:$0xff]   ;;  %v1458_v23 = vld [vmem:[%s1784_s13 + $0x154] ss:$8 sps:$4 sm:$0xff]   ;;  %v1461_v25 = vld [vmem:[%s1784_s13 + $0x150] ss:$8 sps:$4 sm:$0xff]  }
  0x64   : > { %1043 = vmatprep.subr.bf16.mxu0 %v1440_v11  ;;  %v1462_v26 = vld [vmem:[%s1784_s13 + $0x64] ss:$8 sps:$4 sm:$0xff]   ;;  %v1466_v28 = vld [vmem:[%s1784_s13 + $0x60] ss:$8 sps:$4 sm:$0xff]   ;;  %v1468_v30 = vld [vmem:[%s1784_s13 + $0x74] ss:$8 sps:$4 sm:$0xff]  }
  0x65   : > { %v1464_v27 = vld [vmem:[%s1784_s13 + $0x164] ss:$8 sps:$4 sm:$0xff]   ;;  %v1467_v29 = vld [vmem:[%s1784_s13 + $0x160] ss:$8 sps:$4 sm:$0xff]   ;;  %v1470_v31 = vld [vmem:[%s1784_s13 + $0x174] ss:$8 sps:$4 sm:$0xff]  }
  0x66   : > { %1001 = vmatpush1.bf16.msra.mxu1 %v1442_v12  ;;  %v1472_v32 = vld [vmem:[%s1784_s13 + $0x70] ss:$8 sps:$4 sm:$0xff]   ;;  %v1474_v34 = vld [vmem:[%s1784_s13 + $0x84] ss:$8 sps:$4 sm:$0xff]   ;;  %v1478_v36 = vld [vmem:[%s1784_s13 + $0x80] ss:$8 sps:$4 sm:$0xff]  }
  0x67   : > { %1044 = vmatpush1.bf16.msra.mxu0 %v1443_v13  ;;  %1002 = vmatprep.subr.bf16.mxu1 %v1444_v14  ;;  %v1473_v33 = vld [vmem:[%s1784_s13 + $0x170] ss:$8 sps:$4 sm:$0xff]   ;;  %v1476_v35 = vld [vmem:[%s1784_s13 + $0x184] ss:$8 sps:$4 sm:$0xff]   ;;  %v1479_v37 = vld [vmem:[%s1784_s13 + $0x180] ss:$8 sps:$4 sm:$0xff]  }
  0x68   : > { %1045 = vmatprep.subr.bf16.mxu0 %v1446_v15  ;;  %v1480_v38 = vld [vmem:[%s1784_s13 + $0x94] ss:$8 sps:$4 sm:$0xff]   ;;  %v1484_v40 = vld [vmem:[%s1784_s13 + $0x90] ss:$8 sps:$4 sm:$0xff]   ;;  %v1486_v42 = vld [vmem:[%s1784_s13 + $0xa4] ss:$8 sps:$4 sm:$0xff]  }
  0x69   : > { %v1482_v39 = vld [vmem:[%s1784_s13 + $0x194] ss:$8 sps:$4 sm:$0xff]   ;;  %v1485_v41 = vld [vmem:[%s1784_s13 + $0x190] ss:$8 sps:$4 sm:$0xff]   ;;  %v1488_v43 = vld [vmem:[%s1784_s13 + $0x1a4] ss:$8 sps:$4 sm:$0xff]  }
  0x6a   : > { %1003 = vmatpush1.bf16.msra.mxu1 %v1448_v16  ;;  %v1490_v44 = vld [vmem:[%s1784_s13 + $0xa0] ss:$8 sps:$4 sm:$0xff]   ;;  %v1492_v46 = vld [vmem:[%s1784_s13 + $0xb4] ss:$8 sps:$4 sm:$0xff]   ;;  %v1496_v48 = vld [vmem:[%s1784_s13 + $0xb0] ss:$8 sps:$4 sm:$0xff]  }
  0x6b   : > { %1046 = vmatpush1.bf16.msra.mxu0 %v1449_v17  ;;  %1004 = vmatprep.subr.bf16.mxu1 %v1450_v18  ;;  %v1491_v45 = vld [vmem:[%s1784_s13 + $0x1a0] ss:$8 sps:$4 sm:$0xff]   ;;  %v1494_v47 = vld [vmem:[%s1784_s13 + $0x1b4] ss:$8 sps:$4 sm:$0xff]   ;;  %v1497_v49 = vld [vmem:[%s1784_s13 + $0x1b0] ss:$8 sps:$4 sm:$0xff]  }
  0x6c   : > { %1047 = vmatprep.subr.bf16.mxu0 %v1452_v19  ;;  %v1498_v50 = vld [vmem:[%s1784_s13 + $0xc4] ss:$8 sps:$4 sm:$0xff]   ;;  %v1502_v52 = vld [vmem:[%s1784_s13 + $0xc0] ss:$8 sps:$4 sm:$0xff]   ;;  %v1504_v54 = vld [vmem:[%s1784_s13 + $0xd4] ss:$8 sps:$4 sm:$0xff]  }
  0x6d   : > { %v1500_v51 = vld [vmem:[%s1784_s13 + $0x1c4] ss:$8 sps:$4 sm:$0xff]   ;;  %v1503_v53 = vld [vmem:[%s1784_s13 + $0x1c0] ss:$8 sps:$4 sm:$0xff]   ;;  %v1506_v55 = vld [vmem:[%s1784_s13 + $0x1d4] ss:$8 sps:$4 sm:$0xff]  }
  0x6e   : > { %1005 = vmatpush1.bf16.msra.mxu1 %v1454_v20  ;;  %v1508_v56 = vld [vmem:[%s1784_s13 + $0xd0] ss:$8 sps:$4 sm:$0xff]   ;;  %v1510_v58 = vld [vmem:[%s1784_s13 + $0xe4] ss:$8 sps:$4 sm:$0xff]   ;;  %v1514_v60 = vld [vmem:[%s1784_s13 + $0xe0] ss:$8 sps:$4 sm:$0xff]  }
  0x6f   : > { %1048 = vmatpush1.bf16.msra.mxu0 %v1455_v21  ;;  %1006 = vmatprep.subr.bf16.mxu1 %v1456_v22  ;;  %v1509_v57 = vld [vmem:[%s1784_s13 + $0x1d0] ss:$8 sps:$4 sm:$0xff]   ;;  %v1512_v59 = vld [vmem:[%s1784_s13 + $0x1e4] ss:$8 sps:$4 sm:$0xff]   ;;  %v1515_v61 = vld [vmem:[%s1784_s13 + $0x1e0] ss:$8 sps:$4 sm:$0xff]  }
  0x70   : > { %1049 = vmatprep.subr.bf16.mxu0 %v1458_v23  ;;  %v1516_v62 = vld [vmem:[%s1784_s13 + $0xf4] ss:$8 sps:$4 sm:$0xff]   ;;  %v1520_v0 = vld [vmem:[%s1784_s13 + $0xf0] ss:$8 sps:$4 sm:$0xff]   ;;  %s1899_s26 = smov (!%p577_p11, %s1301_s26), 7  ;;  %v1085_v5 = vshrl.u32 %v1084_v4, 7 }
  0x71   : > { %v1518_v63 = vld [vmem:[%s1784_s13 + $0x1f4] ss:$8 sps:$4 sm:$0xff]   ;;  %v1521_v1 = vld [vmem:[%s1784_s13 + $0x1f0] ss:$8 sps:$4 sm:$0xff]   ;;  %s579_s29 = scalar_lea.vmem %s1888_s2, %s1899_s26  ;;  %s584_s6 = scalar_lea.vmem %s1889_s3, %s1899_s26 }
  0x72   : > { %1007 = vmatpush1.bf16.msra.mxu1 %v1460_v24  ;;  %v1522_v2 = vld [vmem:[%s1886_s0] ss:$16 sps:$4 sm:$0xff]   ;;  %v1525_v3 = vld [vmem:[%s1886_s0 + $0x8] ss:$16 sps:$4 sm:$0xff]   ;;  %v1086_v6 = vsub.s32 0, %v1085_v5  ;;  %v1090_v8 = vsub.s32 1, %v1085_v5 }
  0x73   : > { %1050 = vmatpush1.bf16.msra.mxu0 %v1461_v25  ;;  %1008 = vmatprep.subr.bf16.mxu1 %v1462_v26  ;;  %v1082_v7 = vld [vmem:[%s579_s29] sm:$0x3]  ;;  %s1300_s8 = sshll.u32 %s520_s7, 4  ;;  %s1381_s10 = sshll.u32 (%p1628_p6), %s1558_s17, 3 }
  0x74   : > { %1051 = vmatprep.subr.bf16.mxu0 %v1464_v27  ;;  %v1098_v9 = vld [vmem:[%s584_s6] sm:$0x3]  ;;  %v1087_v10 = vrot.slane %v1082_v7, %v1086_v6  ;;  %v1091_v13 = vrot.slane %v1082_v7, %v1090_v8  ;;  %s561_s9 = scalar_lea.vmem [#allocation3], %s1300_s8  ;;  %s1140_s11 = scalar_lea.vmem (%p1628_p6), %s1890_s4, %s1381_s10 }
  0x75   : > { %v1103_v15 = vrot.slane %v1098_v9, %v1086_v6  ;;  %v1107_v19 = vrot.slane %v1098_v9, %v1090_v8 }
  0x76   : > { %1009 = vmatpush1.bf16.msra.mxu1 %v1466_v28 }
  0x77   : > { %1052 = vmatpush1.bf16.msra.mxu0 %v1467_v29  ;;  %1010 = vmatprep.subr.bf16.mxu1 %v1468_v30 }
  0x78   : > { %1053 = vmatprep.subr.bf16.mxu0 %v1470_v31 }
  0x7a   : > { %1011 = vmatpush1.bf16.msra.mxu1 %v1472_v32 }
  0x7b   : > { %1054 = vmatpush1.bf16.msra.mxu0 %v1473_v33  ;;  %1012 = vmatprep.subr.bf16.mxu1 %v1474_v34 }
  0x7c   : > { %1055 = vmatprep.subr.bf16.mxu0 %v1476_v35 }
  0x7e   : > { %1013 = vmatpush1.bf16.msra.mxu1 %v1478_v36 }
  0x7f   : > { %1056 = vmatpush1.bf16.msra.mxu0 %v1479_v37  ;;  %1014 = vmatprep.subr.bf16.mxu1 %v1480_v38 }
  0x80   : > { %1057 = vmatprep.subr.bf16.mxu0 %v1482_v39 }
  0x82   : > { %1015 = vmatpush1.bf16.msra.mxu1 %v1484_v40 }
  0x83   : > { %1058 = vmatpush1.bf16.msra.mxu0 %v1485_v41  ;;  %1016 = vmatprep.subr.bf16.mxu1 %v1486_v42 }
  0x84   : > { %1059 = vmatprep.subr.bf16.mxu0 %v1488_v43 }
  0x86   : > { %1017 = vmatpush1.bf16.msra.mxu1 %v1490_v44 }
  0x87   : > { %1060 = vmatpush1.bf16.msra.mxu0 %v1491_v45  ;;  %1018 = vmatprep.subr.bf16.mxu1 %v1492_v46 }
  0x88   : > { %1061 = vmatprep.subr.bf16.mxu0 %v1494_v47 }
  0x8a   : > { %1019 = vmatpush1.bf16.msra.mxu1 %v1496_v48 }
  0x8b   : > { %1062 = vmatpush1.bf16.msra.mxu0 %v1497_v49  ;;  %1020 = vmatprep.subr.bf16.mxu1 %v1498_v50 }
  0x8c   : > { %1063 = vmatprep.subr.bf16.mxu0 %v1500_v51 }
  0x8e   : > { %1021 = vmatpush1.bf16.msra.mxu1 %v1502_v52 }
  0x8f   : > { %1064 = vmatpush1.bf16.msra.mxu0 %v1503_v53  ;;  %1022 = vmatprep.subr.bf16.mxu1 %v1504_v54 }
  0x90   : > { %1065 = vmatprep.subr.bf16.mxu0 %v1506_v55 }
  0x92   : > { %1023 = vmatpush1.bf16.msra.mxu1 %v1508_v56 }
  0x93   : > { %1066 = vmatpush1.bf16.msra.mxu0 %v1509_v57  ;;  %1024 = vmatprep.subr.bf16.mxu1 %v1510_v58 }
  0x94   : > { %1067 = vmatprep.subr.bf16.mxu0 %v1512_v59 }
  0x96   : > { %1025 = vmatpush1.bf16.msra.mxu1 %v1514_v60 }
  0x97   : > { %1068 = vmatpush1.bf16.msra.mxu0 %v1515_v61  ;;  %1026 = vmatprep.subr.bf16.mxu1 %v1516_v62 }
  0x98   : > { %1069 = vmatprep.subr.bf16.mxu0 %v1518_v63 }
  0x9a   : > { %1027 = vmatpush1.bf16.msra.mxu1 %v1520_v0 }
  0x9b   : > { %1070 = vmatpush1.bf16.msra.mxu0 %v1521_v1 }
  0x9d   : > { %1029 = vmatmul.mubr.bf16.vlgmr.msra.gmra.mrb[0].mxu1 %v1522_v2 }
  0x9e   : > { %1072 = vmatmul.mubr.bf16.vlgmr.msra.gmra.mrb[0].mxu0 %v1525_v3 }
 0x170   : > { %v1030_v11 = vpop.f32.mrb[0].mxu1 }
 0x171   : > { %v1073_v12 = vpop.f32.mrb[0].mxu0  ;;  %v1032_v16 = vpop.f32.mrb[1].mxu1 }
 0x172   : > { %v1074_v14 = vadd.f32 %v1073_v12, %v1030_v11  ;;  %v1075_v17 = vpop.f32.mrb[1].mxu0  ;;  %v1034_v20 = vpop.f32.mrb[2].mxu1 }
 0x173   : > { %v1076_v18 = vadd.f32 %v1075_v17, %v1032_v16  ;;  %v1077_v21 = vpop.f32.mrb[2].mxu0  ;;  %v1036_v24 = vpop.f32.mrb[3].mxu1 }
 0x174   : > { %v1094_v22 = vmul.f32 %v1087_v10, %v1074_v14  ;;  %v1078_v23 = vadd.f32 %v1077_v21, %v1034_v20  ;;  %v1079_v25 = vpop.f32.mrb[3].mxu0 }
 0x175   : > { %v1095_v26 = vmul.f32 %v1091_v13, %v1076_v18  ;;  %v1080_v27 = vadd.f32 %v1079_v25, %v1036_v24 }
 0x176   : > { %v1110_v28 = vadd.f32 %v1103_v15, %v1094_v22  ;;  %v1096_v29 = vmul.f32 %v1087_v10, %v1078_v23 }
 0x177   : > { %v1111_v30 = vadd.f32 %v1107_v19, %v1095_v26  ;;  %v1097_v31 = vmul.f32 %v1091_v13, %v1080_v27  ;;  %1134 = sbr.rel (!%p1628_p6) target bundleno = 390 (0x186), region = 78 }
 0x178   : > { %v1112_v32 = vadd.f32 %v1103_v15, %v1096_v29 }
 0x179   : > { %v1379_v33 = vpack.c.bf16 %v1111_v30, %v1110_v28  ;;  %v1113_v34 = vadd.f32 %v1107_v19, %v1097_v31 }
 0x17b   : > { %1126 = vst [vmem:[%s561_s9] sm:$0xff] %v1379_v33  ;;  %v1380_v35 = vpack.c.bf16 %v1113_v34, %v1112_v32 }
 0x17d   : > { %1127 = vst [vmem:[%s561_s9 + $0x8] sm:$0xff] %v1380_v35 }
 0x182   : > { %v1170_v36 = vld [vmem:[%s561_s9] sm:$0xff] }
 0x183   : > { %1171 = vst [vmem:[%s1140_s11] sm:$0xff] %v1170_v36 }
 0x184   : > { %v1172_v37 = vld [vmem:[%s561_s9 + $0x8] sm:$0xff] }
 0x185   : > { %1173 = vst [vmem:[%s1140_s11 + $0x20] sm:$0xff] %v1172_v37 }
 0x186 PF: > { %s14_s19 = sadd.s32 1, %s1566_s19   ;;  %s1892_s15 = smov %s1554_s16 }
 0x187   : > { %p11_p12 = scmp.ge.s32.totalorder %s14_s19, 6   ;;  %s1893_s16 = smov %s1633_s25 }
 0x188   : > { %s1894_s17 = smov %s1562_s18  ;;  %s1895_s18 = smov %s1897_s20 }
 0x189   :  { %13 = sbr.rel (!%p11_p12) target bundleno = 3 (0x3), region = 156 }

// kernel: resnet50_forward.84
= control target key start
LH: loop header
LB: loop body
LE: loop exit
PB: predicated region body
PF: predicated region fallthrough
CT: control target
= control target key end

     0   :  { %s1267_s18 = smov 0   ;;  %s1269_s19 = smov 0   ;;  %s1475_s0 = inlined_call_operand.vmem [shape: bf16[16,256], index: 0, kind: input, shape index: {}]   ;;  %s1476_s1 = inlined_call_operand.vmem [shape: bf16[256,1024], index: 1, kind: input, shape index: {}]   ;;  %s1477_s2 = inlined_call_operand.vmem [shape: f32[1,1024], index: 2, kind: input, shape index: {}]   ;;  %s1478_s3 = inlined_call_operand.vmem [shape: f32[1,1024], index: 3, kind: input, shape index: {}]   ;;  %s1479_s4 = inlined_call_operand.vmem [shape: bf16[16,1024], index: 4, kind: input, shape index: {}]   ;;  %s1480_s5 = inlined_call_operand.vmem [shape: bf16[16,1024], index: 5, kind: output, shape index: {}]  }
   0x1   :  { %s1271_s20 = smov 0   ;;  %s1273_s21 = smov 0  }
   0x2   :  { %s1275_s22 = smov 0  }
   0x3 LB: > { %s30_s23 = sadd.s32 1, %s1231_s21  ;;  %s1043_s24 = sadd.s32 4294967295, %s1235_s22   ;;  %s1235_s22 = sphi %s1275_s22, %s15_s22   ;;  %s1231_s21 = sphi %s1273_s21, %s1486_s21   ;;  %s1227_s20 = sphi %s1271_s20, %s1485_s20   ;;  %s1223_s19 = sphi %s1269_s19, %s1484_s19   ;;  %s1219_s18 = sphi %s1267_s18, %s1483_s18  }
   0x4   : > { %p32_p0 = scmp.ge.s32.totalorder %s30_s23, 4  ;;  %p78_p1 = scmp.ne.s32.totalorder %s1223_s19, %s1219_s18 }
   0x5   : > { %p79_p2 = scmp.eq.s32.totalorder %s1235_s22, 0  ;;  %p190_p4 = scmp.eq.s32.totalorder %s1043_s24, 3 }
   0x6   : > { %s1488_s23 = smov (%p32_p0, %s30_s23), 0  ;;  %s71_s27 = sadd.s32 1, %s1223_s19 }
   0x7   : > { %p1299_p3 = por %p79_p2, %p78_p1  ;;  %s67_s26 = ssub.s32 %s1231_s21, %s1488_s23 }
   0x8   : > { %p69_p5 = scmp.eq.s32.totalorder %s67_s26, 0  ;;  %p1306_p6 = por %p190_p4, %p78_p1 }
   0x9   : > { %p1047_p7 = scmp.ge.s32.totalorder %s1235_s22, 4 }
   0xa   : > { %s1311_s29 = scalar_select %p69_p5, %s1223_s19, %s71_s27  }
   0xb   : > { %227 = sbr.rel (%p1047_p7) target bundleno = 61 (0x3d), region = 20 }
  0x12   : > { %230 = sbr.rel (!%p1299_p3) target bundleno = 54 (0x36), region = 24  ;;  %s232_s30 = sand.u32 (%p1299_p3), 1, %s1223_s19  }
  0x13   : > { %s1101_s6 = sshll.u32 (%p1299_p3), %s1231_s21, 3  ;;  %s1048_s7 = sshll.u32 (%p1299_p3), %s232_s30, 8 }
  0x14   : > { %s1321_s10 = scalar_lea.vmem (%p1299_p3), %s1476_s1, %s1101_s6  ;;  %s1326_s11 = scalar_lea.vmem (%p1299_p3), [#allocation2], %s1048_s7 }
  0x15   : > { %v330_v0 = vld [vmem:[%s1321_s10] sm:$0xff] (%p1299_p3) }
  0x16   : > { %v332_v1 = vld [vmem:[%s1321_s10 + $0x20] sm:$0xff] (%p1299_p3)  ;;  %331 = vst [vmem:[%s1326_s11] sm:$0xff] (%p1299_p3), %v330_v0 }
  0x17   : > { %v334_v2 = vld [vmem:[%s1321_s10 + $0x40] sm:$0xff] (%p1299_p3)  ;;  %333 = vst [vmem:[%s1326_s11 + $0x8] sm:$0xff] (%p1299_p3), %v332_v1 }
  0x18   : > { %335 = vst [vmem:[%s1326_s11 + $0x10] sm:$0xff] (%p1299_p3), %v334_v2  ;;  %v336_v3 = vld [vmem:[%s1321_s10 + $0x60] sm:$0xff] (%p1299_p3) }
  0x19   : > { %v338_v4 = vld [vmem:[%s1321_s10 + $0x80] sm:$0xff]  ;;  %337 = vst [vmem:[%s1326_s11 + $0x18] sm:$0xff] %v336_v3 }
  0x1a   : > { %v340_v5 = vld [vmem:[%s1321_s10 + $0xa0] sm:$0xff]  ;;  %339 = vst [vmem:[%s1326_s11 + $0x20] sm:$0xff] %v338_v4 }
  0x1b   : > { %341 = vst [vmem:[%s1326_s11 + $0x28] sm:$0xff] %v340_v5  ;;  %v342_v6 = vld [vmem:[%s1321_s10 + $0xc0] sm:$0xff] }
  0x1c   : > { %v344_v7 = vld [vmem:[%s1321_s10 + $0xe0] sm:$0xff]  ;;  %343 = vst [vmem:[%s1326_s11 + $0x30] sm:$0xff] %v342_v6 }
  0x1d   : > { %v346_v8 = vld [vmem:[%s1321_s10 + $0x100] sm:$0xff]  ;;  %345 = vst [vmem:[%s1326_s11 + $0x38] sm:$0xff] %v344_v7 }
  0x1e   : > { %347 = vst [vmem:[%s1326_s11 + $0x40] sm:$0xff] %v346_v8  ;;  %v348_v9 = vld [vmem:[%s1321_s10 + $0x120] sm:$0xff] }
  0x1f   : > { %v350_v10 = vld [vmem:[%s1321_s10 + $0x140] sm:$0xff]  ;;  %349 = vst [vmem:[%s1326_s11 + $0x48] sm:$0xff] %v348_v9 }
  0x20   : > { %v352_v11 = vld [vmem:[%s1321_s10 + $0x160] sm:$0xff]  ;;  %351 = vst [vmem:[%s1326_s11 + $0x50] sm:$0xff] %v350_v10 }
  0x21   : > { %353 = vst [vmem:[%s1326_s11 + $0x58] sm:$0xff] %v352_v11  ;;  %v354_v12 = vld [vmem:[%s1321_s10 + $0x180] sm:$0xff] }
  0x22   : > { %v356_v13 = vld [vmem:[%s1321_s10 + $0x1a0] sm:$0xff]  ;;  %355 = vst [vmem:[%s1326_s11 + $0x60] sm:$0xff] %v354_v12 }
  0x23   : > { %v358_v14 = vld [vmem:[%s1321_s10 + $0x1c0] sm:$0xff]  ;;  %357 = vst [vmem:[%s1326_s11 + $0x68] sm:$0xff] %v356_v13 }
  0x24   : > { %359 = vst [vmem:[%s1326_s11 + $0x70] sm:$0xff] %v358_v14  ;;  %v360_v15 = vld [vmem:[%s1321_s10 + $0x1e0] sm:$0xff] }
  0x25   : > { %v362_v16 = vld [vmem:[%s1321_s10 + $0x200] sm:$0xff]  ;;  %361 = vst [vmem:[%s1326_s11 + $0x78] sm:$0xff] %v360_v15 }
  0x26   : > { %v364_v17 = vld [vmem:[%s1321_s10 + $0x220] sm:$0xff]  ;;  %363 = vst [vmem:[%s1326_s11 + $0x80] sm:$0xff] %v362_v16 }
  0x27   : > { %365 = vst [vmem:[%s1326_s11 + $0x88] sm:$0xff] %v364_v17  ;;  %v366_v18 = vld [vmem:[%s1321_s10 + $0x240] sm:$0xff] }
  0x28   : > { %v368_v19 = vld [vmem:[%s1321_s10 + $0x260] sm:$0xff]  ;;  %367 = vst [vmem:[%s1326_s11 + $0x90] sm:$0xff] %v366_v18 }
  0x29   : > { %v370_v20 = vld [vmem:[%s1321_s10 + $0x280] sm:$0xff]  ;;  %369 = vst [vmem:[%s1326_s11 + $0x98] sm:$0xff] %v368_v19 }
  0x2a   : > { %371 = vst [vmem:[%s1326_s11 + $0xa0] sm:$0xff] %v370_v20  ;;  %v372_v21 = vld [vmem:[%s1321_s10 + $0x2a0] sm:$0xff] }
  0x2b   : > { %v374_v22 = vld [vmem:[%s1321_s10 + $0x2c0] sm:$0xff]  ;;  %373 = vst [vmem:[%s1326_s11 + $0xa8] sm:$0xff] %v372_v21 }
  0x2c   : > { %v376_v23 = vld [vmem:[%s1321_s10 + $0x2e0] sm:$0xff]  ;;  %375 = vst [vmem:[%s1326_s11 + $0xb0] sm:$0xff] %v374_v22 }
  0x2d   : > { %377 = vst [vmem:[%s1326_s11 + $0xb8] sm:$0xff] %v376_v23  ;;  %v378_v24 = vld [vmem:[%s1321_s10 + $0x300] sm:$0xff] }
  0x2e   : > { %v380_v25 = vld [vmem:[%s1321_s10 + $0x320] sm:$0xff]  ;;  %379 = vst [vmem:[%s1326_s11 + $0xc0] sm:$0xff] %v378_v24 }
  0x2f   : > { %v382_v26 = vld [vmem:[%s1321_s10 + $0x340] sm:$0xff]  ;;  %381 = vst [vmem:[%s1326_s11 + $0xc8] sm:$0xff] %v380_v25 }
  0x30   : > { %383 = vst [vmem:[%s1326_s11 + $0xd0] sm:$0xff] %v382_v26  ;;  %v384_v27 = vld [vmem:[%s1321_s10 + $0x360] sm:$0xff] }
  0x31   : > { %v386_v28 = vld [vmem:[%s1321_s10 + $0x380] sm:$0xff]  ;;  %385 = vst [vmem:[%s1326_s11 + $0xd8] sm:$0xff] %v384_v27 }
  0x32   : > { %v388_v29 = vld [vmem:[%s1321_s10 + $0x3a0] sm:$0xff]  ;;  %387 = vst [vmem:[%s1326_s11 + $0xe0] sm:$0xff] %v386_v28 }
  0x33   : > { %389 = vst [vmem:[%s1326_s11 + $0xe8] sm:$0xff] %v388_v29  ;;  %v390_v30 = vld [vmem:[%s1321_s10 + $0x3c0] sm:$0xff] }
  0x34   : > { %v392_v31 = vld [vmem:[%s1321_s10 + $0x3e0] sm:$0xff]  ;;  %391 = vst [vmem:[%s1326_s11 + $0xf0] sm:$0xff] %v390_v30 }
  0x35   : > { %393 = vst [vmem:[%s1326_s11 + $0xf8] sm:$0xff] %v392_v31 }
  0x36 PF: > { %415 = sbr.rel (!%p1299_p3) target bundleno = 61 (0x3d), region = 70  ;;  %s417_s12 = sand.u32 (%p1299_p3), 1, %s1223_s19  }
  0x37   : > { %s1102_s13 = sshll.u32 (%p1299_p3), %s1231_s21, 3  ;;  %s1051_s14 = sshll.u32 (%p1299_p3), %s417_s12, 4 }
  0x38   : > { %s425_s17 = scalar_lea.vmem (%p1299_p3), %s1479_s4, %s1102_s13  ;;  %s419_s24 = scalar_lea.vmem (%p1299_p3), [#allocation3], %s1051_s14 }
  0x39   : > { %v455_v32 = vld [vmem:[%s425_s17] sm:$0xff] (%p1299_p3) }
  0x3a   : > { %v457_v33 = vld [vmem:[%s425_s17 + $0x20] sm:$0xff] (%p1299_p3)  ;;  %456 = vst [vmem:[%s419_s24] sm:$0xff] (%p1299_p3), %v455_v32 }
  0x3b   : > { %458 = vst [vmem:[%s419_s24 + $0x8] sm:$0xff] (%p1299_p3), %v457_v33 }
  0x3d PF: > { %p1054_p8 = scmp.ge.s32.totalorder %s1235_s22, 1  ;;  %p463_p9 = scmp.lt.s32.totalorder %s1235_s22, 5 }
  0x3f   : > { %p464_p10 = pnand %p1054_p8, %p463_p9 }
  0x40   : > { %s470_s25 = sand.u32 (!%p464_p10), 1, %s1219_s18   ;;  %v1196_v34 = vld [vmem:[%s1475_s0 + $0x4] ss:$8 sps:$4 sm:$0xff] (!%p464_p10)   ;;  %v1194_v3 = vld [vmem:[%s1475_s0] ss:$8 sps:$4 sm:$0xff] (!%p464_p10)   ;;  %s1058_s9 = sshll.u32 (!%p464_p10), %s1227_s20, 1  ;;  %v802_v4 = vlaneseq (!%p464_p10) }
  0x41   : > { %467 = sbr.rel (%p464_p10) target bundleno = 366 (0x16e), region = 108  ;;  %s1055_s26 = sshll.u32 (!%p464_p10), %s470_s25, 8  ;;  %789 = vmatprep.mubr.bf16.mxu0 (!%p464_p10), %v1196_v34 }
  0x42   : > { %s1404_s6 = scalar_lea.vmem (!%p464_p10), [#allocation2], %s1055_s26  ;;  %p540_p11 = scmp.lt.s32.totalorder (!%p464_p10), %s1058_s9, 7  ;;  %v803_v5 = vshrl.u32 (!%p464_p10), %v802_v4, 7 }
  0x43   : > { %v1146_v35 = vld [vmem:[%s1404_s6 + $0x4] ss:$8 sps:$4 sm:$0xff] (!%p464_p10)   ;;  %v1148_v36 = vld [vmem:[%s1404_s6] ss:$8 sps:$4 sm:$0xff] (!%p464_p10)   ;;  %v1149_v37 = vld [vmem:[%s1404_s6 + $0x14] ss:$8 sps:$4 sm:$0xff] (!%p464_p10)  }
  0x44   : > { %757 = vmatprep.subr.bf16.mxu0 (!%p464_p10), %v1146_v35  ;;  %v1151_v38 = vld [vmem:[%s1404_s6 + $0x10] ss:$8 sps:$4 sm:$0xff] (!%p464_p10)   ;;  %v1152_v39 = vld [vmem:[%s1404_s6 + $0x24] ss:$8 sps:$4 sm:$0xff] (!%p464_p10)   ;;  %v1154_v40 = vld [vmem:[%s1404_s6 + $0x20] ss:$8 sps:$4 sm:$0xff] (!%p464_p10)  }
  0x45   : > { %758 = vmatpush1.bf16.msra.mxu0 (!%p464_p10), %v1148_v36  ;;  %v1155_v41 = vld [vmem:[%s1404_s6 + $0x34] ss:$8 sps:$4 sm:$0xff] (!%p464_p10)   ;;  %v1157_v42 = vld [vmem:[%s1404_s6 + $0x30] ss:$8 sps:$4 sm:$0xff] (!%p464_p10)   ;;  %v1158_v43 = vld [vmem:[%s1404_s6 + $0x44] ss:$8 sps:$4 sm:$0xff] (!%p464_p10)  }
  0x46   : > { %759 = vmatprep.subr.bf16.mxu0 (!%p464_p10), %v1149_v37  ;;  %v1160_v44 = vld [vmem:[%s1404_s6 + $0x40] ss:$8 sps:$4 sm:$0xff] (!%p464_p10)   ;;  %v1161_v45 = vld [vmem:[%s1404_s6 + $0x54] ss:$8 sps:$4 sm:$0xff] (!%p464_p10)   ;;  %v1163_v46 = vld [vmem:[%s1404_s6 + $0x50] ss:$8 sps:$4 sm:$0xff] (!%p464_p10)  }
  0x47   : > { %v1164_v47 = vld [vmem:[%s1404_s6 + $0x64] ss:$8 sps:$4 sm:$0xff] (!%p464_p10)   ;;  %v1166_v48 = vld [vmem:[%s1404_s6 + $0x60] ss:$8 sps:$4 sm:$0xff] (!%p464_p10)   ;;  %v1167_v49 = vld [vmem:[%s1404_s6 + $0x74] ss:$8 sps:$4 sm:$0xff] (!%p464_p10)  }
  0x48   : > { %v1169_v50 = vld [vmem:[%s1404_s6 + $0x70] ss:$8 sps:$4 sm:$0xff]   ;;  %v1170_v51 = vld [vmem:[%s1404_s6 + $0x84] ss:$8 sps:$4 sm:$0xff]   ;;  %v1172_v52 = vld [vmem:[%s1404_s6 + $0x80] ss:$8 sps:$4 sm:$0xff]  }
  0x49   : > { %760 = vmatpush1.bf16.msra.mxu0 %v1151_v38  ;;  %v1173_v53 = vld [vmem:[%s1404_s6 + $0x94] ss:$8 sps:$4 sm:$0xff]   ;;  %v1175_v54 = vld [vmem:[%s1404_s6 + $0x90] ss:$8 sps:$4 sm:$0xff]   ;;  %v1176_v55 = vld [vmem:[%s1404_s6 + $0xa4] ss:$8 sps:$4 sm:$0xff]  }
  0x4a   : > { %761 = vmatprep.subr.bf16.mxu0 %v1152_v39  ;;  %v1178_v56 = vld [vmem:[%s1404_s6 + $0xa0] ss:$8 sps:$4 sm:$0xff]   ;;  %v1179_v57 = vld [vmem:[%s1404_s6 + $0xb4] ss:$8 sps:$4 sm:$0xff]   ;;  %v1181_v58 = vld [vmem:[%s1404_s6 + $0xb0] ss:$8 sps:$4 sm:$0xff]  }
  0x4b   : > { %v1182_v59 = vld [vmem:[%s1404_s6 + $0xc4] ss:$8 sps:$4 sm:$0xff]   ;;  %v1184_v60 = vld [vmem:[%s1404_s6 + $0xc0] ss:$8 sps:$4 sm:$0xff]   ;;  %v1185_v61 = vld [vmem:[%s1404_s6 + $0xd4] ss:$8 sps:$4 sm:$0xff]  }
  0x4c   : > { %v1187_v62 = vld [vmem:[%s1404_s6 + $0xd0] ss:$8 sps:$4 sm:$0xff]   ;;  %v1188_v63 = vld [vmem:[%s1404_s6 + $0xe4] ss:$8 sps:$4 sm:$0xff]   ;;  %v1190_v0 = vld [vmem:[%s1404_s6 + $0xe0] ss:$8 sps:$4 sm:$0xff]  }
  0x4d   : > { %762 = vmatpush1.bf16.msra.mxu0 %v1154_v40  ;;  %v1191_v1 = vld [vmem:[%s1404_s6 + $0xf4] ss:$8 sps:$4 sm:$0xff]   ;;  %v1193_v2 = vld [vmem:[%s1404_s6 + $0xf0] ss:$8 sps:$4 sm:$0xff]   ;;  %s1490_s9 = smov (!%p540_p11, %s1058_s9), 7  ;;  %s1447_s13 = sshll.u32 %s470_s25, 4 }
  0x4e   : > { %763 = vmatprep.subr.bf16.mxu0 %v1155_v41  ;;  %s542_s12 = scalar_lea.vmem %s1477_s2, %s1490_s9  ;;  %s547_s16 = scalar_lea.vmem %s1478_s3, %s1490_s9  ;;  %v804_v6 = vsub.s32 0, %v803_v5  ;;  %v808_v8 = vsub.s32 1, %v803_v5 }
  0x4f   : > { %v800_v7 = vld [vmem:[%s542_s12] sm:$0x3]  ;;  %s479_s17 = scalar_lea.vmem [#allocation3], %s1447_s13  ;;  %s524_s18 = scalar_lea.vmem [#allocation4], %s1447_s13 }
  0x50   : > { %v816_v9 = vld [vmem:[%s547_s16] sm:$0x3]  ;;  %v805_v10 = vrot.slane %v800_v7, %v804_v6  ;;  %v809_v12 = vrot.slane %v800_v7, %v808_v8  ;;  %v833_v16 = vld [vmem:[%s479_s17 + $0x8] sm:$0xff]  ;;  %s1105_s24 = sshll.u32 (%p1306_p6), %s1227_s20, 3 }
  0x51   : > { %764 = vmatpush1.bf16.msra.mxu0 %v1157_v42  ;;  %v832_v11 = vld [vmem:[%s479_s17] sm:$0xff]  ;;  %v821_v13 = vrot.slane %v816_v9, %v804_v6  ;;  %v825_v15 = vrot.slane %v816_v9, %v808_v8  ;;  %v836_v25 = vunpack.c.l.bf16 %v833_v16  ;;  %v837_v29 = vunpack.c.h.bf16 %v833_v16  ;;  %s872_s27 = scalar_lea.vmem (%p1306_p6), %s1480_s5, %s1105_s24 }
  0x52   : > { %765 = vmatprep.subr.bf16.mxu0 %v1158_v43  ;;  %v834_v18 = vunpack.c.l.bf16 %v832_v11  ;;  %v835_v21 = vunpack.c.h.bf16 %v832_v11 }
  0x55   : > { %766 = vmatpush1.bf16.msra.mxu0 %v1160_v44 }
  0x56   : > { %767 = vmatprep.subr.bf16.mxu0 %v1161_v45 }
  0x59   : > { %768 = vmatpush1.bf16.msra.mxu0 %v1163_v46 }
  0x5a   : > { %769 = vmatprep.subr.bf16.mxu0 %v1164_v47 }
  0x5d   : > { %770 = vmatpush1.bf16.msra.mxu0 %v1166_v48 }
  0x5e   : > { %771 = vmatprep.subr.bf16.mxu0 %v1167_v49 }
  0x61   : > { %772 = vmatpush1.bf16.msra.mxu0 %v1169_v50 }
  0x62   : > { %773 = vmatprep.subr.bf16.mxu0 %v1170_v51 }
  0x65   : > { %774 = vmatpush1.bf16.msra.mxu0 %v1172_v52 }
  0x66   : > { %775 = vmatprep.subr.bf16.mxu0 %v1173_v53 }
  0x69   : > { %776 = vmatpush1.bf16.msra.mxu0 %v1175_v54 }
  0x6a   : > { %777 = vmatprep.subr.bf16.mxu0 %v1176_v55 }
  0x6d   : > { %778 = vmatpush1.bf16.msra.mxu0 %v1178_v56 }
  0x6e   : > { %779 = vmatprep.subr.bf16.mxu0 %v1179_v57 }
  0x71   : > { %780 = vmatpush1.bf16.msra.mxu0 %v1181_v58 }
  0x72   : > { %781 = vmatprep.subr.bf16.mxu0 %v1182_v59 }
  0x75   : > { %782 = vmatpush1.bf16.msra.mxu0 %v1184_v60 }
  0x76   : > { %783 = vmatprep.subr.bf16.mxu0 %v1185_v61 }
  0x79   : > { %784 = vmatpush1.bf16.msra.mxu0 %v1187_v62 }
  0x7a   : > { %785 = vmatprep.subr.bf16.mxu0 %v1188_v63 }
  0x7d   : > { %786 = vmatpush1.bf16.msra.mxu0 %v1190_v0 }
  0x7e   : > { %787 = vmatprep.subr.bf16.mxu0 %v1191_v1 }
  0x81   : > { %788 = vmatpush1.bf16.msra.mxu0 %v1193_v2 }
  0x84   : > { %790 = vmatmul.mubr.bf16.vlgmr.msra.gmra.mrb[0].mxu0 %v1194_v3 }
 0x157   : > { %v791_v14 = vpop.f32.mrb[0].mxu0 }
 0x158   : > { %v812_v17 = vmul.f32 %v805_v10, %v791_v14  ;;  %v793_v19 = vpop.f32.mrb[1].mxu0 }
 0x159   : > { %v813_v20 = vmul.f32 %v809_v12, %v793_v19  ;;  %v795_v22 = vpop.f32.mrb[2].mxu0 }
 0x15a   : > { %v828_v23 = vadd.f32 %v821_v13, %v812_v17  ;;  %v814_v24 = vmul.f32 %v805_v10, %v795_v22  ;;  %v797_v26 = vpop.f32.mrb[3].mxu0 }
 0x15b   : > { %v829_v27 = vadd.f32 %v825_v15, %v813_v20  ;;  %v815_v28 = vmul.f32 %v809_v12, %v797_v26 }
 0x15c   : > { %v838_v30 = vadd.f32 %v834_v18, %v828_v23  ;;  %v830_v31 = vadd.f32 %v821_v13, %v814_v24 }
 0x15d   : > { %v839_v32 = vadd.f32 %v835_v21, %v829_v27  ;;  %v831_v33 = vadd.f32 %v825_v15, %v815_v28 }
 0x15e   : > { %v842_v34 = vmax.f32 %v838_v30, 0.0  ;;  %v840_v35 = vadd.f32 %v836_v25, %v830_v31 }
 0x15f   : > { %v843_v36 = vmax.f32 %v839_v32, 0.0  ;;  %v841_v37 = vadd.f32 %v837_v29, %v831_v33  ;;  %866 = sbr.rel (!%p1306_p6) target bundleno = 366 (0x16e), region = 120 }
 0x160   : > { %v844_v38 = vmax.f32 %v840_v35, 0.0 }
 0x161   : > { %v1103_v39 = vpack.c.bf16 %v843_v36, %v842_v34  ;;  %v845_v40 = vmax.f32 %v841_v37, 0.0 }
 0x163   : > { %858 = vst [vmem:[%s524_s18] sm:$0xff] %v1103_v39  ;;  %v1104_v41 = vpack.c.bf16 %v845_v40, %v844_v38 }
 0x165   : > { %859 = vst [vmem:[%s524_s18 + $0x8] sm:$0xff] %v1104_v41 }
 0x16a   : > { %v902_v42 = vld [vmem:[%s524_s18] sm:$0xff] }
 0x16b   : > { %903 = vst [vmem:[%s872_s27] sm:$0xff] %v902_v42 }
 0x16c   : > { %v904_v43 = vld [vmem:[%s524_s18 + $0x8] sm:$0xff] }
 0x16d   : > { %905 = vst [vmem:[%s872_s27 + $0x20] sm:$0xff] %v904_v43 }
 0x16e PF: > { %s15_s22 = sadd.s32 1, %s1235_s22   ;;  %s1483_s18 = smov %s1223_s19 }
 0x16f   : > { %p12_p12 = scmp.ge.s32.totalorder %s15_s22, 6   ;;  %s1484_s19 = smov %s1311_s29 }
 0x170   : > { %s1485_s20 = smov %s1231_s21  ;;  %s1486_s21 = smov %s1488_s23 }
 0x171   :  { %14 = sbr.rel (!%p12_p12) target bundleno = 3 (0x3), region = 206 }

// kernel: resnet50_forward.85
= control target key start
LH: loop header
LB: loop body
LE: loop exit
PB: predicated region body
PF: predicated region fallthrough
CT: control target
= control target key end

     0   :  { %s1356_s15 = smov 0   ;;  %s1358_s16 = smov 0   ;;  %s1507_s0 = inlined_call_operand.vmem [shape: bf16[16,1024], index: 0, kind: input, shape index: {}]   ;;  %s1508_s1 = inlined_call_operand.vmem [shape: bf16[1024,256], index: 1, kind: input, shape index: {}]   ;;  %s1509_s2 = inlined_call_operand.vmem [shape: f32[1,256], index: 2, kind: input, shape index: {}]   ;;  %s1510_s3 = inlined_call_operand.vmem [shape: f32[1,256], index: 3, kind: input, shape index: {}]   ;;  %s1511_s4 = inlined_call_operand.vmem [shape: bf16[16,256], index: 4, kind: output, shape index: {}]  }
   0x1   :  { %s1360_s17 = smov 0   ;;  %s1362_s18 = smov 0  }
   0x2   :  { %s1364_s19 = smov 0  }
   0x3 LB: > { %s26_s20 = sadd.s32 1, %s1324_s18  ;;  %p49_p1 = scmp.ne.s32.totalorder %s1316_s16, %s1312_s15  ;;  %s1328_s19 = sphi %s1364_s19, %s14_s19   ;;  %s1324_s18 = sphi %s1362_s18, %s1515_s18   ;;  %s1320_s17 = sphi %s1360_s17, %s1514_s17   ;;  %s1316_s16 = sphi %s1358_s16, %s1513_s16   ;;  %s1312_s15 = sphi %s1356_s15, %s1512_s15  }
   0x4   : > { %p27_p0 = scmp.ge.s32.totalorder %s26_s20, 2  ;;  %p50_p2 = scmp.eq.s32.totalorder %s1328_s19, 0 }
   0x5   : > { %s42_s22 = sadd.s32 1, %s1316_s16  ;;  %p1054_p5 = scmp.ge.s32.totalorder %s1328_s19, 2 }
   0x6   : > { %s1517_s20 = smov (%p27_p0, %s26_s20), 0  ;;  %p51_p3 = por %p50_p2, %p49_p1 }
   0x7   : > { %s38_s21 = ssub.s32 %s1324_s18, %s1517_s20  ;;  %199 = sbr.rel (%p1054_p5) target bundleno = 21 (0x15), region = 24 }
   0x8   : > { %p40_p4 = scmp.eq.s32.totalorder %s38_s21, 0 }
   0xa   : > { %s1391_s23 = scalar_select %p40_p4, %s1316_s16, %s42_s22  }
   0xe   : > { %202 = sbr.rel (!%p51_p3) target bundleno = 21 (0x15), region = 28  ;;  %s204_s24 = sand.u32 (%p51_p3), 1, %s1316_s16  }
   0xf   : > { %s1139_s25 = sshll.u32 (%p51_p3), %s1324_s18, 4  ;;  %s1055_s26 = sshll.u32 (%p51_p3), %s204_s24, 5 }
  0x10   : > { %s212_s29 = scalar_lea.vmem (%p51_p3), %s1507_s0, %s1139_s25  ;;  %s206_s30 = scalar_lea.vmem (%p51_p3), [#allocation3], %s1055_s26 }
  0x11   : > { %v225_v0 = vld [vmem:[%s212_s29] sm:$0xff] (%p51_p3)  ;;  %v227_v1 = vld [vmem:[%s212_s29 + $0x8] sm:$0xff] (%p51_p3) }
  0x12   : > { %v229_v2 = vld [vmem:[%s212_s29 + $0x20] sm:$0xff] (%p51_p3)  ;;  %226 = vst [vmem:[%s206_s30] sm:$0xff] (%p51_p3), %v225_v0  ;;  %228 = vst [vmem:[%s206_s30 + $0x8] sm:$0xff] (%p51_p3), %v227_v1  ;;  %v231_v3 = vld [vmem:[%s212_s29 + $0x28] sm:$0xff] (%p51_p3) }
  0x13   : > { %230 = vst [vmem:[%s206_s30 + $0x10] sm:$0xff] (%p51_p3), %v229_v2  ;;  %232 = vst [vmem:[%s206_s30 + $0x18] sm:$0xff] (%p51_p3), %v231_v3 }
  0x15 PF: > { %p1058_p6 = scmp.ge.s32.totalorder %s1328_s19, 1  ;;  %p252_p7 = scmp.lt.s32.totalorder %s1328_s19, 3 }
  0x17   : > { %p253_p8 = pnand %p1058_p6, %p252_p7 }
  0x18   : > { %s259_s5 = sand.u32 (!%p253_p8), 1, %s1312_s15   ;;  %s1060_s6 = sshll.u32 (!%p253_p8), %s1320_s17, 6 }
  0x19   : > { %256 = sbr.rel (%p253_p8) target bundleno = 341 (0x155), region = 55  ;;  %s1059_s7 = sshll.u32 (!%p253_p8), %s259_s5, 5 }
  0x1a   : > { %p311_p9 = scmp.lt.s32.totalorder (!%p253_p8), %s1060_s6, 127  ;;  %s1408_s12 = scalar_lea.vmem (!%p253_p8), [#allocation3], %s1059_s7 }
  0x1b   : > { %p1063_p10 = scmp.ne.s32.totalorder (!%p253_p8), %s1320_s17, 0 }
  0x20   : > { %s1519_s6 = smov (!%p311_p9, %s1060_s6), 127  ;;  %346 = sbr.rel (%p1063_p10) target bundleno = 39 (0x27), region = 63 }
  0x21   : > { %s1140_s8 = sshll.u32 %s1519_s6, 3  ;;  %v1330_v4 = vmov (!%p1063_p10), 0.0  }
  0x22   : > { %s1406_s11 = scalar_lea.vmem %s1508_s1, %s1140_s8  ;;  %347 = vst [vmem:[#allocation2] sm:$0xff] (!%p1063_p10), %v1330_v4  ;;  %348 = vst [vmem:[#allocation2 + $0x8] sm:$0xff] (!%p1063_p10), %v1330_v4 }
  0x23   : > { %349 = vst [vmem:[#allocation2 + $0x10] sm:$0xff] (!%p1063_p10), %v1330_v4  ;;  %350 = vst [vmem:[#allocation2 + $0x18] sm:$0xff] (!%p1063_p10), %v1330_v4 }
  0x27 PF: > { %v1188_v5 = vld [vmem:[%s1406_s11 + $0x4] ss:$8 sps:$4 sm:$0xff]   ;;  %v1192_v7 = vld [vmem:[%s1406_s11] ss:$8 sps:$4 sm:$0xff]   ;;  %v1194_v9 = vld [vmem:[%s1406_s11 + $0x14] ss:$8 sps:$4 sm:$0xff]  }
  0x28   : > { %v1190_v6 = vld [vmem:[%s1406_s11 + $0x104] ss:$8 sps:$4 sm:$0xff]   ;;  %763 = vmatprep.subr.bf16.mxu1 %v1188_v5  ;;  %v1193_v8 = vld [vmem:[%s1406_s11 + $0x100] ss:$8 sps:$4 sm:$0xff]   ;;  %v1196_v10 = vld [vmem:[%s1406_s11 + $0x114] ss:$8 sps:$4 sm:$0xff]  }
  0x29   : > { %806 = vmatprep.subr.bf16.mxu0 %v1190_v6  ;;  %764 = vmatpush1.bf16.msra.mxu1 %v1192_v7  ;;  %v1198_v11 = vld [vmem:[%s1406_s11 + $0x10] ss:$8 sps:$4 sm:$0xff]   ;;  %v1200_v13 = vld [vmem:[%s1406_s11 + $0x24] ss:$8 sps:$4 sm:$0xff]   ;;  %v1204_v15 = vld [vmem:[%s1406_s11 + $0x20] ss:$8 sps:$4 sm:$0xff]  }
  0x2a   : > { %807 = vmatpush1.bf16.msra.mxu0 %v1193_v8  ;;  %765 = vmatprep.subr.bf16.mxu1 %v1194_v9  ;;  %v1199_v12 = vld [vmem:[%s1406_s11 + $0x110] ss:$8 sps:$4 sm:$0xff]   ;;  %v1202_v14 = vld [vmem:[%s1406_s11 + $0x124] ss:$8 sps:$4 sm:$0xff]   ;;  %v1205_v16 = vld [vmem:[%s1406_s11 + $0x120] ss:$8 sps:$4 sm:$0xff]  }
  0x2b   : > { %808 = vmatprep.subr.bf16.mxu0 %v1196_v10  ;;  %v1206_v17 = vld [vmem:[%s1406_s11 + $0x34] ss:$8 sps:$4 sm:$0xff]   ;;  %v1210_v19 = vld [vmem:[%s1406_s11 + $0x30] ss:$8 sps:$4 sm:$0xff]   ;;  %v1212_v21 = vld [vmem:[%s1406_s11 + $0x44] ss:$8 sps:$4 sm:$0xff]  }
  0x2c   : > { %v1208_v18 = vld [vmem:[%s1406_s11 + $0x134] ss:$8 sps:$4 sm:$0xff]   ;;  %v1211_v20 = vld [vmem:[%s1406_s11 + $0x130] ss:$8 sps:$4 sm:$0xff]   ;;  %v1214_v22 = vld [vmem:[%s1406_s11 + $0x144] ss:$8 sps:$4 sm:$0xff]  }
  0x2d   : > { %766 = vmatpush1.bf16.msra.mxu1 %v1198_v11  ;;  %v1216_v23 = vld [vmem:[%s1406_s11 + $0x40] ss:$8 sps:$4 sm:$0xff]   ;;  %v1218_v25 = vld [vmem:[%s1406_s11 + $0x54] ss:$8 sps:$4 sm:$0xff]   ;;  %v1222_v27 = vld [vmem:[%s1406_s11 + $0x50] ss:$8 sps:$4 sm:$0xff]  }
  0x2e   : > { %809 = vmatpush1.bf16.msra.mxu0 %v1199_v12  ;;  %767 = vmatprep.subr.bf16.mxu1 %v1200_v13  ;;  %v1217_v24 = vld [vmem:[%s1406_s11 + $0x140] ss:$8 sps:$4 sm:$0xff]   ;;  %v1220_v26 = vld [vmem:[%s1406_s11 + $0x154] ss:$8 sps:$4 sm:$0xff]   ;;  %v1223_v28 = vld [vmem:[%s1406_s11 + $0x150] ss:$8 sps:$4 sm:$0xff]  }
  0x2f   : > { %810 = vmatprep.subr.bf16.mxu0 %v1202_v14  ;;  %v1224_v29 = vld [vmem:[%s1406_s11 + $0x64] ss:$8 sps:$4 sm:$0xff]   ;;  %v1228_v31 = vld [vmem:[%s1406_s11 + $0x60] ss:$8 sps:$4 sm:$0xff]   ;;  %v1230_v33 = vld [vmem:[%s1406_s11 + $0x74] ss:$8 sps:$4 sm:$0xff]  }
  0x30   : > { %v1226_v30 = vld [vmem:[%s1406_s11 + $0x164] ss:$8 sps:$4 sm:$0xff]   ;;  %v1229_v32 = vld [vmem:[%s1406_s11 + $0x160] ss:$8 sps:$4 sm:$0xff]   ;;  %v1232_v34 = vld [vmem:[%s1406_s11 + $0x174] ss:$8 sps:$4 sm:$0xff]  }
  0x31   : > { %768 = vmatpush1.bf16.msra.mxu1 %v1204_v15  ;;  %v1234_v35 = vld [vmem:[%s1406_s11 + $0x70] ss:$8 sps:$4 sm:$0xff]   ;;  %v1236_v37 = vld [vmem:[%s1406_s11 + $0x84] ss:$8 sps:$4 sm:$0xff]   ;;  %v1240_v39 = vld [vmem:[%s1406_s11 + $0x80] ss:$8 sps:$4 sm:$0xff]  }
  0x32   : > { %811 = vmatpush1.bf16.msra.mxu0 %v1205_v16  ;;  %769 = vmatprep.subr.bf16.mxu1 %v1206_v17  ;;  %v1235_v36 = vld [vmem:[%s1406_s11 + $0x170] ss:$8 sps:$4 sm:$0xff]   ;;  %v1238_v38 = vld [vmem:[%s1406_s11 + $0x184] ss:$8 sps:$4 sm:$0xff]   ;;  %v1241_v40 = vld [vmem:[%s1406_s11 + $0x180] ss:$8 sps:$4 sm:$0xff]  }
  0x33   : > { %812 = vmatprep.subr.bf16.mxu0 %v1208_v18  ;;  %v1242_v41 = vld [vmem:[%s1406_s11 + $0x94] ss:$8 sps:$4 sm:$0xff]   ;;  %v1246_v43 = vld [vmem:[%s1406_s11 + $0x90] ss:$8 sps:$4 sm:$0xff]   ;;  %v1248_v45 = vld [vmem:[%s1406_s11 + $0xa4] ss:$8 sps:$4 sm:$0xff]  }
  0x34   : > { %v1244_v42 = vld [vmem:[%s1406_s11 + $0x194] ss:$8 sps:$4 sm:$0xff]   ;;  %v1247_v44 = vld [vmem:[%s1406_s11 + $0x190] ss:$8 sps:$4 sm:$0xff]   ;;  %v1250_v46 = vld [vmem:[%s1406_s11 + $0x1a4] ss:$8 sps:$4 sm:$0xff]  }
  0x35   : > { %770 = vmatpush1.bf16.msra.mxu1 %v1210_v19  ;;  %v1252_v47 = vld [vmem:[%s1406_s11 + $0xa0] ss:$8 sps:$4 sm:$0xff]   ;;  %v1254_v49 = vld [vmem:[%s1406_s11 + $0xb4] ss:$8 sps:$4 sm:$0xff]   ;;  %v1258_v51 = vld [vmem:[%s1406_s11 + $0xb0] ss:$8 sps:$4 sm:$0xff]  }
  0x36   : > { %813 = vmatpush1.bf16.msra.mxu0 %v1211_v20  ;;  %771 = vmatprep.subr.bf16.mxu1 %v1212_v21  ;;  %v1253_v48 = vld [vmem:[%s1406_s11 + $0x1a0] ss:$8 sps:$4 sm:$0xff]   ;;  %v1256_v50 = vld [vmem:[%s1406_s11 + $0x1b4] ss:$8 sps:$4 sm:$0xff]   ;;  %v1259_v53 = vld [vmem:[%s1406_s11 + $0x1b0] ss:$8 sps:$4 sm:$0xff]  }
  0x37   : > { %814 = vmatprep.subr.bf16.mxu0 %v1214_v22  ;;  %v1286_v52 = vld [vmem:[%s1408_s12 + $0x4] ss:$16 sps:$4 sm:$0xff]   ;;  %v1289_v56 = vld [vmem:[%s1408_s12 + $0xc] ss:$16 sps:$4 sm:$0xff]   ;;  %v1264_v57 = vld [vmem:[%s1406_s11 + $0xc0] ss:$8 sps:$4 sm:$0xff]  }
  0x38   : > { %v1260_v54 = vld [vmem:[%s1406_s11 + $0xc4] ss:$8 sps:$4 sm:$0xff]   ;;  %795 = vmatprep.mubr.bf16.mxu1 %v1286_v52  ;;  %838 = vmatprep.mubr.bf16.mxu0 %v1289_v56  ;;  %v1265_v58 = vld [vmem:[%s1406_s11 + $0x1c0] ss:$8 sps:$4 sm:$0xff]   ;;  %v1266_v59 = vld [vmem:[%s1406_s11 + $0xd4] ss:$8 sps:$4 sm:$0xff]  }
  0x39   : > { %772 = vmatpush1.bf16.msra.mxu1 %v1216_v23  ;;  %v1262_v55 = vld [vmem:[%s1406_s11 + $0x1c4] ss:$8 sps:$4 sm:$0xff]   ;;  %v1268_v60 = vld [vmem:[%s1406_s11 + $0x1d4] ss:$8 sps:$4 sm:$0xff]   ;;  %v1270_v61 = vld [vmem:[%s1406_s11 + $0xd0] ss:$8 sps:$4 sm:$0xff]  }
  0x3a   : > { %815 = vmatpush1.bf16.msra.mxu0 %v1217_v24  ;;  %773 = vmatprep.subr.bf16.mxu1 %v1218_v25  ;;  %v1271_v62 = vld [vmem:[%s1406_s11 + $0x1d0] ss:$8 sps:$4 sm:$0xff]   ;;  %v1272_v63 = vld [vmem:[%s1406_s11 + $0xe4] ss:$8 sps:$4 sm:$0xff]   ;;  %v1276_v1 = vld [vmem:[%s1406_s11 + $0xe0] ss:$8 sps:$4 sm:$0xff]  }
  0x3b   : > { %816 = vmatprep.subr.bf16.mxu0 %v1220_v26  ;;  %v1274_v0 = vld [vmem:[%s1406_s11 + $0x1e4] ss:$8 sps:$4 sm:$0xff]   ;;  %v1277_v2 = vld [vmem:[%s1406_s11 + $0x1e0] ss:$8 sps:$4 sm:$0xff]   ;;  %v1278_v3 = vld [vmem:[%s1406_s11 + $0xf4] ss:$8 sps:$4 sm:$0xff]  }
  0x3c   : > { %v1280_v4 = vld [vmem:[%s1406_s11 + $0x1f4] ss:$8 sps:$4 sm:$0xff]   ;;  %v1282_v5 = vld [vmem:[%s1406_s11 + $0xf0] ss:$8 sps:$4 sm:$0xff]   ;;  %v351_v10 = vld [vmem:[#allocation2] sm:$0xff]  ;;  %p1132_p11 = scmp.ne.s32.totalorder %s1320_s17, 1 }
  0x3d   : > { %774 = vmatpush1.bf16.msra.mxu1 %v1222_v27  ;;  %v1283_v6 = vld [vmem:[%s1406_s11 + $0x1f0] ss:$8 sps:$4 sm:$0xff]   ;;  %v352_v14 = vld [vmem:[#allocation2 + $0x8] sm:$0xff] }
  0x3e   : > { %817 = vmatpush1.bf16.msra.mxu0 %v1223_v28  ;;  %775 = vmatprep.subr.bf16.mxu1 %v1224_v29  ;;  %v1284_v7 = vld [vmem:[%s1408_s12] ss:$16 sps:$4 sm:$0xff]   ;;  %v1287_v8 = vld [vmem:[%s1408_s12 + $0x8] ss:$16 sps:$4 sm:$0xff]   ;;  %v867_v29 = vlaneseq (!%p1132_p11) }
  0x3f   : > { %818 = vmatprep.subr.bf16.mxu0 %v1226_v30  ;;  %v353_v18 = vld [vmem:[#allocation2 + $0x10] sm:$0xff]  ;;  %v354_v23 = vld [vmem:[#allocation2 + $0x18] sm:$0xff] }
  0x40   : > { %v868_v30 = vshrl.u32 (!%p1132_p11), %v867_v29, 7 }
  0x41   : > { %776 = vmatpush1.bf16.msra.mxu1 %v1228_v31  ;;  %v865_v31 = vld [vmem:[%s1509_s2] sm:$0x3] (!%p1132_p11) }
  0x42   : > { %819 = vmatpush1.bf16.msra.mxu0 %v1229_v32  ;;  %777 = vmatprep.subr.bf16.mxu1 %v1230_v33  ;;  %v881_v32 = vld [vmem:[%s1510_s3] sm:$0x3] (!%p1132_p11) }
  0x43   : > { %820 = vmatprep.subr.bf16.mxu0 %v1232_v34  ;;  %v869_v34 = vsub.s32 (!%p1132_p11), 0, %v868_v30 }
  0x45   : > { %778 = vmatpush1.bf16.msra.mxu1 %v1234_v35  ;;  %v873_v35 = vsub.s32 (!%p1132_p11), 1, %v868_v30 }
  0x46   : > { %821 = vmatpush1.bf16.msra.mxu0 %v1235_v36  ;;  %779 = vmatprep.subr.bf16.mxu1 %v1236_v37 }
  0x47   : > { %822 = vmatprep.subr.bf16.mxu0 %v1238_v38 }
  0x49   : > { %780 = vmatpush1.bf16.msra.mxu1 %v1240_v39  ;;  %v870_v39 = vrot.slane (!%p1132_p11), %v865_v31, %v869_v34 }
  0x4a   : > { %823 = vmatpush1.bf16.msra.mxu0 %v1241_v40  ;;  %781 = vmatprep.subr.bf16.mxu1 %v1242_v41  ;;  %v874_v40 = vrot.slane (!%p1132_p11), %v865_v31, %v873_v35  ;;  %v886_v41 = vrot.slane (!%p1132_p11), %v881_v32, %v869_v34 }
  0x4b   : > { %824 = vmatprep.subr.bf16.mxu0 %v1244_v42  ;;  %v890_v42 = vrot.slane (!%p1132_p11), %v881_v32, %v873_v35 }
  0x4d   : > { %782 = vmatpush1.bf16.msra.mxu1 %v1246_v43 }
  0x4e   : > { %825 = vmatpush1.bf16.msra.mxu0 %v1247_v44  ;;  %783 = vmatprep.subr.bf16.mxu1 %v1248_v45 }
  0x4f   : > { %826 = vmatprep.subr.bf16.mxu0 %v1250_v46 }
  0x51   : > { %784 = vmatpush1.bf16.msra.mxu1 %v1252_v47 }
  0x52   : > { %827 = vmatpush1.bf16.msra.mxu0 %v1253_v48  ;;  %785 = vmatprep.subr.bf16.mxu1 %v1254_v49 }
  0x53   : > { %828 = vmatprep.subr.bf16.mxu0 %v1256_v50 }
  0x55   : > { %786 = vmatpush1.bf16.msra.mxu1 %v1258_v51 }
  0x56   : > { %829 = vmatpush1.bf16.msra.mxu0 %v1259_v53  ;;  %787 = vmatprep.subr.bf16.mxu1 %v1260_v54 }
  0x57   : > { %830 = vmatprep.subr.bf16.mxu0 %v1262_v55 }
  0x59   : > { %788 = vmatpush1.bf16.msra.mxu1 %v1264_v57 }
  0x5a   : > { %831 = vmatpush1.bf16.msra.mxu0 %v1265_v58  ;;  %789 = vmatprep.subr.bf16.mxu1 %v1266_v59 }
  0x5b   : > { %832 = vmatprep.subr.bf16.mxu0 %v1268_v60 }
  0x5d   : > { %790 = vmatpush1.bf16.msra.mxu1 %v1270_v61 }
  0x5e   : > { %833 = vmatpush1.bf16.msra.mxu0 %v1271_v62  ;;  %791 = vmatprep.subr.bf16.mxu1 %v1272_v63 }
  0x5f   : > { %834 = vmatprep.subr.bf16.mxu0 %v1274_v0 }
  0x61   : > { %792 = vmatpush1.bf16.msra.mxu1 %v1276_v1 }
  0x62   : > { %835 = vmatpush1.bf16.msra.mxu0 %v1277_v2  ;;  %793 = vmatprep.subr.bf16.mxu1 %v1278_v3 }
  0x63   : > { %836 = vmatprep.subr.bf16.mxu0 %v1280_v4 }
  0x65   : > { %794 = vmatpush1.bf16.msra.mxu1 %v1282_v5 }
  0x66   : > { %837 = vmatpush1.bf16.msra.mxu0 %v1283_v6 }
  0x68   : > { %796 = vmatmul.mubr.bf16.vlgmr.msra.gmra.mrb[0].mxu1 %v1284_v7 }
  0x69   : > { %839 = vmatmul.mubr.bf16.vlgmr.msra.gmra.mrb[0].mxu0 %v1287_v8 }
 0x13b   : > { %v797_v9 = vpop.f32.mrb[0].mxu1 }
 0x13c   : > { %v840_v11 = vpop.f32.mrb[0].mxu0  ;;  %v799_v13 = vpop.f32.mrb[1].mxu1 }
 0x13d   : > { %v841_v12 = vadd.f32 %v840_v11, %v797_v9  ;;  %v842_v15 = vpop.f32.mrb[1].mxu0  ;;  %v801_v17 = vpop.f32.mrb[2].mxu1 }
 0x13e   : > { %v843_v16 = vadd.f32 %v842_v15, %v799_v13  ;;  %v844_v19 = vpop.f32.mrb[2].mxu0  ;;  %v803_v22 = vpop.f32.mrb[3].mxu1  ;;  %860 = sbr.rel (%p1132_p11) target bundleno = 341 (0x155), region = 67 }
 0x13f   : > { %v849_v20 = vadd.f32 %v841_v12, %v351_v10  ;;  %v845_v21 = vadd.f32 %v844_v19, %v801_v17  ;;  %v846_v24 = vpop.f32.mrb[3].mxu0 }
 0x140   : > { %v850_v25 = vadd.f32 %v843_v16, %v352_v14  ;;  %v847_v26 = vadd.f32 %v846_v24, %v803_v22 }
 0x141   : > { %853 = vst [vmem:[#allocation2] sm:$0xff] %v849_v20  ;;  %v851_v27 = vadd.f32 %v845_v21, %v353_v18 }
 0x142   : > { %854 = vst [vmem:[#allocation2 + $0x8] sm:$0xff] %v850_v25  ;;  %v852_v28 = vadd.f32 %v847_v26, %v354_v23 }
 0x143   : > { %855 = vst [vmem:[#allocation2 + $0x10] sm:$0xff] %v851_v27 }
 0x144   : > { %856 = vst [vmem:[#allocation2 + $0x18] sm:$0xff] %v852_v28 }
 0x148   : > { %v861_v33 = vld [vmem:[#allocation2] sm:$0xff] }
 0x149   : > { %v862_v36 = vld [vmem:[#allocation2 + $0x8] sm:$0xff]  ;;  %v877_v43 = vmul.f32 %v870_v39, %v861_v33 }
 0x14a   : > { %v863_v37 = vld [vmem:[#allocation2 + $0x10] sm:$0xff]  ;;  %v878_v44 = vmul.f32 %v874_v40, %v862_v36 }
 0x14b   : > { %v864_v38 = vld [vmem:[#allocation2 + $0x18] sm:$0xff]  ;;  %v879_v45 = vmul.f32 %v870_v39, %v863_v37  ;;  %v893_v47 = vadd.f32 %v886_v41, %v877_v43 }
 0x14c   : > { %v880_v46 = vmul.f32 %v874_v40, %v864_v38  ;;  %v894_v48 = vadd.f32 %v890_v42, %v878_v44 }
 0x14d   : > { %v895_v49 = vadd.f32 %v886_v41, %v879_v45  ;;  %v897_v51 = vmax.f32 %v893_v47, 0.0 }
 0x14e   : > { %v896_v50 = vadd.f32 %v890_v42, %v880_v46  ;;  %v898_v52 = vmax.f32 %v894_v48, 0.0 }
 0x14f   : > { %v899_v53 = vmax.f32 %v895_v49, 0.0 }
 0x150   : > { %v900_v54 = vmax.f32 %v896_v50, 0.0  ;;  %v1141_v55 = vpack.c.bf16 %v898_v52, %v897_v51 }
 0x152   : > { %v1142_v56 = vpack.c.bf16 %v900_v54, %v899_v53  ;;  %913 = vst [vmem:[%s1511_s4] sm:$0xff] %v1141_v55 }
 0x154   : > { %914 = vst [vmem:[%s1511_s4 + $0x8] sm:$0xff] %v1142_v56 }
 0x155 PF: > { %s14_s19 = sadd.s32 1, %s1328_s19   ;;  %s1512_s15 = smov %s1316_s16 }
 0x156   : > { %p11_p12 = scmp.ge.s32.totalorder %s14_s19, 4   ;;  %s1513_s16 = smov %s1391_s23 }
 0x157   : > { %s1514_s17 = smov %s1324_s18  ;;  %s1515_s18 = smov %s1517_s20 }
 0x158   :  { %13 = sbr.rel (!%p11_p12) target bundleno = 3 (0x3), region = 111 }

// kernel: resnet50_forward.101
= control target key start
LH: loop header
LB: loop body
LE: loop exit
PB: predicated region body
PF: predicated region fallthrough
CT: control target
= control target key end

     0   :  { %s2137_s0 = inlined_call_operand.vmem [shape: bf16[16,1024], index: 0, kind: input, shape index: {}]   ;;  %s2138_s1 = inlined_call_operand.vmem [shape: bf16[1024,512], index: 1, kind: input, shape index: {}]   ;;  %s2139_s2 = inlined_call_operand.vmem [shape: f32[1,512], index: 2, kind: input, shape index: {}]   ;;  %s2140_s3 = inlined_call_operand.vmem [shape: f32[1,512], index: 3, kind: input, shape index: {}]   ;;  %s2141_s4 = inlined_call_operand.vmem [shape: bf16[16,512], index: 4, kind: output, shape index: {}]  }
   0x1   :  { %2144 = sst [smem:[#allocation8_spill]] %s2137_s0 }
   0x2   :  { %2145 = sst [smem:[#allocation9_spill]] %s2138_s1 }
   0x3   :  { %s1746_s15 = smov 0   ;;  %s1748_s16 = smov 0  }
   0x4   :  { %s1750_s17 = smov 0   ;;  %s1752_s18 = smov 0  }
   0x5   :  { %s1754_s19 = smov 0   ;;  %s1756_s20 = smov 0  }
   0x6   :  { %s1758_s21 = smov 0   ;;  %s1760_s22 = smov 0  }
   0x7   :  { %s1762_s23 = smov 0   ;;  %s1764_s24 = smov 0  }
   0x8   :  { %s1766_s25 = smov 0  }
   0x9 LB: > { %s1337_s26 = sadd.s32 4294967295, %s1718_s25   ;;  %s26_s27 = sadd.s32 1, %s1710_s23  ;;  %s1718_s25 = sphi %s1766_s25, %s14_s25   ;;  %s1714_s24 = sphi %s1764_s24, %s2164_s24   ;;  %s1710_s23 = sphi %s1762_s23, %s2163_s23   ;;  %s1706_s22 = sphi %s1760_s22, %s2162_s22   ;;  %s1702_s21 = sphi %s1758_s21, %s2161_s21   ;;  %s1698_s20 = sphi %s1756_s20, %s2160_s20   ;;  %s1694_s19 = sphi %s1754_s19, %s2159_s19   ;;  %s1690_s18 = sphi %s1752_s18, %s2158_s18   ;;  %s1686_s17 = sphi %s1750_s17, %s2157_s17   ;;  %s1682_s16 = sphi %s1748_s16, %s2156_s16   ;;  %s1678_s15 = sphi %s1746_s15, %s2155_s15  }
   0xa   : > { %p27_p0 = scmp.ge.s32.totalorder %s26_s27, 2  ;;  %s29_s28 = sadd.s32 1, %s1714_s24 }
   0xb   : > { %s42_s29 = sadd.s32 1, %s1698_s20  ;;  %p49_p1 = scmp.ne.s32.totalorder %s1698_s20, %s1694_s19 }
   0xc   : > { %s2166_s27 = smov (%p27_p0, %s26_s27), 0  ;;  %s2168_s28 = smov (!%p27_p0, %s29_s28), %s1714_s24 }
   0xd   : > { %2146 = sst [smem:[#allocation6_spill]] %s2166_s27  ;;  %s38_s30 = ssub.s32 %s1710_s23, %s2166_s27 }
   0xe   : > { %p50_p2 = scmp.eq.s32.totalorder %s1718_s25, 0  ;;  %p31_p3 = scmp.ge.s32.totalorder %s2168_s28, 2 }
   0xf   : > { %p40_p4 = scmp.eq.s32.totalorder %s38_s30, 0  ;;  %s70_s6 = sadd.s32 1, %s1690_s18 }
  0x10   : > { %p1813_p5 = por %p50_p2, %p49_p1  ;;  %s2170_s28 = smov (%p31_p3, %s2168_s28), 0 }
  0x11   : > { %2148 = sst [smem:[#allocation7_spill]] %s2170_s28  ;;  %s66_s8 = ssub.s32 %s1714_s24, %s2170_s28 }
  0x12   : > { %s1821_s7 = scalar_select %p40_p4, %s1698_s20, %s42_s29  }
  0x13   : > { %p77_p6 = scmp.ne.s32.totalorder %s1690_s18, %s1686_s17  ;;  %s67_s9 = sor.u32 %s66_s8, %s38_s30 }
  0x14   : > { %p148_p7 = scmp.eq.s32.totalorder %s66_s8, 0  ;;  %p68_p8 = scmp.eq.s32.totalorder %s67_s9, 0 }
  0x15   : > { %p1827_p9 = por %p77_p6, %p50_p2  ;;  %s150_s11 = sadd.s32 1, %s1682_s16 }
  0x16   : > { %p160_p10 = scmp.ne.s32.totalorder %s1682_s16, %s1678_s15  ;;  %p161_p11 = scmp.eq.s32.totalorder %s1337_s26, 3 }
  0x17   : > { %s1835_s12 = scalar_select %p68_p8, %s1690_s18, %s70_s6  }
  0x18   : > { %s1838_s13 = scalar_select %p148_p7, %s1682_s16, %s150_s11  }
  0x19   : > { %p1840_p12 = por %p161_p11, %p160_p10  ;;  %p1340_p13 = scmp.ge.s32.totalorder %s1718_s25, 4 }
  0x1b   : > { %183 = sbr.rel (%p1340_p13) target bundleno = 88 (0x58), region = 16 }
  0x22   : > { %186 = sbr.rel (!%p1813_p5) target bundleno = 46 (0x2e), region = 20  ;;  %s188_s29 = sand.u32 (%p1813_p5), 1, %s1698_s20  }
  0x23   : > { %s1432_s30 = sshll.u32 (%p1813_p5), %s1710_s23, 4  ;;  %s1341_s8 = sshll.u32 (%p1813_p5), %s188_s29, 5 }
  0x24   : > { %s2151_s0 = sld [smem:[#allocation8_spill]] (%p1813_p5)  ;;  %s190_s26 = scalar_lea.vmem (%p1813_p5), [#allocation3], %s1341_s8 }
  0x2a   : > { %s196_s11 = scalar_lea.vmem %s2151_s0, %s1432_s30 }
  0x2b   : > { %v209_v0 = vld [vmem:[%s196_s11] sm:$0xff]  ;;  %v211_v1 = vld [vmem:[%s196_s11 + $0x8] sm:$0xff] }
  0x2c   : > { %v213_v2 = vld [vmem:[%s196_s11 + $0x20] sm:$0xff]  ;;  %210 = vst [vmem:[%s190_s26] sm:$0xff] %v209_v0  ;;  %212 = vst [vmem:[%s190_s26 + $0x8] sm:$0xff] %v211_v1  ;;  %v215_v3 = vld [vmem:[%s196_s11 + $0x28] sm:$0xff] }
  0x2d   : > { %214 = vst [vmem:[%s190_s26 + $0x10] sm:$0xff] %v213_v2  ;;  %216 = vst [vmem:[%s190_s26 + $0x18] sm:$0xff] %v215_v3 }
  0x2e PF: > { %222 = sbr.rel (!%p1827_p9) target bundleno = 88 (0x58), region = 43  ;;  %s224_s5 = sand.u32 (%p1827_p9), 1, %s1690_s18  }
  0x2f   : > { %s1346_s29 = sshll.u32 (%p1827_p9), %s1714_s24, 1  ;;  %s1344_s6 = sshll.u32 (%p1827_p9), %s224_s5, 9 }
  0x30   : > { %s1433_s30 = sshll.u32 (%p1827_p9), %s1710_s23, 8  ;;  %s2152_s1 = sld [smem:[#allocation9_spill]] (%p1827_p9) }
  0x31   : > { %s230_s9 = sadd.s32 (%p1827_p9), %s1433_s30, %s1346_s29  ;;  %s1865_s10 = scalar_lea.vmem (%p1827_p9), [#allocation4], %s1344_s6 }
  0x32   : > { %s1348_s0 = sshll.u32 (%p1827_p9), %s230_s9, 2 }
  0x36   : > { %s1860_s27 = scalar_lea.vmem %s2152_s1, %s1348_s0 }
  0x37   : > { %v386_v4 = vld [vmem:[%s1860_s27] sm:$0xff]  ;;  %v388_v5 = vld [vmem:[%s1860_s27 + $0x10] sm:$0xff] }
  0x38   : > { %v390_v6 = vld [vmem:[%s1860_s27 + $0x20] sm:$0xff]  ;;  %387 = vst [vmem:[%s1865_s10] sm:$0xff] %v386_v4  ;;  %389 = vst [vmem:[%s1865_s10 + $0x8] sm:$0xff] %v388_v5  ;;  %v392_v7 = vld [vmem:[%s1860_s27 + $0x30] sm:$0xff] }
  0x39   : > { %391 = vst [vmem:[%s1865_s10 + $0x10] sm:$0xff] %v390_v6  ;;  %v394_v8 = vld [vmem:[%s1860_s27 + $0x40] sm:$0xff]  ;;  %v396_v9 = vld [vmem:[%s1860_s27 + $0x50] sm:$0xff]  ;;  %393 = vst [vmem:[%s1865_s10 + $0x18] sm:$0xff] %v392_v7 }
  0x3a   : > { %395 = vst [vmem:[%s1865_s10 + $0x20] sm:$0xff] %v394_v8  ;;  %397 = vst [vmem:[%s1865_s10 + $0x28] sm:$0xff] %v396_v9  ;;  %v398_v10 = vld [vmem:[%s1860_s27 + $0x60] sm:$0xff]  ;;  %v400_v11 = vld [vmem:[%s1860_s27 + $0x70] sm:$0xff] }
  0x3b   : > { %v402_v12 = vld [vmem:[%s1860_s27 + $0x80] sm:$0xff]  ;;  %399 = vst [vmem:[%s1865_s10 + $0x30] sm:$0xff] %v398_v10  ;;  %401 = vst [vmem:[%s1865_s10 + $0x38] sm:$0xff] %v400_v11  ;;  %v404_v13 = vld [vmem:[%s1860_s27 + $0x90] sm:$0xff] }
  0x3c   : > { %403 = vst [vmem:[%s1865_s10 + $0x40] sm:$0xff] %v402_v12  ;;  %v406_v14 = vld [vmem:[%s1860_s27 + $0xa0] sm:$0xff]  ;;  %v408_v15 = vld [vmem:[%s1860_s27 + $0xb0] sm:$0xff]  ;;  %405 = vst [vmem:[%s1865_s10 + $0x48] sm:$0xff] %v404_v13 }
  0x3d   : > { %407 = vst [vmem:[%s1865_s10 + $0x50] sm:$0xff] %v406_v14  ;;  %409 = vst [vmem:[%s1865_s10 + $0x58] sm:$0xff] %v408_v15  ;;  %v410_v16 = vld [vmem:[%s1860_s27 + $0xc0] sm:$0xff]  ;;  %v412_v17 = vld [vmem:[%s1860_s27 + $0xd0] sm:$0xff] }
  0x3e   : > { %v414_v18 = vld [vmem:[%s1860_s27 + $0xe0] sm:$0xff]  ;;  %411 = vst [vmem:[%s1865_s10 + $0x60] sm:$0xff] %v410_v16  ;;  %413 = vst [vmem:[%s1865_s10 + $0x68] sm:$0xff] %v412_v17  ;;  %v416_v19 = vld [vmem:[%s1860_s27 + $0xf0] sm:$0xff] }
  0x3f   : > { %415 = vst [vmem:[%s1865_s10 + $0x70] sm:$0xff] %v414_v18  ;;  %v418_v20 = vld [vmem:[%s1860_s27 + $0x100] sm:$0xff]  ;;  %v420_v21 = vld [vmem:[%s1860_s27 + $0x110] sm:$0xff]  ;;  %417 = vst [vmem:[%s1865_s10 + $0x78] sm:$0xff] %v416_v19 }
  0x40   : > { %419 = vst [vmem:[%s1865_s10 + $0x80] sm:$0xff] %v418_v20  ;;  %421 = vst [vmem:[%s1865_s10 + $0x88] sm:$0xff] %v420_v21  ;;  %v422_v22 = vld [vmem:[%s1860_s27 + $0x120] sm:$0xff]  ;;  %v424_v23 = vld [vmem:[%s1860_s27 + $0x130] sm:$0xff] }
  0x41   : > { %v426_v24 = vld [vmem:[%s1860_s27 + $0x140] sm:$0xff]  ;;  %423 = vst [vmem:[%s1865_s10 + $0x90] sm:$0xff] %v422_v22  ;;  %425 = vst [vmem:[%s1865_s10 + $0x98] sm:$0xff] %v424_v23  ;;  %v428_v25 = vld [vmem:[%s1860_s27 + $0x150] sm:$0xff] }
  0x42   : > { %427 = vst [vmem:[%s1865_s10 + $0xa0] sm:$0xff] %v426_v24  ;;  %v430_v26 = vld [vmem:[%s1860_s27 + $0x160] sm:$0xff]  ;;  %v432_v27 = vld [vmem:[%s1860_s27 + $0x170] sm:$0xff]  ;;  %429 = vst [vmem:[%s1865_s10 + $0xa8] sm:$0xff] %v428_v25 }
  0x43   : > { %431 = vst [vmem:[%s1865_s10 + $0xb0] sm:$0xff] %v430_v26  ;;  %433 = vst [vmem:[%s1865_s10 + $0xb8] sm:$0xff] %v432_v27  ;;  %v434_v28 = vld [vmem:[%s1860_s27 + $0x180] sm:$0xff]  ;;  %v436_v29 = vld [vmem:[%s1860_s27 + $0x190] sm:$0xff] }
  0x44   : > { %v438_v30 = vld [vmem:[%s1860_s27 + $0x1a0] sm:$0xff]  ;;  %435 = vst [vmem:[%s1865_s10 + $0xc0] sm:$0xff] %v434_v28  ;;  %437 = vst [vmem:[%s1865_s10 + $0xc8] sm:$0xff] %v436_v29  ;;  %v440_v31 = vld [vmem:[%s1860_s27 + $0x1b0] sm:$0xff] }
  0x45   : > { %439 = vst [vmem:[%s1865_s10 + $0xd0] sm:$0xff] %v438_v30  ;;  %v442_v32 = vld [vmem:[%s1860_s27 + $0x1c0] sm:$0xff]  ;;  %v444_v33 = vld [vmem:[%s1860_s27 + $0x1d0] sm:$0xff]  ;;  %441 = vst [vmem:[%s1865_s10 + $0xd8] sm:$0xff] %v440_v31 }
  0x46   : > { %443 = vst [vmem:[%s1865_s10 + $0xe0] sm:$0xff] %v442_v32  ;;  %445 = vst [vmem:[%s1865_s10 + $0xe8] sm:$0xff] %v444_v33  ;;  %v446_v34 = vld [vmem:[%s1860_s27 + $0x1e0] sm:$0xff]  ;;  %v448_v35 = vld [vmem:[%s1860_s27 + $0x1f0] sm:$0xff] }
  0x47   : > { %v450_v36 = vld [vmem:[%s1860_s27 + $0x200] sm:$0xff]  ;;  %447 = vst [vmem:[%s1865_s10 + $0xf0] sm:$0xff] %v446_v34  ;;  %449 = vst [vmem:[%s1865_s10 + $0xf8] sm:$0xff] %v448_v35  ;;  %v452_v37 = vld [vmem:[%s1860_s27 + $0x210] sm:$0xff] }
  0x48   : > { %451 = vst [vmem:[%s1865_s10 + $0x100] sm:$0xff] %v450_v36  ;;  %v454_v38 = vld [vmem:[%s1860_s27 + $0x220] sm:$0xff]  ;;  %v456_v39 = vld [vmem:[%s1860_s27 + $0x230] sm:$0xff]  ;;  %453 = vst [vmem:[%s1865_s10 + $0x108] sm:$0xff] %v452_v37 }
  0x49   : > { %455 = vst [vmem:[%s1865_s10 + $0x110] sm:$0xff] %v454_v38  ;;  %457 = vst [vmem:[%s1865_s10 + $0x118] sm:$0xff] %v456_v39  ;;  %v458_v40 = vld [vmem:[%s1860_s27 + $0x240] sm:$0xff]  ;;  %v460_v41 = vld [vmem:[%s1860_s27 + $0x250] sm:$0xff] }
  0x4a   : > { %v462_v42 = vld [vmem:[%s1860_s27 + $0x260] sm:$0xff]  ;;  %459 = vst [vmem:[%s1865_s10 + $0x120] sm:$0xff] %v458_v40  ;;  %461 = vst [vmem:[%s1865_s10 + $0x128] sm:$0xff] %v460_v41  ;;  %v464_v43 = vld [vmem:[%s1860_s27 + $0x270] sm:$0xff] }
  0x4b   : > { %463 = vst [vmem:[%s1865_s10 + $0x130] sm:$0xff] %v462_v42  ;;  %v466_v44 = vld [vmem:[%s1860_s27 + $0x280] sm:$0xff]  ;;  %v468_v45 = vld [vmem:[%s1860_s27 + $0x290] sm:$0xff]  ;;  %465 = vst [vmem:[%s1865_s10 + $0x138] sm:$0xff] %v464_v43 }
  0x4c   : > { %467 = vst [vmem:[%s1865_s10 + $0x140] sm:$0xff] %v466_v44  ;;  %469 = vst [vmem:[%s1865_s10 + $0x148] sm:$0xff] %v468_v45  ;;  %v470_v46 = vld [vmem:[%s1860_s27 + $0x2a0] sm:$0xff]  ;;  %v472_v47 = vld [vmem:[%s1860_s27 + $0x2b0] sm:$0xff] }
  0x4d   : > { %v474_v48 = vld [vmem:[%s1860_s27 + $0x2c0] sm:$0xff]  ;;  %471 = vst [vmem:[%s1865_s10 + $0x150] sm:$0xff] %v470_v46  ;;  %473 = vst [vmem:[%s1865_s10 + $0x158] sm:$0xff] %v472_v47  ;;  %v476_v49 = vld [vmem:[%s1860_s27 + $0x2d0] sm:$0xff] }
  0x4e   : > { %475 = vst [vmem:[%s1865_s10 + $0x160] sm:$0xff] %v474_v48  ;;  %v478_v50 = vld [vmem:[%s1860_s27 + $0x2e0] sm:$0xff]  ;;  %v480_v51 = vld [vmem:[%s1860_s27 + $0x2f0] sm:$0xff]  ;;  %477 = vst [vmem:[%s1865_s10 + $0x168] sm:$0xff] %v476_v49 }
  0x4f   : > { %479 = vst [vmem:[%s1865_s10 + $0x170] sm:$0xff] %v478_v50  ;;  %481 = vst [vmem:[%s1865_s10 + $0x178] sm:$0xff] %v480_v51  ;;  %v482_v52 = vld [vmem:[%s1860_s27 + $0x300] sm:$0xff]  ;;  %v484_v53 = vld [vmem:[%s1860_s27 + $0x310] sm:$0xff] }
  0x50   : > { %v486_v54 = vld [vmem:[%s1860_s27 + $0x320] sm:$0xff]  ;;  %483 = vst [vmem:[%s1865_s10 + $0x180] sm:$0xff] %v482_v52  ;;  %485 = vst [vmem:[%s1865_s10 + $0x188] sm:$0xff] %v484_v53  ;;  %v488_v55 = vld [vmem:[%s1860_s27 + $0x330] sm:$0xff] }
  0x51   : > { %487 = vst [vmem:[%s1865_s10 + $0x190] sm:$0xff] %v486_v54  ;;  %v490_v56 = vld [vmem:[%s1860_s27 + $0x340] sm:$0xff]  ;;  %v492_v57 = vld [vmem:[%s1860_s27 + $0x350] sm:$0xff]  ;;  %489 = vst [vmem:[%s1865_s10 + $0x198] sm:$0xff] %v488_v55 }
  0x52   : > { %491 = vst [vmem:[%s1865_s10 + $0x1a0] sm:$0xff] %v490_v56  ;;  %493 = vst [vmem:[%s1865_s10 + $0x1a8] sm:$0xff] %v492_v57  ;;  %v494_v58 = vld [vmem:[%s1860_s27 + $0x360] sm:$0xff]  ;;  %v496_v59 = vld [vmem:[%s1860_s27 + $0x370] sm:$0xff] }
  0x53   : > { %v498_v60 = vld [vmem:[%s1860_s27 + $0x380] sm:$0xff]  ;;  %495 = vst [vmem:[%s1865_s10 + $0x1b0] sm:$0xff] %v494_v58  ;;  %497 = vst [vmem:[%s1865_s10 + $0x1b8] sm:$0xff] %v496_v59  ;;  %v500_v61 = vld [vmem:[%s1860_s27 + $0x390] sm:$0xff] }
  0x54   : > { %499 = vst [vmem:[%s1865_s10 + $0x1c0] sm:$0xff] %v498_v60  ;;  %v502_v62 = vld [vmem:[%s1860_s27 + $0x3a0] sm:$0xff]  ;;  %v504_v63 = vld [vmem:[%s1860_s27 + $0x3b0] sm:$0xff]  ;;  %501 = vst [vmem:[%s1865_s10 + $0x1c8] sm:$0xff] %v500_v61 }
  0x55   : > { %503 = vst [vmem:[%s1865_s10 + $0x1d0] sm:$0xff] %v502_v62  ;;  %505 = vst [vmem:[%s1865_s10 + $0x1d8] sm:$0xff] %v504_v63  ;;  %v506_v0 = vld [vmem:[%s1860_s27 + $0x3c0] sm:$0xff]  ;;  %v508_v1 = vld [vmem:[%s1860_s27 + $0x3d0] sm:$0xff] }
  0x56   : > { %v510_v2 = vld [vmem:[%s1860_s27 + $0x3e0] sm:$0xff]  ;;  %507 = vst [vmem:[%s1865_s10 + $0x1e0] sm:$0xff] %v506_v0  ;;  %509 = vst [vmem:[%s1865_s10 + $0x1e8] sm:$0xff] %v508_v1  ;;  %v512_v3 = vld [vmem:[%s1860_s27 + $0x3f0] sm:$0xff] }
  0x57   : > { %511 = vst [vmem:[%s1865_s10 + $0x1f0] sm:$0xff] %v510_v2  ;;  %513 = vst [vmem:[%s1865_s10 + $0x1f8] sm:$0xff] %v512_v3 }
  0x58 PF: > { %p1349_p0 = scmp.ge.s32.totalorder %s1718_s25, 1  ;;  %p534_p1 = scmp.lt.s32.totalorder %s1718_s25, 5 }
  0x5a   : > { %p535_p2 = pnand %p1349_p0, %p534_p1 }
  0x5b   : > { %s541_s0 = sand.u32 (!%p535_p2), 1, %s1694_s19   ;;  %s548_s28 = sand.u32 (!%p535_p2), 1, %s1686_s17  }
  0x5c   : > { %538 = sbr.rel (%p535_p2) target bundleno = 416 (0x1a0), region = 89  ;;  %s1350_s11 = sshll.u32 (!%p535_p2), %s541_s0, 5 }
  0x5d   : > { %s1351_s26 = sshll.u32 (!%p535_p2), %s548_s28, 9  ;;  %s581_s5 = sand.u32 (!%p535_p2), 1, %s1678_s15  }
  0x5e   : > { %s1353_s29 = sshll.u32 (!%p535_p2), %s1706_s22, 1  ;;  %s1352_s27 = sshll.u32 (!%p535_p2), %s581_s5, 4 }
  0x5f   : > { %p589_p3 = scmp.lt.s32.totalorder (!%p535_p2), %s1353_s29, 3  ;;  %s2008_s19 = scalar_lea.vmem (!%p535_p2), [#allocation3], %s1350_s11 }
  0x60   : > { %s2010_s17 = scalar_lea.vmem (!%p535_p2), [#allocation4], %s1351_s26  ;;  %s2012_s15 = scalar_lea.vmem (!%p535_p2), [#allocation5], %s1352_s27 }
  0x61   : > { %p1355_p4 = scmp.ne.s32.totalorder (!%p535_p2), %s1702_s21, 0 }
  0x63   : > { %s2172_s29 = smov (!%p589_p3, %s1353_s29), 3  ;;  %603 = sbr.rel (%p1355_p4) target bundleno = 106 (0x6a), region = 101 }
  0x64   : > { %s591_s9 = scalar_lea.vmem %s2139_s2, %s2172_s29  ;;  %s596_s1 = scalar_lea.vmem %s2140_s3, %s2172_s29  ;;  %v1720_v4 = vmov (!%p1355_p4), 0.0  }
  0x65   : > { %604 = vst [vmem:[#allocation2] sm:$0xff] (!%p1355_p4), %v1720_v4  ;;  %605 = vst [vmem:[#allocation2 + $0x8] sm:$0xff] (!%p1355_p4), %v1720_v4 }
  0x66   : > { %606 = vst [vmem:[#allocation2 + $0x10] sm:$0xff] (!%p1355_p4), %v1720_v4  ;;  %607 = vst [vmem:[#allocation2 + $0x18] sm:$0xff] (!%p1355_p4), %v1720_v4 }
  0x6a PF: > { %v1530_v5 = vld [vmem:[%s2010_s17 + $0x4] ss:$8 sps:$4 sm:$0xff]   ;;  %v1534_v7 = vld [vmem:[%s2010_s17] ss:$8 sps:$4 sm:$0xff]   ;;  %v1536_v9 = vld [vmem:[%s2010_s17 + $0x14] ss:$8 sps:$4 sm:$0xff]  }
  0x6b   : > { %v1532_v6 = vld [vmem:[%s2010_s17 + $0x104] ss:$8 sps:$4 sm:$0xff]   ;;  %1020 = vmatprep.subr.bf16.mxu1 %v1530_v5  ;;  %v1535_v8 = vld [vmem:[%s2010_s17 + $0x100] ss:$8 sps:$4 sm:$0xff]   ;;  %v1538_v10 = vld [vmem:[%s2010_s17 + $0x114] ss:$8 sps:$4 sm:$0xff]  }
  0x6c   : > { %1063 = vmatprep.subr.bf16.mxu0 %v1532_v6  ;;  %1021 = vmatpush1.bf16.msra.mxu1 %v1534_v7  ;;  %v1540_v11 = vld [vmem:[%s2010_s17 + $0x10] ss:$8 sps:$4 sm:$0xff]   ;;  %v1542_v13 = vld [vmem:[%s2010_s17 + $0x24] ss:$8 sps:$4 sm:$0xff]   ;;  %v1546_v15 = vld [vmem:[%s2010_s17 + $0x20] ss:$8 sps:$4 sm:$0xff]  }
  0x6d   : > { %1064 = vmatpush1.bf16.msra.mxu0 %v1535_v8  ;;  %1022 = vmatprep.subr.bf16.mxu1 %v1536_v9  ;;  %v1541_v12 = vld [vmem:[%s2010_s17 + $0x110] ss:$8 sps:$4 sm:$0xff]   ;;  %v1544_v14 = vld [vmem:[%s2010_s17 + $0x124] ss:$8 sps:$4 sm:$0xff]   ;;  %v1547_v16 = vld [vmem:[%s2010_s17 + $0x120] ss:$8 sps:$4 sm:$0xff]  }
  0x6e   : > { %1065 = vmatprep.subr.bf16.mxu0 %v1538_v10  ;;  %v1548_v17 = vld [vmem:[%s2010_s17 + $0x34] ss:$8 sps:$4 sm:$0xff]   ;;  %v1552_v19 = vld [vmem:[%s2010_s17 + $0x30] ss:$8 sps:$4 sm:$0xff]   ;;  %v1554_v21 = vld [vmem:[%s2010_s17 + $0x44] ss:$8 sps:$4 sm:$0xff]  }
  0x6f   : > { %v1550_v18 = vld [vmem:[%s2010_s17 + $0x134] ss:$8 sps:$4 sm:$0xff]   ;;  %v1553_v20 = vld [vmem:[%s2010_s17 + $0x130] ss:$8 sps:$4 sm:$0xff]   ;;  %v1556_v22 = vld [vmem:[%s2010_s17 + $0x144] ss:$8 sps:$4 sm:$0xff]  }
  0x70   : > { %1023 = vmatpush1.bf16.msra.mxu1 %v1540_v11  ;;  %v1558_v23 = vld [vmem:[%s2010_s17 + $0x40] ss:$8 sps:$4 sm:$0xff]   ;;  %v1560_v25 = vld [vmem:[%s2010_s17 + $0x54] ss:$8 sps:$4 sm:$0xff]   ;;  %v1564_v27 = vld [vmem:[%s2010_s17 + $0x50] ss:$8 sps:$4 sm:$0xff]  }
  0x71   : > { %1066 = vmatpush1.bf16.msra.mxu0 %v1541_v12  ;;  %1024 = vmatprep.subr.bf16.mxu1 %v1542_v13  ;;  %v1559_v24 = vld [vmem:[%s2010_s17 + $0x140] ss:$8 sps:$4 sm:$0xff]   ;;  %v1562_v26 = vld [vmem:[%s2010_s17 + $0x154] ss:$8 sps:$4 sm:$0xff]   ;;  %v1565_v28 = vld [vmem:[%s2010_s17 + $0x150] ss:$8 sps:$4 sm:$0xff]  }
  0x72   : > { %1067 = vmatprep.subr.bf16.mxu0 %v1544_v14  ;;  %v1566_v29 = vld [vmem:[%s2010_s17 + $0x64] ss:$8 sps:$4 sm:$0xff]   ;;  %v1570_v31 = vld [vmem:[%s2010_s17 + $0x60] ss:$8 sps:$4 sm:$0xff]   ;;  %v1572_v33 = vld [vmem:[%s2010_s17 + $0x74] ss:$8 sps:$4 sm:$0xff]  }
  0x73   : > { %v1568_v30 = vld [vmem:[%s2010_s17 + $0x164] ss:$8 sps:$4 sm:$0xff]   ;;  %v1571_v32 = vld [vmem:[%s2010_s17 + $0x160] ss:$8 sps:$4 sm:$0xff]   ;;  %v1574_v34 = vld [vmem:[%s2010_s17 + $0x174] ss:$8 sps:$4 sm:$0xff]  }
  0x74   : > { %1025 = vmatpush1.bf16.msra.mxu1 %v1546_v15  ;;  %v1576_v35 = vld [vmem:[%s2010_s17 + $0x70] ss:$8 sps:$4 sm:$0xff]   ;;  %v1578_v37 = vld [vmem:[%s2010_s17 + $0x84] ss:$8 sps:$4 sm:$0xff]   ;;  %v1582_v39 = vld [vmem:[%s2010_s17 + $0x80] ss:$8 sps:$4 sm:$0xff]  }
  0x75   : > { %1068 = vmatpush1.bf16.msra.mxu0 %v1547_v16  ;;  %1026 = vmatprep.subr.bf16.mxu1 %v1548_v17  ;;  %v1577_v36 = vld [vmem:[%s2010_s17 + $0x170] ss:$8 sps:$4 sm:$0xff]   ;;  %v1580_v38 = vld [vmem:[%s2010_s17 + $0x184] ss:$8 sps:$4 sm:$0xff]   ;;  %v1583_v40 = vld [vmem:[%s2010_s17 + $0x180] ss:$8 sps:$4 sm:$0xff]  }
  0x76   : > { %1069 = vmatprep.subr.bf16.mxu0 %v1550_v18  ;;  %v1584_v41 = vld [vmem:[%s2010_s17 + $0x94] ss:$8 sps:$4 sm:$0xff]   ;;  %v1588_v43 = vld [vmem:[%s2010_s17 + $0x90] ss:$8 sps:$4 sm:$0xff]   ;;  %v1590_v45 = vld [vmem:[%s2010_s17 + $0xa4] ss:$8 sps:$4 sm:$0xff]  }
  0x77   : > { %v1586_v42 = vld [vmem:[%s2010_s17 + $0x194] ss:$8 sps:$4 sm:$0xff]   ;;  %v1589_v44 = vld [vmem:[%s2010_s17 + $0x190] ss:$8 sps:$4 sm:$0xff]   ;;  %v1592_v46 = vld [vmem:[%s2010_s17 + $0x1a4] ss:$8 sps:$4 sm:$0xff]  }
  0x78   : > { %1027 = vmatpush1.bf16.msra.mxu1 %v1552_v19  ;;  %v1594_v47 = vld [vmem:[%s2010_s17 + $0xa0] ss:$8 sps:$4 sm:$0xff]   ;;  %v1596_v49 = vld [vmem:[%s2010_s17 + $0xb4] ss:$8 sps:$4 sm:$0xff]   ;;  %v1600_v51 = vld [vmem:[%s2010_s17 + $0xb0] ss:$8 sps:$4 sm:$0xff]  }
  0x79   : > { %1070 = vmatpush1.bf16.msra.mxu0 %v1553_v20  ;;  %1028 = vmatprep.subr.bf16.mxu1 %v1554_v21  ;;  %v1595_v48 = vld [vmem:[%s2010_s17 + $0x1a0] ss:$8 sps:$4 sm:$0xff]   ;;  %v1598_v50 = vld [vmem:[%s2010_s17 + $0x1b4] ss:$8 sps:$4 sm:$0xff]   ;;  %v1601_v53 = vld [vmem:[%s2010_s17 + $0x1b0] ss:$8 sps:$4 sm:$0xff]  }
  0x7a   : > { %1071 = vmatprep.subr.bf16.mxu0 %v1556_v22  ;;  %v1628_v52 = vld [vmem:[%s2008_s19 + $0x4] ss:$16 sps:$4 sm:$0xff]   ;;  %v1631_v56 = vld [vmem:[%s2008_s19 + $0xc] ss:$16 sps:$4 sm:$0xff]   ;;  %v1606_v57 = vld [vmem:[%s2010_s17 + $0xc0] ss:$8 sps:$4 sm:$0xff]  }
  0x7b   : > { %v1602_v54 = vld [vmem:[%s2010_s17 + $0xc4] ss:$8 sps:$4 sm:$0xff]   ;;  %1052 = vmatprep.mubr.bf16.mxu1 %v1628_v52  ;;  %1095 = vmatprep.mubr.bf16.mxu0 %v1631_v56  ;;  %v1607_v58 = vld [vmem:[%s2010_s17 + $0x1c0] ss:$8 sps:$4 sm:$0xff]   ;;  %v1608_v59 = vld [vmem:[%s2010_s17 + $0xd4] ss:$8 sps:$4 sm:$0xff]  }
  0x7c   : > { %1029 = vmatpush1.bf16.msra.mxu1 %v1558_v23  ;;  %v1604_v55 = vld [vmem:[%s2010_s17 + $0x1c4] ss:$8 sps:$4 sm:$0xff]   ;;  %v1610_v60 = vld [vmem:[%s2010_s17 + $0x1d4] ss:$8 sps:$4 sm:$0xff]   ;;  %v1612_v61 = vld [vmem:[%s2010_s17 + $0xd0] ss:$8 sps:$4 sm:$0xff]  }
  0x7d   : > { %1072 = vmatpush1.bf16.msra.mxu0 %v1559_v24  ;;  %1030 = vmatprep.subr.bf16.mxu1 %v1560_v25  ;;  %v1613_v62 = vld [vmem:[%s2010_s17 + $0x1d0] ss:$8 sps:$4 sm:$0xff]   ;;  %v1614_v63 = vld [vmem:[%s2010_s17 + $0xe4] ss:$8 sps:$4 sm:$0xff]   ;;  %v1618_v1 = vld [vmem:[%s2010_s17 + $0xe0] ss:$8 sps:$4 sm:$0xff]  }
  0x7e   : > { %1073 = vmatprep.subr.bf16.mxu0 %v1562_v26  ;;  %v1616_v0 = vld [vmem:[%s2010_s17 + $0x1e4] ss:$8 sps:$4 sm:$0xff]   ;;  %v1619_v2 = vld [vmem:[%s2010_s17 + $0x1e0] ss:$8 sps:$4 sm:$0xff]   ;;  %v1620_v3 = vld [vmem:[%s2010_s17 + $0xf4] ss:$8 sps:$4 sm:$0xff]  }
  0x7f   : > { %v1622_v4 = vld [vmem:[%s2010_s17 + $0x1f4] ss:$8 sps:$4 sm:$0xff]   ;;  %v1624_v5 = vld [vmem:[%s2010_s17 + $0xf0] ss:$8 sps:$4 sm:$0xff]   ;;  %v608_v10 = vld [vmem:[#allocation2] sm:$0xff]  ;;  %p1424_p5 = scmp.ne.s32.totalorder %s1702_s21, 1 }
  0x80   : > { %1031 = vmatpush1.bf16.msra.mxu1 %v1564_v27  ;;  %v1625_v6 = vld [vmem:[%s2010_s17 + $0x1f0] ss:$8 sps:$4 sm:$0xff]   ;;  %v609_v14 = vld [vmem:[#allocation2 + $0x8] sm:$0xff] }
  0x81   : > { %1074 = vmatpush1.bf16.msra.mxu0 %v1565_v28  ;;  %1032 = vmatprep.subr.bf16.mxu1 %v1566_v29  ;;  %v1626_v7 = vld [vmem:[%s2008_s19] ss:$16 sps:$4 sm:$0xff]   ;;  %v1629_v8 = vld [vmem:[%s2008_s19 + $0x8] ss:$16 sps:$4 sm:$0xff]   ;;  %v1124_v29 = vlaneseq (!%p1424_p5) }
  0x82   : > { %1075 = vmatprep.subr.bf16.mxu0 %v1568_v30  ;;  %v610_v18 = vld [vmem:[#allocation2 + $0x10] sm:$0xff]  ;;  %v611_v23 = vld [vmem:[#allocation2 + $0x18] sm:$0xff] }
  0x83   : > { %v1125_v30 = vshrl.u32 (!%p1424_p5), %v1124_v29, 7 }
  0x84   : > { %1033 = vmatpush1.bf16.msra.mxu1 %v1570_v31  ;;  %v1122_v31 = vld [vmem:[%s591_s9] sm:$0x3] (!%p1424_p5) }
  0x85   : > { %1076 = vmatpush1.bf16.msra.mxu0 %v1571_v32  ;;  %1034 = vmatprep.subr.bf16.mxu1 %v1572_v33  ;;  %v1138_v32 = vld [vmem:[%s596_s1] sm:$0x3] (!%p1424_p5) }
  0x86   : > { %1077 = vmatprep.subr.bf16.mxu0 %v1574_v34  ;;  %v1126_v34 = vsub.s32 (!%p1424_p5), 0, %v1125_v30 }
  0x88   : > { %1035 = vmatpush1.bf16.msra.mxu1 %v1576_v35  ;;  %v1130_v35 = vsub.s32 (!%p1424_p5), 1, %v1125_v30 }
  0x89   : > { %1078 = vmatpush1.bf16.msra.mxu0 %v1577_v36  ;;  %1036 = vmatprep.subr.bf16.mxu1 %v1578_v37 }
  0x8a   : > { %1079 = vmatprep.subr.bf16.mxu0 %v1580_v38 }
  0x8c   : > { %1037 = vmatpush1.bf16.msra.mxu1 %v1582_v39  ;;  %v1127_v39 = vrot.slane (!%p1424_p5), %v1122_v31, %v1126_v34 }
  0x8d   : > { %1080 = vmatpush1.bf16.msra.mxu0 %v1583_v40  ;;  %1038 = vmatprep.subr.bf16.mxu1 %v1584_v41  ;;  %v1131_v40 = vrot.slane (!%p1424_p5), %v1122_v31, %v1130_v35  ;;  %v1143_v41 = vrot.slane (!%p1424_p5), %v1138_v32, %v1126_v34 }
  0x8e   : > { %1081 = vmatprep.subr.bf16.mxu0 %v1586_v42  ;;  %v1147_v42 = vrot.slane (!%p1424_p5), %v1138_v32, %v1130_v35 }
  0x90   : > { %1039 = vmatpush1.bf16.msra.mxu1 %v1588_v43 }
  0x91   : > { %1082 = vmatpush1.bf16.msra.mxu0 %v1589_v44  ;;  %1040 = vmatprep.subr.bf16.mxu1 %v1590_v45 }
  0x92   : > { %1083 = vmatprep.subr.bf16.mxu0 %v1592_v46 }
  0x94   : > { %1041 = vmatpush1.bf16.msra.mxu1 %v1594_v47 }
  0x95   : > { %1084 = vmatpush1.bf16.msra.mxu0 %v1595_v48  ;;  %1042 = vmatprep.subr.bf16.mxu1 %v1596_v49 }
  0x96   : > { %1085 = vmatprep.subr.bf16.mxu0 %v1598_v50 }
  0x98   : > { %1043 = vmatpush1.bf16.msra.mxu1 %v1600_v51 }
  0x99   : > { %1086 = vmatpush1.bf16.msra.mxu0 %v1601_v53  ;;  %1044 = vmatprep.subr.bf16.mxu1 %v1602_v54 }
  0x9a   : > { %1087 = vmatprep.subr.bf16.mxu0 %v1604_v55 }
  0x9c   : > { %1045 = vmatpush1.bf16.msra.mxu1 %v1606_v57 }
  0x9d   : > { %1088 = vmatpush1.bf16.msra.mxu0 %v1607_v58  ;;  %1046 = vmatprep.subr.bf16.mxu1 %v1608_v59 }
  0x9e   : > { %1089 = vmatprep.subr.bf16.mxu0 %v1610_v60 }
  0xa0   : > { %1047 = vmatpush1.bf16.msra.mxu1 %v1612_v61 }
  0xa1   : > { %1090 = vmatpush1.bf16.msra.mxu0 %v1613_v62  ;;  %1048 = vmatprep.subr.bf16.mxu1 %v1614_v63 }
  0xa2   : > { %1091 = vmatprep.subr.bf16.mxu0 %v1616_v0 }
  0xa4   : > { %1049 = vmatpush1.bf16.msra.mxu1 %v1618_v1 }
  0xa5   : > { %1092 = vmatpush1.bf16.msra.mxu0 %v1619_v2  ;;  %1050 = vmatprep.subr.bf16.mxu1 %v1620_v3 }
  0xa6   : > { %1093 = vmatprep.subr.bf16.mxu0 %v1622_v4 }
  0xa8   : > { %1051 = vmatpush1.bf16.msra.mxu1 %v1624_v5 }
  0xa9   : > { %1094 = vmatpush1.bf16.msra.mxu0 %v1625_v6 }
  0xab   : > { %1053 = vmatmul.mubr.bf16.vlgmr.msra.gmra.mrb[0].mxu1 %v1626_v7 }
  0xac   : > { %1096 = vmatmul.mubr.bf16.vlgmr.msra.gmra.mrb[0].mxu0 %v1629_v8 }
 0x17e   : > { %v1054_v9 = vpop.f32.mrb[0].mxu1 }
 0x17f   : > { %v1097_v11 = vpop.f32.mrb[0].mxu0  ;;  %v1056_v13 = vpop.f32.mrb[1].mxu1 }
 0x180   : > { %v1098_v12 = vadd.f32 %v1097_v11, %v1054_v9  ;;  %v1099_v15 = vpop.f32.mrb[1].mxu0  ;;  %v1058_v17 = vpop.f32.mrb[2].mxu1 }
 0x181   : > { %v1100_v16 = vadd.f32 %v1099_v15, %v1056_v13  ;;  %v1101_v19 = vpop.f32.mrb[2].mxu0  ;;  %v1060_v22 = vpop.f32.mrb[3].mxu1  ;;  %1117 = sbr.rel (%p1424_p5) target bundleno = 408 (0x198), region = 105 }
 0x182   : > { %v1106_v20 = vadd.f32 %v1098_v12, %v608_v10  ;;  %v1102_v21 = vadd.f32 %v1101_v19, %v1058_v17  ;;  %v1103_v24 = vpop.f32.mrb[3].mxu0 }
 0x183   : > { %v1107_v25 = vadd.f32 %v1100_v16, %v609_v14  ;;  %v1104_v26 = vadd.f32 %v1103_v24, %v1060_v22 }
 0x184   : > { %1110 = vst [vmem:[#allocation2] sm:$0xff] %v1106_v20  ;;  %v1108_v27 = vadd.f32 %v1102_v21, %v610_v18 }
 0x185   : > { %1111 = vst [vmem:[#allocation2 + $0x8] sm:$0xff] %v1107_v25  ;;  %v1109_v28 = vadd.f32 %v1104_v26, %v611_v23 }
 0x186   : > { %1112 = vst [vmem:[#allocation2 + $0x10] sm:$0xff] %v1108_v27 }
 0x187   : > { %1113 = vst [vmem:[#allocation2 + $0x18] sm:$0xff] %v1109_v28 }
 0x18b   : > { %v1118_v33 = vld [vmem:[#allocation2] sm:$0xff] }
 0x18c   : > { %v1119_v36 = vld [vmem:[#allocation2 + $0x8] sm:$0xff]  ;;  %v1134_v43 = vmul.f32 %v1127_v39, %v1118_v33 }
 0x18d   : > { %v1120_v37 = vld [vmem:[#allocation2 + $0x10] sm:$0xff]  ;;  %v1135_v44 = vmul.f32 %v1131_v40, %v1119_v36 }
 0x18e   : > { %v1121_v38 = vld [vmem:[#allocation2 + $0x18] sm:$0xff]  ;;  %v1136_v45 = vmul.f32 %v1127_v39, %v1120_v37  ;;  %v1150_v47 = vadd.f32 %v1143_v41, %v1134_v43 }
 0x18f   : > { %v1137_v46 = vmul.f32 %v1131_v40, %v1121_v38  ;;  %v1151_v48 = vadd.f32 %v1147_v42, %v1135_v44 }
 0x190   : > { %v1152_v49 = vadd.f32 %v1143_v41, %v1136_v45  ;;  %v1154_v51 = vmax.f32 %v1150_v47, 0.0 }
 0x191   : > { %v1153_v50 = vadd.f32 %v1147_v42, %v1137_v46  ;;  %v1155_v52 = vmax.f32 %v1151_v48, 0.0 }
 0x192   : > { %v1156_v53 = vmax.f32 %v1152_v49, 0.0 }
 0x193   : > { %v1157_v54 = vmax.f32 %v1153_v50, 0.0  ;;  %v1434_v55 = vpack.c.bf16 %v1155_v52, %v1154_v51 }
 0x195   : > { %v1435_v56 = vpack.c.bf16 %v1157_v54, %v1156_v53  ;;  %1170 = vst [vmem:[%s2012_s15] sm:$0xff] %v1434_v55 }
 0x197   : > { %1171 = vst [vmem:[%s2012_s15 + $0x8] sm:$0xff] %v1435_v56 }
 0x198 PF: > { %1178 = sbr.rel (!%p1840_p12) target bundleno = 416 (0x1a0), region = 109  ;;  %s1436_s1 = sshll.u32 (%p1840_p12), %s1706_s22, 3 }
 0x199   : > { %s1184_s29 = scalar_lea.vmem (%p1840_p12), %s2141_s4, %s1436_s1 }
 0x19c   : > { %v1214_v57 = vld [vmem:[%s2012_s15] sm:$0xff] (%p1840_p12) }
 0x19d   : > { %1215 = vst [vmem:[%s1184_s29] sm:$0xff] (%p1840_p12), %v1214_v57 }
 0x19e   : > { %v1216_v58 = vld [vmem:[%s2012_s15 + $0x8] sm:$0xff] (%p1840_p12) }
 0x19f   : > { %1217 = vst [vmem:[%s1184_s29 + $0x10] sm:$0xff] %v1216_v58 }
 0x1a0 PF: > { %s14_s25 = sadd.s32 1, %s1718_s25   ;;  %s2153_s14 = sld [smem:[#allocation6_spill]] }
 0x1a1   : > { %p11_p6 = scmp.ge.s32.totalorder %s14_s25, 6   ;;  %s2154_s27 = sld [smem:[#allocation7_spill]] }
 0x1a2   : > { %s2155_s15 = smov %s1682_s16  ;;  %s2156_s16 = smov %s1838_s13 }
 0x1a3   : > { %s2157_s17 = smov %s1690_s18  ;;  %s2158_s18 = smov %s1835_s12 }
 0x1a4   : > { %s2159_s19 = smov %s1698_s20  ;;  %s2160_s20 = smov %s1821_s7 }
 0x1a5   : > { %s2161_s21 = smov %s1710_s23  ;;  %s2162_s22 = smov %s1714_s24 }
 0x1a6   : > { %s2163_s23 = smov %s2153_s14  ;;  %13 = sbr.rel (!%p11_p6) target bundleno = 9 (0x9), region = 192 }
 0x1a7   : > { %s2164_s24 = smov %s2154_s27 }

// kernel: resnet50_forward.102
= control target key start
LH: loop header
LB: loop body
LE: loop exit
PB: predicated region body
PF: predicated region fallthrough
CT: control target
= control target key end

     0   :  { %s2137_s0 = inlined_call_operand.vmem [shape: bf16[16,4608], index: 0, kind: input, shape index: {}]   ;;  %s2138_s1 = inlined_call_operand.vmem [shape: bf16[4608,512], index: 1, kind: input, shape index: {}]   ;;  %s2139_s2 = inlined_call_operand.vmem [shape: f32[1,512], index: 2, kind: input, shape index: {}]   ;;  %s2140_s3 = inlined_call_operand.vmem [shape: f32[1,512], index: 3, kind: input, shape index: {}]   ;;  %s2141_s4 = inlined_call_operand.vmem [shape: bf16[16,512], index: 4, kind: output, shape index: {}]  }
   0x1   :  { %2144 = sst [smem:[#allocation8_spill]] %s2137_s0 }
   0x2   :  { %2145 = sst [smem:[#allocation9_spill]] %s2138_s1 }
   0x3   :  { %s1746_s15 = smov 0   ;;  %s1748_s16 = smov 0  }
   0x4   :  { %s1750_s17 = smov 0   ;;  %s1752_s18 = smov 0  }
   0x5   :  { %s1754_s19 = smov 0   ;;  %s1756_s20 = smov 0  }
   0x6   :  { %s1758_s21 = smov 0   ;;  %s1760_s22 = smov 0  }
   0x7   :  { %s1762_s23 = smov 0   ;;  %s1764_s24 = smov 0  }
   0x8   :  { %s1766_s25 = smov 0  }
   0x9 LB: > { %s1337_s26 = sadd.s32 4294967295, %s1718_s25   ;;  %s26_s27 = sadd.s32 1, %s1710_s23  ;;  %s1718_s25 = sphi %s1766_s25, %s14_s25   ;;  %s1714_s24 = sphi %s1764_s24, %s2164_s24   ;;  %s1710_s23 = sphi %s1762_s23, %s2163_s23   ;;  %s1706_s22 = sphi %s1760_s22, %s2162_s22   ;;  %s1702_s21 = sphi %s1758_s21, %s2161_s21   ;;  %s1698_s20 = sphi %s1756_s20, %s2160_s20   ;;  %s1694_s19 = sphi %s1754_s19, %s2159_s19   ;;  %s1690_s18 = sphi %s1752_s18, %s2158_s18   ;;  %s1686_s17 = sphi %s1750_s17, %s2157_s17   ;;  %s1682_s16 = sphi %s1748_s16, %s2156_s16   ;;  %s1678_s15 = sphi %s1746_s15, %s2155_s15  }
   0xa   : > { %p27_p0 = scmp.ge.s32.totalorder %s26_s27, 9  ;;  %s29_s28 = sadd.s32 1, %s1714_s24 }
   0xb   : > { %s42_s29 = sadd.s32 1, %s1698_s20  ;;  %p49_p1 = scmp.ne.s32.totalorder %s1698_s20, %s1694_s19 }
   0xc   : > { %s2166_s27 = smov (%p27_p0, %s26_s27), 0  ;;  %s2168_s28 = smov (!%p27_p0, %s29_s28), %s1714_s24 }
   0xd   : > { %2146 = sst [smem:[#allocation6_spill]] %s2166_s27  ;;  %s38_s30 = ssub.s32 %s1710_s23, %s2166_s27 }
   0xe   : > { %p50_p2 = scmp.eq.s32.totalorder %s1718_s25, 0  ;;  %p31_p3 = scmp.ge.s32.totalorder %s2168_s28, 2 }
   0xf   : > { %p40_p4 = scmp.eq.s32.totalorder %s38_s30, 0  ;;  %s70_s6 = sadd.s32 1, %s1690_s18 }
  0x10   : > { %p1813_p5 = por %p50_p2, %p49_p1  ;;  %s2170_s28 = smov (%p31_p3, %s2168_s28), 0 }
  0x11   : > { %2148 = sst [smem:[#allocation7_spill]] %s2170_s28  ;;  %s66_s8 = ssub.s32 %s1714_s24, %s2170_s28 }
  0x12   : > { %s1821_s7 = scalar_select %p40_p4, %s1698_s20, %s42_s29  }
  0x13   : > { %p77_p6 = scmp.ne.s32.totalorder %s1690_s18, %s1686_s17  ;;  %s67_s9 = sor.u32 %s66_s8, %s38_s30 }
  0x14   : > { %p148_p7 = scmp.eq.s32.totalorder %s66_s8, 0  ;;  %p68_p8 = scmp.eq.s32.totalorder %s67_s9, 0 }
  0x15   : > { %p1827_p9 = por %p77_p6, %p50_p2  ;;  %s150_s11 = sadd.s32 1, %s1682_s16 }
  0x16   : > { %p160_p10 = scmp.ne.s32.totalorder %s1682_s16, %s1678_s15  ;;  %p161_p11 = scmp.eq.s32.totalorder %s1337_s26, 17 }
  0x17   : > { %s1835_s12 = scalar_select %p68_p8, %s1690_s18, %s70_s6  }
  0x18   : > { %s1838_s13 = scalar_select %p148_p7, %s1682_s16, %s150_s11  }
  0x19   : > { %p1840_p12 = por %p161_p11, %p160_p10  ;;  %p1340_p13 = scmp.ge.s32.totalorder %s1718_s25, 18 }
  0x1b   : > { %183 = sbr.rel (%p1340_p13) target bundleno = 88 (0x58), region = 16 }
  0x22   : > { %186 = sbr.rel (!%p1813_p5) target bundleno = 46 (0x2e), region = 20  ;;  %s188_s29 = sand.u32 (%p1813_p5), 1, %s1698_s20  }
  0x23   : > { %s1432_s30 = sshll.u32 (%p1813_p5), %s1710_s23, 4  ;;  %s1341_s8 = sshll.u32 (%p1813_p5), %s188_s29, 5 }
  0x24   : > { %s2151_s0 = sld [smem:[#allocation8_spill]] (%p1813_p5)  ;;  %s190_s26 = scalar_lea.vmem (%p1813_p5), [#allocation3], %s1341_s8 }
  0x2a   : > { %s196_s11 = scalar_lea.vmem %s2151_s0, %s1432_s30 }
  0x2b   : > { %v209_v0 = vld [vmem:[%s196_s11] sm:$0xff]  ;;  %v211_v1 = vld [vmem:[%s196_s11 + $0x8] sm:$0xff]  ;;  %v213_v2 = vld [vmem:[%s196_s11 + $0x90] sm:$0xff] }
  0x2c   : > { %210 = vst [vmem:[%s190_s26] sm:$0xff] %v209_v0  ;;  %212 = vst [vmem:[%s190_s26 + $0x8] sm:$0xff] %v211_v1  ;;  %v215_v3 = vld [vmem:[%s196_s11 + $0x98] sm:$0xff] }
  0x2d   : > { %214 = vst [vmem:[%s190_s26 + $0x10] sm:$0xff] %v213_v2  ;;  %216 = vst [vmem:[%s190_s26 + $0x18] sm:$0xff] %v215_v3 }
  0x2e PF: > { %222 = sbr.rel (!%p1827_p9) target bundleno = 88 (0x58), region = 43  ;;  %s224_s5 = sand.u32 (%p1827_p9), 1, %s1690_s18  }
  0x2f   : > { %s1346_s29 = sshll.u32 (%p1827_p9), %s1714_s24, 1  ;;  %s1344_s6 = sshll.u32 (%p1827_p9), %s224_s5, 9 }
  0x30   : > { %s1433_s30 = sshll.u32 (%p1827_p9), %s1710_s23, 8  ;;  %s2152_s1 = sld [smem:[#allocation9_spill]] (%p1827_p9) }
  0x31   : > { %s230_s9 = sadd.s32 (%p1827_p9), %s1433_s30, %s1346_s29  ;;  %s1865_s10 = scalar_lea.vmem (%p1827_p9), [#allocation4], %s1344_s6 }
  0x32   : > { %s1348_s0 = sshll.u32 (%p1827_p9), %s230_s9, 2 }
  0x36   : > { %s1860_s27 = scalar_lea.vmem %s2152_s1, %s1348_s0 }
  0x37   : > { %v386_v4 = vld [vmem:[%s1860_s27] sm:$0xff]  ;;  %v388_v5 = vld [vmem:[%s1860_s27 + $0x10] sm:$0xff] }
  0x38   : > { %v390_v6 = vld [vmem:[%s1860_s27 + $0x20] sm:$0xff]  ;;  %387 = vst [vmem:[%s1865_s10] sm:$0xff] %v386_v4  ;;  %389 = vst [vmem:[%s1865_s10 + $0x8] sm:$0xff] %v388_v5  ;;  %v392_v7 = vld [vmem:[%s1860_s27 + $0x30] sm:$0xff] }
  0x39   : > { %391 = vst [vmem:[%s1865_s10 + $0x10] sm:$0xff] %v390_v6  ;;  %v394_v8 = vld [vmem:[%s1860_s27 + $0x40] sm:$0xff]  ;;  %v396_v9 = vld [vmem:[%s1860_s27 + $0x50] sm:$0xff]  ;;  %393 = vst [vmem:[%s1865_s10 + $0x18] sm:$0xff] %v392_v7 }
  0x3a   : > { %395 = vst [vmem:[%s1865_s10 + $0x20] sm:$0xff] %v394_v8  ;;  %397 = vst [vmem:[%s1865_s10 + $0x28] sm:$0xff] %v396_v9  ;;  %v398_v10 = vld [vmem:[%s1860_s27 + $0x60] sm:$0xff]  ;;  %v400_v11 = vld [vmem:[%s1860_s27 + $0x70] sm:$0xff] }
  0x3b   : > { %v402_v12 = vld [vmem:[%s1860_s27 + $0x80] sm:$0xff]  ;;  %399 = vst [vmem:[%s1865_s10 + $0x30] sm:$0xff] %v398_v10  ;;  %401 = vst [vmem:[%s1865_s10 + $0x38] sm:$0xff] %v400_v11  ;;  %v404_v13 = vld [vmem:[%s1860_s27 + $0x90] sm:$0xff] }
  0x3c   : > { %403 = vst [vmem:[%s1865_s10 + $0x40] sm:$0xff] %v402_v12  ;;  %v406_v14 = vld [vmem:[%s1860_s27 + $0xa0] sm:$0xff]  ;;  %v408_v15 = vld [vmem:[%s1860_s27 + $0xb0] sm:$0xff]  ;;  %405 = vst [vmem:[%s1865_s10 + $0x48] sm:$0xff] %v404_v13 }
  0x3d   : > { %407 = vst [vmem:[%s1865_s10 + $0x50] sm:$0xff] %v406_v14  ;;  %409 = vst [vmem:[%s1865_s10 + $0x58] sm:$0xff] %v408_v15  ;;  %v410_v16 = vld [vmem:[%s1860_s27 + $0xc0] sm:$0xff]  ;;  %v412_v17 = vld [vmem:[%s1860_s27 + $0xd0] sm:$0xff] }
  0x3e   : > { %v414_v18 = vld [vmem:[%s1860_s27 + $0xe0] sm:$0xff]  ;;  %411 = vst [vmem:[%s1865_s10 + $0x60] sm:$0xff] %v410_v16  ;;  %413 = vst [vmem:[%s1865_s10 + $0x68] sm:$0xff] %v412_v17  ;;  %v416_v19 = vld [vmem:[%s1860_s27 + $0xf0] sm:$0xff] }
  0x3f   : > { %415 = vst [vmem:[%s1865_s10 + $0x70] sm:$0xff] %v414_v18  ;;  %v418_v20 = vld [vmem:[%s1860_s27 + $0x100] sm:$0xff]  ;;  %v420_v21 = vld [vmem:[%s1860_s27 + $0x110] sm:$0xff]  ;;  %417 = vst [vmem:[%s1865_s10 + $0x78] sm:$0xff] %v416_v19 }
  0x40   : > { %419 = vst [vmem:[%s1865_s10 + $0x80] sm:$0xff] %v418_v20  ;;  %421 = vst [vmem:[%s1865_s10 + $0x88] sm:$0xff] %v420_v21  ;;  %v422_v22 = vld [vmem:[%s1860_s27 + $0x120] sm:$0xff]  ;;  %v424_v23 = vld [vmem:[%s1860_s27 + $0x130] sm:$0xff] }
  0x41   : > { %v426_v24 = vld [vmem:[%s1860_s27 + $0x140] sm:$0xff]  ;;  %423 = vst [vmem:[%s1865_s10 + $0x90] sm:$0xff] %v422_v22  ;;  %425 = vst [vmem:[%s1865_s10 + $0x98] sm:$0xff] %v424_v23  ;;  %v428_v25 = vld [vmem:[%s1860_s27 + $0x150] sm:$0xff] }
  0x42   : > { %427 = vst [vmem:[%s1865_s10 + $0xa0] sm:$0xff] %v426_v24  ;;  %v430_v26 = vld [vmem:[%s1860_s27 + $0x160] sm:$0xff]  ;;  %v432_v27 = vld [vmem:[%s1860_s27 + $0x170] sm:$0xff]  ;;  %429 = vst [vmem:[%s1865_s10 + $0xa8] sm:$0xff] %v428_v25 }
  0x43   : > { %431 = vst [vmem:[%s1865_s10 + $0xb0] sm:$0xff] %v430_v26  ;;  %433 = vst [vmem:[%s1865_s10 + $0xb8] sm:$0xff] %v432_v27  ;;  %v434_v28 = vld [vmem:[%s1860_s27 + $0x180] sm:$0xff]  ;;  %v436_v29 = vld [vmem:[%s1860_s27 + $0x190] sm:$0xff] }
  0x44   : > { %v438_v30 = vld [vmem:[%s1860_s27 + $0x1a0] sm:$0xff]  ;;  %435 = vst [vmem:[%s1865_s10 + $0xc0] sm:$0xff] %v434_v28  ;;  %437 = vst [vmem:[%s1865_s10 + $0xc8] sm:$0xff] %v436_v29  ;;  %v440_v31 = vld [vmem:[%s1860_s27 + $0x1b0] sm:$0xff] }
  0x45   : > { %439 = vst [vmem:[%s1865_s10 + $0xd0] sm:$0xff] %v438_v30  ;;  %v442_v32 = vld [vmem:[%s1860_s27 + $0x1c0] sm:$0xff]  ;;  %v444_v33 = vld [vmem:[%s1860_s27 + $0x1d0] sm:$0xff]  ;;  %441 = vst [vmem:[%s1865_s10 + $0xd8] sm:$0xff] %v440_v31 }
  0x46   : > { %443 = vst [vmem:[%s1865_s10 + $0xe0] sm:$0xff] %v442_v32  ;;  %445 = vst [vmem:[%s1865_s10 + $0xe8] sm:$0xff] %v444_v33  ;;  %v446_v34 = vld [vmem:[%s1860_s27 + $0x1e0] sm:$0xff]  ;;  %v448_v35 = vld [vmem:[%s1860_s27 + $0x1f0] sm:$0xff] }
  0x47   : > { %v450_v36 = vld [vmem:[%s1860_s27 + $0x200] sm:$0xff]  ;;  %447 = vst [vmem:[%s1865_s10 + $0xf0] sm:$0xff] %v446_v34  ;;  %449 = vst [vmem:[%s1865_s10 + $0xf8] sm:$0xff] %v448_v35  ;;  %v452_v37 = vld [vmem:[%s1860_s27 + $0x210] sm:$0xff] }
  0x48   : > { %451 = vst [vmem:[%s1865_s10 + $0x100] sm:$0xff] %v450_v36  ;;  %v454_v38 = vld [vmem:[%s1860_s27 + $0x220] sm:$0xff]  ;;  %v456_v39 = vld [vmem:[%s1860_s27 + $0x230] sm:$0xff]  ;;  %453 = vst [vmem:[%s1865_s10 + $0x108] sm:$0xff] %v452_v37 }
  0x49   : > { %455 = vst [vmem:[%s1865_s10 + $0x110] sm:$0xff] %v454_v38  ;;  %457 = vst [vmem:[%s1865_s10 + $0x118] sm:$0xff] %v456_v39  ;;  %v458_v40 = vld [vmem:[%s1860_s27 + $0x240] sm:$0xff]  ;;  %v460_v41 = vld [vmem:[%s1860_s27 + $0x250] sm:$0xff] }
  0x4a   : > { %v462_v42 = vld [vmem:[%s1860_s27 + $0x260] sm:$0xff]  ;;  %459 = vst [vmem:[%s1865_s10 + $0x120] sm:$0xff] %v458_v40  ;;  %461 = vst [vmem:[%s1865_s10 + $0x128] sm:$0xff] %v460_v41  ;;  %v464_v43 = vld [vmem:[%s1860_s27 + $0x270] sm:$0xff] }
  0x4b   : > { %463 = vst [vmem:[%s1865_s10 + $0x130] sm:$0xff] %v462_v42  ;;  %v466_v44 = vld [vmem:[%s1860_s27 + $0x280] sm:$0xff]  ;;  %v468_v45 = vld [vmem:[%s1860_s27 + $0x290] sm:$0xff]  ;;  %465 = vst [vmem:[%s1865_s10 + $0x138] sm:$0xff] %v464_v43 }
  0x4c   : > { %467 = vst [vmem:[%s1865_s10 + $0x140] sm:$0xff] %v466_v44  ;;  %469 = vst [vmem:[%s1865_s10 + $0x148] sm:$0xff] %v468_v45  ;;  %v470_v46 = vld [vmem:[%s1860_s27 + $0x2a0] sm:$0xff]  ;;  %v472_v47 = vld [vmem:[%s1860_s27 + $0x2b0] sm:$0xff] }
  0x4d   : > { %v474_v48 = vld [vmem:[%s1860_s27 + $0x2c0] sm:$0xff]  ;;  %471 = vst [vmem:[%s1865_s10 + $0x150] sm:$0xff] %v470_v46  ;;  %473 = vst [vmem:[%s1865_s10 + $0x158] sm:$0xff] %v472_v47  ;;  %v476_v49 = vld [vmem:[%s1860_s27 + $0x2d0] sm:$0xff] }
  0x4e   : > { %475 = vst [vmem:[%s1865_s10 + $0x160] sm:$0xff] %v474_v48  ;;  %v478_v50 = vld [vmem:[%s1860_s27 + $0x2e0] sm:$0xff]  ;;  %v480_v51 = vld [vmem:[%s1860_s27 + $0x2f0] sm:$0xff]  ;;  %477 = vst [vmem:[%s1865_s10 + $0x168] sm:$0xff] %v476_v49 }
  0x4f   : > { %479 = vst [vmem:[%s1865_s10 + $0x170] sm:$0xff] %v478_v50  ;;  %481 = vst [vmem:[%s1865_s10 + $0x178] sm:$0xff] %v480_v51  ;;  %v482_v52 = vld [vmem:[%s1860_s27 + $0x300] sm:$0xff]  ;;  %v484_v53 = vld [vmem:[%s1860_s27 + $0x310] sm:$0xff] }
  0x50   : > { %v486_v54 = vld [vmem:[%s1860_s27 + $0x320] sm:$0xff]  ;;  %483 = vst [vmem:[%s1865_s10 + $0x180] sm:$0xff] %v482_v52  ;;  %485 = vst [vmem:[%s1865_s10 + $0x188] sm:$0xff] %v484_v53  ;;  %v488_v55 = vld [vmem:[%s1860_s27 + $0x330] sm:$0xff] }
  0x51   : > { %487 = vst [vmem:[%s1865_s10 + $0x190] sm:$0xff] %v486_v54  ;;  %v490_v56 = vld [vmem:[%s1860_s27 + $0x340] sm:$0xff]  ;;  %v492_v57 = vld [vmem:[%s1860_s27 + $0x350] sm:$0xff]  ;;  %489 = vst [vmem:[%s1865_s10 + $0x198] sm:$0xff] %v488_v55 }
  0x52   : > { %491 = vst [vmem:[%s1865_s10 + $0x1a0] sm:$0xff] %v490_v56  ;;  %493 = vst [vmem:[%s1865_s10 + $0x1a8] sm:$0xff] %v492_v57  ;;  %v494_v58 = vld [vmem:[%s1860_s27 + $0x360] sm:$0xff]  ;;  %v496_v59 = vld [vmem:[%s1860_s27 + $0x370] sm:$0xff] }
  0x53   : > { %v498_v60 = vld [vmem:[%s1860_s27 + $0x380] sm:$0xff]  ;;  %495 = vst [vmem:[%s1865_s10 + $0x1b0] sm:$0xff] %v494_v58  ;;  %497 = vst [vmem:[%s1865_s10 + $0x1b8] sm:$0xff] %v496_v59  ;;  %v500_v61 = vld [vmem:[%s1860_s27 + $0x390] sm:$0xff] }
  0x54   : > { %499 = vst [vmem:[%s1865_s10 + $0x1c0] sm:$0xff] %v498_v60  ;;  %v502_v62 = vld [vmem:[%s1860_s27 + $0x3a0] sm:$0xff]  ;;  %v504_v63 = vld [vmem:[%s1860_s27 + $0x3b0] sm:$0xff]  ;;  %501 = vst [vmem:[%s1865_s10 + $0x1c8] sm:$0xff] %v500_v61 }
  0x55   : > { %503 = vst [vmem:[%s1865_s10 + $0x1d0] sm:$0xff] %v502_v62  ;;  %505 = vst [vmem:[%s1865_s10 + $0x1d8] sm:$0xff] %v504_v63  ;;  %v506_v0 = vld [vmem:[%s1860_s27 + $0x3c0] sm:$0xff]  ;;  %v508_v1 = vld [vmem:[%s1860_s27 + $0x3d0] sm:$0xff] }
  0x56   : > { %v510_v2 = vld [vmem:[%s1860_s27 + $0x3e0] sm:$0xff]  ;;  %507 = vst [vmem:[%s1865_s10 + $0x1e0] sm:$0xff] %v506_v0  ;;  %509 = vst [vmem:[%s1865_s10 + $0x1e8] sm:$0xff] %v508_v1  ;;  %v512_v3 = vld [vmem:[%s1860_s27 + $0x3f0] sm:$0xff] }
  0x57   : > { %511 = vst [vmem:[%s1865_s10 + $0x1f0] sm:$0xff] %v510_v2  ;;  %513 = vst [vmem:[%s1865_s10 + $0x1f8] sm:$0xff] %v512_v3 }
  0x58 PF: > { %p1349_p0 = scmp.ge.s32.totalorder %s1718_s25, 1  ;;  %p534_p1 = scmp.lt.s32.totalorder %s1718_s25, 19 }
  0x5a   : > { %p535_p2 = pnand %p1349_p0, %p534_p1 }
  0x5b   : > { %s541_s0 = sand.u32 (!%p535_p2), 1, %s1694_s19   ;;  %s548_s28 = sand.u32 (!%p535_p2), 1, %s1686_s17  }
  0x5c   : > { %538 = sbr.rel (%p535_p2) target bundleno = 416 (0x1a0), region = 89  ;;  %s1350_s11 = sshll.u32 (!%p535_p2), %s541_s0, 5 }
  0x5d   : > { %s1351_s26 = sshll.u32 (!%p535_p2), %s548_s28, 9  ;;  %s581_s5 = sand.u32 (!%p535_p2), 1, %s1678_s15  }
  0x5e   : > { %s1353_s29 = sshll.u32 (!%p535_p2), %s1706_s22, 1  ;;  %s1352_s27 = sshll.u32 (!%p535_p2), %s581_s5, 4 }
  0x5f   : > { %p589_p3 = scmp.lt.s32.totalorder (!%p535_p2), %s1353_s29, 3  ;;  %s2008_s19 = scalar_lea.vmem (!%p535_p2), [#allocation3], %s1350_s11 }
  0x60   : > { %s2010_s17 = scalar_lea.vmem (!%p535_p2), [#allocation4], %s1351_s26  ;;  %s2012_s15 = scalar_lea.vmem (!%p535_p2), [#allocation5], %s1352_s27 }
  0x61   : > { %p1355_p4 = scmp.ne.s32.totalorder (!%p535_p2), %s1702_s21, 0 }
  0x63   : > { %s2172_s29 = smov (!%p589_p3, %s1353_s29), 3  ;;  %603 = sbr.rel (%p1355_p4) target bundleno = 106 (0x6a), region = 101 }
  0x64   : > { %s591_s9 = scalar_lea.vmem %s2139_s2, %s2172_s29  ;;  %s596_s1 = scalar_lea.vmem %s2140_s3, %s2172_s29  ;;  %v1720_v4 = vmov (!%p1355_p4), 0.0  }
  0x65   : > { %604 = vst [vmem:[#allocation2] sm:$0xff] (!%p1355_p4), %v1720_v4  ;;  %605 = vst [vmem:[#allocation2 + $0x8] sm:$0xff] (!%p1355_p4), %v1720_v4 }
  0x66   : > { %606 = vst [vmem:[#allocation2 + $0x10] sm:$0xff] (!%p1355_p4), %v1720_v4  ;;  %607 = vst [vmem:[#allocation2 + $0x18] sm:$0xff] (!%p1355_p4), %v1720_v4 }
  0x6a PF: > { %v1530_v5 = vld [vmem:[%s2010_s17 + $0x4] ss:$8 sps:$4 sm:$0xff]   ;;  %v1534_v7 = vld [vmem:[%s2010_s17] ss:$8 sps:$4 sm:$0xff]   ;;  %v1536_v9 = vld [vmem:[%s2010_s17 + $0x14] ss:$8 sps:$4 sm:$0xff]  }
  0x6b   : > { %v1532_v6 = vld [vmem:[%s2010_s17 + $0x104] ss:$8 sps:$4 sm:$0xff]   ;;  %1020 = vmatprep.subr.bf16.mxu1 %v1530_v5  ;;  %v1535_v8 = vld [vmem:[%s2010_s17 + $0x100] ss:$8 sps:$4 sm:$0xff]   ;;  %v1538_v10 = vld [vmem:[%s2010_s17 + $0x114] ss:$8 sps:$4 sm:$0xff]  }
  0x6c   : > { %1063 = vmatprep.subr.bf16.mxu0 %v1532_v6  ;;  %1021 = vmatpush1.bf16.msra.mxu1 %v1534_v7  ;;  %v1540_v11 = vld [vmem:[%s2010_s17 + $0x10] ss:$8 sps:$4 sm:$0xff]   ;;  %v1542_v13 = vld [vmem:[%s2010_s17 + $0x24] ss:$8 sps:$4 sm:$0xff]   ;;  %v1546_v15 = vld [vmem:[%s2010_s17 + $0x20] ss:$8 sps:$4 sm:$0xff]  }
  0x6d   : > { %1064 = vmatpush1.bf16.msra.mxu0 %v1535_v8  ;;  %1022 = vmatprep.subr.bf16.mxu1 %v1536_v9  ;;  %v1541_v12 = vld [vmem:[%s2010_s17 + $0x110] ss:$8 sps:$4 sm:$0xff]   ;;  %v1544_v14 = vld [vmem:[%s2010_s17 + $0x124] ss:$8 sps:$4 sm:$0xff]   ;;  %v1547_v16 = vld [vmem:[%s2010_s17 + $0x120] ss:$8 sps:$4 sm:$0xff]  }
  0x6e   : > { %1065 = vmatprep.subr.bf16.mxu0 %v1538_v10  ;;  %v1548_v17 = vld [vmem:[%s2010_s17 + $0x34] ss:$8 sps:$4 sm:$0xff]   ;;  %v1552_v19 = vld [vmem:[%s2010_s17 + $0x30] ss:$8 sps:$4 sm:$0xff]   ;;  %v1554_v21 = vld [vmem:[%s2010_s17 + $0x44] ss:$8 sps:$4 sm:$0xff]  }
  0x6f   : > { %v1550_v18 = vld [vmem:[%s2010_s17 + $0x134] ss:$8 sps:$4 sm:$0xff]   ;;  %v1553_v20 = vld [vmem:[%s2010_s17 + $0x130] ss:$8 sps:$4 sm:$0xff]   ;;  %v1556_v22 = vld [vmem:[%s2010_s17 + $0x144] ss:$8 sps:$4 sm:$0xff]  }
  0x70   : > { %1023 = vmatpush1.bf16.msra.mxu1 %v1540_v11  ;;  %v1558_v23 = vld [vmem:[%s2010_s17 + $0x40] ss:$8 sps:$4 sm:$0xff]   ;;  %v1560_v25 = vld [vmem:[%s2010_s17 + $0x54] ss:$8 sps:$4 sm:$0xff]   ;;  %v1564_v27 = vld [vmem:[%s2010_s17 + $0x50] ss:$8 sps:$4 sm:$0xff]  }
  0x71   : > { %1066 = vmatpush1.bf16.msra.mxu0 %v1541_v12  ;;  %1024 = vmatprep.subr.bf16.mxu1 %v1542_v13  ;;  %v1559_v24 = vld [vmem:[%s2010_s17 + $0x140] ss:$8 sps:$4 sm:$0xff]   ;;  %v1562_v26 = vld [vmem:[%s2010_s17 + $0x154] ss:$8 sps:$4 sm:$0xff]   ;;  %v1565_v28 = vld [vmem:[%s2010_s17 + $0x150] ss:$8 sps:$4 sm:$0xff]  }
  0x72   : > { %1067 = vmatprep.subr.bf16.mxu0 %v1544_v14  ;;  %v1566_v29 = vld [vmem:[%s2010_s17 + $0x64] ss:$8 sps:$4 sm:$0xff]   ;;  %v1570_v31 = vld [vmem:[%s2010_s17 + $0x60] ss:$8 sps:$4 sm:$0xff]   ;;  %v1572_v33 = vld [vmem:[%s2010_s17 + $0x74] ss:$8 sps:$4 sm:$0xff]  }
  0x73   : > { %v1568_v30 = vld [vmem:[%s2010_s17 + $0x164] ss:$8 sps:$4 sm:$0xff]   ;;  %v1571_v32 = vld [vmem:[%s2010_s17 + $0x160] ss:$8 sps:$4 sm:$0xff]   ;;  %v1574_v34 = vld [vmem:[%s2010_s17 + $0x174] ss:$8 sps:$4 sm:$0xff]  }
  0x74   : > { %1025 = vmatpush1.bf16.msra.mxu1 %v1546_v15  ;;  %v1576_v35 = vld [vmem:[%s2010_s17 + $0x70] ss:$8 sps:$4 sm:$0xff]   ;;  %v1578_v37 = vld [vmem:[%s2010_s17 + $0x84] ss:$8 sps:$4 sm:$0xff]   ;;  %v1582_v39 = vld [vmem:[%s2010_s17 + $0x80] ss:$8 sps:$4 sm:$0xff]  }
  0x75   : > { %1068 = vmatpush1.bf16.msra.mxu0 %v1547_v16  ;;  %1026 = vmatprep.subr.bf16.mxu1 %v1548_v17  ;;  %v1577_v36 = vld [vmem:[%s2010_s17 + $0x170] ss:$8 sps:$4 sm:$0xff]   ;;  %v1580_v38 = vld [vmem:[%s2010_s17 + $0x184] ss:$8 sps:$4 sm:$0xff]   ;;  %v1583_v40 = vld [vmem:[%s2010_s17 + $0x180] ss:$8 sps:$4 sm:$0xff]  }
  0x76   : > { %1069 = vmatprep.subr.bf16.mxu0 %v1550_v18  ;;  %v1584_v41 = vld [vmem:[%s2010_s17 + $0x94] ss:$8 sps:$4 sm:$0xff]   ;;  %v1588_v43 = vld [vmem:[%s2010_s17 + $0x90] ss:$8 sps:$4 sm:$0xff]   ;;  %v1590_v45 = vld [vmem:[%s2010_s17 + $0xa4] ss:$8 sps:$4 sm:$0xff]  }
  0x77   : > { %v1586_v42 = vld [vmem:[%s2010_s17 + $0x194] ss:$8 sps:$4 sm:$0xff]   ;;  %v1589_v44 = vld [vmem:[%s2010_s17 + $0x190] ss:$8 sps:$4 sm:$0xff]   ;;  %v1592_v46 = vld [vmem:[%s2010_s17 + $0x1a4] ss:$8 sps:$4 sm:$0xff]  }
  0x78   : > { %1027 = vmatpush1.bf16.msra.mxu1 %v1552_v19  ;;  %v1594_v47 = vld [vmem:[%s2010_s17 + $0xa0] ss:$8 sps:$4 sm:$0xff]   ;;  %v1596_v49 = vld [vmem:[%s2010_s17 + $0xb4] ss:$8 sps:$4 sm:$0xff]   ;;  %v1600_v51 = vld [vmem:[%s2010_s17 + $0xb0] ss:$8 sps:$4 sm:$0xff]  }
  0x79   : > { %1070 = vmatpush1.bf16.msra.mxu0 %v1553_v20  ;;  %1028 = vmatprep.subr.bf16.mxu1 %v1554_v21  ;;  %v1595_v48 = vld [vmem:[%s2010_s17 + $0x1a0] ss:$8 sps:$4 sm:$0xff]   ;;  %v1598_v50 = vld [vmem:[%s2010_s17 + $0x1b4] ss:$8 sps:$4 sm:$0xff]   ;;  %v1601_v53 = vld [vmem:[%s2010_s17 + $0x1b0] ss:$8 sps:$4 sm:$0xff]  }
  0x7a   : > { %1071 = vmatprep.subr.bf16.mxu0 %v1556_v22  ;;  %v1628_v52 = vld [vmem:[%s2008_s19 + $0x4] ss:$16 sps:$4 sm:$0xff]   ;;  %v1631_v56 = vld [vmem:[%s2008_s19 + $0xc] ss:$16 sps:$4 sm:$0xff]   ;;  %v1606_v57 = vld [vmem:[%s2010_s17 + $0xc0] ss:$8 sps:$4 sm:$0xff]  }
  0x7b   : > { %v1602_v54 = vld [vmem:[%s2010_s17 + $0xc4] ss:$8 sps:$4 sm:$0xff]   ;;  %1052 = vmatprep.mubr.bf16.mxu1 %v1628_v52  ;;  %1095 = vmatprep.mubr.bf16.mxu0 %v1631_v56  ;;  %v1607_v58 = vld [vmem:[%s2010_s17 + $0x1c0] ss:$8 sps:$4 sm:$0xff]   ;;  %v1608_v59 = vld [vmem:[%s2010_s17 + $0xd4] ss:$8 sps:$4 sm:$0xff]  }
  0x7c   : > { %1029 = vmatpush1.bf16.msra.mxu1 %v1558_v23  ;;  %v1604_v55 = vld [vmem:[%s2010_s17 + $0x1c4] ss:$8 sps:$4 sm:$0xff]   ;;  %v1610_v60 = vld [vmem:[%s2010_s17 + $0x1d4] ss:$8 sps:$4 sm:$0xff]   ;;  %v1612_v61 = vld [vmem:[%s2010_s17 + $0xd0] ss:$8 sps:$4 sm:$0xff]  }
  0x7d   : > { %1072 = vmatpush1.bf16.msra.mxu0 %v1559_v24  ;;  %1030 = vmatprep.subr.bf16.mxu1 %v1560_v25  ;;  %v1613_v62 = vld [vmem:[%s2010_s17 + $0x1d0] ss:$8 sps:$4 sm:$0xff]   ;;  %v1614_v63 = vld [vmem:[%s2010_s17 + $0xe4] ss:$8 sps:$4 sm:$0xff]   ;;  %v1618_v1 = vld [vmem:[%s2010_s17 + $0xe0] ss:$8 sps:$4 sm:$0xff]  }
  0x7e   : > { %1073 = vmatprep.subr.bf16.mxu0 %v1562_v26  ;;  %v1616_v0 = vld [vmem:[%s2010_s17 + $0x1e4] ss:$8 sps:$4 sm:$0xff]   ;;  %v1619_v2 = vld [vmem:[%s2010_s17 + $0x1e0] ss:$8 sps:$4 sm:$0xff]   ;;  %v1620_v3 = vld [vmem:[%s2010_s17 + $0xf4] ss:$8 sps:$4 sm:$0xff]  }
  0x7f   : > { %v1622_v4 = vld [vmem:[%s2010_s17 + $0x1f4] ss:$8 sps:$4 sm:$0xff]   ;;  %v1624_v5 = vld [vmem:[%s2010_s17 + $0xf0] ss:$8 sps:$4 sm:$0xff]   ;;  %v608_v10 = vld [vmem:[#allocation2] sm:$0xff]  ;;  %p1424_p5 = scmp.ne.s32.totalorder %s1702_s21, 8 }
  0x80   : > { %1031 = vmatpush1.bf16.msra.mxu1 %v1564_v27  ;;  %v1625_v6 = vld [vmem:[%s2010_s17 + $0x1f0] ss:$8 sps:$4 sm:$0xff]   ;;  %v609_v14 = vld [vmem:[#allocation2 + $0x8] sm:$0xff] }
  0x81   : > { %1074 = vmatpush1.bf16.msra.mxu0 %v1565_v28  ;;  %1032 = vmatprep.subr.bf16.mxu1 %v1566_v29  ;;  %v1626_v7 = vld [vmem:[%s2008_s19] ss:$16 sps:$4 sm:$0xff]   ;;  %v1629_v8 = vld [vmem:[%s2008_s19 + $0x8] ss:$16 sps:$4 sm:$0xff]   ;;  %v1124_v29 = vlaneseq (!%p1424_p5) }
  0x82   : > { %1075 = vmatprep.subr.bf16.mxu0 %v1568_v30  ;;  %v610_v18 = vld [vmem:[#allocation2 + $0x10] sm:$0xff]  ;;  %v611_v23 = vld [vmem:[#allocation2 + $0x18] sm:$0xff] }
  0x83   : > { %v1125_v30 = vshrl.u32 (!%p1424_p5), %v1124_v29, 7 }
  0x84   : > { %1033 = vmatpush1.bf16.msra.mxu1 %v1570_v31  ;;  %v1122_v31 = vld [vmem:[%s591_s9] sm:$0x3] (!%p1424_p5) }
  0x85   : > { %1076 = vmatpush1.bf16.msra.mxu0 %v1571_v32  ;;  %1034 = vmatprep.subr.bf16.mxu1 %v1572_v33  ;;  %v1138_v32 = vld [vmem:[%s596_s1] sm:$0x3] (!%p1424_p5) }
  0x86   : > { %1077 = vmatprep.subr.bf16.mxu0 %v1574_v34  ;;  %v1126_v34 = vsub.s32 (!%p1424_p5), 0, %v1125_v30 }
  0x88   : > { %1035 = vmatpush1.bf16.msra.mxu1 %v1576_v35  ;;  %v1130_v35 = vsub.s32 (!%p1424_p5), 1, %v1125_v30 }
  0x89   : > { %1078 = vmatpush1.bf16.msra.mxu0 %v1577_v36  ;;  %1036 = vmatprep.subr.bf16.mxu1 %v1578_v37 }
  0x8a   : > { %1079 = vmatprep.subr.bf16.mxu0 %v1580_v38 }
  0x8c   : > { %1037 = vmatpush1.bf16.msra.mxu1 %v1582_v39  ;;  %v1127_v39 = vrot.slane (!%p1424_p5), %v1122_v31, %v1126_v34 }
  0x8d   : > { %1080 = vmatpush1.bf16.msra.mxu0 %v1583_v40  ;;  %1038 = vmatprep.subr.bf16.mxu1 %v1584_v41  ;;  %v1131_v40 = vrot.slane (!%p1424_p5), %v1122_v31, %v1130_v35  ;;  %v1143_v41 = vrot.slane (!%p1424_p5), %v1138_v32, %v1126_v34 }
  0x8e   : > { %1081 = vmatprep.subr.bf16.mxu0 %v1586_v42  ;;  %v1147_v42 = vrot.slane (!%p1424_p5), %v1138_v32, %v1130_v35 }
  0x90   : > { %1039 = vmatpush1.bf16.msra.mxu1 %v1588_v43 }
  0x91   : > { %1082 = vmatpush1.bf16.msra.mxu0 %v1589_v44  ;;  %1040 = vmatprep.subr.bf16.mxu1 %v1590_v45 }
  0x92   : > { %1083 = vmatprep.subr.bf16.mxu0 %v1592_v46 }
  0x94   : > { %1041 = vmatpush1.bf16.msra.mxu1 %v1594_v47 }
  0x95   : > { %1084 = vmatpush1.bf16.msra.mxu0 %v1595_v48  ;;  %1042 = vmatprep.subr.bf16.mxu1 %v1596_v49 }
  0x96   : > { %1085 = vmatprep.subr.bf16.mxu0 %v1598_v50 }
  0x98   : > { %1043 = vmatpush1.bf16.msra.mxu1 %v1600_v51 }
  0x99   : > { %1086 = vmatpush1.bf16.msra.mxu0 %v1601_v53  ;;  %1044 = vmatprep.subr.bf16.mxu1 %v1602_v54 }
  0x9a   : > { %1087 = vmatprep.subr.bf16.mxu0 %v1604_v55 }
  0x9c   : > { %1045 = vmatpush1.bf16.msra.mxu1 %v1606_v57 }
  0x9d   : > { %1088 = vmatpush1.bf16.msra.mxu0 %v1607_v58  ;;  %1046 = vmatprep.subr.bf16.mxu1 %v1608_v59 }
  0x9e   : > { %1089 = vmatprep.subr.bf16.mxu0 %v1610_v60 }
  0xa0   : > { %1047 = vmatpush1.bf16.msra.mxu1 %v1612_v61 }
  0xa1   : > { %1090 = vmatpush1.bf16.msra.mxu0 %v1613_v62  ;;  %1048 = vmatprep.subr.bf16.mxu1 %v1614_v63 }
  0xa2   : > { %1091 = vmatprep.subr.bf16.mxu0 %v1616_v0 }
  0xa4   : > { %1049 = vmatpush1.bf16.msra.mxu1 %v1618_v1 }
  0xa5   : > { %1092 = vmatpush1.bf16.msra.mxu0 %v1619_v2  ;;  %1050 = vmatprep.subr.bf16.mxu1 %v1620_v3 }
  0xa6   : > { %1093 = vmatprep.subr.bf16.mxu0 %v1622_v4 }
  0xa8   : > { %1051 = vmatpush1.bf16.msra.mxu1 %v1624_v5 }
  0xa9   : > { %1094 = vmatpush1.bf16.msra.mxu0 %v1625_v6 }
  0xab   : > { %1053 = vmatmul.mubr.bf16.vlgmr.msra.gmra.mrb[0].mxu1 %v1626_v7 }
  0xac   : > { %1096 = vmatmul.mubr.bf16.vlgmr.msra.gmra.mrb[0].mxu0 %v1629_v8 }
 0x17e   : > { %v1054_v9 = vpop.f32.mrb[0].mxu1 }
 0x17f   : > { %v1097_v11 = vpop.f32.mrb[0].mxu0  ;;  %v1056_v13 = vpop.f32.mrb[1].mxu1 }
 0x180   : > { %v1098_v12 = vadd.f32 %v1097_v11, %v1054_v9  ;;  %v1099_v15 = vpop.f32.mrb[1].mxu0  ;;  %v1058_v17 = vpop.f32.mrb[2].mxu1 }
 0x181   : > { %v1100_v16 = vadd.f32 %v1099_v15, %v1056_v13  ;;  %v1101_v19 = vpop.f32.mrb[2].mxu0  ;;  %v1060_v22 = vpop.f32.mrb[3].mxu1  ;;  %1117 = sbr.rel (%p1424_p5) target bundleno = 408 (0x198), region = 105 }
 0x182   : > { %v1106_v20 = vadd.f32 %v1098_v12, %v608_v10  ;;  %v1102_v21 = vadd.f32 %v1101_v19, %v1058_v17  ;;  %v1103_v24 = vpop.f32.mrb[3].mxu0 }
 0x183   : > { %v1107_v25 = vadd.f32 %v1100_v16, %v609_v14  ;;  %v1104_v26 = vadd.f32 %v1103_v24, %v1060_v22 }
 0x184   : > { %1110 = vst [vmem:[#allocation2] sm:$0xff] %v1106_v20  ;;  %v1108_v27 = vadd.f32 %v1102_v21, %v610_v18 }
 0x185   : > { %1111 = vst [vmem:[#allocation2 + $0x8] sm:$0xff] %v1107_v25  ;;  %v1109_v28 = vadd.f32 %v1104_v26, %v611_v23 }
 0x186   : > { %1112 = vst [vmem:[#allocation2 + $0x10] sm:$0xff] %v1108_v27 }
 0x187   : > { %1113 = vst [vmem:[#allocation2 + $0x18] sm:$0xff] %v1109_v28 }
 0x18b   : > { %v1118_v33 = vld [vmem:[#allocation2] sm:$0xff] }
 0x18c   : > { %v1119_v36 = vld [vmem:[#allocation2 + $0x8] sm:$0xff]  ;;  %v1134_v43 = vmul.f32 %v1127_v39, %v1118_v33 }
 0x18d   : > { %v1120_v37 = vld [vmem:[#allocation2 + $0x10] sm:$0xff]  ;;  %v1135_v44 = vmul.f32 %v1131_v40, %v1119_v36 }
 0x18e   : > { %v1121_v38 = vld [vmem:[#allocation2 + $0x18] sm:$0xff]  ;;  %v1136_v45 = vmul.f32 %v1127_v39, %v1120_v37  ;;  %v1150_v47 = vadd.f32 %v1143_v41, %v1134_v43 }
 0x18f   : > { %v1137_v46 = vmul.f32 %v1131_v40, %v1121_v38  ;;  %v1151_v48 = vadd.f32 %v1147_v42, %v1135_v44 }
 0x190   : > { %v1152_v49 = vadd.f32 %v1143_v41, %v1136_v45  ;;  %v1154_v51 = vmax.f32 %v1150_v47, 0.0 }
 0x191   : > { %v1153_v50 = vadd.f32 %v1147_v42, %v1137_v46  ;;  %v1155_v52 = vmax.f32 %v1151_v48, 0.0 }
 0x192   : > { %v1156_v53 = vmax.f32 %v1152_v49, 0.0 }
 0x193   : > { %v1157_v54 = vmax.f32 %v1153_v50, 0.0  ;;  %v1434_v55 = vpack.c.bf16 %v1155_v52, %v1154_v51 }
 0x195   : > { %v1435_v56 = vpack.c.bf16 %v1157_v54, %v1156_v53  ;;  %1170 = vst [vmem:[%s2012_s15] sm:$0xff] %v1434_v55 }
 0x197   : > { %1171 = vst [vmem:[%s2012_s15 + $0x8] sm:$0xff] %v1435_v56 }
 0x198 PF: > { %1178 = sbr.rel (!%p1840_p12) target bundleno = 416 (0x1a0), region = 109  ;;  %s1436_s1 = sshll.u32 (%p1840_p12), %s1706_s22, 3 }
 0x199   : > { %s1184_s29 = scalar_lea.vmem (%p1840_p12), %s2141_s4, %s1436_s1 }
 0x19c   : > { %v1214_v57 = vld [vmem:[%s2012_s15] sm:$0xff] (%p1840_p12) }
 0x19d   : > { %1215 = vst [vmem:[%s1184_s29] sm:$0xff] (%p1840_p12), %v1214_v57 }
 0x19e   : > { %v1216_v58 = vld [vmem:[%s2012_s15 + $0x8] sm:$0xff] (%p1840_p12) }
 0x19f   : > { %1217 = vst [vmem:[%s1184_s29 + $0x10] sm:$0xff] %v1216_v58 }
 0x1a0 PF: > { %s14_s25 = sadd.s32 1, %s1718_s25   ;;  %s2153_s14 = sld [smem:[#allocation6_spill]] }
 0x1a1   : > { %p11_p6 = scmp.ge.s32.totalorder %s14_s25, 20   ;;  %s2154_s27 = sld [smem:[#allocation7_spill]] }
 0x1a2   : > { %s2155_s15 = smov %s1682_s16  ;;  %s2156_s16 = smov %s1838_s13 }
 0x1a3   : > { %s2157_s17 = smov %s1690_s18  ;;  %s2158_s18 = smov %s1835_s12 }
 0x1a4   : > { %s2159_s19 = smov %s1698_s20  ;;  %s2160_s20 = smov %s1821_s7 }
 0x1a5   : > { %s2161_s21 = smov %s1710_s23  ;;  %s2162_s22 = smov %s1714_s24 }
 0x1a6   : > { %s2163_s23 = smov %s2153_s14  ;;  %13 = sbr.rel (!%p11_p6) target bundleno = 9 (0x9), region = 192 }
 0x1a7   : > { %s2164_s24 = smov %s2154_s27 }

// kernel: resnet50_forward.100
= control target key start
LH: loop header
LB: loop body
LE: loop exit
PB: predicated region body
PF: predicated region fallthrough
CT: control target
= control target key end

     0   :  { %s2133_s0 = inlined_call_operand.vmem [shape: bf16[16,1024], index: 0, kind: input, shape index: {}]   ;;  %s2134_s1 = inlined_call_operand.vmem [shape: bf16[1024,2048], index: 1, kind: input, shape index: {}]   ;;  %s2135_s2 = inlined_call_operand.vmem [shape: f32[1,2048], index: 2, kind: input, shape index: {}]   ;;  %s2136_s3 = inlined_call_operand.vmem [shape: f32[1,2048], index: 3, kind: input, shape index: {}]   ;;  %s2137_s4 = inlined_call_operand.vmem [shape: bf16[16,2048], index: 4, kind: output, shape index: {}]  }
   0x1   :  { %2140 = sst [smem:[#allocation8_spill]] %s2133_s0 }
   0x2   :  { %2141 = sst [smem:[#allocation9_spill]] %s2134_s1 }
   0x3   :  { %s1742_s15 = smov 0   ;;  %s1744_s16 = smov 0  }
   0x4   :  { %s1746_s17 = smov 0   ;;  %s1748_s18 = smov 0  }
   0x5   :  { %s1750_s19 = smov 0   ;;  %s1752_s20 = smov 0  }
   0x6   :  { %s1754_s21 = smov 0   ;;  %s1756_s22 = smov 0  }
   0x7   :  { %s1758_s23 = smov 0   ;;  %s1760_s24 = smov 0  }
   0x8   :  { %s1762_s25 = smov 0  }
   0x9 LB: > { %s1333_s26 = sadd.s32 4294967295, %s1714_s25   ;;  %s26_s27 = sadd.s32 1, %s1706_s23  ;;  %s1714_s25 = sphi %s1762_s25, %s14_s25   ;;  %s1710_s24 = sphi %s1760_s24, %s2160_s24   ;;  %s1706_s23 = sphi %s1758_s23, %s2159_s23   ;;  %s1702_s22 = sphi %s1756_s22, %s2158_s22   ;;  %s1698_s21 = sphi %s1754_s21, %s2157_s21   ;;  %s1694_s20 = sphi %s1752_s20, %s2156_s20   ;;  %s1690_s19 = sphi %s1750_s19, %s2155_s19   ;;  %s1686_s18 = sphi %s1748_s18, %s2154_s18   ;;  %s1682_s17 = sphi %s1746_s17, %s2153_s17   ;;  %s1678_s16 = sphi %s1744_s16, %s2152_s16   ;;  %s1674_s15 = sphi %s1742_s15, %s2151_s15  }
   0xa   : > { %p27_p0 = scmp.ge.s32.totalorder %s26_s27, 2  ;;  %s29_s28 = sadd.s32 1, %s1710_s24 }
   0xb   : > { %s42_s29 = sadd.s32 1, %s1694_s20  ;;  %p49_p1 = scmp.ne.s32.totalorder %s1694_s20, %s1690_s19 }
   0xc   : > { %s2162_s27 = smov (%p27_p0, %s26_s27), 0  ;;  %s2164_s28 = smov (!%p27_p0, %s29_s28), %s1710_s24 }
   0xd   : > { %2142 = sst [smem:[#allocation6_spill]] %s2162_s27  ;;  %s38_s30 = ssub.s32 %s1706_s23, %s2162_s27 }
   0xe   : > { %p50_p2 = scmp.eq.s32.totalorder %s1714_s25, 0  ;;  %p31_p3 = scmp.ge.s32.totalorder %s2164_s28, 8 }
   0xf   : > { %p40_p4 = scmp.eq.s32.totalorder %s38_s30, 0  ;;  %s70_s6 = sadd.s32 1, %s1686_s18 }
  0x10   : > { %p1809_p5 = por %p50_p2, %p49_p1  ;;  %s2166_s28 = smov (%p31_p3, %s2164_s28), 0 }
  0x11   : > { %2144 = sst [smem:[#allocation7_spill]] %s2166_s28  ;;  %s66_s8 = ssub.s32 %s1710_s24, %s2166_s28 }
  0x12   : > { %s1817_s7 = scalar_select %p40_p4, %s1694_s20, %s42_s29  }
  0x13   : > { %p77_p6 = scmp.ne.s32.totalorder %s1686_s18, %s1682_s17  ;;  %s67_s9 = sor.u32 %s66_s8, %s38_s30 }
  0x14   : > { %p148_p7 = scmp.eq.s32.totalorder %s66_s8, 0  ;;  %p68_p8 = scmp.eq.s32.totalorder %s67_s9, 0 }
  0x15   : > { %p1823_p9 = por %p77_p6, %p50_p2  ;;  %s150_s11 = sadd.s32 1, %s1678_s16 }
  0x16   : > { %p160_p10 = scmp.ne.s32.totalorder %s1678_s16, %s1674_s15  ;;  %p161_p11 = scmp.eq.s32.totalorder %s1333_s26, 15 }
  0x17   : > { %s1831_s12 = scalar_select %p68_p8, %s1686_s18, %s70_s6  }
  0x18   : > { %s1834_s13 = scalar_select %p148_p7, %s1678_s16, %s150_s11  }
  0x19   : > { %p1836_p12 = por %p161_p11, %p160_p10  ;;  %p1336_p13 = scmp.ge.s32.totalorder %s1714_s25, 16 }
  0x1b   : > { %183 = sbr.rel (%p1336_p13) target bundleno = 120 (0x78), region = 16 }
  0x22   : > { %186 = sbr.rel (!%p1809_p5) target bundleno = 46 (0x2e), region = 20  ;;  %s188_s29 = sand.u32 (%p1809_p5), 1, %s1694_s20  }
  0x23   : > { %s1428_s30 = sshll.u32 (%p1809_p5), %s1706_s23, 4  ;;  %s1337_s8 = sshll.u32 (%p1809_p5), %s188_s29, 5 }
  0x24   : > { %s2147_s0 = sld [smem:[#allocation8_spill]] (%p1809_p5)  ;;  %s190_s26 = scalar_lea.vmem (%p1809_p5), [#allocation3], %s1337_s8 }
  0x2a   : > { %s196_s11 = scalar_lea.vmem %s2147_s0, %s1428_s30 }
  0x2b   : > { %v209_v0 = vld [vmem:[%s196_s11] sm:$0xff]  ;;  %v211_v1 = vld [vmem:[%s196_s11 + $0x8] sm:$0xff] }
  0x2c   : > { %v213_v2 = vld [vmem:[%s196_s11 + $0x20] sm:$0xff]  ;;  %210 = vst [vmem:[%s190_s26] sm:$0xff] %v209_v0  ;;  %212 = vst [vmem:[%s190_s26 + $0x8] sm:$0xff] %v211_v1  ;;  %v215_v3 = vld [vmem:[%s196_s11 + $0x28] sm:$0xff] }
  0x2d   : > { %214 = vst [vmem:[%s190_s26 + $0x10] sm:$0xff] %v213_v2  ;;  %216 = vst [vmem:[%s190_s26 + $0x18] sm:$0xff] %v215_v3 }
  0x2e PF: > { %222 = sbr.rel (!%p1823_p9) target bundleno = 120 (0x78), region = 43  ;;  %s224_s5 = sand.u32 (%p1823_p9), 1, %s1686_s18  }
  0x2f   : > { %s1342_s29 = sshll.u32 (%p1823_p9), %s1710_s24, 1  ;;  %s1340_s6 = sshll.u32 (%p1823_p9), %s224_s5, 9 }
  0x30   : > { %s1429_s30 = sshll.u32 (%p1823_p9), %s1706_s23, 10  ;;  %s2148_s1 = sld [smem:[#allocation9_spill]] (%p1823_p9) }
  0x31   : > { %s230_s9 = sadd.s32 (%p1823_p9), %s1429_s30, %s1342_s29  ;;  %s1861_s10 = scalar_lea.vmem (%p1823_p9), [#allocation4], %s1340_s6 }
  0x32   : > { %s1344_s0 = sshll.u32 (%p1823_p9), %s230_s9, 2 }
  0x36   : > { %s1856_s27 = scalar_lea.vmem %s2148_s1, %s1344_s0 }
  0x37   : > { %v386_v4 = vld [vmem:[%s1856_s27] sm:$0xff] }
  0x38   : > { %v388_v5 = vld [vmem:[%s1856_s27 + $0x40] sm:$0xff]  ;;  %387 = vst [vmem:[%s1861_s10] sm:$0xff] %v386_v4 }
  0x39   : > { %v390_v6 = vld [vmem:[%s1856_s27 + $0x80] sm:$0xff]  ;;  %389 = vst [vmem:[%s1861_s10 + $0x8] sm:$0xff] %v388_v5 }
  0x3a   : > { %391 = vst [vmem:[%s1861_s10 + $0x10] sm:$0xff] %v390_v6  ;;  %v392_v7 = vld [vmem:[%s1856_s27 + $0xc0] sm:$0xff] }
  0x3b   : > { %v394_v8 = vld [vmem:[%s1856_s27 + $0x100] sm:$0xff]  ;;  %393 = vst [vmem:[%s1861_s10 + $0x18] sm:$0xff] %v392_v7 }
  0x3c   : > { %v396_v9 = vld [vmem:[%s1856_s27 + $0x140] sm:$0xff]  ;;  %395 = vst [vmem:[%s1861_s10 + $0x20] sm:$0xff] %v394_v8 }
  0x3d   : > { %397 = vst [vmem:[%s1861_s10 + $0x28] sm:$0xff] %v396_v9  ;;  %v398_v10 = vld [vmem:[%s1856_s27 + $0x180] sm:$0xff] }
  0x3e   : > { %v400_v11 = vld [vmem:[%s1856_s27 + $0x1c0] sm:$0xff]  ;;  %399 = vst [vmem:[%s1861_s10 + $0x30] sm:$0xff] %v398_v10 }
  0x3f   : > { %v402_v12 = vld [vmem:[%s1856_s27 + $0x200] sm:$0xff]  ;;  %401 = vst [vmem:[%s1861_s10 + $0x38] sm:$0xff] %v400_v11 }
  0x40   : > { %403 = vst [vmem:[%s1861_s10 + $0x40] sm:$0xff] %v402_v12  ;;  %v404_v13 = vld [vmem:[%s1856_s27 + $0x240] sm:$0xff] }
  0x41   : > { %v406_v14 = vld [vmem:[%s1856_s27 + $0x280] sm:$0xff]  ;;  %405 = vst [vmem:[%s1861_s10 + $0x48] sm:$0xff] %v404_v13 }
  0x42   : > { %v408_v15 = vld [vmem:[%s1856_s27 + $0x2c0] sm:$0xff]  ;;  %407 = vst [vmem:[%s1861_s10 + $0x50] sm:$0xff] %v406_v14 }
  0x43   : > { %409 = vst [vmem:[%s1861_s10 + $0x58] sm:$0xff] %v408_v15  ;;  %v410_v16 = vld [vmem:[%s1856_s27 + $0x300] sm:$0xff] }
  0x44   : > { %v412_v17 = vld [vmem:[%s1856_s27 + $0x340] sm:$0xff]  ;;  %411 = vst [vmem:[%s1861_s10 + $0x60] sm:$0xff] %v410_v16 }
  0x45   : > { %v414_v18 = vld [vmem:[%s1856_s27 + $0x380] sm:$0xff]  ;;  %413 = vst [vmem:[%s1861_s10 + $0x68] sm:$0xff] %v412_v17 }
  0x46   : > { %415 = vst [vmem:[%s1861_s10 + $0x70] sm:$0xff] %v414_v18  ;;  %v416_v19 = vld [vmem:[%s1856_s27 + $0x3c0] sm:$0xff] }
  0x47   : > { %v418_v20 = vld [vmem:[%s1856_s27 + $0x400] sm:$0xff]  ;;  %417 = vst [vmem:[%s1861_s10 + $0x78] sm:$0xff] %v416_v19 }
  0x48   : > { %v420_v21 = vld [vmem:[%s1856_s27 + $0x440] sm:$0xff]  ;;  %419 = vst [vmem:[%s1861_s10 + $0x80] sm:$0xff] %v418_v20 }
  0x49   : > { %421 = vst [vmem:[%s1861_s10 + $0x88] sm:$0xff] %v420_v21  ;;  %v422_v22 = vld [vmem:[%s1856_s27 + $0x480] sm:$0xff] }
  0x4a   : > { %v424_v23 = vld [vmem:[%s1856_s27 + $0x4c0] sm:$0xff]  ;;  %423 = vst [vmem:[%s1861_s10 + $0x90] sm:$0xff] %v422_v22 }
  0x4b   : > { %v426_v24 = vld [vmem:[%s1856_s27 + $0x500] sm:$0xff]  ;;  %425 = vst [vmem:[%s1861_s10 + $0x98] sm:$0xff] %v424_v23 }
  0x4c   : > { %427 = vst [vmem:[%s1861_s10 + $0xa0] sm:$0xff] %v426_v24  ;;  %v428_v25 = vld [vmem:[%s1856_s27 + $0x540] sm:$0xff] }
  0x4d   : > { %v430_v26 = vld [vmem:[%s1856_s27 + $0x580] sm:$0xff]  ;;  %429 = vst [vmem:[%s1861_s10 + $0xa8] sm:$0xff] %v428_v25 }
  0x4e   : > { %v432_v27 = vld [vmem:[%s1856_s27 + $0x5c0] sm:$0xff]  ;;  %431 = vst [vmem:[%s1861_s10 + $0xb0] sm:$0xff] %v430_v26 }
  0x4f   : > { %433 = vst [vmem:[%s1861_s10 + $0xb8] sm:$0xff] %v432_v27  ;;  %v434_v28 = vld [vmem:[%s1856_s27 + $0x600] sm:$0xff] }
  0x50   : > { %v436_v29 = vld [vmem:[%s1856_s27 + $0x640] sm:$0xff]  ;;  %435 = vst [vmem:[%s1861_s10 + $0xc0] sm:$0xff] %v434_v28 }
  0x51   : > { %v438_v30 = vld [vmem:[%s1856_s27 + $0x680] sm:$0xff]  ;;  %437 = vst [vmem:[%s1861_s10 + $0xc8] sm:$0xff] %v436_v29 }
  0x52   : > { %439 = vst [vmem:[%s1861_s10 + $0xd0] sm:$0xff] %v438_v30  ;;  %v440_v31 = vld [vmem:[%s1856_s27 + $0x6c0] sm:$0xff] }
  0x53   : > { %v442_v32 = vld [vmem:[%s1856_s27 + $0x700] sm:$0xff]  ;;  %441 = vst [vmem:[%s1861_s10 + $0xd8] sm:$0xff] %v440_v31 }
  0x54   : > { %v444_v33 = vld [vmem:[%s1856_s27 + $0x740] sm:$0xff]  ;;  %443 = vst [vmem:[%s1861_s10 + $0xe0] sm:$0xff] %v442_v32 }
  0x55   : > { %445 = vst [vmem:[%s1861_s10 + $0xe8] sm:$0xff] %v444_v33  ;;  %v446_v34 = vld [vmem:[%s1856_s27 + $0x780] sm:$0xff] }
  0x56   : > { %v448_v35 = vld [vmem:[%s1856_s27 + $0x7c0] sm:$0xff]  ;;  %447 = vst [vmem:[%s1861_s10 + $0xf0] sm:$0xff] %v446_v34 }
  0x57   : > { %v450_v36 = vld [vmem:[%s1856_s27 + $0x800] sm:$0xff]  ;;  %449 = vst [vmem:[%s1861_s10 + $0xf8] sm:$0xff] %v448_v35 }
  0x58   : > { %451 = vst [vmem:[%s1861_s10 + $0x100] sm:$0xff] %v450_v36  ;;  %v452_v37 = vld [vmem:[%s1856_s27 + $0x840] sm:$0xff] }
  0x59   : > { %v454_v38 = vld [vmem:[%s1856_s27 + $0x880] sm:$0xff]  ;;  %453 = vst [vmem:[%s1861_s10 + $0x108] sm:$0xff] %v452_v37 }
  0x5a   : > { %v456_v39 = vld [vmem:[%s1856_s27 + $0x8c0] sm:$0xff]  ;;  %455 = vst [vmem:[%s1861_s10 + $0x110] sm:$0xff] %v454_v38 }
  0x5b   : > { %457 = vst [vmem:[%s1861_s10 + $0x118] sm:$0xff] %v456_v39  ;;  %v458_v40 = vld [vmem:[%s1856_s27 + $0x900] sm:$0xff] }
  0x5c   : > { %v460_v41 = vld [vmem:[%s1856_s27 + $0x940] sm:$0xff]  ;;  %459 = vst [vmem:[%s1861_s10 + $0x120] sm:$0xff] %v458_v40 }
  0x5d   : > { %v462_v42 = vld [vmem:[%s1856_s27 + $0x980] sm:$0xff]  ;;  %461 = vst [vmem:[%s1861_s10 + $0x128] sm:$0xff] %v460_v41 }
  0x5e   : > { %463 = vst [vmem:[%s1861_s10 + $0x130] sm:$0xff] %v462_v42  ;;  %v464_v43 = vld [vmem:[%s1856_s27 + $0x9c0] sm:$0xff] }
  0x5f   : > { %v466_v44 = vld [vmem:[%s1856_s27 + $0xa00] sm:$0xff]  ;;  %465 = vst [vmem:[%s1861_s10 + $0x138] sm:$0xff] %v464_v43 }
  0x60   : > { %v468_v45 = vld [vmem:[%s1856_s27 + $0xa40] sm:$0xff]  ;;  %467 = vst [vmem:[%s1861_s10 + $0x140] sm:$0xff] %v466_v44 }
  0x61   : > { %469 = vst [vmem:[%s1861_s10 + $0x148] sm:$0xff] %v468_v45  ;;  %v470_v46 = vld [vmem:[%s1856_s27 + $0xa80] sm:$0xff] }
  0x62   : > { %v472_v47 = vld [vmem:[%s1856_s27 + $0xac0] sm:$0xff]  ;;  %471 = vst [vmem:[%s1861_s10 + $0x150] sm:$0xff] %v470_v46 }
  0x63   : > { %v474_v48 = vld [vmem:[%s1856_s27 + $0xb00] sm:$0xff]  ;;  %473 = vst [vmem:[%s1861_s10 + $0x158] sm:$0xff] %v472_v47 }
  0x64   : > { %475 = vst [vmem:[%s1861_s10 + $0x160] sm:$0xff] %v474_v48  ;;  %v476_v49 = vld [vmem:[%s1856_s27 + $0xb40] sm:$0xff] }
  0x65   : > { %v478_v50 = vld [vmem:[%s1856_s27 + $0xb80] sm:$0xff]  ;;  %477 = vst [vmem:[%s1861_s10 + $0x168] sm:$0xff] %v476_v49 }
  0x66   : > { %v480_v51 = vld [vmem:[%s1856_s27 + $0xbc0] sm:$0xff]  ;;  %479 = vst [vmem:[%s1861_s10 + $0x170] sm:$0xff] %v478_v50 }
  0x67   : > { %481 = vst [vmem:[%s1861_s10 + $0x178] sm:$0xff] %v480_v51  ;;  %v482_v52 = vld [vmem:[%s1856_s27 + $0xc00] sm:$0xff] }
  0x68   : > { %v484_v53 = vld [vmem:[%s1856_s27 + $0xc40] sm:$0xff]  ;;  %483 = vst [vmem:[%s1861_s10 + $0x180] sm:$0xff] %v482_v52 }
  0x69   : > { %v486_v54 = vld [vmem:[%s1856_s27 + $0xc80] sm:$0xff]  ;;  %485 = vst [vmem:[%s1861_s10 + $0x188] sm:$0xff] %v484_v53 }
  0x6a   : > { %487 = vst [vmem:[%s1861_s10 + $0x190] sm:$0xff] %v486_v54  ;;  %v488_v55 = vld [vmem:[%s1856_s27 + $0xcc0] sm:$0xff] }
  0x6b   : > { %v490_v56 = vld [vmem:[%s1856_s27 + $0xd00] sm:$0xff]  ;;  %489 = vst [vmem:[%s1861_s10 + $0x198] sm:$0xff] %v488_v55 }
  0x6c   : > { %v492_v57 = vld [vmem:[%s1856_s27 + $0xd40] sm:$0xff]  ;;  %491 = vst [vmem:[%s1861_s10 + $0x1a0] sm:$0xff] %v490_v56 }
  0x6d   : > { %493 = vst [vmem:[%s1861_s10 + $0x1a8] sm:$0xff] %v492_v57  ;;  %v494_v58 = vld [vmem:[%s1856_s27 + $0xd80] sm:$0xff] }
  0x6e   : > { %v496_v59 = vld [vmem:[%s1856_s27 + $0xdc0] sm:$0xff]  ;;  %495 = vst [vmem:[%s1861_s10 + $0x1b0] sm:$0xff] %v494_v58 }
  0x6f   : > { %v498_v60 = vld [vmem:[%s1856_s27 + $0xe00] sm:$0xff]  ;;  %497 = vst [vmem:[%s1861_s10 + $0x1b8] sm:$0xff] %v496_v59 }
  0x70   : > { %499 = vst [vmem:[%s1861_s10 + $0x1c0] sm:$0xff] %v498_v60  ;;  %v500_v61 = vld [vmem:[%s1856_s27 + $0xe40] sm:$0xff] }
  0x71   : > { %v502_v62 = vld [vmem:[%s1856_s27 + $0xe80] sm:$0xff]  ;;  %501 = vst [vmem:[%s1861_s10 + $0x1c8] sm:$0xff] %v500_v61 }
  0x72   : > { %v504_v63 = vld [vmem:[%s1856_s27 + $0xec0] sm:$0xff]  ;;  %503 = vst [vmem:[%s1861_s10 + $0x1d0] sm:$0xff] %v502_v62 }
  0x73   : > { %505 = vst [vmem:[%s1861_s10 + $0x1d8] sm:$0xff] %v504_v63  ;;  %v506_v0 = vld [vmem:[%s1856_s27 + $0xf00] sm:$0xff] }
  0x74   : > { %v508_v1 = vld [vmem:[%s1856_s27 + $0xf40] sm:$0xff]  ;;  %507 = vst [vmem:[%s1861_s10 + $0x1e0] sm:$0xff] %v506_v0 }
  0x75   : > { %v510_v2 = vld [vmem:[%s1856_s27 + $0xf80] sm:$0xff]  ;;  %509 = vst [vmem:[%s1861_s10 + $0x1e8] sm:$0xff] %v508_v1 }
  0x76   : > { %511 = vst [vmem:[%s1861_s10 + $0x1f0] sm:$0xff] %v510_v2  ;;  %v512_v3 = vld [vmem:[%s1856_s27 + $0xfc0] sm:$0xff] }
  0x77   : > { %513 = vst [vmem:[%s1861_s10 + $0x1f8] sm:$0xff] %v512_v3 }
  0x78 PF: > { %p1345_p0 = scmp.ge.s32.totalorder %s1714_s25, 1  ;;  %p534_p1 = scmp.lt.s32.totalorder %s1714_s25, 17 }
  0x7a   : > { %p535_p2 = pnand %p1345_p0, %p534_p1 }
  0x7b   : > { %s541_s0 = sand.u32 (!%p535_p2), 1, %s1690_s19   ;;  %s548_s28 = sand.u32 (!%p535_p2), 1, %s1682_s17  }
  0x7c   : > { %538 = sbr.rel (%p535_p2) target bundleno = 446 (0x1be), region = 89  ;;  %s1346_s11 = sshll.u32 (!%p535_p2), %s541_s0, 5 }
  0x7d   : > { %s1347_s26 = sshll.u32 (!%p535_p2), %s548_s28, 9  ;;  %s581_s5 = sand.u32 (!%p535_p2), 1, %s1674_s15  }
  0x7e   : > { %s1349_s29 = sshll.u32 (!%p535_p2), %s1702_s22, 1  ;;  %s1348_s27 = sshll.u32 (!%p535_p2), %s581_s5, 4 }
  0x7f   : > { %p589_p3 = scmp.lt.s32.totalorder (!%p535_p2), %s1349_s29, 15  ;;  %s2004_s19 = scalar_lea.vmem (!%p535_p2), [#allocation3], %s1346_s11 }
  0x80   : > { %s2006_s17 = scalar_lea.vmem (!%p535_p2), [#allocation4], %s1347_s26  ;;  %s2008_s15 = scalar_lea.vmem (!%p535_p2), [#allocation5], %s1348_s27 }
  0x81   : > { %p1351_p4 = scmp.ne.s32.totalorder (!%p535_p2), %s1698_s21, 0 }
  0x83   : > { %s2168_s29 = smov (!%p589_p3, %s1349_s29), 15  ;;  %603 = sbr.rel (%p1351_p4) target bundleno = 138 (0x8a), region = 101 }
  0x84   : > { %s591_s9 = scalar_lea.vmem %s2135_s2, %s2168_s29  ;;  %s596_s1 = scalar_lea.vmem %s2136_s3, %s2168_s29  ;;  %v1716_v4 = vmov (!%p1351_p4), 0.0  }
  0x85   : > { %604 = vst [vmem:[#allocation2] sm:$0xff] (!%p1351_p4), %v1716_v4  ;;  %605 = vst [vmem:[#allocation2 + $0x8] sm:$0xff] (!%p1351_p4), %v1716_v4 }
  0x86   : > { %606 = vst [vmem:[#allocation2 + $0x10] sm:$0xff] (!%p1351_p4), %v1716_v4  ;;  %607 = vst [vmem:[#allocation2 + $0x18] sm:$0xff] (!%p1351_p4), %v1716_v4 }
  0x8a PF: > { %v1526_v5 = vld [vmem:[%s2006_s17 + $0x4] ss:$8 sps:$4 sm:$0xff]   ;;  %v1530_v7 = vld [vmem:[%s2006_s17] ss:$8 sps:$4 sm:$0xff]   ;;  %v1532_v9 = vld [vmem:[%s2006_s17 + $0x14] ss:$8 sps:$4 sm:$0xff]  }
  0x8b   : > { %v1528_v6 = vld [vmem:[%s2006_s17 + $0x104] ss:$8 sps:$4 sm:$0xff]   ;;  %1020 = vmatprep.subr.bf16.mxu1 %v1526_v5  ;;  %v1531_v8 = vld [vmem:[%s2006_s17 + $0x100] ss:$8 sps:$4 sm:$0xff]   ;;  %v1534_v10 = vld [vmem:[%s2006_s17 + $0x114] ss:$8 sps:$4 sm:$0xff]  }
  0x8c   : > { %1063 = vmatprep.subr.bf16.mxu0 %v1528_v6  ;;  %1021 = vmatpush1.bf16.msra.mxu1 %v1530_v7  ;;  %v1536_v11 = vld [vmem:[%s2006_s17 + $0x10] ss:$8 sps:$4 sm:$0xff]   ;;  %v1538_v13 = vld [vmem:[%s2006_s17 + $0x24] ss:$8 sps:$4 sm:$0xff]   ;;  %v1542_v15 = vld [vmem:[%s2006_s17 + $0x20] ss:$8 sps:$4 sm:$0xff]  }
  0x8d   : > { %1064 = vmatpush1.bf16.msra.mxu0 %v1531_v8  ;;  %1022 = vmatprep.subr.bf16.mxu1 %v1532_v9  ;;  %v1537_v12 = vld [vmem:[%s2006_s17 + $0x110] ss:$8 sps:$4 sm:$0xff]   ;;  %v1540_v14 = vld [vmem:[%s2006_s17 + $0x124] ss:$8 sps:$4 sm:$0xff]   ;;  %v1543_v16 = vld [vmem:[%s2006_s17 + $0x120] ss:$8 sps:$4 sm:$0xff]  }
  0x8e   : > { %1065 = vmatprep.subr.bf16.mxu0 %v1534_v10  ;;  %v1544_v17 = vld [vmem:[%s2006_s17 + $0x34] ss:$8 sps:$4 sm:$0xff]   ;;  %v1548_v19 = vld [vmem:[%s2006_s17 + $0x30] ss:$8 sps:$4 sm:$0xff]   ;;  %v1550_v21 = vld [vmem:[%s2006_s17 + $0x44] ss:$8 sps:$4 sm:$0xff]  }
  0x8f   : > { %v1546_v18 = vld [vmem:[%s2006_s17 + $0x134] ss:$8 sps:$4 sm:$0xff]   ;;  %v1549_v20 = vld [vmem:[%s2006_s17 + $0x130] ss:$8 sps:$4 sm:$0xff]   ;;  %v1552_v22 = vld [vmem:[%s2006_s17 + $0x144] ss:$8 sps:$4 sm:$0xff]  }
  0x90   : > { %1023 = vmatpush1.bf16.msra.mxu1 %v1536_v11  ;;  %v1554_v23 = vld [vmem:[%s2006_s17 + $0x40] ss:$8 sps:$4 sm:$0xff]   ;;  %v1556_v25 = vld [vmem:[%s2006_s17 + $0x54] ss:$8 sps:$4 sm:$0xff]   ;;  %v1560_v27 = vld [vmem:[%s2006_s17 + $0x50] ss:$8 sps:$4 sm:$0xff]  }
  0x91   : > { %1066 = vmatpush1.bf16.msra.mxu0 %v1537_v12  ;;  %1024 = vmatprep.subr.bf16.mxu1 %v1538_v13  ;;  %v1555_v24 = vld [vmem:[%s2006_s17 + $0x140] ss:$8 sps:$4 sm:$0xff]   ;;  %v1558_v26 = vld [vmem:[%s2006_s17 + $0x154] ss:$8 sps:$4 sm:$0xff]   ;;  %v1561_v28 = vld [vmem:[%s2006_s17 + $0x150] ss:$8 sps:$4 sm:$0xff]  }
  0x92   : > { %1067 = vmatprep.subr.bf16.mxu0 %v1540_v14  ;;  %v1562_v29 = vld [vmem:[%s2006_s17 + $0x64] ss:$8 sps:$4 sm:$0xff]   ;;  %v1566_v31 = vld [vmem:[%s2006_s17 + $0x60] ss:$8 sps:$4 sm:$0xff]   ;;  %v1568_v33 = vld [vmem:[%s2006_s17 + $0x74] ss:$8 sps:$4 sm:$0xff]  }
  0x93   : > { %v1564_v30 = vld [vmem:[%s2006_s17 + $0x164] ss:$8 sps:$4 sm:$0xff]   ;;  %v1567_v32 = vld [vmem:[%s2006_s17 + $0x160] ss:$8 sps:$4 sm:$0xff]   ;;  %v1570_v34 = vld [vmem:[%s2006_s17 + $0x174] ss:$8 sps:$4 sm:$0xff]  }
  0x94   : > { %1025 = vmatpush1.bf16.msra.mxu1 %v1542_v15  ;;  %v1572_v35 = vld [vmem:[%s2006_s17 + $0x70] ss:$8 sps:$4 sm:$0xff]   ;;  %v1574_v37 = vld [vmem:[%s2006_s17 + $0x84] ss:$8 sps:$4 sm:$0xff]   ;;  %v1578_v39 = vld [vmem:[%s2006_s17 + $0x80] ss:$8 sps:$4 sm:$0xff]  }
  0x95   : > { %1068 = vmatpush1.bf16.msra.mxu0 %v1543_v16  ;;  %1026 = vmatprep.subr.bf16.mxu1 %v1544_v17  ;;  %v1573_v36 = vld [vmem:[%s2006_s17 + $0x170] ss:$8 sps:$4 sm:$0xff]   ;;  %v1576_v38 = vld [vmem:[%s2006_s17 + $0x184] ss:$8 sps:$4 sm:$0xff]   ;;  %v1579_v40 = vld [vmem:[%s2006_s17 + $0x180] ss:$8 sps:$4 sm:$0xff]  }
  0x96   : > { %1069 = vmatprep.subr.bf16.mxu0 %v1546_v18  ;;  %v1580_v41 = vld [vmem:[%s2006_s17 + $0x94] ss:$8 sps:$4 sm:$0xff]   ;;  %v1584_v43 = vld [vmem:[%s2006_s17 + $0x90] ss:$8 sps:$4 sm:$0xff]   ;;  %v1586_v45 = vld [vmem:[%s2006_s17 + $0xa4] ss:$8 sps:$4 sm:$0xff]  }
  0x97   : > { %v1582_v42 = vld [vmem:[%s2006_s17 + $0x194] ss:$8 sps:$4 sm:$0xff]   ;;  %v1585_v44 = vld [vmem:[%s2006_s17 + $0x190] ss:$8 sps:$4 sm:$0xff]   ;;  %v1588_v46 = vld [vmem:[%s2006_s17 + $0x1a4] ss:$8 sps:$4 sm:$0xff]  }
  0x98   : > { %1027 = vmatpush1.bf16.msra.mxu1 %v1548_v19  ;;  %v1590_v47 = vld [vmem:[%s2006_s17 + $0xa0] ss:$8 sps:$4 sm:$0xff]   ;;  %v1592_v49 = vld [vmem:[%s2006_s17 + $0xb4] ss:$8 sps:$4 sm:$0xff]   ;;  %v1596_v51 = vld [vmem:[%s2006_s17 + $0xb0] ss:$8 sps:$4 sm:$0xff]  }
  0x99   : > { %1070 = vmatpush1.bf16.msra.mxu0 %v1549_v20  ;;  %1028 = vmatprep.subr.bf16.mxu1 %v1550_v21  ;;  %v1591_v48 = vld [vmem:[%s2006_s17 + $0x1a0] ss:$8 sps:$4 sm:$0xff]   ;;  %v1594_v50 = vld [vmem:[%s2006_s17 + $0x1b4] ss:$8 sps:$4 sm:$0xff]   ;;  %v1597_v53 = vld [vmem:[%s2006_s17 + $0x1b0] ss:$8 sps:$4 sm:$0xff]  }
  0x9a   : > { %1071 = vmatprep.subr.bf16.mxu0 %v1552_v22  ;;  %v1624_v52 = vld [vmem:[%s2004_s19 + $0x4] ss:$16 sps:$4 sm:$0xff]   ;;  %v1627_v56 = vld [vmem:[%s2004_s19 + $0xc] ss:$16 sps:$4 sm:$0xff]   ;;  %v1602_v57 = vld [vmem:[%s2006_s17 + $0xc0] ss:$8 sps:$4 sm:$0xff]  }
  0x9b   : > { %v1598_v54 = vld [vmem:[%s2006_s17 + $0xc4] ss:$8 sps:$4 sm:$0xff]   ;;  %1052 = vmatprep.mubr.bf16.mxu1 %v1624_v52  ;;  %1095 = vmatprep.mubr.bf16.mxu0 %v1627_v56  ;;  %v1603_v58 = vld [vmem:[%s2006_s17 + $0x1c0] ss:$8 sps:$4 sm:$0xff]   ;;  %v1604_v59 = vld [vmem:[%s2006_s17 + $0xd4] ss:$8 sps:$4 sm:$0xff]  }
  0x9c   : > { %1029 = vmatpush1.bf16.msra.mxu1 %v1554_v23  ;;  %v1600_v55 = vld [vmem:[%s2006_s17 + $0x1c4] ss:$8 sps:$4 sm:$0xff]   ;;  %v1606_v60 = vld [vmem:[%s2006_s17 + $0x1d4] ss:$8 sps:$4 sm:$0xff]   ;;  %v1608_v61 = vld [vmem:[%s2006_s17 + $0xd0] ss:$8 sps:$4 sm:$0xff]  }
  0x9d   : > { %1072 = vmatpush1.bf16.msra.mxu0 %v1555_v24  ;;  %1030 = vmatprep.subr.bf16.mxu1 %v1556_v25  ;;  %v1609_v62 = vld [vmem:[%s2006_s17 + $0x1d0] ss:$8 sps:$4 sm:$0xff]   ;;  %v1610_v63 = vld [vmem:[%s2006_s17 + $0xe4] ss:$8 sps:$4 sm:$0xff]   ;;  %v1614_v1 = vld [vmem:[%s2006_s17 + $0xe0] ss:$8 sps:$4 sm:$0xff]  }
  0x9e   : > { %1073 = vmatprep.subr.bf16.mxu0 %v1558_v26  ;;  %v1612_v0 = vld [vmem:[%s2006_s17 + $0x1e4] ss:$8 sps:$4 sm:$0xff]   ;;  %v1615_v2 = vld [vmem:[%s2006_s17 + $0x1e0] ss:$8 sps:$4 sm:$0xff]   ;;  %v1616_v3 = vld [vmem:[%s2006_s17 + $0xf4] ss:$8 sps:$4 sm:$0xff]  }
  0x9f   : > { %v1618_v4 = vld [vmem:[%s2006_s17 + $0x1f4] ss:$8 sps:$4 sm:$0xff]   ;;  %v1620_v5 = vld [vmem:[%s2006_s17 + $0xf0] ss:$8 sps:$4 sm:$0xff]   ;;  %v608_v10 = vld [vmem:[#allocation2] sm:$0xff]  ;;  %p1420_p5 = scmp.ne.s32.totalorder %s1698_s21, 1 }
  0xa0   : > { %1031 = vmatpush1.bf16.msra.mxu1 %v1560_v27  ;;  %v1621_v6 = vld [vmem:[%s2006_s17 + $0x1f0] ss:$8 sps:$4 sm:$0xff]   ;;  %v609_v14 = vld [vmem:[#allocation2 + $0x8] sm:$0xff] }
  0xa1   : > { %1074 = vmatpush1.bf16.msra.mxu0 %v1561_v28  ;;  %1032 = vmatprep.subr.bf16.mxu1 %v1562_v29  ;;  %v1622_v7 = vld [vmem:[%s2004_s19] ss:$16 sps:$4 sm:$0xff]   ;;  %v1625_v8 = vld [vmem:[%s2004_s19 + $0x8] ss:$16 sps:$4 sm:$0xff]   ;;  %v1124_v29 = vlaneseq (!%p1420_p5) }
  0xa2   : > { %1075 = vmatprep.subr.bf16.mxu0 %v1564_v30  ;;  %v610_v18 = vld [vmem:[#allocation2 + $0x10] sm:$0xff]  ;;  %v611_v23 = vld [vmem:[#allocation2 + $0x18] sm:$0xff] }
  0xa3   : > { %v1125_v30 = vshrl.u32 (!%p1420_p5), %v1124_v29, 7 }
  0xa4   : > { %1033 = vmatpush1.bf16.msra.mxu1 %v1566_v31  ;;  %v1122_v31 = vld [vmem:[%s591_s9] sm:$0x3] (!%p1420_p5) }
  0xa5   : > { %1076 = vmatpush1.bf16.msra.mxu0 %v1567_v32  ;;  %1034 = vmatprep.subr.bf16.mxu1 %v1568_v33  ;;  %v1138_v32 = vld [vmem:[%s596_s1] sm:$0x3] (!%p1420_p5) }
  0xa6   : > { %1077 = vmatprep.subr.bf16.mxu0 %v1570_v34  ;;  %v1126_v34 = vsub.s32 (!%p1420_p5), 0, %v1125_v30 }
  0xa8   : > { %1035 = vmatpush1.bf16.msra.mxu1 %v1572_v35  ;;  %v1130_v35 = vsub.s32 (!%p1420_p5), 1, %v1125_v30 }
  0xa9   : > { %1078 = vmatpush1.bf16.msra.mxu0 %v1573_v36  ;;  %1036 = vmatprep.subr.bf16.mxu1 %v1574_v37 }
  0xaa   : > { %1079 = vmatprep.subr.bf16.mxu0 %v1576_v38 }
  0xac   : > { %1037 = vmatpush1.bf16.msra.mxu1 %v1578_v39  ;;  %v1127_v39 = vrot.slane (!%p1420_p5), %v1122_v31, %v1126_v34 }
  0xad   : > { %1080 = vmatpush1.bf16.msra.mxu0 %v1579_v40  ;;  %1038 = vmatprep.subr.bf16.mxu1 %v1580_v41  ;;  %v1131_v40 = vrot.slane (!%p1420_p5), %v1122_v31, %v1130_v35  ;;  %v1143_v41 = vrot.slane (!%p1420_p5), %v1138_v32, %v1126_v34 }
  0xae   : > { %1081 = vmatprep.subr.bf16.mxu0 %v1582_v42  ;;  %v1147_v42 = vrot.slane (!%p1420_p5), %v1138_v32, %v1130_v35 }
  0xb0   : > { %1039 = vmatpush1.bf16.msra.mxu1 %v1584_v43 }
  0xb1   : > { %1082 = vmatpush1.bf16.msra.mxu0 %v1585_v44  ;;  %1040 = vmatprep.subr.bf16.mxu1 %v1586_v45 }
  0xb2   : > { %1083 = vmatprep.subr.bf16.mxu0 %v1588_v46 }
  0xb4   : > { %1041 = vmatpush1.bf16.msra.mxu1 %v1590_v47 }
  0xb5   : > { %1084 = vmatpush1.bf16.msra.mxu0 %v1591_v48  ;;  %1042 = vmatprep.subr.bf16.mxu1 %v1592_v49 }
  0xb6   : > { %1085 = vmatprep.subr.bf16.mxu0 %v1594_v50 }
  0xb8   : > { %1043 = vmatpush1.bf16.msra.mxu1 %v1596_v51 }
  0xb9   : > { %1086 = vmatpush1.bf16.msra.mxu0 %v1597_v53  ;;  %1044 = vmatprep.subr.bf16.mxu1 %v1598_v54 }
  0xba   : > { %1087 = vmatprep.subr.bf16.mxu0 %v1600_v55 }
  0xbc   : > { %1045 = vmatpush1.bf16.msra.mxu1 %v1602_v57 }
  0xbd   : > { %1088 = vmatpush1.bf16.msra.mxu0 %v1603_v58  ;;  %1046 = vmatprep.subr.bf16.mxu1 %v1604_v59 }
  0xbe   : > { %1089 = vmatprep.subr.bf16.mxu0 %v1606_v60 }
  0xc0   : > { %1047 = vmatpush1.bf16.msra.mxu1 %v1608_v61 }
  0xc1   : > { %1090 = vmatpush1.bf16.msra.mxu0 %v1609_v62  ;;  %1048 = vmatprep.subr.bf16.mxu1 %v1610_v63 }
  0xc2   : > { %1091 = vmatprep.subr.bf16.mxu0 %v1612_v0 }
  0xc4   : > { %1049 = vmatpush1.bf16.msra.mxu1 %v1614_v1 }
  0xc5   : > { %1092 = vmatpush1.bf16.msra.mxu0 %v1615_v2  ;;  %1050 = vmatprep.subr.bf16.mxu1 %v1616_v3 }
  0xc6   : > { %1093 = vmatprep.subr.bf16.mxu0 %v1618_v4 }
  0xc8   : > { %1051 = vmatpush1.bf16.msra.mxu1 %v1620_v5 }
  0xc9   : > { %1094 = vmatpush1.bf16.msra.mxu0 %v1621_v6 }
  0xcb   : > { %1053 = vmatmul.mubr.bf16.vlgmr.msra.gmra.mrb[0].mxu1 %v1622_v7 }
  0xcc   : > { %1096 = vmatmul.mubr.bf16.vlgmr.msra.gmra.mrb[0].mxu0 %v1625_v8 }
 0x19e   : > { %v1054_v9 = vpop.f32.mrb[0].mxu1 }
 0x19f   : > { %v1097_v11 = vpop.f32.mrb[0].mxu0  ;;  %v1056_v13 = vpop.f32.mrb[1].mxu1 }
 0x1a0   : > { %v1098_v12 = vadd.f32 %v1097_v11, %v1054_v9  ;;  %v1099_v15 = vpop.f32.mrb[1].mxu0  ;;  %v1058_v17 = vpop.f32.mrb[2].mxu1 }
 0x1a1   : > { %v1100_v16 = vadd.f32 %v1099_v15, %v1056_v13  ;;  %v1101_v19 = vpop.f32.mrb[2].mxu0  ;;  %v1060_v22 = vpop.f32.mrb[3].mxu1  ;;  %1117 = sbr.rel (%p1420_p5) target bundleno = 438 (0x1b6), region = 105 }
 0x1a2   : > { %v1106_v20 = vadd.f32 %v1098_v12, %v608_v10  ;;  %v1102_v21 = vadd.f32 %v1101_v19, %v1058_v17  ;;  %v1103_v24 = vpop.f32.mrb[3].mxu0 }
 0x1a3   : > { %v1107_v25 = vadd.f32 %v1100_v16, %v609_v14  ;;  %v1104_v26 = vadd.f32 %v1103_v24, %v1060_v22 }
 0x1a4   : > { %1110 = vst [vmem:[#allocation2] sm:$0xff] %v1106_v20  ;;  %v1108_v27 = vadd.f32 %v1102_v21, %v610_v18 }
 0x1a5   : > { %1111 = vst [vmem:[#allocation2 + $0x8] sm:$0xff] %v1107_v25  ;;  %v1109_v28 = vadd.f32 %v1104_v26, %v611_v23 }
 0x1a6   : > { %1112 = vst [vmem:[#allocation2 + $0x10] sm:$0xff] %v1108_v27 }
 0x1a7   : > { %1113 = vst [vmem:[#allocation2 + $0x18] sm:$0xff] %v1109_v28 }
 0x1ab   : > { %v1118_v33 = vld [vmem:[#allocation2] sm:$0xff] }
 0x1ac   : > { %v1119_v36 = vld [vmem:[#allocation2 + $0x8] sm:$0xff]  ;;  %v1134_v43 = vmul.f32 %v1127_v39, %v1118_v33 }
 0x1ad   : > { %v1120_v37 = vld [vmem:[#allocation2 + $0x10] sm:$0xff]  ;;  %v1135_v44 = vmul.f32 %v1131_v40, %v1119_v36 }
 0x1ae   : > { %v1121_v38 = vld [vmem:[#allocation2 + $0x18] sm:$0xff]  ;;  %v1136_v45 = vmul.f32 %v1127_v39, %v1120_v37  ;;  %v1150_v47 = vadd.f32 %v1143_v41, %v1134_v43 }
 0x1af   : > { %v1137_v46 = vmul.f32 %v1131_v40, %v1121_v38  ;;  %v1151_v48 = vadd.f32 %v1147_v42, %v1135_v44 }
 0x1b0   : > { %v1152_v49 = vadd.f32 %v1143_v41, %v1136_v45 }
 0x1b1   : > { %v1153_v50 = vadd.f32 %v1147_v42, %v1137_v46  ;;  %v1430_v51 = vpack.c.bf16 %v1151_v48, %v1150_v47 }
 0x1b3   : > { %v1431_v52 = vpack.c.bf16 %v1153_v50, %v1152_v49  ;;  %1166 = vst [vmem:[%s2008_s15] sm:$0xff] %v1430_v51 }
 0x1b5   : > { %1167 = vst [vmem:[%s2008_s15 + $0x8] sm:$0xff] %v1431_v52 }
 0x1b6 PF: > { %1174 = sbr.rel (!%p1836_p12) target bundleno = 446 (0x1be), region = 109  ;;  %s1432_s1 = sshll.u32 (%p1836_p12), %s1702_s22, 3 }
 0x1b7   : > { %s1180_s29 = scalar_lea.vmem (%p1836_p12), %s2137_s4, %s1432_s1 }
 0x1ba   : > { %v1210_v53 = vld [vmem:[%s2008_s15] sm:$0xff] (%p1836_p12) }
 0x1bb   : > { %1211 = vst [vmem:[%s1180_s29] sm:$0xff] (%p1836_p12), %v1210_v53 }
 0x1bc   : > { %v1212_v54 = vld [vmem:[%s2008_s15 + $0x8] sm:$0xff] (%p1836_p12) }
 0x1bd   : > { %1213 = vst [vmem:[%s1180_s29 + $0x40] sm:$0xff] %v1212_v54 }
 0x1be PF: > { %s14_s25 = sadd.s32 1, %s1714_s25   ;;  %s2149_s14 = sld [smem:[#allocation6_spill]] }
 0x1bf   : > { %p11_p6 = scmp.ge.s32.totalorder %s14_s25, 18   ;;  %s2150_s27 = sld [smem:[#allocation7_spill]] }
 0x1c0   : > { %s2151_s15 = smov %s1678_s16  ;;  %s2152_s16 = smov %s1834_s13 }
 0x1c1   : > { %s2153_s17 = smov %s1686_s18  ;;  %s2154_s18 = smov %s1831_s12 }
 0x1c2   : > { %s2155_s19 = smov %s1694_s20  ;;  %s2156_s20 = smov %s1817_s7 }
 0x1c3   : > { %s2157_s21 = smov %s1706_s23  ;;  %s2158_s22 = smov %s1710_s24 }
 0x1c4   : > { %s2159_s23 = smov %s2149_s14  ;;  %13 = sbr.rel (!%p11_p6) target bundleno = 9 (0x9), region = 192 }
 0x1c5   : > { %s2160_s24 = smov %s2150_s27 }

// kernel: resnet50_forward.103
= control target key start
LH: loop header
LB: loop body
LE: loop exit
PB: predicated region body
PF: predicated region fallthrough
CT: control target
= control target key end

     0   :  { %s1731_s18 = smov 0   ;;  %s1733_s19 = smov 0   ;;  %s2041_s0 = inlined_call_operand.vmem [shape: bf16[16,512], index: 0, kind: input, shape index: {}]   ;;  %s2042_s1 = inlined_call_operand.vmem [shape: bf16[512,2048], index: 1, kind: input, shape index: {}]   ;;  %s2043_s2 = inlined_call_operand.vmem [shape: f32[1,2048], index: 2, kind: input, shape index: {}]   ;;  %s2044_s3 = inlined_call_operand.vmem [shape: f32[1,2048], index: 3, kind: input, shape index: {}]   ;;  %s2045_s4 = inlined_call_operand.vmem [shape: bf16[16,2048], index: 4, kind: input, shape index: {}]   ;;  %s2046_s5 = inlined_call_operand.vmem [shape: bf16[16,2048], index: 5, kind: output, shape index: {}]  }
   0x1   :  { %s1735_s20 = smov 0   ;;  %s1737_s21 = smov 0  }
   0x2   :  { %s1739_s22 = smov 0  }
   0x3 LB: > { %s30_s23 = sadd.s32 1, %s1695_s21  ;;  %s1418_s24 = sadd.s32 4294967295, %s1699_s22   ;;  %s1699_s22 = sphi %s1739_s22, %s15_s22   ;;  %s1695_s21 = sphi %s1737_s21, %s2052_s21   ;;  %s1691_s20 = sphi %s1735_s20, %s2051_s20   ;;  %s1687_s19 = sphi %s1733_s19, %s2050_s19   ;;  %s1683_s18 = sphi %s1731_s18, %s2049_s18  }
   0x4   : > { %p32_p0 = scmp.ge.s32.totalorder %s30_s23, 8  ;;  %p78_p1 = scmp.ne.s32.totalorder %s1687_s19, %s1683_s18 }
   0x5   : > { %p79_p2 = scmp.eq.s32.totalorder %s1699_s22, 0  ;;  %p190_p4 = scmp.eq.s32.totalorder %s1418_s24, 7 }
   0x6   : > { %s2054_s23 = smov (%p32_p0, %s30_s23), 0  ;;  %s71_s27 = sadd.s32 1, %s1687_s19 }
   0x7   : > { %p1763_p3 = por %p79_p2, %p78_p1  ;;  %s67_s26 = ssub.s32 %s1695_s21, %s2054_s23 }
   0x8   : > { %p69_p5 = scmp.eq.s32.totalorder %s67_s26, 0  ;;  %p1770_p6 = por %p190_p4, %p78_p1 }
   0x9   : > { %p1422_p7 = scmp.ge.s32.totalorder %s1699_s22, 8 }
   0xa   : > { %s1775_s29 = scalar_select %p69_p5, %s1687_s19, %s71_s27  }
   0xb   : > { %227 = sbr.rel (%p1422_p7) target bundleno = 93 (0x5d), region = 20 }
  0x12   : > { %230 = sbr.rel (!%p1763_p3) target bundleno = 86 (0x56), region = 24  ;;  %s232_s30 = sand.u32 (%p1763_p3), 1, %s1687_s19  }
  0x13   : > { %s1510_s6 = sshll.u32 (%p1763_p3), %s1695_s21, 3  ;;  %s1423_s7 = sshll.u32 (%p1763_p3), %s232_s30, 9 }
  0x14   : > { %s1785_s10 = scalar_lea.vmem (%p1763_p3), %s2042_s1, %s1510_s6  ;;  %s1790_s11 = scalar_lea.vmem (%p1763_p3), [#allocation2], %s1423_s7 }
  0x15   : > { %v394_v0 = vld [vmem:[%s1785_s10] sm:$0xff] (%p1763_p3) }
  0x16   : > { %v396_v1 = vld [vmem:[%s1785_s10 + $0x40] sm:$0xff] (%p1763_p3)  ;;  %395 = vst [vmem:[%s1790_s11] sm:$0xff] (%p1763_p3), %v394_v0 }
  0x17   : > { %v398_v2 = vld [vmem:[%s1785_s10 + $0x80] sm:$0xff] (%p1763_p3)  ;;  %397 = vst [vmem:[%s1790_s11 + $0x8] sm:$0xff] (%p1763_p3), %v396_v1 }
  0x18   : > { %399 = vst [vmem:[%s1790_s11 + $0x10] sm:$0xff] (%p1763_p3), %v398_v2  ;;  %v400_v3 = vld [vmem:[%s1785_s10 + $0xc0] sm:$0xff] (%p1763_p3) }
  0x19   : > { %v402_v4 = vld [vmem:[%s1785_s10 + $0x100] sm:$0xff]  ;;  %401 = vst [vmem:[%s1790_s11 + $0x18] sm:$0xff] %v400_v3 }
  0x1a   : > { %v404_v5 = vld [vmem:[%s1785_s10 + $0x140] sm:$0xff]  ;;  %403 = vst [vmem:[%s1790_s11 + $0x20] sm:$0xff] %v402_v4 }
  0x1b   : > { %405 = vst [vmem:[%s1790_s11 + $0x28] sm:$0xff] %v404_v5  ;;  %v406_v6 = vld [vmem:[%s1785_s10 + $0x180] sm:$0xff] }
  0x1c   : > { %v408_v7 = vld [vmem:[%s1785_s10 + $0x1c0] sm:$0xff]  ;;  %407 = vst [vmem:[%s1790_s11 + $0x30] sm:$0xff] %v406_v6 }
  0x1d   : > { %v410_v8 = vld [vmem:[%s1785_s10 + $0x200] sm:$0xff]  ;;  %409 = vst [vmem:[%s1790_s11 + $0x38] sm:$0xff] %v408_v7 }
  0x1e   : > { %411 = vst [vmem:[%s1790_s11 + $0x40] sm:$0xff] %v410_v8  ;;  %v412_v9 = vld [vmem:[%s1785_s10 + $0x240] sm:$0xff] }
  0x1f   : > { %v414_v10 = vld [vmem:[%s1785_s10 + $0x280] sm:$0xff]  ;;  %413 = vst [vmem:[%s1790_s11 + $0x48] sm:$0xff] %v412_v9 }
  0x20   : > { %v416_v11 = vld [vmem:[%s1785_s10 + $0x2c0] sm:$0xff]  ;;  %415 = vst [vmem:[%s1790_s11 + $0x50] sm:$0xff] %v414_v10 }
  0x21   : > { %417 = vst [vmem:[%s1790_s11 + $0x58] sm:$0xff] %v416_v11  ;;  %v418_v12 = vld [vmem:[%s1785_s10 + $0x300] sm:$0xff] }
  0x22   : > { %v420_v13 = vld [vmem:[%s1785_s10 + $0x340] sm:$0xff]  ;;  %419 = vst [vmem:[%s1790_s11 + $0x60] sm:$0xff] %v418_v12 }
  0x23   : > { %v422_v14 = vld [vmem:[%s1785_s10 + $0x380] sm:$0xff]  ;;  %421 = vst [vmem:[%s1790_s11 + $0x68] sm:$0xff] %v420_v13 }
  0x24   : > { %423 = vst [vmem:[%s1790_s11 + $0x70] sm:$0xff] %v422_v14  ;;  %v424_v15 = vld [vmem:[%s1785_s10 + $0x3c0] sm:$0xff] }
  0x25   : > { %v426_v16 = vld [vmem:[%s1785_s10 + $0x400] sm:$0xff]  ;;  %425 = vst [vmem:[%s1790_s11 + $0x78] sm:$0xff] %v424_v15 }
  0x26   : > { %v428_v17 = vld [vmem:[%s1785_s10 + $0x440] sm:$0xff]  ;;  %427 = vst [vmem:[%s1790_s11 + $0x80] sm:$0xff] %v426_v16 }
  0x27   : > { %429 = vst [vmem:[%s1790_s11 + $0x88] sm:$0xff] %v428_v17  ;;  %v430_v18 = vld [vmem:[%s1785_s10 + $0x480] sm:$0xff] }
  0x28   : > { %v432_v19 = vld [vmem:[%s1785_s10 + $0x4c0] sm:$0xff]  ;;  %431 = vst [vmem:[%s1790_s11 + $0x90] sm:$0xff] %v430_v18 }
  0x29   : > { %v434_v20 = vld [vmem:[%s1785_s10 + $0x500] sm:$0xff]  ;;  %433 = vst [vmem:[%s1790_s11 + $0x98] sm:$0xff] %v432_v19 }
  0x2a   : > { %435 = vst [vmem:[%s1790_s11 + $0xa0] sm:$0xff] %v434_v20  ;;  %v436_v21 = vld [vmem:[%s1785_s10 + $0x540] sm:$0xff] }
  0x2b   : > { %v438_v22 = vld [vmem:[%s1785_s10 + $0x580] sm:$0xff]  ;;  %437 = vst [vmem:[%s1790_s11 + $0xa8] sm:$0xff] %v436_v21 }
  0x2c   : > { %v440_v23 = vld [vmem:[%s1785_s10 + $0x5c0] sm:$0xff]  ;;  %439 = vst [vmem:[%s1790_s11 + $0xb0] sm:$0xff] %v438_v22 }
  0x2d   : > { %441 = vst [vmem:[%s1790_s11 + $0xb8] sm:$0xff] %v440_v23  ;;  %v442_v24 = vld [vmem:[%s1785_s10 + $0x600] sm:$0xff] }
  0x2e   : > { %v444_v25 = vld [vmem:[%s1785_s10 + $0x640] sm:$0xff]  ;;  %443 = vst [vmem:[%s1790_s11 + $0xc0] sm:$0xff] %v442_v24 }
  0x2f   : > { %v446_v26 = vld [vmem:[%s1785_s10 + $0x680] sm:$0xff]  ;;  %445 = vst [vmem:[%s1790_s11 + $0xc8] sm:$0xff] %v444_v25 }
  0x30   : > { %447 = vst [vmem:[%s1790_s11 + $0xd0] sm:$0xff] %v446_v26  ;;  %v448_v27 = vld [vmem:[%s1785_s10 + $0x6c0] sm:$0xff] }
  0x31   : > { %v450_v28 = vld [vmem:[%s1785_s10 + $0x700] sm:$0xff]  ;;  %449 = vst [vmem:[%s1790_s11 + $0xd8] sm:$0xff] %v448_v27 }
  0x32   : > { %v452_v29 = vld [vmem:[%s1785_s10 + $0x740] sm:$0xff]  ;;  %451 = vst [vmem:[%s1790_s11 + $0xe0] sm:$0xff] %v450_v28 }
  0x33   : > { %453 = vst [vmem:[%s1790_s11 + $0xe8] sm:$0xff] %v452_v29  ;;  %v454_v30 = vld [vmem:[%s1785_s10 + $0x780] sm:$0xff] }
  0x34   : > { %v456_v31 = vld [vmem:[%s1785_s10 + $0x7c0] sm:$0xff]  ;;  %455 = vst [vmem:[%s1790_s11 + $0xf0] sm:$0xff] %v454_v30 }
  0x35   : > { %v458_v32 = vld [vmem:[%s1785_s10 + $0x800] sm:$0xff]  ;;  %457 = vst [vmem:[%s1790_s11 + $0xf8] sm:$0xff] %v456_v31 }
  0x36   : > { %459 = vst [vmem:[%s1790_s11 + $0x100] sm:$0xff] %v458_v32  ;;  %v460_v33 = vld [vmem:[%s1785_s10 + $0x840] sm:$0xff] }
  0x37   : > { %v462_v34 = vld [vmem:[%s1785_s10 + $0x880] sm:$0xff]  ;;  %461 = vst [vmem:[%s1790_s11 + $0x108] sm:$0xff] %v460_v33 }
  0x38   : > { %v464_v35 = vld [vmem:[%s1785_s10 + $0x8c0] sm:$0xff]  ;;  %463 = vst [vmem:[%s1790_s11 + $0x110] sm:$0xff] %v462_v34 }
  0x39   : > { %465 = vst [vmem:[%s1790_s11 + $0x118] sm:$0xff] %v464_v35  ;;  %v466_v36 = vld [vmem:[%s1785_s10 + $0x900] sm:$0xff] }
  0x3a   : > { %v468_v37 = vld [vmem:[%s1785_s10 + $0x940] sm:$0xff]  ;;  %467 = vst [vmem:[%s1790_s11 + $0x120] sm:$0xff] %v466_v36 }
  0x3b   : > { %v470_v38 = vld [vmem:[%s1785_s10 + $0x980] sm:$0xff]  ;;  %469 = vst [vmem:[%s1790_s11 + $0x128] sm:$0xff] %v468_v37 }
  0x3c   : > { %471 = vst [vmem:[%s1790_s11 + $0x130] sm:$0xff] %v470_v38  ;;  %v472_v39 = vld [vmem:[%s1785_s10 + $0x9c0] sm:$0xff] }
  0x3d   : > { %v474_v40 = vld [vmem:[%s1785_s10 + $0xa00] sm:$0xff]  ;;  %473 = vst [vmem:[%s1790_s11 + $0x138] sm:$0xff] %v472_v39 }
  0x3e   : > { %v476_v41 = vld [vmem:[%s1785_s10 + $0xa40] sm:$0xff]  ;;  %475 = vst [vmem:[%s1790_s11 + $0x140] sm:$0xff] %v474_v40 }
  0x3f   : > { %477 = vst [vmem:[%s1790_s11 + $0x148] sm:$0xff] %v476_v41  ;;  %v478_v42 = vld [vmem:[%s1785_s10 + $0xa80] sm:$0xff] }
  0x40   : > { %v480_v43 = vld [vmem:[%s1785_s10 + $0xac0] sm:$0xff]  ;;  %479 = vst [vmem:[%s1790_s11 + $0x150] sm:$0xff] %v478_v42 }
  0x41   : > { %v482_v44 = vld [vmem:[%s1785_s10 + $0xb00] sm:$0xff]  ;;  %481 = vst [vmem:[%s1790_s11 + $0x158] sm:$0xff] %v480_v43 }
  0x42   : > { %483 = vst [vmem:[%s1790_s11 + $0x160] sm:$0xff] %v482_v44  ;;  %v484_v45 = vld [vmem:[%s1785_s10 + $0xb40] sm:$0xff] }
  0x43   : > { %v486_v46 = vld [vmem:[%s1785_s10 + $0xb80] sm:$0xff]  ;;  %485 = vst [vmem:[%s1790_s11 + $0x168] sm:$0xff] %v484_v45 }
  0x44   : > { %v488_v47 = vld [vmem:[%s1785_s10 + $0xbc0] sm:$0xff]  ;;  %487 = vst [vmem:[%s1790_s11 + $0x170] sm:$0xff] %v486_v46 }
  0x45   : > { %489 = vst [vmem:[%s1790_s11 + $0x178] sm:$0xff] %v488_v47  ;;  %v490_v48 = vld [vmem:[%s1785_s10 + $0xc00] sm:$0xff] }
  0x46   : > { %v492_v49 = vld [vmem:[%s1785_s10 + $0xc40] sm:$0xff]  ;;  %491 = vst [vmem:[%s1790_s11 + $0x180] sm:$0xff] %v490_v48 }
  0x47   : > { %v494_v50 = vld [vmem:[%s1785_s10 + $0xc80] sm:$0xff]  ;;  %493 = vst [vmem:[%s1790_s11 + $0x188] sm:$0xff] %v492_v49 }
  0x48   : > { %495 = vst [vmem:[%s1790_s11 + $0x190] sm:$0xff] %v494_v50  ;;  %v496_v51 = vld [vmem:[%s1785_s10 + $0xcc0] sm:$0xff] }
  0x49   : > { %v498_v52 = vld [vmem:[%s1785_s10 + $0xd00] sm:$0xff]  ;;  %497 = vst [vmem:[%s1790_s11 + $0x198] sm:$0xff] %v496_v51 }
  0x4a   : > { %v500_v53 = vld [vmem:[%s1785_s10 + $0xd40] sm:$0xff]  ;;  %499 = vst [vmem:[%s1790_s11 + $0x1a0] sm:$0xff] %v498_v52 }
  0x4b   : > { %501 = vst [vmem:[%s1790_s11 + $0x1a8] sm:$0xff] %v500_v53  ;;  %v502_v54 = vld [vmem:[%s1785_s10 + $0xd80] sm:$0xff] }
  0x4c   : > { %v504_v55 = vld [vmem:[%s1785_s10 + $0xdc0] sm:$0xff]  ;;  %503 = vst [vmem:[%s1790_s11 + $0x1b0] sm:$0xff] %v502_v54 }
  0x4d   : > { %v506_v56 = vld [vmem:[%s1785_s10 + $0xe00] sm:$0xff]  ;;  %505 = vst [vmem:[%s1790_s11 + $0x1b8] sm:$0xff] %v504_v55 }
  0x4e   : > { %507 = vst [vmem:[%s1790_s11 + $0x1c0] sm:$0xff] %v506_v56  ;;  %v508_v57 = vld [vmem:[%s1785_s10 + $0xe40] sm:$0xff] }
  0x4f   : > { %v510_v58 = vld [vmem:[%s1785_s10 + $0xe80] sm:$0xff]  ;;  %509 = vst [vmem:[%s1790_s11 + $0x1c8] sm:$0xff] %v508_v57 }
  0x50   : > { %v512_v59 = vld [vmem:[%s1785_s10 + $0xec0] sm:$0xff]  ;;  %511 = vst [vmem:[%s1790_s11 + $0x1d0] sm:$0xff] %v510_v58 }
  0x51   : > { %513 = vst [vmem:[%s1790_s11 + $0x1d8] sm:$0xff] %v512_v59  ;;  %v514_v60 = vld [vmem:[%s1785_s10 + $0xf00] sm:$0xff] }
  0x52   : > { %v516_v61 = vld [vmem:[%s1785_s10 + $0xf40] sm:$0xff]  ;;  %515 = vst [vmem:[%s1790_s11 + $0x1e0] sm:$0xff] %v514_v60 }
  0x53   : > { %v518_v62 = vld [vmem:[%s1785_s10 + $0xf80] sm:$0xff]  ;;  %517 = vst [vmem:[%s1790_s11 + $0x1e8] sm:$0xff] %v516_v61 }
  0x54   : > { %519 = vst [vmem:[%s1790_s11 + $0x1f0] sm:$0xff] %v518_v62  ;;  %v520_v63 = vld [vmem:[%s1785_s10 + $0xfc0] sm:$0xff] }
  0x55   : > { %521 = vst [vmem:[%s1790_s11 + $0x1f8] sm:$0xff] %v520_v63 }
  0x56 PF: > { %543 = sbr.rel (!%p1763_p3) target bundleno = 93 (0x5d), region = 70  ;;  %s545_s12 = sand.u32 (%p1763_p3), 1, %s1687_s19  }
  0x57   : > { %s1511_s13 = sshll.u32 (%p1763_p3), %s1695_s21, 3  ;;  %s1426_s14 = sshll.u32 (%p1763_p3), %s545_s12, 4 }
  0x58   : > { %s553_s17 = scalar_lea.vmem (%p1763_p3), %s2045_s4, %s1511_s13  ;;  %s547_s24 = scalar_lea.vmem (%p1763_p3), [#allocation3], %s1426_s14 }
  0x59   : > { %v583_v0 = vld [vmem:[%s553_s17] sm:$0xff] (%p1763_p3) }
  0x5a   : > { %v585_v1 = vld [vmem:[%s553_s17 + $0x40] sm:$0xff] (%p1763_p3)  ;;  %584 = vst [vmem:[%s547_s24] sm:$0xff] (%p1763_p3), %v583_v0 }
  0x5b   : > { %586 = vst [vmem:[%s547_s24 + $0x8] sm:$0xff] (%p1763_p3), %v585_v1 }
  0x5d PF: > { %p1429_p8 = scmp.ge.s32.totalorder %s1699_s22, 1  ;;  %p591_p9 = scmp.lt.s32.totalorder %s1699_s22, 9 }
  0x5f   : > { %p592_p10 = pnand %p1429_p8, %p591_p9 }
  0x60   : > { %s598_s25 = sand.u32 (!%p592_p10), 1, %s1683_s18   ;;  %v1657_v2 = vld [vmem:[%s2041_s0 + $0x4] ss:$16 sps:$4 sm:$0xff] (!%p592_p10)   ;;  %v1660_v3 = vld [vmem:[%s2041_s0 + $0xc] ss:$16 sps:$4 sm:$0xff] (!%p592_p10)   ;;  %s1433_s13 = sshll.u32 (!%p592_p10), %s1691_s20, 1 }
  0x61   : > { %595 = sbr.rel (%p592_p10) target bundleno = 401 (0x191), region = 108  ;;  %s1430_s26 = sshll.u32 (!%p592_p10), %s598_s25, 9  ;;  %1121 = vmatprep.mubr.bf16.mxu1 (!%p592_p10), %v1657_v2  ;;  %1164 = vmatprep.mubr.bf16.mxu0 (!%p592_p10), %v1660_v3 }
  0x62   : > { %s1935_s8 = scalar_lea.vmem (!%p592_p10), [#allocation2], %s1430_s26  ;;  %p668_p11 = scmp.lt.s32.totalorder (!%p592_p10), %s1433_s13, 15 }
  0x63   : > { %v1559_v4 = vld [vmem:[%s1935_s8 + $0x4] ss:$8 sps:$4 sm:$0xff] (!%p592_p10)   ;;  %v1563_v6 = vld [vmem:[%s1935_s8] ss:$8 sps:$4 sm:$0xff] (!%p592_p10)   ;;  %v1565_v8 = vld [vmem:[%s1935_s8 + $0x14] ss:$8 sps:$4 sm:$0xff] (!%p592_p10)  }
  0x64   : > { %v1561_v5 = vld [vmem:[%s1935_s8 + $0x104] ss:$8 sps:$4 sm:$0xff] (!%p592_p10)   ;;  %1089 = vmatprep.subr.bf16.mxu1 (!%p592_p10), %v1559_v4  ;;  %v1564_v7 = vld [vmem:[%s1935_s8 + $0x100] ss:$8 sps:$4 sm:$0xff] (!%p592_p10)   ;;  %v1567_v9 = vld [vmem:[%s1935_s8 + $0x114] ss:$8 sps:$4 sm:$0xff] (!%p592_p10)  }
  0x65   : > { %1132 = vmatprep.subr.bf16.mxu0 (!%p592_p10), %v1561_v5  ;;  %1090 = vmatpush1.bf16.msra.mxu1 (!%p592_p10), %v1563_v6  ;;  %v1569_v10 = vld [vmem:[%s1935_s8 + $0x10] ss:$8 sps:$4 sm:$0xff] (!%p592_p10)   ;;  %v1571_v12 = vld [vmem:[%s1935_s8 + $0x24] ss:$8 sps:$4 sm:$0xff] (!%p592_p10)   ;;  %v1575_v14 = vld [vmem:[%s1935_s8 + $0x20] ss:$8 sps:$4 sm:$0xff] (!%p592_p10)   ;;  %v1177_v6 = vlaneseq (!%p592_p10) }
  0x66   : > { %1133 = vmatpush1.bf16.msra.mxu0 (!%p592_p10), %v1564_v7  ;;  %1091 = vmatprep.subr.bf16.mxu1 (!%p592_p10), %v1565_v8  ;;  %v1570_v11 = vld [vmem:[%s1935_s8 + $0x110] ss:$8 sps:$4 sm:$0xff] (!%p592_p10)   ;;  %v1573_v13 = vld [vmem:[%s1935_s8 + $0x124] ss:$8 sps:$4 sm:$0xff] (!%p592_p10)   ;;  %v1576_v15 = vld [vmem:[%s1935_s8 + $0x120] ss:$8 sps:$4 sm:$0xff] (!%p592_p10)  }
  0x67   : > { %1134 = vmatprep.subr.bf16.mxu0 (!%p592_p10), %v1567_v9  ;;  %v1577_v16 = vld [vmem:[%s1935_s8 + $0x34] ss:$8 sps:$4 sm:$0xff] (!%p592_p10)   ;;  %v1581_v18 = vld [vmem:[%s1935_s8 + $0x30] ss:$8 sps:$4 sm:$0xff] (!%p592_p10)   ;;  %v1583_v20 = vld [vmem:[%s1935_s8 + $0x44] ss:$8 sps:$4 sm:$0xff] (!%p592_p10)  }
  0x68   : > { %v1579_v17 = vld [vmem:[%s1935_s8 + $0x134] ss:$8 sps:$4 sm:$0xff]   ;;  %v1582_v19 = vld [vmem:[%s1935_s8 + $0x130] ss:$8 sps:$4 sm:$0xff]   ;;  %v1585_v21 = vld [vmem:[%s1935_s8 + $0x144] ss:$8 sps:$4 sm:$0xff]  }
  0x69   : > { %1092 = vmatpush1.bf16.msra.mxu1 %v1569_v10  ;;  %v1587_v22 = vld [vmem:[%s1935_s8 + $0x40] ss:$8 sps:$4 sm:$0xff]   ;;  %v1589_v24 = vld [vmem:[%s1935_s8 + $0x54] ss:$8 sps:$4 sm:$0xff]   ;;  %v1593_v26 = vld [vmem:[%s1935_s8 + $0x50] ss:$8 sps:$4 sm:$0xff]  }
  0x6a   : > { %1135 = vmatpush1.bf16.msra.mxu0 %v1570_v11  ;;  %1093 = vmatprep.subr.bf16.mxu1 %v1571_v12  ;;  %v1588_v23 = vld [vmem:[%s1935_s8 + $0x140] ss:$8 sps:$4 sm:$0xff]   ;;  %v1591_v25 = vld [vmem:[%s1935_s8 + $0x154] ss:$8 sps:$4 sm:$0xff]   ;;  %v1594_v27 = vld [vmem:[%s1935_s8 + $0x150] ss:$8 sps:$4 sm:$0xff]  }
  0x6b   : > { %1136 = vmatprep.subr.bf16.mxu0 %v1573_v13  ;;  %v1595_v28 = vld [vmem:[%s1935_s8 + $0x64] ss:$8 sps:$4 sm:$0xff]   ;;  %v1599_v30 = vld [vmem:[%s1935_s8 + $0x60] ss:$8 sps:$4 sm:$0xff]   ;;  %v1601_v32 = vld [vmem:[%s1935_s8 + $0x74] ss:$8 sps:$4 sm:$0xff]  }
  0x6c   : > { %v1597_v29 = vld [vmem:[%s1935_s8 + $0x164] ss:$8 sps:$4 sm:$0xff]   ;;  %v1600_v31 = vld [vmem:[%s1935_s8 + $0x160] ss:$8 sps:$4 sm:$0xff]   ;;  %v1603_v33 = vld [vmem:[%s1935_s8 + $0x174] ss:$8 sps:$4 sm:$0xff]  }
  0x6d   : > { %1094 = vmatpush1.bf16.msra.mxu1 %v1575_v14  ;;  %v1605_v34 = vld [vmem:[%s1935_s8 + $0x70] ss:$8 sps:$4 sm:$0xff]   ;;  %v1607_v36 = vld [vmem:[%s1935_s8 + $0x84] ss:$8 sps:$4 sm:$0xff]   ;;  %v1611_v38 = vld [vmem:[%s1935_s8 + $0x80] ss:$8 sps:$4 sm:$0xff]  }
  0x6e   : > { %1137 = vmatpush1.bf16.msra.mxu0 %v1576_v15  ;;  %1095 = vmatprep.subr.bf16.mxu1 %v1577_v16  ;;  %v1606_v35 = vld [vmem:[%s1935_s8 + $0x170] ss:$8 sps:$4 sm:$0xff]   ;;  %v1609_v37 = vld [vmem:[%s1935_s8 + $0x184] ss:$8 sps:$4 sm:$0xff]   ;;  %v1612_v39 = vld [vmem:[%s1935_s8 + $0x180] ss:$8 sps:$4 sm:$0xff]  }
  0x6f   : > { %1138 = vmatprep.subr.bf16.mxu0 %v1579_v17  ;;  %v1613_v40 = vld [vmem:[%s1935_s8 + $0x94] ss:$8 sps:$4 sm:$0xff]   ;;  %v1617_v42 = vld [vmem:[%s1935_s8 + $0x90] ss:$8 sps:$4 sm:$0xff]   ;;  %v1619_v44 = vld [vmem:[%s1935_s8 + $0xa4] ss:$8 sps:$4 sm:$0xff]  }
  0x70   : > { %v1615_v41 = vld [vmem:[%s1935_s8 + $0x194] ss:$8 sps:$4 sm:$0xff]   ;;  %v1618_v43 = vld [vmem:[%s1935_s8 + $0x190] ss:$8 sps:$4 sm:$0xff]   ;;  %v1621_v45 = vld [vmem:[%s1935_s8 + $0x1a4] ss:$8 sps:$4 sm:$0xff]  }
  0x71   : > { %1096 = vmatpush1.bf16.msra.mxu1 %v1581_v18  ;;  %v1623_v46 = vld [vmem:[%s1935_s8 + $0xa0] ss:$8 sps:$4 sm:$0xff]   ;;  %v1625_v48 = vld [vmem:[%s1935_s8 + $0xb4] ss:$8 sps:$4 sm:$0xff]   ;;  %v1629_v50 = vld [vmem:[%s1935_s8 + $0xb0] ss:$8 sps:$4 sm:$0xff]  }
  0x72   : > { %1139 = vmatpush1.bf16.msra.mxu0 %v1582_v19  ;;  %1097 = vmatprep.subr.bf16.mxu1 %v1583_v20  ;;  %v1624_v47 = vld [vmem:[%s1935_s8 + $0x1a0] ss:$8 sps:$4 sm:$0xff]   ;;  %v1627_v49 = vld [vmem:[%s1935_s8 + $0x1b4] ss:$8 sps:$4 sm:$0xff]   ;;  %v1630_v51 = vld [vmem:[%s1935_s8 + $0x1b0] ss:$8 sps:$4 sm:$0xff]  }
  0x73   : > { %1140 = vmatprep.subr.bf16.mxu0 %v1585_v21  ;;  %v1631_v52 = vld [vmem:[%s1935_s8 + $0xc4] ss:$8 sps:$4 sm:$0xff]   ;;  %v1635_v54 = vld [vmem:[%s1935_s8 + $0xc0] ss:$8 sps:$4 sm:$0xff]   ;;  %v1637_v56 = vld [vmem:[%s1935_s8 + $0xd4] ss:$8 sps:$4 sm:$0xff]  }
  0x74   : > { %v1633_v53 = vld [vmem:[%s1935_s8 + $0x1c4] ss:$8 sps:$4 sm:$0xff]   ;;  %v1636_v55 = vld [vmem:[%s1935_s8 + $0x1c0] ss:$8 sps:$4 sm:$0xff]   ;;  %v1639_v57 = vld [vmem:[%s1935_s8 + $0x1d4] ss:$8 sps:$4 sm:$0xff]  }
  0x75   : > { %1098 = vmatpush1.bf16.msra.mxu1 %v1587_v22  ;;  %v1641_v58 = vld [vmem:[%s1935_s8 + $0xd0] ss:$8 sps:$4 sm:$0xff]   ;;  %v1643_v60 = vld [vmem:[%s1935_s8 + $0xe4] ss:$8 sps:$4 sm:$0xff]   ;;  %v1647_v62 = vld [vmem:[%s1935_s8 + $0xe0] ss:$8 sps:$4 sm:$0xff]  }
  0x76   : > { %1141 = vmatpush1.bf16.msra.mxu0 %v1588_v23  ;;  %1099 = vmatprep.subr.bf16.mxu1 %v1589_v24  ;;  %v1642_v59 = vld [vmem:[%s1935_s8 + $0x1d0] ss:$8 sps:$4 sm:$0xff]   ;;  %v1645_v61 = vld [vmem:[%s1935_s8 + $0x1e4] ss:$8 sps:$4 sm:$0xff]   ;;  %v1648_v63 = vld [vmem:[%s1935_s8 + $0x1e0] ss:$8 sps:$4 sm:$0xff]  }
  0x77   : > { %1142 = vmatprep.subr.bf16.mxu0 %v1591_v25  ;;  %v1649_v0 = vld [vmem:[%s1935_s8 + $0xf4] ss:$8 sps:$4 sm:$0xff]   ;;  %v1653_v2 = vld [vmem:[%s1935_s8 + $0xf0] ss:$8 sps:$4 sm:$0xff]   ;;  %s2056_s13 = smov (!%p668_p11, %s1433_s13), 15  ;;  %v1178_v7 = vshrl.u32 %v1177_v6, 7 }
  0x78   : > { %v1651_v1 = vld [vmem:[%s1935_s8 + $0x1f4] ss:$8 sps:$4 sm:$0xff]   ;;  %v1654_v3 = vld [vmem:[%s1935_s8 + $0x1f0] ss:$8 sps:$4 sm:$0xff]   ;;  %s670_s16 = scalar_lea.vmem %s2043_s2, %s2056_s13  ;;  %s2013_s17 = sshll.u32 %s598_s25, 4 }
  0x79   : > { %1100 = vmatpush1.bf16.msra.mxu1 %v1593_v26  ;;  %v1655_v4 = vld [vmem:[%s2041_s0] ss:$16 sps:$4 sm:$0xff]   ;;  %v1658_v5 = vld [vmem:[%s2041_s0 + $0x8] ss:$16 sps:$4 sm:$0xff]   ;;  %s675_s27 = scalar_lea.vmem %s2044_s3, %s2056_s13  ;;  %v1179_v8 = vsub.s32 0, %v1178_v7  ;;  %v1183_v10 = vsub.s32 1, %v1178_v7 }
  0x7a   : > { %1143 = vmatpush1.bf16.msra.mxu0 %v1594_v27  ;;  %1101 = vmatprep.subr.bf16.mxu1 %v1595_v28  ;;  %v1175_v9 = vld [vmem:[%s670_s16] sm:$0x3]  ;;  %s607_s30 = scalar_lea.vmem [#allocation3], %s2013_s17  ;;  %s652_s18 = scalar_lea.vmem [#allocation4], %s2013_s17 }
  0x7b   : > { %1144 = vmatprep.subr.bf16.mxu0 %v1597_v29  ;;  %v1191_v11 = vld [vmem:[%s675_s27] sm:$0x3]  ;;  %v1180_v12 = vrot.slane %v1175_v9, %v1179_v8  ;;  %v1184_v16 = vrot.slane %v1175_v9, %v1183_v10  ;;  %v1208_v25 = vld [vmem:[%s607_s30 + $0x8] sm:$0xff]  ;;  %s1514_s25 = sshll.u32 (%p1770_p6), %s1691_s20, 3 }
  0x7c   : > { %v1207_v15 = vld [vmem:[%s607_s30] sm:$0xff]  ;;  %v1196_v18 = vrot.slane %v1191_v11, %v1179_v8  ;;  %v1200_v22 = vrot.slane %v1191_v11, %v1183_v10  ;;  %s1247_s8 = scalar_lea.vmem (%p1770_p6), %s2046_s5, %s1514_s25 }
  0x7d   : > { %1102 = vmatpush1.bf16.msra.mxu1 %v1599_v30  ;;  %v1209_v27 = vunpack.c.l.bf16 %v1207_v15 }
  0x7e   : > { %1145 = vmatpush1.bf16.msra.mxu0 %v1600_v31  ;;  %1103 = vmatprep.subr.bf16.mxu1 %v1601_v32  ;;  %v1210_v32 = vunpack.c.h.bf16 %v1207_v15 }
  0x7f   : > { %1146 = vmatprep.subr.bf16.mxu0 %v1603_v33 }
  0x81   : > { %1104 = vmatpush1.bf16.msra.mxu1 %v1605_v34 }
  0x82   : > { %1147 = vmatpush1.bf16.msra.mxu0 %v1606_v35  ;;  %1105 = vmatprep.subr.bf16.mxu1 %v1607_v36  ;;  %v1211_v36 = vunpack.c.l.bf16 %v1208_v25 }
  0x83   : > { %1148 = vmatprep.subr.bf16.mxu0 %v1609_v37 }
  0x85   : > { %1106 = vmatpush1.bf16.msra.mxu1 %v1611_v38 }
  0x86   : > { %1149 = vmatpush1.bf16.msra.mxu0 %v1612_v39  ;;  %1107 = vmatprep.subr.bf16.mxu1 %v1613_v40  ;;  %v1212_v39 = vunpack.c.h.bf16 %v1208_v25 }
  0x87   : > { %1150 = vmatprep.subr.bf16.mxu0 %v1615_v41 }
  0x89   : > { %1108 = vmatpush1.bf16.msra.mxu1 %v1617_v42 }
  0x8a   : > { %1151 = vmatpush1.bf16.msra.mxu0 %v1618_v43  ;;  %1109 = vmatprep.subr.bf16.mxu1 %v1619_v44 }
  0x8b   : > { %1152 = vmatprep.subr.bf16.mxu0 %v1621_v45 }
  0x8d   : > { %1110 = vmatpush1.bf16.msra.mxu1 %v1623_v46 }
  0x8e   : > { %1153 = vmatpush1.bf16.msra.mxu0 %v1624_v47  ;;  %1111 = vmatprep.subr.bf16.mxu1 %v1625_v48 }
  0x8f   : > { %1154 = vmatprep.subr.bf16.mxu0 %v1627_v49 }
  0x91   : > { %1112 = vmatpush1.bf16.msra.mxu1 %v1629_v50 }
  0x92   : > { %1155 = vmatpush1.bf16.msra.mxu0 %v1630_v51  ;;  %1113 = vmatprep.subr.bf16.mxu1 %v1631_v52 }
  0x93   : > { %1156 = vmatprep.subr.bf16.mxu0 %v1633_v53 }
  0x95   : > { %1114 = vmatpush1.bf16.msra.mxu1 %v1635_v54 }
  0x96   : > { %1157 = vmatpush1.bf16.msra.mxu0 %v1636_v55  ;;  %1115 = vmatprep.subr.bf16.mxu1 %v1637_v56 }
  0x97   : > { %1158 = vmatprep.subr.bf16.mxu0 %v1639_v57 }
  0x99   : > { %1116 = vmatpush1.bf16.msra.mxu1 %v1641_v58 }
  0x9a   : > { %1159 = vmatpush1.bf16.msra.mxu0 %v1642_v59  ;;  %1117 = vmatprep.subr.bf16.mxu1 %v1643_v60 }
  0x9b   : > { %1160 = vmatprep.subr.bf16.mxu0 %v1645_v61 }
  0x9d   : > { %1118 = vmatpush1.bf16.msra.mxu1 %v1647_v62 }
  0x9e   : > { %1161 = vmatpush1.bf16.msra.mxu0 %v1648_v63  ;;  %1119 = vmatprep.subr.bf16.mxu1 %v1649_v0 }
  0x9f   : > { %1162 = vmatprep.subr.bf16.mxu0 %v1651_v1 }
  0xa1   : > { %1120 = vmatpush1.bf16.msra.mxu1 %v1653_v2 }
  0xa2   : > { %1163 = vmatpush1.bf16.msra.mxu0 %v1654_v3 }
  0xa4   : > { %1122 = vmatmul.mubr.bf16.vlgmr.msra.gmra.mrb[0].mxu1 %v1655_v4 }
  0xa5   : > { %1165 = vmatmul.mubr.bf16.vlgmr.msra.gmra.mrb[0].mxu0 %v1658_v5 }
 0x177   : > { %v1123_v13 = vpop.f32.mrb[0].mxu1 }
 0x178   : > { %v1166_v14 = vpop.f32.mrb[0].mxu0  ;;  %v1125_v19 = vpop.f32.mrb[1].mxu1 }
 0x179   : > { %v1167_v17 = vadd.f32 %v1166_v14, %v1123_v13  ;;  %v1168_v20 = vpop.f32.mrb[1].mxu0  ;;  %v1127_v23 = vpop.f32.mrb[2].mxu1 }
 0x17a   : > { %v1169_v21 = vadd.f32 %v1168_v20, %v1125_v19  ;;  %v1170_v24 = vpop.f32.mrb[2].mxu0  ;;  %v1129_v29 = vpop.f32.mrb[3].mxu1 }
 0x17b   : > { %v1187_v26 = vmul.f32 %v1180_v12, %v1167_v17  ;;  %v1171_v28 = vadd.f32 %v1170_v24, %v1127_v23  ;;  %v1172_v30 = vpop.f32.mrb[3].mxu0 }
 0x17c   : > { %v1188_v31 = vmul.f32 %v1184_v16, %v1169_v21  ;;  %v1173_v33 = vadd.f32 %v1172_v30, %v1129_v29 }
 0x17d   : > { %v1203_v34 = vadd.f32 %v1196_v18, %v1187_v26  ;;  %v1189_v35 = vmul.f32 %v1180_v12, %v1171_v28 }
 0x17e   : > { %v1204_v37 = vadd.f32 %v1200_v22, %v1188_v31  ;;  %v1190_v38 = vmul.f32 %v1184_v16, %v1173_v33 }
 0x17f   : > { %v1213_v40 = vadd.f32 %v1209_v27, %v1203_v34  ;;  %v1205_v41 = vadd.f32 %v1196_v18, %v1189_v35 }
 0x180   : > { %v1214_v42 = vadd.f32 %v1210_v32, %v1204_v37  ;;  %v1206_v43 = vadd.f32 %v1200_v22, %v1190_v38 }
 0x181   : > { %v1217_v44 = vmax.f32 %v1213_v40, 0.0  ;;  %v1215_v45 = vadd.f32 %v1211_v36, %v1205_v41 }
 0x182   : > { %v1218_v46 = vmax.f32 %v1214_v42, 0.0  ;;  %v1216_v47 = vadd.f32 %v1212_v39, %v1206_v43  ;;  %1241 = sbr.rel (!%p1770_p6) target bundleno = 401 (0x191), region = 120 }
 0x183   : > { %v1219_v48 = vmax.f32 %v1215_v45, 0.0 }
 0x184   : > { %v1512_v49 = vpack.c.bf16 %v1218_v46, %v1217_v44  ;;  %v1220_v50 = vmax.f32 %v1216_v47, 0.0 }
 0x186   : > { %1233 = vst [vmem:[%s652_s18] sm:$0xff] %v1512_v49  ;;  %v1513_v51 = vpack.c.bf16 %v1220_v50, %v1219_v48 }
 0x188   : > { %1234 = vst [vmem:[%s652_s18 + $0x8] sm:$0xff] %v1513_v51 }
 0x18d   : > { %v1277_v52 = vld [vmem:[%s652_s18] sm:$0xff] }
 0x18e   : > { %1278 = vst [vmem:[%s1247_s8] sm:$0xff] %v1277_v52 }
 0x18f   : > { %v1279_v53 = vld [vmem:[%s652_s18 + $0x8] sm:$0xff] }
 0x190   : > { %1280 = vst [vmem:[%s1247_s8 + $0x40] sm:$0xff] %v1279_v53 }
 0x191 PF: > { %s15_s22 = sadd.s32 1, %s1699_s22   ;;  %s2049_s18 = smov %s1687_s19 }
 0x192   : > { %p12_p12 = scmp.ge.s32.totalorder %s15_s22, 10   ;;  %s2050_s19 = smov %s1775_s29 }
 0x193   : > { %s2051_s20 = smov %s1695_s21  ;;  %s2052_s21 = smov %s2054_s23 }
 0x194   :  { %14 = sbr.rel (!%p12_p12) target bundleno = 3 (0x3), region = 206 }

// kernel: resnet50_forward.104
= control target key start
LH: loop header
LB: loop body
LE: loop exit
PB: predicated region body
PF: predicated region fallthrough
CT: control target
= control target key end

     0   :  { %s2137_s0 = inlined_call_operand.vmem [shape: bf16[16,2048], index: 0, kind: input, shape index: {}]   ;;  %s2138_s1 = inlined_call_operand.vmem [shape: bf16[2048,512], index: 1, kind: input, shape index: {}]   ;;  %s2139_s2 = inlined_call_operand.vmem [shape: f32[1,512], index: 2, kind: input, shape index: {}]   ;;  %s2140_s3 = inlined_call_operand.vmem [shape: f32[1,512], index: 3, kind: input, shape index: {}]   ;;  %s2141_s4 = inlined_call_operand.vmem [shape: bf16[16,512], index: 4, kind: output, shape index: {}]  }
   0x1   :  { %2144 = sst [smem:[#allocation8_spill]] %s2137_s0 }
   0x2   :  { %2145 = sst [smem:[#allocation9_spill]] %s2138_s1 }
   0x3   :  { %s1746_s15 = smov 0   ;;  %s1748_s16 = smov 0  }
   0x4   :  { %s1750_s17 = smov 0   ;;  %s1752_s18 = smov 0  }
   0x5   :  { %s1754_s19 = smov 0   ;;  %s1756_s20 = smov 0  }
   0x6   :  { %s1758_s21 = smov 0   ;;  %s1760_s22 = smov 0  }
   0x7   :  { %s1762_s23 = smov 0   ;;  %s1764_s24 = smov 0  }
   0x8   :  { %s1766_s25 = smov 0  }
   0x9 LB: > { %s1337_s26 = sadd.s32 4294967295, %s1718_s25   ;;  %s26_s27 = sadd.s32 1, %s1710_s23  ;;  %s1718_s25 = sphi %s1766_s25, %s14_s25   ;;  %s1714_s24 = sphi %s1764_s24, %s2164_s24   ;;  %s1710_s23 = sphi %s1762_s23, %s2163_s23   ;;  %s1706_s22 = sphi %s1760_s22, %s2162_s22   ;;  %s1702_s21 = sphi %s1758_s21, %s2161_s21   ;;  %s1698_s20 = sphi %s1756_s20, %s2160_s20   ;;  %s1694_s19 = sphi %s1754_s19, %s2159_s19   ;;  %s1690_s18 = sphi %s1752_s18, %s2158_s18   ;;  %s1686_s17 = sphi %s1750_s17, %s2157_s17   ;;  %s1682_s16 = sphi %s1748_s16, %s2156_s16   ;;  %s1678_s15 = sphi %s1746_s15, %s2155_s15  }
   0xa   : > { %p27_p0 = scmp.ge.s32.totalorder %s26_s27, 4  ;;  %s29_s28 = sadd.s32 1, %s1714_s24 }
   0xb   : > { %s42_s29 = sadd.s32 1, %s1698_s20  ;;  %p49_p1 = scmp.ne.s32.totalorder %s1698_s20, %s1694_s19 }
   0xc   : > { %s2166_s27 = smov (%p27_p0, %s26_s27), 0  ;;  %s2168_s28 = smov (!%p27_p0, %s29_s28), %s1714_s24 }
   0xd   : > { %2146 = sst [smem:[#allocation6_spill]] %s2166_s27  ;;  %s38_s30 = ssub.s32 %s1710_s23, %s2166_s27 }
   0xe   : > { %p50_p2 = scmp.eq.s32.totalorder %s1718_s25, 0  ;;  %p31_p3 = scmp.ge.s32.totalorder %s2168_s28, 2 }
   0xf   : > { %p40_p4 = scmp.eq.s32.totalorder %s38_s30, 0  ;;  %s70_s6 = sadd.s32 1, %s1690_s18 }
  0x10   : > { %p1813_p5 = por %p50_p2, %p49_p1  ;;  %s2170_s28 = smov (%p31_p3, %s2168_s28), 0 }
  0x11   : > { %2148 = sst [smem:[#allocation7_spill]] %s2170_s28  ;;  %s66_s8 = ssub.s32 %s1714_s24, %s2170_s28 }
  0x12   : > { %s1821_s7 = scalar_select %p40_p4, %s1698_s20, %s42_s29  }
  0x13   : > { %p77_p6 = scmp.ne.s32.totalorder %s1690_s18, %s1686_s17  ;;  %s67_s9 = sor.u32 %s66_s8, %s38_s30 }
  0x14   : > { %p148_p7 = scmp.eq.s32.totalorder %s66_s8, 0  ;;  %p68_p8 = scmp.eq.s32.totalorder %s67_s9, 0 }
  0x15   : > { %p1827_p9 = por %p77_p6, %p50_p2  ;;  %s150_s11 = sadd.s32 1, %s1682_s16 }
  0x16   : > { %p160_p10 = scmp.ne.s32.totalorder %s1682_s16, %s1678_s15  ;;  %p161_p11 = scmp.eq.s32.totalorder %s1337_s26, 7 }
  0x17   : > { %s1835_s12 = scalar_select %p68_p8, %s1690_s18, %s70_s6  }
  0x18   : > { %s1838_s13 = scalar_select %p148_p7, %s1682_s16, %s150_s11  }
  0x19   : > { %p1840_p12 = por %p161_p11, %p160_p10  ;;  %p1340_p13 = scmp.ge.s32.totalorder %s1718_s25, 8 }
  0x1b   : > { %183 = sbr.rel (%p1340_p13) target bundleno = 88 (0x58), region = 16 }
  0x22   : > { %186 = sbr.rel (!%p1813_p5) target bundleno = 46 (0x2e), region = 20  ;;  %s188_s29 = sand.u32 (%p1813_p5), 1, %s1698_s20  }
  0x23   : > { %s1432_s30 = sshll.u32 (%p1813_p5), %s1710_s23, 4  ;;  %s1341_s8 = sshll.u32 (%p1813_p5), %s188_s29, 5 }
  0x24   : > { %s2151_s0 = sld [smem:[#allocation8_spill]] (%p1813_p5)  ;;  %s190_s26 = scalar_lea.vmem (%p1813_p5), [#allocation3], %s1341_s8 }
  0x2a   : > { %s196_s11 = scalar_lea.vmem %s2151_s0, %s1432_s30 }
  0x2b   : > { %v209_v0 = vld [vmem:[%s196_s11] sm:$0xff]  ;;  %v211_v1 = vld [vmem:[%s196_s11 + $0x8] sm:$0xff] }
  0x2c   : > { %v213_v2 = vld [vmem:[%s196_s11 + $0x40] sm:$0xff]  ;;  %210 = vst [vmem:[%s190_s26] sm:$0xff] %v209_v0  ;;  %212 = vst [vmem:[%s190_s26 + $0x8] sm:$0xff] %v211_v1  ;;  %v215_v3 = vld [vmem:[%s196_s11 + $0x48] sm:$0xff] }
  0x2d   : > { %214 = vst [vmem:[%s190_s26 + $0x10] sm:$0xff] %v213_v2  ;;  %216 = vst [vmem:[%s190_s26 + $0x18] sm:$0xff] %v215_v3 }
  0x2e PF: > { %222 = sbr.rel (!%p1827_p9) target bundleno = 88 (0x58), region = 43  ;;  %s224_s5 = sand.u32 (%p1827_p9), 1, %s1690_s18  }
  0x2f   : > { %s1346_s29 = sshll.u32 (%p1827_p9), %s1714_s24, 1  ;;  %s1344_s6 = sshll.u32 (%p1827_p9), %s224_s5, 9 }
  0x30   : > { %s1433_s30 = sshll.u32 (%p1827_p9), %s1710_s23, 8  ;;  %s2152_s1 = sld [smem:[#allocation9_spill]] (%p1827_p9) }
  0x31   : > { %s230_s9 = sadd.s32 (%p1827_p9), %s1433_s30, %s1346_s29  ;;  %s1865_s10 = scalar_lea.vmem (%p1827_p9), [#allocation4], %s1344_s6 }
  0x32   : > { %s1348_s0 = sshll.u32 (%p1827_p9), %s230_s9, 2 }
  0x36   : > { %s1860_s27 = scalar_lea.vmem %s2152_s1, %s1348_s0 }
  0x37   : > { %v386_v4 = vld [vmem:[%s1860_s27] sm:$0xff]  ;;  %v388_v5 = vld [vmem:[%s1860_s27 + $0x10] sm:$0xff] }
  0x38   : > { %v390_v6 = vld [vmem:[%s1860_s27 + $0x20] sm:$0xff]  ;;  %387 = vst [vmem:[%s1865_s10] sm:$0xff] %v386_v4  ;;  %389 = vst [vmem:[%s1865_s10 + $0x8] sm:$0xff] %v388_v5  ;;  %v392_v7 = vld [vmem:[%s1860_s27 + $0x30] sm:$0xff] }
  0x39   : > { %391 = vst [vmem:[%s1865_s10 + $0x10] sm:$0xff] %v390_v6  ;;  %v394_v8 = vld [vmem:[%s1860_s27 + $0x40] sm:$0xff]  ;;  %v396_v9 = vld [vmem:[%s1860_s27 + $0x50] sm:$0xff]  ;;  %393 = vst [vmem:[%s1865_s10 + $0x18] sm:$0xff] %v392_v7 }
  0x3a   : > { %395 = vst [vmem:[%s1865_s10 + $0x20] sm:$0xff] %v394_v8  ;;  %397 = vst [vmem:[%s1865_s10 + $0x28] sm:$0xff] %v396_v9  ;;  %v398_v10 = vld [vmem:[%s1860_s27 + $0x60] sm:$0xff]  ;;  %v400_v11 = vld [vmem:[%s1860_s27 + $0x70] sm:$0xff] }
  0x3b   : > { %v402_v12 = vld [vmem:[%s1860_s27 + $0x80] sm:$0xff]  ;;  %399 = vst [vmem:[%s1865_s10 + $0x30] sm:$0xff] %v398_v10  ;;  %401 = vst [vmem:[%s1865_s10 + $0x38] sm:$0xff] %v400_v11  ;;  %v404_v13 = vld [vmem:[%s1860_s27 + $0x90] sm:$0xff] }
  0x3c   : > { %403 = vst [vmem:[%s1865_s10 + $0x40] sm:$0xff] %v402_v12  ;;  %v406_v14 = vld [vmem:[%s1860_s27 + $0xa0] sm:$0xff]  ;;  %v408_v15 = vld [vmem:[%s1860_s27 + $0xb0] sm:$0xff]  ;;  %405 = vst [vmem:[%s1865_s10 + $0x48] sm:$0xff] %v404_v13 }
  0x3d   : > { %407 = vst [vmem:[%s1865_s10 + $0x50] sm:$0xff] %v406_v14  ;;  %409 = vst [vmem:[%s1865_s10 + $0x58] sm:$0xff] %v408_v15  ;;  %v410_v16 = vld [vmem:[%s1860_s27 + $0xc0] sm:$0xff]  ;;  %v412_v17 = vld [vmem:[%s1860_s27 + $0xd0] sm:$0xff] }
  0x3e   : > { %v414_v18 = vld [vmem:[%s1860_s27 + $0xe0] sm:$0xff]  ;;  %411 = vst [vmem:[%s1865_s10 + $0x60] sm:$0xff] %v410_v16  ;;  %413 = vst [vmem:[%s1865_s10 + $0x68] sm:$0xff] %v412_v17  ;;  %v416_v19 = vld [vmem:[%s1860_s27 + $0xf0] sm:$0xff] }
  0x3f   : > { %415 = vst [vmem:[%s1865_s10 + $0x70] sm:$0xff] %v414_v18  ;;  %v418_v20 = vld [vmem:[%s1860_s27 + $0x100] sm:$0xff]  ;;  %v420_v21 = vld [vmem:[%s1860_s27 + $0x110] sm:$0xff]  ;;  %417 = vst [vmem:[%s1865_s10 + $0x78] sm:$0xff] %v416_v19 }
  0x40   : > { %419 = vst [vmem:[%s1865_s10 + $0x80] sm:$0xff] %v418_v20  ;;  %421 = vst [vmem:[%s1865_s10 + $0x88] sm:$0xff] %v420_v21  ;;  %v422_v22 = vld [vmem:[%s1860_s27 + $0x120] sm:$0xff]  ;;  %v424_v23 = vld [vmem:[%s1860_s27 + $0x130] sm:$0xff] }
  0x41   : > { %v426_v24 = vld [vmem:[%s1860_s27 + $0x140] sm:$0xff]  ;;  %423 = vst [vmem:[%s1865_s10 + $0x90] sm:$0xff] %v422_v22  ;;  %425 = vst [vmem:[%s1865_s10 + $0x98] sm:$0xff] %v424_v23  ;;  %v428_v25 = vld [vmem:[%s1860_s27 + $0x150] sm:$0xff] }
  0x42   : > { %427 = vst [vmem:[%s1865_s10 + $0xa0] sm:$0xff] %v426_v24  ;;  %v430_v26 = vld [vmem:[%s1860_s27 + $0x160] sm:$0xff]  ;;  %v432_v27 = vld [vmem:[%s1860_s27 + $0x170] sm:$0xff]  ;;  %429 = vst [vmem:[%s1865_s10 + $0xa8] sm:$0xff] %v428_v25 }
  0x43   : > { %431 = vst [vmem:[%s1865_s10 + $0xb0] sm:$0xff] %v430_v26  ;;  %433 = vst [vmem:[%s1865_s10 + $0xb8] sm:$0xff] %v432_v27  ;;  %v434_v28 = vld [vmem:[%s1860_s27 + $0x180] sm:$0xff]  ;;  %v436_v29 = vld [vmem:[%s1860_s27 + $0x190] sm:$0xff] }
  0x44   : > { %v438_v30 = vld [vmem:[%s1860_s27 + $0x1a0] sm:$0xff]  ;;  %435 = vst [vmem:[%s1865_s10 + $0xc0] sm:$0xff] %v434_v28  ;;  %437 = vst [vmem:[%s1865_s10 + $0xc8] sm:$0xff] %v436_v29  ;;  %v440_v31 = vld [vmem:[%s1860_s27 + $0x1b0] sm:$0xff] }
  0x45   : > { %439 = vst [vmem:[%s1865_s10 + $0xd0] sm:$0xff] %v438_v30  ;;  %v442_v32 = vld [vmem:[%s1860_s27 + $0x1c0] sm:$0xff]  ;;  %v444_v33 = vld [vmem:[%s1860_s27 + $0x1d0] sm:$0xff]  ;;  %441 = vst [vmem:[%s1865_s10 + $0xd8] sm:$0xff] %v440_v31 }
  0x46   : > { %443 = vst [vmem:[%s1865_s10 + $0xe0] sm:$0xff] %v442_v32  ;;  %445 = vst [vmem:[%s1865_s10 + $0xe8] sm:$0xff] %v444_v33  ;;  %v446_v34 = vld [vmem:[%s1860_s27 + $0x1e0] sm:$0xff]  ;;  %v448_v35 = vld [vmem:[%s1860_s27 + $0x1f0] sm:$0xff] }
  0x47   : > { %v450_v36 = vld [vmem:[%s1860_s27 + $0x200] sm:$0xff]  ;;  %447 = vst [vmem:[%s1865_s10 + $0xf0] sm:$0xff] %v446_v34  ;;  %449 = vst [vmem:[%s1865_s10 + $0xf8] sm:$0xff] %v448_v35  ;;  %v452_v37 = vld [vmem:[%s1860_s27 + $0x210] sm:$0xff] }
  0x48   : > { %451 = vst [vmem:[%s1865_s10 + $0x100] sm:$0xff] %v450_v36  ;;  %v454_v38 = vld [vmem:[%s1860_s27 + $0x220] sm:$0xff]  ;;  %v456_v39 = vld [vmem:[%s1860_s27 + $0x230] sm:$0xff]  ;;  %453 = vst [vmem:[%s1865_s10 + $0x108] sm:$0xff] %v452_v37 }
  0x49   : > { %455 = vst [vmem:[%s1865_s10 + $0x110] sm:$0xff] %v454_v38  ;;  %457 = vst [vmem:[%s1865_s10 + $0x118] sm:$0xff] %v456_v39  ;;  %v458_v40 = vld [vmem:[%s1860_s27 + $0x240] sm:$0xff]  ;;  %v460_v41 = vld [vmem:[%s1860_s27 + $0x250] sm:$0xff] }
  0x4a   : > { %v462_v42 = vld [vmem:[%s1860_s27 + $0x260] sm:$0xff]  ;;  %459 = vst [vmem:[%s1865_s10 + $0x120] sm:$0xff] %v458_v40  ;;  %461 = vst [vmem:[%s1865_s10 + $0x128] sm:$0xff] %v460_v41  ;;  %v464_v43 = vld [vmem:[%s1860_s27 + $0x270] sm:$0xff] }
  0x4b   : > { %463 = vst [vmem:[%s1865_s10 + $0x130] sm:$0xff] %v462_v42  ;;  %v466_v44 = vld [vmem:[%s1860_s27 + $0x280] sm:$0xff]  ;;  %v468_v45 = vld [vmem:[%s1860_s27 + $0x290] sm:$0xff]  ;;  %465 = vst [vmem:[%s1865_s10 + $0x138] sm:$0xff] %v464_v43 }
  0x4c   : > { %467 = vst [vmem:[%s1865_s10 + $0x140] sm:$0xff] %v466_v44  ;;  %469 = vst [vmem:[%s1865_s10 + $0x148] sm:$0xff] %v468_v45  ;;  %v470_v46 = vld [vmem:[%s1860_s27 + $0x2a0] sm:$0xff]  ;;  %v472_v47 = vld [vmem:[%s1860_s27 + $0x2b0] sm:$0xff] }
  0x4d   : > { %v474_v48 = vld [vmem:[%s1860_s27 + $0x2c0] sm:$0xff]  ;;  %471 = vst [vmem:[%s1865_s10 + $0x150] sm:$0xff] %v470_v46  ;;  %473 = vst [vmem:[%s1865_s10 + $0x158] sm:$0xff] %v472_v47  ;;  %v476_v49 = vld [vmem:[%s1860_s27 + $0x2d0] sm:$0xff] }
  0x4e   : > { %475 = vst [vmem:[%s1865_s10 + $0x160] sm:$0xff] %v474_v48  ;;  %v478_v50 = vld [vmem:[%s1860_s27 + $0x2e0] sm:$0xff]  ;;  %v480_v51 = vld [vmem:[%s1860_s27 + $0x2f0] sm:$0xff]  ;;  %477 = vst [vmem:[%s1865_s10 + $0x168] sm:$0xff] %v476_v49 }
  0x4f   : > { %479 = vst [vmem:[%s1865_s10 + $0x170] sm:$0xff] %v478_v50  ;;  %481 = vst [vmem:[%s1865_s10 + $0x178] sm:$0xff] %v480_v51  ;;  %v482_v52 = vld [vmem:[%s1860_s27 + $0x300] sm:$0xff]  ;;  %v484_v53 = vld [vmem:[%s1860_s27 + $0x310] sm:$0xff] }
  0x50   : > { %v486_v54 = vld [vmem:[%s1860_s27 + $0x320] sm:$0xff]  ;;  %483 = vst [vmem:[%s1865_s10 + $0x180] sm:$0xff] %v482_v52  ;;  %485 = vst [vmem:[%s1865_s10 + $0x188] sm:$0xff] %v484_v53  ;;  %v488_v55 = vld [vmem:[%s1860_s27 + $0x330] sm:$0xff] }
  0x51   : > { %487 = vst [vmem:[%s1865_s10 + $0x190] sm:$0xff] %v486_v54  ;;  %v490_v56 = vld [vmem:[%s1860_s27 + $0x340] sm:$0xff]  ;;  %v492_v57 = vld [vmem:[%s1860_s27 + $0x350] sm:$0xff]  ;;  %489 = vst [vmem:[%s1865_s10 + $0x198] sm:$0xff] %v488_v55 }
  0x52   : > { %491 = vst [vmem:[%s1865_s10 + $0x1a0] sm:$0xff] %v490_v56  ;;  %493 = vst [vmem:[%s1865_s10 + $0x1a8] sm:$0xff] %v492_v57  ;;  %v494_v58 = vld [vmem:[%s1860_s27 + $0x360] sm:$0xff]  ;;  %v496_v59 = vld [vmem:[%s1860_s27 + $0x370] sm:$0xff] }
  0x53   : > { %v498_v60 = vld [vmem:[%s1860_s27 + $0x380] sm:$0xff]  ;;  %495 = vst [vmem:[%s1865_s10 + $0x1b0] sm:$0xff] %v494_v58  ;;  %497 = vst [vmem:[%s1865_s10 + $0x1b8] sm:$0xff] %v496_v59  ;;  %v500_v61 = vld [vmem:[%s1860_s27 + $0x390] sm:$0xff] }
  0x54   : > { %499 = vst [vmem:[%s1865_s10 + $0x1c0] sm:$0xff] %v498_v60  ;;  %v502_v62 = vld [vmem:[%s1860_s27 + $0x3a0] sm:$0xff]  ;;  %v504_v63 = vld [vmem:[%s1860_s27 + $0x3b0] sm:$0xff]  ;;  %501 = vst [vmem:[%s1865_s10 + $0x1c8] sm:$0xff] %v500_v61 }
  0x55   : > { %503 = vst [vmem:[%s1865_s10 + $0x1d0] sm:$0xff] %v502_v62  ;;  %505 = vst [vmem:[%s1865_s10 + $0x1d8] sm:$0xff] %v504_v63  ;;  %v506_v0 = vld [vmem:[%s1860_s27 + $0x3c0] sm:$0xff]  ;;  %v508_v1 = vld [vmem:[%s1860_s27 + $0x3d0] sm:$0xff] }
  0x56   : > { %v510_v2 = vld [vmem:[%s1860_s27 + $0x3e0] sm:$0xff]  ;;  %507 = vst [vmem:[%s1865_s10 + $0x1e0] sm:$0xff] %v506_v0  ;;  %509 = vst [vmem:[%s1865_s10 + $0x1e8] sm:$0xff] %v508_v1  ;;  %v512_v3 = vld [vmem:[%s1860_s27 + $0x3f0] sm:$0xff] }
  0x57   : > { %511 = vst [vmem:[%s1865_s10 + $0x1f0] sm:$0xff] %v510_v2  ;;  %513 = vst [vmem:[%s1865_s10 + $0x1f8] sm:$0xff] %v512_v3 }
  0x58 PF: > { %p1349_p0 = scmp.ge.s32.totalorder %s1718_s25, 1  ;;  %p534_p1 = scmp.lt.s32.totalorder %s1718_s25, 9 }
  0x5a   : > { %p535_p2 = pnand %p1349_p0, %p534_p1 }
  0x5b   : > { %s541_s0 = sand.u32 (!%p535_p2), 1, %s1694_s19   ;;  %s548_s28 = sand.u32 (!%p535_p2), 1, %s1686_s17  }
  0x5c   : > { %538 = sbr.rel (%p535_p2) target bundleno = 416 (0x1a0), region = 89  ;;  %s1350_s11 = sshll.u32 (!%p535_p2), %s541_s0, 5 }
  0x5d   : > { %s1351_s26 = sshll.u32 (!%p535_p2), %s548_s28, 9  ;;  %s581_s5 = sand.u32 (!%p535_p2), 1, %s1678_s15  }
  0x5e   : > { %s1353_s29 = sshll.u32 (!%p535_p2), %s1706_s22, 1  ;;  %s1352_s27 = sshll.u32 (!%p535_p2), %s581_s5, 4 }
  0x5f   : > { %p589_p3 = scmp.lt.s32.totalorder (!%p535_p2), %s1353_s29, 3  ;;  %s2008_s19 = scalar_lea.vmem (!%p535_p2), [#allocation3], %s1350_s11 }
  0x60   : > { %s2010_s17 = scalar_lea.vmem (!%p535_p2), [#allocation4], %s1351_s26  ;;  %s2012_s15 = scalar_lea.vmem (!%p535_p2), [#allocation5], %s1352_s27 }
  0x61   : > { %p1355_p4 = scmp.ne.s32.totalorder (!%p535_p2), %s1702_s21, 0 }
  0x63   : > { %s2172_s29 = smov (!%p589_p3, %s1353_s29), 3  ;;  %603 = sbr.rel (%p1355_p4) target bundleno = 106 (0x6a), region = 101 }
  0x64   : > { %s591_s9 = scalar_lea.vmem %s2139_s2, %s2172_s29  ;;  %s596_s1 = scalar_lea.vmem %s2140_s3, %s2172_s29  ;;  %v1720_v4 = vmov (!%p1355_p4), 0.0  }
  0x65   : > { %604 = vst [vmem:[#allocation2] sm:$0xff] (!%p1355_p4), %v1720_v4  ;;  %605 = vst [vmem:[#allocation2 + $0x8] sm:$0xff] (!%p1355_p4), %v1720_v4 }
  0x66   : > { %606 = vst [vmem:[#allocation2 + $0x10] sm:$0xff] (!%p1355_p4), %v1720_v4  ;;  %607 = vst [vmem:[#allocation2 + $0x18] sm:$0xff] (!%p1355_p4), %v1720_v4 }
  0x6a PF: > { %v1530_v5 = vld [vmem:[%s2010_s17 + $0x4] ss:$8 sps:$4 sm:$0xff]   ;;  %v1534_v7 = vld [vmem:[%s2010_s17] ss:$8 sps:$4 sm:$0xff]   ;;  %v1536_v9 = vld [vmem:[%s2010_s17 + $0x14] ss:$8 sps:$4 sm:$0xff]  }
  0x6b   : > { %v1532_v6 = vld [vmem:[%s2010_s17 + $0x104] ss:$8 sps:$4 sm:$0xff]   ;;  %1020 = vmatprep.subr.bf16.mxu1 %v1530_v5  ;;  %v1535_v8 = vld [vmem:[%s2010_s17 + $0x100] ss:$8 sps:$4 sm:$0xff]   ;;  %v1538_v10 = vld [vmem:[%s2010_s17 + $0x114] ss:$8 sps:$4 sm:$0xff]  }
  0x6c   : > { %1063 = vmatprep.subr.bf16.mxu0 %v1532_v6  ;;  %1021 = vmatpush1.bf16.msra.mxu1 %v1534_v7  ;;  %v1540_v11 = vld [vmem:[%s2010_s17 + $0x10] ss:$8 sps:$4 sm:$0xff]   ;;  %v1542_v13 = vld [vmem:[%s2010_s17 + $0x24] ss:$8 sps:$4 sm:$0xff]   ;;  %v1546_v15 = vld [vmem:[%s2010_s17 + $0x20] ss:$8 sps:$4 sm:$0xff]  }
  0x6d   : > { %1064 = vmatpush1.bf16.msra.mxu0 %v1535_v8  ;;  %1022 = vmatprep.subr.bf16.mxu1 %v1536_v9  ;;  %v1541_v12 = vld [vmem:[%s2010_s17 + $0x110] ss:$8 sps:$4 sm:$0xff]   ;;  %v1544_v14 = vld [vmem:[%s2010_s17 + $0x124] ss:$8 sps:$4 sm:$0xff]   ;;  %v1547_v16 = vld [vmem:[%s2010_s17 + $0x120] ss:$8 sps:$4 sm:$0xff]  }
  0x6e   : > { %1065 = vmatprep.subr.bf16.mxu0 %v1538_v10  ;;  %v1548_v17 = vld [vmem:[%s2010_s17 + $0x34] ss:$8 sps:$4 sm:$0xff]   ;;  %v1552_v19 = vld [vmem:[%s2010_s17 + $0x30] ss:$8 sps:$4 sm:$0xff]   ;;  %v1554_v21 = vld [vmem:[%s2010_s17 + $0x44] ss:$8 sps:$4 sm:$0xff]  }
  0x6f   : > { %v1550_v18 = vld [vmem:[%s2010_s17 + $0x134] ss:$8 sps:$4 sm:$0xff]   ;;  %v1553_v20 = vld [vmem:[%s2010_s17 + $0x130] ss:$8 sps:$4 sm:$0xff]   ;;  %v1556_v22 = vld [vmem:[%s2010_s17 + $0x144] ss:$8 sps:$4 sm:$0xff]  }
  0x70   : > { %1023 = vmatpush1.bf16.msra.mxu1 %v1540_v11  ;;  %v1558_v23 = vld [vmem:[%s2010_s17 + $0x40] ss:$8 sps:$4 sm:$0xff]   ;;  %v1560_v25 = vld [vmem:[%s2010_s17 + $0x54] ss:$8 sps:$4 sm:$0xff]   ;;  %v1564_v27 = vld [vmem:[%s2010_s17 + $0x50] ss:$8 sps:$4 sm:$0xff]  }
  0x71   : > { %1066 = vmatpush1.bf16.msra.mxu0 %v1541_v12  ;;  %1024 = vmatprep.subr.bf16.mxu1 %v1542_v13  ;;  %v1559_v24 = vld [vmem:[%s2010_s17 + $0x140] ss:$8 sps:$4 sm:$0xff]   ;;  %v1562_v26 = vld [vmem:[%s2010_s17 + $0x154] ss:$8 sps:$4 sm:$0xff]   ;;  %v1565_v28 = vld [vmem:[%s2010_s17 + $0x150] ss:$8 sps:$4 sm:$0xff]  }
  0x72   : > { %1067 = vmatprep.subr.bf16.mxu0 %v1544_v14  ;;  %v1566_v29 = vld [vmem:[%s2010_s17 + $0x64] ss:$8 sps:$4 sm:$0xff]   ;;  %v1570_v31 = vld [vmem:[%s2010_s17 + $0x60] ss:$8 sps:$4 sm:$0xff]   ;;  %v1572_v33 = vld [vmem:[%s2010_s17 + $0x74] ss:$8 sps:$4 sm:$0xff]  }
  0x73   : > { %v1568_v30 = vld [vmem:[%s2010_s17 + $0x164] ss:$8 sps:$4 sm:$0xff]   ;;  %v1571_v32 = vld [vmem:[%s2010_s17 + $0x160] ss:$8 sps:$4 sm:$0xff]   ;;  %v1574_v34 = vld [vmem:[%s2010_s17 + $0x174] ss:$8 sps:$4 sm:$0xff]  }
  0x74   : > { %1025 = vmatpush1.bf16.msra.mxu1 %v1546_v15  ;;  %v1576_v35 = vld [vmem:[%s2010_s17 + $0x70] ss:$8 sps:$4 sm:$0xff]   ;;  %v1578_v37 = vld [vmem:[%s2010_s17 + $0x84] ss:$8 sps:$4 sm:$0xff]   ;;  %v1582_v39 = vld [vmem:[%s2010_s17 + $0x80] ss:$8 sps:$4 sm:$0xff]  }
  0x75   : > { %1068 = vmatpush1.bf16.msra.mxu0 %v1547_v16  ;;  %1026 = vmatprep.subr.bf16.mxu1 %v1548_v17  ;;  %v1577_v36 = vld [vmem:[%s2010_s17 + $0x170] ss:$8 sps:$4 sm:$0xff]   ;;  %v1580_v38 = vld [vmem:[%s2010_s17 + $0x184] ss:$8 sps:$4 sm:$0xff]   ;;  %v1583_v40 = vld [vmem:[%s2010_s17 + $0x180] ss:$8 sps:$4 sm:$0xff]  }
  0x76   : > { %1069 = vmatprep.subr.bf16.mxu0 %v1550_v18  ;;  %v1584_v41 = vld [vmem:[%s2010_s17 + $0x94] ss:$8 sps:$4 sm:$0xff]   ;;  %v1588_v43 = vld [vmem:[%s2010_s17 + $0x90] ss:$8 sps:$4 sm:$0xff]   ;;  %v1590_v45 = vld [vmem:[%s2010_s17 + $0xa4] ss:$8 sps:$4 sm:$0xff]  }
  0x77   : > { %v1586_v42 = vld [vmem:[%s2010_s17 + $0x194] ss:$8 sps:$4 sm:$0xff]   ;;  %v1589_v44 = vld [vmem:[%s2010_s17 + $0x190] ss:$8 sps:$4 sm:$0xff]   ;;  %v1592_v46 = vld [vmem:[%s2010_s17 + $0x1a4] ss:$8 sps:$4 sm:$0xff]  }
  0x78   : > { %1027 = vmatpush1.bf16.msra.mxu1 %v1552_v19  ;;  %v1594_v47 = vld [vmem:[%s2010_s17 + $0xa0] ss:$8 sps:$4 sm:$0xff]   ;;  %v1596_v49 = vld [vmem:[%s2010_s17 + $0xb4] ss:$8 sps:$4 sm:$0xff]   ;;  %v1600_v51 = vld [vmem:[%s2010_s17 + $0xb0] ss:$8 sps:$4 sm:$0xff]  }
  0x79   : > { %1070 = vmatpush1.bf16.msra.mxu0 %v1553_v20  ;;  %1028 = vmatprep.subr.bf16.mxu1 %v1554_v21  ;;  %v1595_v48 = vld [vmem:[%s2010_s17 + $0x1a0] ss:$8 sps:$4 sm:$0xff]   ;;  %v1598_v50 = vld [vmem:[%s2010_s17 + $0x1b4] ss:$8 sps:$4 sm:$0xff]   ;;  %v1601_v53 = vld [vmem:[%s2010_s17 + $0x1b0] ss:$8 sps:$4 sm:$0xff]  }
  0x7a   : > { %1071 = vmatprep.subr.bf16.mxu0 %v1556_v22  ;;  %v1628_v52 = vld [vmem:[%s2008_s19 + $0x4] ss:$16 sps:$4 sm:$0xff]   ;;  %v1631_v56 = vld [vmem:[%s2008_s19 + $0xc] ss:$16 sps:$4 sm:$0xff]   ;;  %v1606_v57 = vld [vmem:[%s2010_s17 + $0xc0] ss:$8 sps:$4 sm:$0xff]  }
  0x7b   : > { %v1602_v54 = vld [vmem:[%s2010_s17 + $0xc4] ss:$8 sps:$4 sm:$0xff]   ;;  %1052 = vmatprep.mubr.bf16.mxu1 %v1628_v52  ;;  %1095 = vmatprep.mubr.bf16.mxu0 %v1631_v56  ;;  %v1607_v58 = vld [vmem:[%s2010_s17 + $0x1c0] ss:$8 sps:$4 sm:$0xff]   ;;  %v1608_v59 = vld [vmem:[%s2010_s17 + $0xd4] ss:$8 sps:$4 sm:$0xff]  }
  0x7c   : > { %1029 = vmatpush1.bf16.msra.mxu1 %v1558_v23  ;;  %v1604_v55 = vld [vmem:[%s2010_s17 + $0x1c4] ss:$8 sps:$4 sm:$0xff]   ;;  %v1610_v60 = vld [vmem:[%s2010_s17 + $0x1d4] ss:$8 sps:$4 sm:$0xff]   ;;  %v1612_v61 = vld [vmem:[%s2010_s17 + $0xd0] ss:$8 sps:$4 sm:$0xff]  }
  0x7d   : > { %1072 = vmatpush1.bf16.msra.mxu0 %v1559_v24  ;;  %1030 = vmatprep.subr.bf16.mxu1 %v1560_v25  ;;  %v1613_v62 = vld [vmem:[%s2010_s17 + $0x1d0] ss:$8 sps:$4 sm:$0xff]   ;;  %v1614_v63 = vld [vmem:[%s2010_s17 + $0xe4] ss:$8 sps:$4 sm:$0xff]   ;;  %v1618_v1 = vld [vmem:[%s2010_s17 + $0xe0] ss:$8 sps:$4 sm:$0xff]  }
  0x7e   : > { %1073 = vmatprep.subr.bf16.mxu0 %v1562_v26  ;;  %v1616_v0 = vld [vmem:[%s2010_s17 + $0x1e4] ss:$8 sps:$4 sm:$0xff]   ;;  %v1619_v2 = vld [vmem:[%s2010_s17 + $0x1e0] ss:$8 sps:$4 sm:$0xff]   ;;  %v1620_v3 = vld [vmem:[%s2010_s17 + $0xf4] ss:$8 sps:$4 sm:$0xff]  }
  0x7f   : > { %v1622_v4 = vld [vmem:[%s2010_s17 + $0x1f4] ss:$8 sps:$4 sm:$0xff]   ;;  %v1624_v5 = vld [vmem:[%s2010_s17 + $0xf0] ss:$8 sps:$4 sm:$0xff]   ;;  %v608_v10 = vld [vmem:[#allocation2] sm:$0xff]  ;;  %p1424_p5 = scmp.ne.s32.totalorder %s1702_s21, 3 }
  0x80   : > { %1031 = vmatpush1.bf16.msra.mxu1 %v1564_v27  ;;  %v1625_v6 = vld [vmem:[%s2010_s17 + $0x1f0] ss:$8 sps:$4 sm:$0xff]   ;;  %v609_v14 = vld [vmem:[#allocation2 + $0x8] sm:$0xff] }
  0x81   : > { %1074 = vmatpush1.bf16.msra.mxu0 %v1565_v28  ;;  %1032 = vmatprep.subr.bf16.mxu1 %v1566_v29  ;;  %v1626_v7 = vld [vmem:[%s2008_s19] ss:$16 sps:$4 sm:$0xff]   ;;  %v1629_v8 = vld [vmem:[%s2008_s19 + $0x8] ss:$16 sps:$4 sm:$0xff]   ;;  %v1124_v29 = vlaneseq (!%p1424_p5) }
  0x82   : > { %1075 = vmatprep.subr.bf16.mxu0 %v1568_v30  ;;  %v610_v18 = vld [vmem:[#allocation2 + $0x10] sm:$0xff]  ;;  %v611_v23 = vld [vmem:[#allocation2 + $0x18] sm:$0xff] }
  0x83   : > { %v1125_v30 = vshrl.u32 (!%p1424_p5), %v1124_v29, 7 }
  0x84   : > { %1033 = vmatpush1.bf16.msra.mxu1 %v1570_v31  ;;  %v1122_v31 = vld [vmem:[%s591_s9] sm:$0x3] (!%p1424_p5) }
  0x85   : > { %1076 = vmatpush1.bf16.msra.mxu0 %v1571_v32  ;;  %1034 = vmatprep.subr.bf16.mxu1 %v1572_v33  ;;  %v1138_v32 = vld [vmem:[%s596_s1] sm:$0x3] (!%p1424_p5) }
  0x86   : > { %1077 = vmatprep.subr.bf16.mxu0 %v1574_v34  ;;  %v1126_v34 = vsub.s32 (!%p1424_p5), 0, %v1125_v30 }
  0x88   : > { %1035 = vmatpush1.bf16.msra.mxu1 %v1576_v35  ;;  %v1130_v35 = vsub.s32 (!%p1424_p5), 1, %v1125_v30 }
  0x89   : > { %1078 = vmatpush1.bf16.msra.mxu0 %v1577_v36  ;;  %1036 = vmatprep.subr.bf16.mxu1 %v1578_v37 }
  0x8a   : > { %1079 = vmatprep.subr.bf16.mxu0 %v1580_v38 }
  0x8c   : > { %1037 = vmatpush1.bf16.msra.mxu1 %v1582_v39  ;;  %v1127_v39 = vrot.slane (!%p1424_p5), %v1122_v31, %v1126_v34 }
  0x8d   : > { %1080 = vmatpush1.bf16.msra.mxu0 %v1583_v40  ;;  %1038 = vmatprep.subr.bf16.mxu1 %v1584_v41  ;;  %v1131_v40 = vrot.slane (!%p1424_p5), %v1122_v31, %v1130_v35  ;;  %v1143_v41 = vrot.slane (!%p1424_p5), %v1138_v32, %v1126_v34 }
  0x8e   : > { %1081 = vmatprep.subr.bf16.mxu0 %v1586_v42  ;;  %v1147_v42 = vrot.slane (!%p1424_p5), %v1138_v32, %v1130_v35 }
  0x90   : > { %1039 = vmatpush1.bf16.msra.mxu1 %v1588_v43 }
  0x91   : > { %1082 = vmatpush1.bf16.msra.mxu0 %v1589_v44  ;;  %1040 = vmatprep.subr.bf16.mxu1 %v1590_v45 }
  0x92   : > { %1083 = vmatprep.subr.bf16.mxu0 %v1592_v46 }
  0x94   : > { %1041 = vmatpush1.bf16.msra.mxu1 %v1594_v47 }
  0x95   : > { %1084 = vmatpush1.bf16.msra.mxu0 %v1595_v48  ;;  %1042 = vmatprep.subr.bf16.mxu1 %v1596_v49 }
  0x96   : > { %1085 = vmatprep.subr.bf16.mxu0 %v1598_v50 }
  0x98   : > { %1043 = vmatpush1.bf16.msra.mxu1 %v1600_v51 }
  0x99   : > { %1086 = vmatpush1.bf16.msra.mxu0 %v1601_v53  ;;  %1044 = vmatprep.subr.bf16.mxu1 %v1602_v54 }
  0x9a   : > { %1087 = vmatprep.subr.bf16.mxu0 %v1604_v55 }
  0x9c   : > { %1045 = vmatpush1.bf16.msra.mxu1 %v1606_v57 }
  0x9d   : > { %1088 = vmatpush1.bf16.msra.mxu0 %v1607_v58  ;;  %1046 = vmatprep.subr.bf16.mxu1 %v1608_v59 }
  0x9e   : > { %1089 = vmatprep.subr.bf16.mxu0 %v1610_v60 }
  0xa0   : > { %1047 = vmatpush1.bf16.msra.mxu1 %v1612_v61 }
  0xa1   : > { %1090 = vmatpush1.bf16.msra.mxu0 %v1613_v62  ;;  %1048 = vmatprep.subr.bf16.mxu1 %v1614_v63 }
  0xa2   : > { %1091 = vmatprep.subr.bf16.mxu0 %v1616_v0 }
  0xa4   : > { %1049 = vmatpush1.bf16.msra.mxu1 %v1618_v1 }
  0xa5   : > { %1092 = vmatpush1.bf16.msra.mxu0 %v1619_v2  ;;  %1050 = vmatprep.subr.bf16.mxu1 %v1620_v3 }
  0xa6   : > { %1093 = vmatprep.subr.bf16.mxu0 %v1622_v4 }
  0xa8   : > { %1051 = vmatpush1.bf16.msra.mxu1 %v1624_v5 }
  0xa9   : > { %1094 = vmatpush1.bf16.msra.mxu0 %v1625_v6 }
  0xab   : > { %1053 = vmatmul.mubr.bf16.vlgmr.msra.gmra.mrb[0].mxu1 %v1626_v7 }
  0xac   : > { %1096 = vmatmul.mubr.bf16.vlgmr.msra.gmra.mrb[0].mxu0 %v1629_v8 }
 0x17e   : > { %v1054_v9 = vpop.f32.mrb[0].mxu1 }
 0x17f   : > { %v1097_v11 = vpop.f32.mrb[0].mxu0  ;;  %v1056_v13 = vpop.f32.mrb[1].mxu1 }
 0x180   : > { %v1098_v12 = vadd.f32 %v1097_v11, %v1054_v9  ;;  %v1099_v15 = vpop.f32.mrb[1].mxu0  ;;  %v1058_v17 = vpop.f32.mrb[2].mxu1 }
 0x181   : > { %v1100_v16 = vadd.f32 %v1099_v15, %v1056_v13  ;;  %v1101_v19 = vpop.f32.mrb[2].mxu0  ;;  %v1060_v22 = vpop.f32.mrb[3].mxu1  ;;  %1117 = sbr.rel (%p1424_p5) target bundleno = 408 (0x198), region = 105 }
 0x182   : > { %v1106_v20 = vadd.f32 %v1098_v12, %v608_v10  ;;  %v1102_v21 = vadd.f32 %v1101_v19, %v1058_v17  ;;  %v1103_v24 = vpop.f32.mrb[3].mxu0 }
 0x183   : > { %v1107_v25 = vadd.f32 %v1100_v16, %v609_v14  ;;  %v1104_v26 = vadd.f32 %v1103_v24, %v1060_v22 }
 0x184   : > { %1110 = vst [vmem:[#allocation2] sm:$0xff] %v1106_v20  ;;  %v1108_v27 = vadd.f32 %v1102_v21, %v610_v18 }
 0x185   : > { %1111 = vst [vmem:[#allocation2 + $0x8] sm:$0xff] %v1107_v25  ;;  %v1109_v28 = vadd.f32 %v1104_v26, %v611_v23 }
 0x186   : > { %1112 = vst [vmem:[#allocation2 + $0x10] sm:$0xff] %v1108_v27 }
 0x187   : > { %1113 = vst [vmem:[#allocation2 + $0x18] sm:$0xff] %v1109_v28 }
 0x18b   : > { %v1118_v33 = vld [vmem:[#allocation2] sm:$0xff] }
 0x18c   : > { %v1119_v36 = vld [vmem:[#allocation2 + $0x8] sm:$0xff]  ;;  %v1134_v43 = vmul.f32 %v1127_v39, %v1118_v33 }
 0x18d   : > { %v1120_v37 = vld [vmem:[#allocation2 + $0x10] sm:$0xff]  ;;  %v1135_v44 = vmul.f32 %v1131_v40, %v1119_v36 }
 0x18e   : > { %v1121_v38 = vld [vmem:[#allocation2 + $0x18] sm:$0xff]  ;;  %v1136_v45 = vmul.f32 %v1127_v39, %v1120_v37  ;;  %v1150_v47 = vadd.f32 %v1143_v41, %v1134_v43 }
 0x18f   : > { %v1137_v46 = vmul.f32 %v1131_v40, %v1121_v38  ;;  %v1151_v48 = vadd.f32 %v1147_v42, %v1135_v44 }
 0x190   : > { %v1152_v49 = vadd.f32 %v1143_v41, %v1136_v45  ;;  %v1154_v51 = vmax.f32 %v1150_v47, 0.0 }
 0x191   : > { %v1153_v50 = vadd.f32 %v1147_v42, %v1137_v46  ;;  %v1155_v52 = vmax.f32 %v1151_v48, 0.0 }
 0x192   : > { %v1156_v53 = vmax.f32 %v1152_v49, 0.0 }
 0x193   : > { %v1157_v54 = vmax.f32 %v1153_v50, 0.0  ;;  %v1434_v55 = vpack.c.bf16 %v1155_v52, %v1154_v51 }
 0x195   : > { %v1435_v56 = vpack.c.bf16 %v1157_v54, %v1156_v53  ;;  %1170 = vst [vmem:[%s2012_s15] sm:$0xff] %v1434_v55 }
 0x197   : > { %1171 = vst [vmem:[%s2012_s15 + $0x8] sm:$0xff] %v1435_v56 }
 0x198 PF: > { %1178 = sbr.rel (!%p1840_p12) target bundleno = 416 (0x1a0), region = 109  ;;  %s1436_s1 = sshll.u32 (%p1840_p12), %s1706_s22, 3 }
 0x199   : > { %s1184_s29 = scalar_lea.vmem (%p1840_p12), %s2141_s4, %s1436_s1 }
 0x19c   : > { %v1214_v57 = vld [vmem:[%s2012_s15] sm:$0xff] (%p1840_p12) }
 0x19d   : > { %1215 = vst [vmem:[%s1184_s29] sm:$0xff] (%p1840_p12), %v1214_v57 }
 0x19e   : > { %v1216_v58 = vld [vmem:[%s2012_s15 + $0x8] sm:$0xff] (%p1840_p12) }
 0x19f   : > { %1217 = vst [vmem:[%s1184_s29 + $0x10] sm:$0xff] %v1216_v58 }
 0x1a0 PF: > { %s14_s25 = sadd.s32 1, %s1718_s25   ;;  %s2153_s14 = sld [smem:[#allocation6_spill]] }
 0x1a1   : > { %p11_p6 = scmp.ge.s32.totalorder %s14_s25, 10   ;;  %s2154_s27 = sld [smem:[#allocation7_spill]] }
 0x1a2   : > { %s2155_s15 = smov %s1682_s16  ;;  %s2156_s16 = smov %s1838_s13 }
 0x1a3   : > { %s2157_s17 = smov %s1690_s18  ;;  %s2158_s18 = smov %s1835_s12 }
 0x1a4   : > { %s2159_s19 = smov %s1698_s20  ;;  %s2160_s20 = smov %s1821_s7 }
 0x1a5   : > { %s2161_s21 = smov %s1710_s23  ;;  %s2162_s22 = smov %s1714_s24 }
 0x1a6   : > { %s2163_s23 = smov %s2153_s14  ;;  %13 = sbr.rel (!%p11_p6) target bundleno = 9 (0x9), region = 192 }
 0x1a7   : > { %s2164_s24 = smov %s2154_s27 }

// kernel: resnet50_forward.110
= control target key start
LH: loop header
LB: loop body
LE: loop exit
PB: predicated region body
PF: predicated region fallthrough
CT: control target
= control target key end

     0   :  { %s250_s6 = smov 0   ;;  %s267_s0 = inlined_call_operand.vmem [shape: bf16[2,1,2048], index: 0, kind: input, shape index: {}]   ;;  %s268_s1 = inlined_call_operand.vmem [shape: f32[2,1,2048], index: 1, kind: output, shape index: {}]  }
   0x1 LB: > { %s213_s7 = sadd.s32 4294967295, %s237_s6   ;;  %p217_p0 = scmp.ge.s32.totalorder %s237_s6, 1  ;;  %s237_s6 = sphi %s250_s6, %s11_s6  }
   0x2   : > { %p86_p1 = scmp.lt.s32.totalorder %s237_s6, 3 }
   0x4   : > { %p87_p2 = pnand %p217_p0, %p86_p1 }
   0x5   : > { %p104_p3 = scmp.lt.s32.totalorder (!%p87_p2), %s213_s7, 1  ;;  %v129_v0 = vlaneseq (!%p87_p2)  ;;  %v239_v1 = vmov (!%p87_p2), 1966171168  }
   0x6   : > { %90 = sbr.rel (%p87_p2) target bundleno = 24 (0x18), region = 24  ;;  %v127_v2 = vunpack.c.l.s4 (!%p87_p2), %v239_v1 }
   0x7   : > { %v130_v3 = vshrl.u32 (!%p87_p2), %v129_v0, 7 }
   0x8   : > { %v128_v4 = vunpack.c.0.s8 (!%p87_p2), %v127_v2 }
   0xa   : > { %v131_v5 = vsub.s32 (!%p87_p2), %v128_v4, %v130_v3 }
   0xd   : > { %s270_s7 = smov (!%p104_p3, %s213_s7), 1 }
   0xe   : > { %s218_s8 = sshll.u32 %s270_s7, 4 }
   0xf   : > { %s107_s11 = scalar_lea.vmem %s267_s0, %s218_s8  ;;  %s111_s14 = scalar_lea.vmem %s268_s1, %s218_s8 }
  0x10   : > { %v112_v6 = vld [vmem:[%s107_s11] sm:$0xff]  ;;  %v113_v7 = vld [vmem:[%s107_s11 + $0x8] sm:$0xff] }
  0x11   : > { %v114_v8 = vunpack.c.l.bf16 %v112_v6  ;;  %v115_v9 = vunpack.c.h.bf16 %v112_v6  ;;  %v116_v10 = vunpack.c.l.bf16 %v113_v7  ;;  %v117_v11 = vunpack.c.h.bf16 %v113_v7 }
  0x13   : > { %v132_v12 = vrot.slane %v114_v8, %v131_v5  ;;  %v139_v13 = vrot.slane %v115_v9, %v131_v5  ;;  %v147_v14 = vrot.slane %v116_v10, %v131_v5  ;;  %v154_v15 = vrot.slane %v117_v11, %v131_v5 }
  0x15   : > { %v140_v16 = vcombine.low %v132_v12, %v139_v13  ;;  %v155_v17 = vcombine.low %v147_v14, %v154_v15 }
  0x17   : > { %158 = vst [vmem:[%s111_s14] sm:$0xff] %v140_v16  ;;  %159 = vst [vmem:[%s111_s14 + $0x8] sm:$0xff] %v155_v17 }
  0x18 PF: > { %s11_s6 = sadd.s32 1, %s237_s6  }
  0x19   : > { %p8_p4 = scmp.ge.s32.totalorder %s11_s6, 4  }
  0x1b   :  { %10 = sbr.rel (!%p8_p4) target bundleno = 1 (0x1), region = 54 }

// kernel: resnet50_forward.111
= control target key start
LH: loop header
LB: loop body
LE: loop exit
PB: predicated region body
PF: predicated region fallthrough
CT: control target
= control target key end

     0   :  { %s1092_s15 = smov 0   ;;  %s1094_s16 = smov 0   ;;  %s1215_s0 = inlined_call_operand.vmem [shape: bf16[16,2048], index: 0, kind: input, shape index: {}]   ;;  %s1216_s1 = inlined_call_operand.vmem [shape: bf16[2048,10], index: 1, kind: input, shape index: {}]   ;;  %s1217_s2 = inlined_call_operand.vmem [shape: f32[1,10], index: 2, kind: input, shape index: {}]   ;;  %s1218_s3 = inlined_call_operand.vmem [shape: f32[1,10], index: 3, kind: input, shape index: {}]   ;;  %s1219_s4 = inlined_call_operand.vmem [shape: f32[16,10], index: 4, kind: output, shape index: {}]  }
   0x1   :  { %s1096_s17 = smov 0   ;;  %s1098_s18 = smov 0  }
   0x2   :  { %s1100_s19 = smov 0  }
   0x3 LB: > { %s26_s20 = sadd.s32 1, %s1060_s18  ;;  %p49_p1 = scmp.ne.s32.totalorder %s1052_s16, %s1048_s15  ;;  %s1064_s19 = sphi %s1100_s19, %s14_s19   ;;  %s1060_s18 = sphi %s1098_s18, %s1223_s18   ;;  %s1056_s17 = sphi %s1096_s17, %s1222_s17   ;;  %s1052_s16 = sphi %s1094_s16, %s1221_s16   ;;  %s1048_s15 = sphi %s1092_s15, %s1220_s15  }
   0x4   : > { %p27_p0 = scmp.ge.s32.totalorder %s26_s20, 4  ;;  %p50_p2 = scmp.eq.s32.totalorder %s1064_s19, 0 }
   0x5   : > { %s42_s22 = sadd.s32 1, %s1052_s16  ;;  %p850_p5 = scmp.ge.s32.totalorder %s1064_s19, 4 }
   0x6   : > { %s1225_s20 = smov (%p27_p0, %s26_s20), 0  ;;  %p51_p3 = por %p50_p2, %p49_p1 }
   0x7   : > { %s38_s21 = ssub.s32 %s1060_s18, %s1225_s20  ;;  %195 = sbr.rel (%p850_p5) target bundleno = 21 (0x15), region = 24 }
   0x8   : > { %p40_p4 = scmp.eq.s32.totalorder %s38_s21, 0 }
   0xa   : > { %s1127_s23 = scalar_select %p40_p4, %s1052_s16, %s42_s22  }
   0xe   : > { %198 = sbr.rel (!%p51_p3) target bundleno = 21 (0x15), region = 28  ;;  %s200_s24 = sand.u32 (%p51_p3), 1, %s1052_s16  }
   0xf   : > { %s902_s25 = sshll.u32 (%p51_p3), %s1060_s18, 4  ;;  %s851_s26 = sshll.u32 (%p51_p3), %s200_s24, 5 }
  0x10   : > { %s208_s29 = scalar_lea.vmem (%p51_p3), %s1215_s0, %s902_s25  ;;  %s202_s30 = scalar_lea.vmem (%p51_p3), [#allocation3], %s851_s26 }
  0x11   : > { %v221_v0 = vld [vmem:[%s208_s29] sm:$0xff] (%p51_p3)  ;;  %v223_v1 = vld [vmem:[%s208_s29 + $0x8] sm:$0xff] (%p51_p3) }
  0x12   : > { %v225_v2 = vld [vmem:[%s208_s29 + $0x40] sm:$0xff] (%p51_p3)  ;;  %222 = vst [vmem:[%s202_s30] sm:$0xff] (%p51_p3), %v221_v0  ;;  %224 = vst [vmem:[%s202_s30 + $0x8] sm:$0xff] (%p51_p3), %v223_v1  ;;  %v227_v3 = vld [vmem:[%s208_s29 + $0x48] sm:$0xff] (%p51_p3) }
  0x13   : > { %226 = vst [vmem:[%s202_s30 + $0x10] sm:$0xff] (%p51_p3), %v225_v2  ;;  %228 = vst [vmem:[%s202_s30 + $0x18] sm:$0xff] (%p51_p3), %v227_v3 }
  0x15 PF: > { %p854_p6 = scmp.ge.s32.totalorder %s1064_s19, 1  ;;  %p245_p7 = scmp.lt.s32.totalorder %s1064_s19, 5 }
  0x17   : > { %p246_p8 = pnand %p854_p6, %p245_p7 }
  0x18   : > { %s252_s5 = sand.u32 (!%p246_p8), 1, %s1048_s15   ;;  %s856_s6 = sshll.u32 (!%p246_p8), %s1056_s17, 6 }
  0x19   : > { %249 = sbr.rel (%p246_p8) target bundleno = 308 (0x134), region = 55  ;;  %s855_s7 = sshll.u32 (!%p246_p8), %s252_s5, 5 }
  0x1a   : > { %p297_p9 = scmp.lt.s32.totalorder (!%p246_p8), %s856_s6, 255  ;;  %s1144_s12 = scalar_lea.vmem (!%p246_p8), [#allocation3], %s855_s7 }
  0x1b   : > { %p858_p10 = scmp.ne.s32.totalorder (!%p246_p8), %s1056_s17, 0 }
  0x20   : > { %s1227_s6 = smov (!%p297_p9, %s856_s6), 255  ;;  %324 = sbr.rel (%p858_p10) target bundleno = 39 (0x27), region = 63 }
  0x21   : > { %s857_s8 = sshll.u32 %s1227_s6, 2  ;;  %vm325_vm0 = vcmask (!%p858_p10), 80896   ;;  %v1066_v4 = vmov (!%p858_p10), 0.0  }
  0x22   : > { %s1142_s11 = scalar_lea.vmem %s1216_s1, %s857_s8  ;;  %326 = vst.msk [vmem:[#allocation2] sm:$0xff] (!%p858_p10), %vm325_vm0, %v1066_v4  ;;  %327 = vst.msk [vmem:[#allocation2 + $0x8] sm:$0xff] (!%p858_p10), %vm325_vm0, %v1066_v4 }
  0x27 PF: > { %v988_v5 = vld [vmem:[%s1142_s11 + $0x40] sm:$0xff]   ;;  %v992_v9 = vld [vmem:[%s1142_s11 + $0x48] sm:$0xff]   ;;  %v996_v13 = vld [vmem:[%s1142_s11 + $0x50] sm:$0xff]   ;;  %vm694_vm1 = vcmask 80896   ;;  %p895_p11 = scmp.ne.s32.totalorder %s1056_s17, 3 }
  0x28   : > { %v989_v6 = vld [vmem:[%s1142_s11 + $0xc0] sm:$0xff]   ;;  %903 = vmatprep.subr.bf16.mxu0 %v988_v5  ;;  %v993_v10 = vld [vmem:[%s1142_s11 + $0xc8] sm:$0xff]   ;;  %v997_v14 = vld [vmem:[%s1142_s11 + $0xd0] sm:$0xff]  }
  0x29   : > { %v990_v7 = vld [vmem:[%s1142_s11] sm:$0xff]   ;;  %925 = vmatprep.subr.bf16.mxu1 %v989_v6  ;;  %v994_v11 = vld [vmem:[%s1142_s11 + $0x8] sm:$0xff]   ;;  %v998_v15 = vld [vmem:[%s1142_s11 + $0x10] sm:$0xff]  }
  0x2a   : > { %v991_v8 = vld [vmem:[%s1142_s11 + $0x80] sm:$0xff]   ;;  %904 = vmatpush3.bf16.msra.mxu0 %v990_v7  ;;  %v995_v12 = vld [vmem:[%s1142_s11 + $0x88] sm:$0xff]   ;;  %v999_v16 = vld [vmem:[%s1142_s11 + $0x90] sm:$0xff]  }
  0x2b   : > { %926 = vmatpush3.bf16.msra.mxu1 %v991_v8  ;;  %905 = vmatprep.subr.bf16.mxu0 %v992_v9  ;;  %v1000_v17 = vld [vmem:[%s1142_s11 + $0x58] sm:$0xff]   ;;  %v1004_v21 = vld [vmem:[%s1142_s11 + $0x60] sm:$0xff]   ;;  %v1008_v25 = vld [vmem:[%s1142_s11 + $0x68] sm:$0xff]  }
  0x2c   : > { %927 = vmatprep.subr.bf16.mxu1 %v993_v10  ;;  %v1001_v18 = vld [vmem:[%s1142_s11 + $0xd8] sm:$0xff]   ;;  %v1005_v22 = vld [vmem:[%s1142_s11 + $0xe0] sm:$0xff]   ;;  %v1009_v26 = vld [vmem:[%s1142_s11 + $0xe8] sm:$0xff]  }
  0x2d   : > { %v1002_v19 = vld [vmem:[%s1142_s11 + $0x18] sm:$0xff]   ;;  %v1006_v23 = vld [vmem:[%s1142_s11 + $0x20] sm:$0xff]   ;;  %v1010_v27 = vld [vmem:[%s1142_s11 + $0x28] sm:$0xff]  }
  0x2e   : > { %906 = vmatpush3.bf16.msra.mxu0 %v994_v11  ;;  %v1003_v20 = vld [vmem:[%s1142_s11 + $0x98] sm:$0xff]   ;;  %v1007_v24 = vld [vmem:[%s1142_s11 + $0xa0] sm:$0xff]   ;;  %v1011_v28 = vld [vmem:[%s1142_s11 + $0xa8] sm:$0xff]  }
  0x2f   : > { %928 = vmatpush3.bf16.msra.mxu1 %v995_v12  ;;  %907 = vmatprep.subr.bf16.mxu0 %v996_v13  ;;  %v1012_v29 = vld [vmem:[%s1142_s11 + $0x70] sm:$0xff]   ;;  %v1016_v33 = vld [vmem:[%s1142_s11 + $0x78] sm:$0xff]   ;;  %v328_v50 = vld [vmem:[#allocation2] sm:$0xff] }
  0x30   : > { %929 = vmatprep.subr.bf16.mxu1 %v997_v14  ;;  %v1013_v30 = vld [vmem:[%s1142_s11 + $0xf0] sm:$0xff]   ;;  %v1017_v34 = vld [vmem:[%s1142_s11 + $0xf8] sm:$0xff]   ;;  %v329_v55 = vld [vmem:[#allocation2 + $0x8] sm:$0xff] }
  0x31   : > { %v1014_v31 = vld [vmem:[%s1142_s11 + $0x30] sm:$0xff]   ;;  %v1018_v35 = vld [vmem:[%s1142_s11 + $0x38] sm:$0xff]   ;;  %v896_v60 = vld [vmem:[%s1217_s2] ss:$0 sm:$0xff] (!%p895_p11) }
  0x32   : > { %908 = vmatpush3.bf16.msra.mxu0 %v998_v15  ;;  %v1015_v32 = vld [vmem:[%s1142_s11 + $0xb0] sm:$0xff]   ;;  %v1019_v36 = vld [vmem:[%s1142_s11 + $0xb8] sm:$0xff]   ;;  %v897_v61 = vld [vmem:[%s1218_s3] ss:$0 sm:$0xff] (!%p895_p11) }
  0x33   : > { %930 = vmatpush3.bf16.msra.mxu1 %v999_v16  ;;  %909 = vmatprep.subr.bf16.mxu0 %v1000_v17  ;;  %v1020_v37 = vld [vmem:[%s1144_s12] ss:$16 sps:$4 sm:$0xff]   ;;  %v1022_v38 = vld [vmem:[%s1144_s12 + $0x4] ss:$16 sps:$4 sm:$0xff]   ;;  %v1023_v39 = vld [vmem:[%s1144_s12 + $0x8] ss:$16 sps:$4 sm:$0xff]  }
  0x34   : > { %931 = vmatprep.subr.bf16.mxu1 %v1001_v18  ;;  %v1025_v40 = vld [vmem:[%s1144_s12 + $0xc] ss:$16 sps:$4 sm:$0xff]   ;;  %642 = vmatprep.mubr.bf16.mxu0 %v1022_v38 }
  0x35   : > { %683 = vmatprep.mubr.bf16.mxu1 %v1025_v40 }
  0x36   : > { %910 = vmatpush3.bf16.msra.mxu0 %v1002_v19 }
  0x37   : > { %932 = vmatpush3.bf16.msra.mxu1 %v1003_v20  ;;  %911 = vmatprep.subr.bf16.mxu0 %v1004_v21 }
  0x38   : > { %933 = vmatprep.subr.bf16.mxu1 %v1005_v22 }
  0x3a   : > { %912 = vmatpush3.bf16.msra.mxu0 %v1006_v23 }
  0x3b   : > { %934 = vmatpush3.bf16.msra.mxu1 %v1007_v24  ;;  %913 = vmatprep.subr.bf16.mxu0 %v1008_v25 }
  0x3c   : > { %935 = vmatprep.subr.bf16.mxu1 %v1009_v26 }
  0x3e   : > { %914 = vmatpush3.bf16.msra.mxu0 %v1010_v27 }
  0x3f   : > { %936 = vmatpush3.bf16.msra.mxu1 %v1011_v28  ;;  %915 = vmatprep.subr.bf16.mxu0 %v1012_v29 }
  0x40   : > { %937 = vmatprep.subr.bf16.mxu1 %v1013_v30 }
  0x42   : > { %916 = vmatpush3.bf16.msra.mxu0 %v1014_v31 }
  0x43   : > { %938 = vmatpush3.bf16.msra.mxu1 %v1015_v32  ;;  %917 = vmatprep.subr.bf16.mxu0 %v1016_v33 }
  0x44   : > { %939 = vmatprep.subr.bf16.mxu1 %v1017_v34 }
  0x46   : > { %918 = vmatpush3.bf16.msra.mxu0 %v1018_v35 }
  0x47   : > { %940 = vmatpush3.bf16.msra.mxu1 %v1019_v36 }
  0x49   : > { %643 = vmatmul.mubr.bf16.vlgmr.msra.gmra.mrb[0].mxu0 %v1020_v37 }
  0x4a   : > { %684 = vmatmul.mubr.bf16.vlgmr.msra.gmra.mrb[0].mxu1 %v1023_v39 }
 0x11c   : > { %v919_v41 = vpop.f32.mrb[0].mxu0 }
 0x11d   : > { %v941_v42 = vpop.f32.mrb[0].mxu1  ;;  %v920_v43 = vpop.f32.mrb[1].mxu0 }
 0x11e   : > { %v921_v44 = vadd.f32 %v920_v43, %v919_v41  ;;  %v942_v45 = vpop.f32.mrb[1].mxu1  ;;  %v922_v46 = vpop.f32.mrb[2].mxu0 }
 0x11f   : > { %v943_v47 = vadd.f32 %v942_v45, %v941_v42  ;;  %v944_v48 = vpop.f32.mrb[2].mxu1  ;;  %v923_v49 = vpop.f32.mrb[3].mxu0 }
 0x120   : > { %v924_v51 = vadd.f32 %v923_v49, %v922_v46  ;;  %v945_v52 = vpop.f32.mrb[3].mxu1 }
 0x121   : > { %v686_v53 = vadd.f32 %v943_v47, %v921_v44  ;;  %v946_v54 = vadd.f32 %v945_v52, %v944_v48  ;;  %700 = sbr.rel (%p895_p11) target bundleno = 308 (0x134), region = 67 }
 0x123   : > { %v692_v56 = vadd.f32 %v686_v53, %v328_v50  ;;  %v689_v57 = vadd.f32 %v946_v54, %v924_v51 }
 0x125   : > { %695 = vst.msk [vmem:[#allocation2] sm:$0xff] %vm694_vm1, %v692_v56  ;;  %v693_v58 = vadd.f32 %v689_v57, %v329_v55 }
 0x127   : > { %696 = vst.msk [vmem:[#allocation2 + $0x8] sm:$0xff] %vm694_vm1, %v693_v58 }
 0x12c   : > { %v701_v59 = vld [vmem:[#allocation2] sm:$0xff] }
 0x12d   : > { %v710_v62 = vmul.f32 %v896_v60, %v701_v59 }
 0x12e   : > { %v702_v63 = vld [vmem:[#allocation2 + $0x8] sm:$0xff] }
 0x12f   : > { %v711_v0 = vmul.f32 %v896_v60, %v702_v63  ;;  %v719_v1 = vadd.f32 %v897_v61, %v710_v62 }
 0x131   : > { %v720_v2 = vadd.f32 %v897_v61, %v711_v0  ;;  %721 = vst.msk [vmem:[%s1219_s4] sm:$0xff] %vm694_vm1, %v719_v1 }
 0x133   : > { %722 = vst.msk [vmem:[%s1219_s4 + $0x8] sm:$0xff] %vm694_vm1, %v720_v2 }
 0x134 PF: > { %s14_s19 = sadd.s32 1, %s1064_s19   ;;  %s1220_s15 = smov %s1052_s16 }
 0x135   : > { %p11_p12 = scmp.ge.s32.totalorder %s14_s19, 6   ;;  %s1221_s16 = smov %s1127_s23 }
 0x136   : > { %s1222_s17 = smov %s1060_s18  ;;  %s1223_s18 = smov %s1225_s20 }
 0x137   :  { %13 = sbr.rel (!%p11_p12) target bundleno = 3 (0x3), region = 111 }

</bundles_post_ra>
